<compile_context>
chip_gen: v7x
topology: tpu7x:2x2x1
jax: 0.10.0
libtpu: 0.0.40
codegen_flags: <defaults>
</compile_context>

<pallas_src>
import functools
import math

import jax
import jax.numpy as jnp
from jax.experimental import pallas as pl
from jax.experimental.pallas import tpu as pltpu

LN_EPS = 1e-5
VMEM_LIMIT = 32 * 1024 * 1024


# ---------------------------------------------------------------------------
# In-kernel building blocks (plain Python helpers traced inside the kernels)
# ---------------------------------------------------------------------------

def _layer_norm(x, gamma, beta):
    mu = jnp.mean(x, axis=-1, keepdims=True)
    var = jnp.mean((x - mu) * (x - mu), axis=-1, keepdims=True)
    return (x - mu) * jax.lax.rsqrt(var + LN_EPS) * gamma + beta


def _linear_layer_norm(x2, w_ref, b_ref, g_ref, beta_ref):
    """LayerNorm(x @ W + b) on a 2-D (rows, Din) activation block."""
    y = jnp.dot(x2.astype(w_ref.dtype), w_ref[...],
                preferred_element_type=jnp.float32) + b_ref[...]
    return _layer_norm(y, g_ref[...], beta_ref[...])


def _mha_block(x2, batch, seq, num_heads,
               wq_ref, wk_ref, wv_ref, bq_ref, bk_ref, bv_ref, wo_ref, bo_ref):
    """Multi-head self-attention (eval mode) on a flattened (B*S, E) block.

    wq/wk/wv: (H, Dh, E) bf16  (lane-dense minor dim, q_h = x @ wq[h]^T)
    wo:       (E, E)     bf16  (out = concat_h(o_h) @ wo, read per head via
                                sublane-aligned row slices)
    Accumulation is float32.
    """
    embed = wo_ref.shape[1]
    dh = embed // num_heads
    scale = 1.0 / math.sqrt(dh)
    contract_last = (((1,), (1,)), ((), ()))          # x (N,E) . w (Dh,E)^T
    xb = x2.astype(wq_ref.dtype)

    acc = jnp.zeros((batch * seq, embed), jnp.float32)
    for h in range(num_heads):                        # static unroll (H = 8)
        q = jax.lax.dot_general(xb, wq_ref[h], contract_last,
                                preferred_element_type=jnp.float32) + bq_ref[h]
        k = jax.lax.dot_general(xb, wk_ref[h], contract_last,
                                preferred_element_type=jnp.float32) + bk_ref[h]
        v = jax.lax.dot_general(xb, wv_ref[h], contract_last,
                                preferred_element_type=jnp.float32) + bv_ref[h]
        q3 = q.reshape(batch, seq, dh)
        k3 = k.reshape(batch, seq, dh)
        v3 = v.reshape(batch, seq, dh)
        s = jnp.einsum("bqd,bkd->bqk", q3, k3,
                       preferred_element_type=jnp.float32) * scale
        s = s - jnp.max(s, axis=-1, keepdims=True)
        p = jnp.exp(s)
        p = p * pl.reciprocal(jnp.sum(p, axis=-1, keepdims=True), approx=True)
        o_h = jnp.einsum("bqk,bkd->bqd", p, v3,
                         preferred_element_type=jnp.float32)
        o_h = o_h.reshape(batch * seq, dh)
        acc = acc + jnp.dot(o_h.astype(wo_ref.dtype),
                            wo_ref[pl.ds(h * dh, dh), :],
                            preferred_element_type=jnp.float32)
    return acc + bo_ref[...]


# ---------------------------------------------------------------------------
# Pallas kernels
# ---------------------------------------------------------------------------

def _modality_kernel(x_ref, wq_ref, wk_ref, wv_ref, bq_ref, bk_ref, bv_ref,
                     wo_ref, bo_ref, wl_ref, bl_ref, g_ref, beta_ref,
                     norm_ref, mean_ref, *, num_heads):
    """Self-attention -> Linear -> LayerNorm for one modality (text / video)."""
    batch, seq, embed = x_ref.shape
    x2 = x_ref[...].reshape(batch * seq, embed)
    attn = _mha_block(x2, batch, seq, num_heads,
                      wq_ref, wk_ref, wv_ref, bq_ref, bk_ref, bv_ref,
                      wo_ref, bo_ref)
    y = _linear_layer_norm(attn, wl_ref, bl_ref, g_ref, beta_ref)
    y3 = y.reshape(batch, seq, y.shape[-1])
    norm_ref[...] = y3
    mean_ref[...] = jnp.mean(y3, axis=1)


def _fusion_kernel(text_ref, audio_ref, video_ref, aln_g_ref, aln_b_ref,
                   wq_ref, wk_ref, wv_ref, bq_ref, bk_ref, bv_ref,
                   wo_ref, bo_ref, wl_ref, bl_ref, g_ref, beta_ref,
                   w1_ref, b1_ref, w2_ref, b2_ref,
                   logits_ref, cls_ref, amean_ref, fuse_ref, *, num_heads):
    """Audio LN + concat + fusion MHA + Linear + LN + cls + classifier head."""
    batch, s_text, dim = text_ref.shape
    s_audio = audio_ref.shape[1]
    s_video = video_ref.shape[1]
    s_total = s_text + s_audio + s_video

    # audio layer-norm (+ mean over frames, part of the module's return)
    a_norm = _layer_norm(audio_ref[...], aln_g_ref[...], aln_b_ref[...])
    amean_ref[...] = jnp.mean(a_norm, axis=1)

    # assemble the fused sequence (text | audio | video) in a VMEM scratch
    fuse_ref[:, 0:s_text, :] = text_ref[...]
    fuse_ref[:, s_text:s_text + s_audio, :] = a_norm
    fuse_ref[:, s_text + s_audio:s_total, :] = video_ref[...]

    x2 = fuse_ref[...].reshape(batch * s_total, dim)
    attn = _mha_block(x2, batch, s_total, num_heads,
                      wq_ref, wk_ref, wv_ref, bq_ref, bk_ref, bv_ref,
                      wo_ref, bo_ref)
    y = _linear_layer_norm(attn, wl_ref, bl_ref, g_ref, beta_ref)
    y3 = y.reshape(batch, s_total, y.shape[-1])

    # fusion_head_output_type == 'cls'
    cls = y3[:, 0, :]                                   # (B, 128)
    cls_ref[...] = cls

    # dropout (inference identity) -> Linear(128,64) -> leaky_relu -> classifier
    h = jnp.dot(cls, w1_ref[...], preferred_element_type=jnp.float32) + b1_ref[...]
    h = jnp.where(h > 0, h, 0.01 * h)                   # leaky_relu slope 0.01
    logits_ref[...] = (jnp.dot(h, w2_ref[...], preferred_element_type=jnp.float32)
                       + b2_ref[...])


# ---------------------------------------------------------------------------
# pallas_call wrappers (grid-less: B and S are tiny, weights DMA'd once)
# ---------------------------------------------------------------------------

def modality_forward(x, attn, lin_w, lin_b, ln_g, ln_b, *, num_heads):
    batch, seq, _ = x.shape
    d_out = lin_w.shape[1]
    kernel = functools.partial(_modality_kernel, num_heads=num_heads)
    return pl.pallas_call(
        kernel,
        out_shape=(jax.ShapeDtypeStruct((batch, seq, d_out), jnp.float32),
                   jax.ShapeDtypeStruct((batch, d_out), jnp.float32)),
        compiler_params=pltpu.CompilerParams(vmem_limit_bytes=VMEM_LIMIT),
    )(x, attn["wq"], attn["wk"], attn["wv"],
      attn["bq"], attn["bk"], attn["bv"], attn["wo"], attn["bo"],
      lin_w, lin_b, ln_g, ln_b)


def fusion_forward(text_norm, audio_raw, video_norm, aln_g, aln_b, attn,
                   lin_w, lin_b, ln_g, ln_b, w1, b1, w2, b2, *, num_heads):
    batch, s_text, dim = text_norm.shape
    s_total = s_text + audio_raw.shape[1] + video_norm.shape[1]
    d_fuse = lin_w.shape[1]
    n_cls = w2.shape[1]
    kernel = functools.partial(_fusion_kernel, num_heads=num_heads)
    return pl.pallas_call(
        kernel,
        out_shape=(jax.ShapeDtypeStruct((batch, n_cls), jnp.float32),
                   jax.ShapeDtypeStruct((batch, d_fuse), jnp.float32),
                   jax.ShapeDtypeStruct((batch, dim), jnp.float32)),
        scratch_shapes=[pltpu.VMEM((batch, s_total, dim), jnp.float32)],
        compiler_params=pltpu.CompilerParams(vmem_limit_bytes=VMEM_LIMIT),
    )(text_norm, audio_raw, video_norm, aln_g, aln_b,
      attn["wq"], attn["wk"], attn["wv"],
      attn["bq"], attn["bk"], attn["bv"], attn["wo"], attn["bo"],
      lin_w, lin_b, ln_g, ln_b, w1, b1, w2, b2)


# ---------------------------------------------------------------------------
# Parameter construction (deterministic, synthetic) + full forward
# ---------------------------------------------------------------------------

def _normal(key, shape, scale=0.05):
    return scale * jax.random.normal(key, shape, jnp.float32)


def make_mha_params(key, embed_dim, num_heads):
    dh = embed_dim // num_heads
    ks = jax.random.split(key, 4)
    return dict(
        # per-head projections stored (H, Dh, E): q_h = x @ wq[h]^T
        # (same row layout as PyTorch's in_proj_weight[h*Dh:(h+1)*Dh, :])
        wq=_normal(ks[0], (num_heads, dh, embed_dim)).astype(jnp.bfloat16),
        wk=_normal(ks[1], (num_heads, dh, embed_dim)).astype(jnp.bfloat16),
        wv=_normal(ks[2], (num_heads, dh, embed_dim)).astype(jnp.bfloat16),
        bq=jnp.zeros((num_heads, 1, dh), jnp.float32),
        bk=jnp.zeros((num_heads, 1, dh), jnp.float32),
        bv=jnp.zeros((num_heads, 1, dh), jnp.float32),
        # out-projection stored transposed (E, E): out = concat_h(o_h) @ wo
        wo=_normal(ks[3], (embed_dim, embed_dim)).astype(jnp.bfloat16),
        bo=jnp.zeros((1, embed_dim), jnp.float32),
    )


def make_params(key, num_classes=4, num_attention_head=8,
                text_encoder_dim=768, audio_encoder_dim=128,
                video_encoder_dim=768):
    ks = jax.random.split(key, 8)
    p = {}
    p["text_attention"] = make_mha_params(ks[0], text_encoder_dim, num_attention_head)
    p["video_attention"] = make_mha_params(ks[1], video_encoder_dim, num_attention_head)
    p["fusion_attention"] = make_mha_params(ks[2], audio_encoder_dim, num_attention_head)
    p["audio_ln_g"] = jnp.ones((1, audio_encoder_dim), jnp.float32)
    p["audio_ln_b"] = jnp.zeros((1, audio_encoder_dim), jnp.float32)
    p["text_linear_w"] = _normal(ks[3], (text_encoder_dim, audio_encoder_dim)).astype(jnp.bfloat16)
    p["text_linear_b"] = jnp.zeros((1, audio_encoder_dim), jnp.float32)
    p["text_ln_g"] = jnp.ones((1, audio_encoder_dim), jnp.float32)
    p["text_ln_b"] = jnp.zeros((1, audio_encoder_dim), jnp.float32)
    p["video_linear_w"] = _normal(ks[4], (video_encoder_dim, audio_encoder_dim)).astype(jnp.bfloat16)
    p["video_linear_b"] = jnp.zeros((1, audio_encoder_dim), jnp.float32)
    p["video_ln_g"] = jnp.ones((1, audio_encoder_dim), jnp.float32)
    p["video_ln_b"] = jnp.zeros((1, audio_encoder_dim), jnp.float32)
    p["fusion_linear_w"] = _normal(ks[5], (audio_encoder_dim, 128)).astype(jnp.bfloat16)
    p["fusion_linear_b"] = jnp.zeros((1, 128), jnp.float32)
    p["fusion_ln_g"] = jnp.ones((1, 128), jnp.float32)
    p["fusion_ln_b"] = jnp.zeros((1, 128), jnp.float32)
    p["linear_w"] = _normal(ks[6], (128, 64))
    p["linear_b"] = jnp.zeros((1, 64), jnp.float32)
    p["classifier_w"] = _normal(ks[7], (64, num_classes))
    p["classifier_b"] = jnp.zeros((1, num_classes), jnp.float32)
    return p


def mmsera_tav_forward(params, text_embeddings, audio_embeddings, video_embedding,
                       num_heads=8):
    """Forward pass (fusion_head_output_type='cls', audio_norm_type='layer_norm')."""
    # text: self-attention -> Linear(768,128) -> LayerNorm    (one fused kernel)
    text_norm, text_mean = modality_forward(
        text_embeddings, params["text_attention"],
        params["text_linear_w"], params["text_linear_b"],
        params["text_ln_g"], params["text_ln_b"], num_heads=num_heads)

    # video: same pipeline (its seq-mean output is unused, as in the module)
    video_norm, _ = modality_forward(
        video_embedding, params["video_attention"],
        params["video_linear_w"], params["video_linear_b"],
        params["video_ln_g"], params["video_ln_b"], num_heads=num_heads)

    # fusion: audio LN + in-VMEM concat + self-attention + Linear + LayerNorm
    #         + cls slice + classifier head                   (one fused kernel)
    logits, cls_token, audio_mean = fusion_forward(
        text_norm, audio_embeddings, video_norm,
        params["audio_ln_g"], params["audio_ln_b"],
        params["fusion_attention"],
        params["fusion_linear_w"], params["fusion_linear_b"],
        params["fusion_ln_g"], params["fusion_ln_b"],
        params["linear_w"], params["linear_b"],
        params["classifier_w"], params["classifier_b"], num_heads=num_heads)

    return logits, cls_token, text_mean, audio_mean


if __name__ == "__main__":
    B = 2           # batch
    S_TEXT = 8      # text sequence length (BERT last_hidden_state tokens)
    S_AUDIO = 8     # audio sequence length (VGGish frames)
    S_VIDEO = 8     # video sequence length
    TEXT_DIM = 768
    AUDIO_DIM = 128
    VIDEO_DIM = 768
    NUM_CLASSES = 4

    root = jax.random.PRNGKey(0)
    k_text, k_audio, k_video, k_params = jax.random.split(root, 4)

    text_embeddings = jax.random.normal(k_text, (B, S_TEXT, TEXT_DIM), jnp.float32)
    audio_embeddings = jax.random.normal(k_audio, (B, S_AUDIO, AUDIO_DIM), jnp.float32)
    video_embedding = jax.random.normal(k_video, (B, S_VIDEO, VIDEO_DIM), jnp.float32)

    params = make_params(k_params, num_classes=NUM_CLASSES)

    out, cls_token, text_mean, audio_mean = mmsera_tav_forward(
        params, text_embeddings, audio_embeddings, video_embedding)
    jax.block_until_ready((out, cls_token, text_mean, audio_mean))

    assert out.shape == (B, NUM_CLASSES)
    assert cls_token.shape == (B, 128)
    assert text_mean.shape == (B, 128)
    assert audio_mean.shape == (B, AUDIO_DIM)
    assert bool(jnp.all(jnp.isfinite(out)))
    assert bool(jnp.all(jnp.isfinite(cls_token)))
    print("KERNEL_OK")
</pallas_src>

<mosaic_0001>
module attributes {stable_mosaic.version = 11 : i64} {
  func.func @_modality_kernel(%arg0: memref<2x8x768xf32, #tpu.memory_space<vmem>>, %arg1: memref<8x96x768xbf16, #tpu.memory_space<vmem>>, %arg2: memref<8x96x768xbf16, #tpu.memory_space<vmem>>, %arg3: memref<8x96x768xbf16, #tpu.memory_space<vmem>>, %arg4: memref<8x1x96xf32, #tpu.memory_space<vmem>>, %arg5: memref<8x1x96xf32, #tpu.memory_space<vmem>>, %arg6: memref<8x1x96xf32, #tpu.memory_space<vmem>>, %arg7: memref<768x768xbf16, #tpu.memory_space<vmem>>, %arg8: memref<1x768xf32, #tpu.memory_space<vmem>>, %arg9: memref<768x128xbf16, #tpu.memory_space<vmem>>, %arg10: memref<1x128xf32, #tpu.memory_space<vmem>>, %arg11: memref<1x128xf32, #tpu.memory_space<vmem>>, %arg12: memref<1x128xf32, #tpu.memory_space<vmem>>, %arg13: memref<2x8x128xf32, #tpu.memory_space<vmem>>, %arg14: memref<2x128xf32, #tpu.memory_space<vmem>>) attributes {dimension_semantics = [], scalar_prefetch = 0 : i64, scratch_operands = 0 : i64, tpu.core_type = #tpu.core_type<tc>} {
    %c0 = arith.constant 0 : index
    %c0_0 = arith.constant 0 : index
    %c0_1 = arith.constant 0 : index
    %0 = vector.load %arg0[%c0, %c0_0, %c0_1] : memref<2x8x768xf32, #tpu.memory_space<vmem>>, vector<2x8x768xf32>
    %1 = vector.shape_cast %0 : vector<2x8x768xf32> to vector<16x768xf32>
    %2 = arith.truncf %1 : vector<16x768xf32> to vector<16x768xbf16>
    %cst = arith.constant 0.000000e+00 : f32
    %3 = vector.broadcast %cst : f32 to vector<16x768xf32>
    %c0_2 = arith.constant 0 : index
    %c0_3 = arith.constant 0 : index
    %c0_4 = arith.constant 0 : index
    %4 = vector.load %arg1[%c0_2, %c0_3, %c0_4] : memref<8x96x768xbf16, #tpu.memory_space<vmem>>, vector<1x96x768xbf16>
    %5 = vector.shape_cast %4 : vector<1x96x768xbf16> to vector<96x768xbf16>
    %cst_5 = arith.constant dense<0.000000e+00> : vector<16x96xf32>
    %6 = tpu.matmul %2, %5, %cst_5 {dimension_numbers = #tpu.dot_dimension_numbers<[1], [1], [0], [0], [0, 0, 1, 0], [], []>} : vector<16x768xbf16>, vector<96x768xbf16>, vector<16x96xf32> -> vector<16x96xf32>
    %c0_6 = arith.constant 0 : index
    %c0_7 = arith.constant 0 : index
    %c0_8 = arith.constant 0 : index
    %7 = vector.load %arg4[%c0_6, %c0_7, %c0_8] : memref<8x1x96xf32, #tpu.memory_space<vmem>>, vector<1x1x96xf32>
    %8 = vector.shape_cast %7 : vector<1x1x96xf32> to vector<1x96xf32>
    %9 = vector.broadcast %8 : vector<1x96xf32> to vector<16x96xf32>
    %10 = arith.addf %6, %9 : vector<16x96xf32>
    %c0_9 = arith.constant 0 : index
    %c0_10 = arith.constant 0 : index
    %c0_11 = arith.constant 0 : index
    %11 = vector.load %arg2[%c0_9, %c0_10, %c0_11] : memref<8x96x768xbf16, #tpu.memory_space<vmem>>, vector<1x96x768xbf16>
    %12 = vector.shape_cast %11 : vector<1x96x768xbf16> to vector<96x768xbf16>
    %cst_12 = arith.constant dense<0.000000e+00> : vector<16x96xf32>
    %13 = tpu.matmul %2, %12, %cst_12 {dimension_numbers = #tpu.dot_dimension_numbers<[1], [1], [0], [0], [0, 0, 1, 0], [], []>} : vector<16x768xbf16>, vector<96x768xbf16>, vector<16x96xf32> -> vector<16x96xf32>
    %c0_13 = arith.constant 0 : index
    %c0_14 = arith.constant 0 : index
    %c0_15 = arith.constant 0 : index
    %14 = vector.load %arg5[%c0_13, %c0_14, %c0_15] : memref<8x1x96xf32, #tpu.memory_space<vmem>>, vector<1x1x96xf32>
    %15 = vector.shape_cast %14 : vector<1x1x96xf32> to vector<1x96xf32>
    %16 = vector.broadcast %15 : vector<1x96xf32> to vector<16x96xf32>
    %17 = arith.addf %13, %16 : vector<16x96xf32>
    %c0_16 = arith.constant 0 : index
    %c0_17 = arith.constant 0 : index
    %c0_18 = arith.constant 0 : index
    %18 = vector.load %arg3[%c0_16, %c0_17, %c0_18] : memref<8x96x768xbf16, #tpu.memory_space<vmem>>, vector<1x96x768xbf16>
    %19 = vector.shape_cast %18 : vector<1x96x768xbf16> to vector<96x768xbf16>
    %cst_19 = arith.constant dense<0.000000e+00> : vector<16x96xf32>
    %20 = tpu.matmul %2, %19, %cst_19 {dimension_numbers = #tpu.dot_dimension_numbers<[1], [1], [0], [0], [0, 0, 1, 0], [], []>} : vector<16x768xbf16>, vector<96x768xbf16>, vector<16x96xf32> -> vector<16x96xf32>
    %c0_20 = arith.constant 0 : index
    %c0_21 = arith.constant 0 : index
    %c0_22 = arith.constant 0 : index
    %21 = vector.load %arg6[%c0_20, %c0_21, %c0_22] : memref<8x1x96xf32, #tpu.memory_space<vmem>>, vector<1x1x96xf32>
    %22 = vector.shape_cast %21 : vector<1x1x96xf32> to vector<1x96xf32>
    %23 = vector.broadcast %22 : vector<1x96xf32> to vector<16x96xf32>
    %24 = arith.addf %20, %23 : vector<16x96xf32>
    %25 = vector.shape_cast %10 : vector<16x96xf32> to vector<2x8x96xf32>
    %26 = vector.shape_cast %17 : vector<16x96xf32> to vector<2x8x96xf32>
    %27 = vector.shape_cast %24 : vector<16x96xf32> to vector<2x8x96xf32>
    "tpu.trace_start"() <{level = 10 : i32, message = "bqd,bkd->bqk"}> : () -> ()
    %cst_23 = arith.constant dense<0.000000e+00> : vector<2x8x8xf32>
    %28 = tpu.matmul %25, %26, %cst_23 {dimension_numbers = #tpu.dot_dimension_numbers<[2], [2], [1], [1], [0, 0, 0, 1, 1, 1], [0], [0]>} : vector<2x8x96xf32>, vector<2x8x96xf32>, vector<2x8x8xf32> -> vector<2x8x8xf32>
    "tpu.trace_stop"() : () -> ()
    %cst_24 = arith.constant 0.102062076 : f32
    %29 = vector.broadcast %cst_24 : f32 to vector<2x8x8xf32>
    %30 = arith.mulf %28, %29 : vector<2x8x8xf32>
    %cst_25 = arith.constant dense<0xFF800000> : vector<2x8xf32>
    %31 = vector.multi_reduction <maximumf>, %30, %cst_25 [2] : vector<2x8x8xf32> to vector<2x8xf32>
    %32 = vector.shape_cast %31 : vector<2x8xf32> to vector<2x8x1xf32>
    %33 = vector.broadcast %32 : vector<2x8x1xf32> to vector<2x8x8xf32>
    %34 = arith.subf %30, %33 : vector<2x8x8xf32>
    %35 = math.exp %34 : vector<2x8x8xf32>
    %cst_26 = arith.constant dense<0.000000e+00> : vector<2x8xf32>
    %36 = vector.multi_reduction <add>, %35, %cst_26 [2] : vector<2x8x8xf32> to vector<2x8xf32>
    %37 = vector.shape_cast %36 : vector<2x8xf32> to vector<2x8x1xf32>
    %38 = tpu.reciprocal %37 {approx = true} : vector<2x8x1xf32> -> vector<2x8x1xf32>
    %39 = vector.broadcast %38 : vector<2x8x1xf32> to vector<2x8x8xf32>
    %40 = arith.mulf %35, %39 : vector<2x8x8xf32>
    "tpu.trace_start"() <{level = 10 : i32, message = "bqk,bkd->bqd"}> : () -> ()
    %cst_27 = arith.constant dense<0.000000e+00> : vector<2x8x96xf32>
    %41 = tpu.matmul %40, %27, %cst_27 {dimension_numbers = #tpu.dot_dimension_numbers<[2], [1], [1], [2], [0, 0, 0, 1, 1, 2], [0], [0]>} : vector<2x8x8xf32>, vector<2x8x96xf32>, vector<2x8x96xf32> -> vector<2x8x96xf32>
    "tpu.trace_stop"() : () -> ()
    %42 = vector.shape_cast %41 : vector<2x8x96xf32> to vector<16x96xf32>
    %43 = arith.truncf %42 : vector<16x96xf32> to vector<16x96xbf16>
    %c0_28 = arith.constant 0 : index
    %c0_29 = arith.constant 0 : index
    %44 = vector.load %arg7[%c0_28, %c0_29] : memref<768x768xbf16, #tpu.memory_space<vmem>>, vector<96x768xbf16>
    %cst_30 = arith.constant dense<0.000000e+00> : vector<16x768xf32>
    %45 = tpu.matmul %43, %44, %cst_30 {dimension_numbers = #tpu.dot_dimension_numbers<[1], [0], [0], [1], [0, 0, 1, 1], [], []>} : vector<16x96xbf16>, vector<96x768xbf16>, vector<16x768xf32> -> vector<16x768xf32>
    %46 = arith.addf %3, %45 : vector<16x768xf32>
    %c1 = arith.constant 1 : index
    %c0_31 = arith.constant 0 : index
    %c0_32 = arith.constant 0 : index
    %47 = vector.load %arg1[%c1, %c0_31, %c0_32] : memref<8x96x768xbf16, #tpu.memory_space<vmem>>, vector<1x96x768xbf16>
    %48 = vector.shape_cast %47 : vector<1x96x768xbf16> to vector<96x768xbf16>
    %cst_33 = arith.constant dense<0.000000e+00> : vector<16x96xf32>
    %49 = tpu.matmul %2, %48, %cst_33 {dimension_numbers = #tpu.dot_dimension_numbers<[1], [1], [0], [0], [0, 0, 1, 0], [], []>} : vector<16x768xbf16>, vector<96x768xbf16>, vector<16x96xf32> -> vector<16x96xf32>
    %c1_34 = arith.constant 1 : index
    %c0_35 = arith.constant 0 : index
    %c0_36 = arith.constant 0 : index
    %50 = vector.load %arg4[%c1_34, %c0_35, %c0_36] : memref<8x1x96xf32, #tpu.memory_space<vmem>>, vector<1x1x96xf32>
    %51 = vector.shape_cast %50 : vector<1x1x96xf32> to vector<1x96xf32>
    %52 = vector.broadcast %51 : vector<1x96xf32> to vector<16x96xf32>
    %53 = arith.addf %49, %52 : vector<16x96xf32>
    %c1_37 = arith.constant 1 : index
    %c0_38 = arith.constant 0 : index
    %c0_39 = arith.constant 0 : index
    %54 = vector.load %arg2[%c1_37, %c0_38, %c0_39] : memref<8x96x768xbf16, #tpu.memory_space<vmem>>, vector<1x96x768xbf16>
    %55 = vector.shape_cast %54 : vector<1x96x768xbf16> to vector<96x768xbf16>
    %cst_40 = arith.constant dense<0.000000e+00> : vector<16x96xf32>
    %56 = tpu.matmul %2, %55, %cst_40 {dimension_numbers = #tpu.dot_dimension_numbers<[1], [1], [0], [0], [0, 0, 1, 0], [], []>} : vector<16x768xbf16>, vector<96x768xbf16>, vector<16x96xf32> -> vector<16x96xf32>
    %c1_41 = arith.constant 1 : index
    %c0_42 = arith.constant 0 : index
    %c0_43 = arith.constant 0 : index
    %57 = vector.load %arg5[%c1_41, %c0_42, %c0_43] : memref<8x1x96xf32, #tpu.memory_space<vmem>>, vector<1x1x96xf32>
    %58 = vector.shape_cast %57 : vector<1x1x96xf32> to vector<1x96xf32>
    %59 = vector.broadcast %58 : vector<1x96xf32> to vector<16x96xf32>
    %60 = arith.addf %56, %59 : vector<16x96xf32>
    %c1_44 = arith.constant 1 : index
    %c0_45 = arith.constant 0 : index
    %c0_46 = arith.constant 0 : index
    %61 = vector.load %arg3[%c1_44, %c0_45, %c0_46] : memref<8x96x768xbf16, #tpu.memory_space<vmem>>, vector<1x96x768xbf16>
    %62 = vector.shape_cast %61 : vector<1x96x768xbf16> to vector<96x768xbf16>
    %cst_47 = arith.constant dense<0.000000e+00> : vector<16x96xf32>
    %63 = tpu.matmul %2, %62, %cst_47 {dimension_numbers = #tpu.dot_dimension_numbers<[1], [1], [0], [0], [0, 0, 1, 0], [], []>} : vector<16x768xbf16>, vector<96x768xbf16>, vector<16x96xf32> -> vector<16x96xf32>
    %c1_48 = arith.constant 1 : index
    %c0_49 = arith.constant 0 : index
    %c0_50 = arith.constant 0 : index
    %64 = vector.load %arg6[%c1_48, %c0_49, %c0_50] : memref<8x1x96xf32, #tpu.memory_space<vmem>>, vector<1x1x96xf32>
    %65 = vector.shape_cast %64 : vector<1x1x96xf32> to vector<1x96xf32>
    %66 = vector.broadcast %65 : vector<1x96xf32> to vector<16x96xf32>
    %67 = arith.addf %63, %66 : vector<16x96xf32>
    %68 = vector.shape_cast %53 : vector<16x96xf32> to vector<2x8x96xf32>
    %69 = vector.shape_cast %60 : vector<16x96xf32> to vector<2x8x96xf32>
    %70 = vector.shape_cast %67 : vector<16x96xf32> to vector<2x8x96xf32>
    "tpu.trace_start"() <{level = 10 : i32, message = "bqd,bkd->bqk"}> : () -> ()
    %cst_51 = arith.constant dense<0.000000e+00> : vector<2x8x8xf32>
    %71 = tpu.matmul %68, %69, %cst_51 {dimension_numbers = #tpu.dot_dimension_numbers<[2], [2], [1], [1], [0, 0, 0, 1, 1, 1], [0], [0]>} : vector<2x8x96xf32>, vector<2x8x96xf32>, vector<2x8x8xf32> -> vector<2x8x8xf32>
    "tpu.trace_stop"() : () -> ()
    %cst_52 = arith.constant 0.102062076 : f32
    %72 = vector.broadcast %cst_52 : f32 to vector<2x8x8xf32>
    %73 = arith.mulf %71, %72 : vector<2x8x8xf32>
    %cst_53 = arith.constant dense<0xFF800000> : vector<2x8xf32>
    %74 = vector.multi_reduction <maximumf>, %73, %cst_53 [2] : vector<2x8x8xf32> to vector<2x8xf32>
    %75 = vector.shape_cast %74 : vector<2x8xf32> to vector<2x8x1xf32>
    %76 = vector.broadcast %75 : vector<2x8x1xf32> to vector<2x8x8xf32>
    %77 = arith.subf %73, %76 : vector<2x8x8xf32>
    %78 = math.exp %77 : vector<2x8x8xf32>
    %cst_54 = arith.constant dense<0.000000e+00> : vector<2x8xf32>
    %79 = vector.multi_reduction <add>, %78, %cst_54 [2] : vector<2x8x8xf32> to vector<2x8xf32>
    %80 = vector.shape_cast %79 : vector<2x8xf32> to vector<2x8x1xf32>
    %81 = tpu.reciprocal %80 {approx = true} : vector<2x8x1xf32> -> vector<2x8x1xf32>
    %82 = vector.broadcast %81 : vector<2x8x1xf32> to vector<2x8x8xf32>
    %83 = arith.mulf %78, %82 : vector<2x8x8xf32>
    "tpu.trace_start"() <{level = 10 : i32, message = "bqk,bkd->bqd"}> : () -> ()
    %cst_55 = arith.constant dense<0.000000e+00> : vector<2x8x96xf32>
    %84 = tpu.matmul %83, %70, %cst_55 {dimension_numbers = #tpu.dot_dimension_numbers<[2], [1], [1], [2], [0, 0, 0, 1, 1, 2], [0], [0]>} : vector<2x8x8xf32>, vector<2x8x96xf32>, vector<2x8x96xf32> -> vector<2x8x96xf32>
    "tpu.trace_stop"() : () -> ()
    %85 = vector.shape_cast %84 : vector<2x8x96xf32> to vector<16x96xf32>
    %86 = arith.truncf %85 : vector<16x96xf32> to vector<16x96xbf16>
    %c96 = arith.constant 96 : index
    %c0_56 = arith.constant 0 : index
    %87 = vector.load %arg7[%c96, %c0_56] : memref<768x768xbf16, #tpu.memory_space<vmem>>, vector<96x768xbf16>
    %cst_57 = arith.constant dense<0.000000e+00> : vector<16x768xf32>
    %88 = tpu.matmul %86, %87, %cst_57 {dimension_numbers = #tpu.dot_dimension_numbers<[1], [0], [0], [1], [0, 0, 1, 1], [], []>} : vector<16x96xbf16>, vector<96x768xbf16>, vector<16x768xf32> -> vector<16x768xf32>
    %89 = arith.addf %46, %88 : vector<16x768xf32>
    %c2 = arith.constant 2 : index
    %c0_58 = arith.constant 0 : index
    %c0_59 = arith.constant 0 : index
    %90 = vector.load %arg1[%c2, %c0_58, %c0_59] : memref<8x96x768xbf16, #tpu.memory_space<vmem>>, vector<1x96x768xbf16>
    %91 = vector.shape_cast %90 : vector<1x96x768xbf16> to vector<96x768xbf16>
    %cst_60 = arith.constant dense<0.000000e+00> : vector<16x96xf32>
    %92 = tpu.matmul %2, %91, %cst_60 {dimension_numbers = #tpu.dot_dimension_numbers<[1], [1], [0], [0], [0, 0, 1, 0], [], []>} : vector<16x768xbf16>, vector<96x768xbf16>, vector<16x96xf32> -> vector<16x96xf32>
    %c2_61 = arith.constant 2 : index
    %c0_62 = arith.constant 0 : index
    %c0_63 = arith.constant 0 : index
    %93 = vector.load %arg4[%c2_61, %c0_62, %c0_63] : memref<8x1x96xf32, #tpu.memory_space<vmem>>, vector<1x1x96xf32>
    %94 = vector.shape_cast %93 : vector<1x1x96xf32> to vector<1x96xf32>
    %95 = vector.broadcast %94 : vector<1x96xf32> to vector<16x96xf32>
    %96 = arith.addf %92, %95 : vector<16x96xf32>
    %c2_64 = arith.constant 2 : index
    %c0_65 = arith.constant 0 : index
    %c0_66 = arith.constant 0 : index
    %97 = vector.load %arg2[%c2_64, %c0_65, %c0_66] : memref<8x96x768xbf16, #tpu.memory_space<vmem>>, vector<1x96x768xbf16>
    %98 = vector.shape_cast %97 : vector<1x96x768xbf16> to vector<96x768xbf16>
    %cst_67 = arith.constant dense<0.000000e+00> : vector<16x96xf32>
    %99 = tpu.matmul %2, %98, %cst_67 {dimension_numbers = #tpu.dot_dimension_numbers<[1], [1], [0], [0], [0, 0, 1, 0], [], []>} : vector<16x768xbf16>, vector<96x768xbf16>, vector<16x96xf32> -> vector<16x96xf32>
    %c2_68 = arith.constant 2 : index
    %c0_69 = arith.constant 0 : index
    %c0_70 = arith.constant 0 : index
    %100 = vector.load %arg5[%c2_68, %c0_69, %c0_70] : memref<8x1x96xf32, #tpu.memory_space<vmem>>, vector<1x1x96xf32>
    %101 = vector.shape_cast %100 : vector<1x1x96xf32> to vector<1x96xf32>
    %102 = vector.broadcast %101 : vector<1x96xf32> to vector<16x96xf32>
    %103 = arith.addf %99, %102 : vector<16x96xf32>
    %c2_71 = arith.constant 2 : index
    %c0_72 = arith.constant 0 : index
    %c0_73 = arith.constant 0 : index
    %104 = vector.load %arg3[%c2_71, %c0_72, %c0_73] : memref<8x96x768xbf16, #tpu.memory_space<vmem>>, vector<1x96x768xbf16>
    %105 = vector.shape_cast %104 : vector<1x96x768xbf16> to vector<96x768xbf16>
    %cst_74 = arith.constant dense<0.000000e+00> : vector<16x96xf32>
    %106 = tpu.matmul %2, %105, %cst_74 {dimension_numbers = #tpu.dot_dimension_numbers<[1], [1], [0], [0], [0, 0, 1, 0], [], []>} : vector<16x768xbf16>, vector<96x768xbf16>, vector<16x96xf32> -> vector<16x96xf32>
    %c2_75 = arith.constant 2 : index
    %c0_76 = arith.constant 0 : index
    %c0_77 = arith.constant 0 : index
    %107 = vector.load %arg6[%c2_75, %c0_76, %c0_77] : memref<8x1x96xf32, #tpu.memory_space<vmem>>, vector<1x1x96xf32>
    %108 = vector.shape_cast %107 : vector<1x1x96xf32> to vector<1x96xf32>
    %109 = vector.broadcast %108 : vector<1x96xf32> to vector<16x96xf32>
    %110 = arith.addf %106, %109 : vector<16x96xf32>
    %111 = vector.shape_cast %96 : vector<16x96xf32> to vector<2x8x96xf32>
    %112 = vector.shape_cast %103 : vector<16x96xf32> to vector<2x8x96xf32>
    %113 = vector.shape_cast %110 : vector<16x96xf32> to vector<2x8x96xf32>
    "tpu.trace_start"() <{level = 10 : i32, message = "bqd,bkd->bqk"}> : () -> ()
    %cst_78 = arith.constant dense<0.000000e+00> : vector<2x8x8xf32>
    %114 = tpu.matmul %111, %112, %cst_78 {dimension_numbers = #tpu.dot_dimension_numbers<[2], [2], [1], [1], [0, 0, 0, 1, 1, 1], [0], [0]>} : vector<2x8x96xf32>, vector<2x8x96xf32>, vector<2x8x8xf32> -> vector<2x8x8xf32>
    "tpu.trace_stop"() : () -> ()
    %cst_79 = arith.constant 0.102062076 : f32
    %115 = vector.broadcast %cst_79 : f32 to vector<2x8x8xf32>
    %116 = arith.mulf %114, %115 : vector<2x8x8xf32>
    %cst_80 = arith.constant dense<0xFF800000> : vector<2x8xf32>
    %117 = vector.multi_reduction <maximumf>, %116, %cst_80 [2] : vector<2x8x8xf32> to vector<2x8xf32>
    %118 = vector.shape_cast %117 : vector<2x8xf32> to vector<2x8x1xf32>
    %119 = vector.broadcast %118 : vector<2x8x1xf32> to vector<2x8x8xf32>
    %120 = arith.subf %116, %119 : vector<2x8x8xf32>
    %121 = math.exp %120 : vector<2x8x8xf32>
    %cst_81 = arith.constant dense<0.000000e+00> : vector<2x8xf32>
    %122 = vector.multi_reduction <add>, %121, %cst_81 [2] : vector<2x8x8xf32> to vector<2x8xf32>
    %123 = vector.shape_cast %122 : vector<2x8xf32> to vector<2x8x1xf32>
    %124 = tpu.reciprocal %123 {approx = true} : vector<2x8x1xf32> -> vector<2x8x1xf32>
    %125 = vector.broadcast %124 : vector<2x8x1xf32> to vector<2x8x8xf32>
    %126 = arith.mulf %121, %125 : vector<2x8x8xf32>
    "tpu.trace_start"() <{level = 10 : i32, message = "bqk,bkd->bqd"}> : () -> ()
    %cst_82 = arith.constant dense<0.000000e+00> : vector<2x8x96xf32>
    %127 = tpu.matmul %126, %113, %cst_82 {dimension_numbers = #tpu.dot_dimension_numbers<[2], [1], [1], [2], [0, 0, 0, 1, 1, 2], [0], [0]>} : vector<2x8x8xf32>, vector<2x8x96xf32>, vector<2x8x96xf32> -> vector<2x8x96xf32>
    "tpu.trace_stop"() : () -> ()
    %128 = vector.shape_cast %127 : vector<2x8x96xf32> to vector<16x96xf32>
    %129 = arith.truncf %128 : vector<16x96xf32> to vector<16x96xbf16>
    %c192 = arith.constant 192 : index
    %c0_83 = arith.constant 0 : index
    %130 = vector.load %arg7[%c192, %c0_83] : memref<768x768xbf16, #tpu.memory_space<vmem>>, vector<96x768xbf16>
    %cst_84 = arith.constant dense<0.000000e+00> : vector<16x768xf32>
    %131 = tpu.matmul %129, %130, %cst_84 {dimension_numbers = #tpu.dot_dimension_numbers<[1], [0], [0], [1], [0, 0, 1, 1], [], []>} : vector<16x96xbf16>, vector<96x768xbf16>, vector<16x768xf32> -> vector<16x768xf32>
    %132 = arith.addf %89, %131 : vector<16x768xf32>
    %c3 = arith.constant 3 : index
    %c0_85 = arith.constant 0 : index
    %c0_86 = arith.constant 0 : index
    %133 = vector.load %arg1[%c3, %c0_85, %c0_86] : memref<8x96x768xbf16, #tpu.memory_space<vmem>>, vector<1x96x768xbf16>
    %134 = vector.shape_cast %133 : vector<1x96x768xbf16> to vector<96x768xbf16>
    %cst_87 = arith.constant dense<0.000000e+00> : vector<16x96xf32>
    %135 = tpu.matmul %2, %134, %cst_87 {dimension_numbers = #tpu.dot_dimension_numbers<[1], [1], [0], [0], [0, 0, 1, 0], [], []>} : vector<16x768xbf16>, vector<96x768xbf16>, vector<16x96xf32> -> vector<16x96xf32>
    %c3_88 = arith.constant 3 : index
    %c0_89 = arith.constant 0 : index
    %c0_90 = arith.constant 0 : index
    %136 = vector.load %arg4[%c3_88, %c0_89, %c0_90] : memref<8x1x96xf32, #tpu.memory_space<vmem>>, vector<1x1x96xf32>
    %137 = vector.shape_cast %136 : vector<1x1x96xf32> to vector<1x96xf32>
    %138 = vector.broadcast %137 : vector<1x96xf32> to vector<16x96xf32>
    %139 = arith.addf %135, %138 : vector<16x96xf32>
    %c3_91 = arith.constant 3 : index
    %c0_92 = arith.constant 0 : index
    %c0_93 = arith.constant 0 : index
    %140 = vector.load %arg2[%c3_91, %c0_92, %c0_93] : memref<8x96x768xbf16, #tpu.memory_space<vmem>>, vector<1x96x768xbf16>
    %141 = vector.shape_cast %140 : vector<1x96x768xbf16> to vector<96x768xbf16>
    %cst_94 = arith.constant dense<0.000000e+00> : vector<16x96xf32>
    %142 = tpu.matmul %2, %141, %cst_94 {dimension_numbers = #tpu.dot_dimension_numbers<[1], [1], [0], [0], [0, 0, 1, 0], [], []>} : vector<16x768xbf16>, vector<96x768xbf16>, vector<16x96xf32> -> vector<16x96xf32>
    %c3_95 = arith.constant 3 : index
    %c0_96 = arith.constant 0 : index
    %c0_97 = arith.constant 0 : index
    %143 = vector.load %arg5[%c3_95, %c0_96, %c0_97] : memref<8x1x96xf32, #tpu.memory_space<vmem>>, vector<1x1x96xf32>
    %144 = vector.shape_cast %143 : vector<1x1x96xf32> to vector<1x96xf32>
    %145 = vector.broadcast %144 : vector<1x96xf32> to vector<16x96xf32>
    %146 = arith.addf %142, %145 : vector<16x96xf32>
    %c3_98 = arith.constant 3 : index
    %c0_99 = arith.constant 0 : index
    %c0_100 = arith.constant 0 : index
    %147 = vector.load %arg3[%c3_98, %c0_99, %c0_100] : memref<8x96x768xbf16, #tpu.memory_space<vmem>>, vector<1x96x768xbf16>
    %148 = vector.shape_cast %147 : vector<1x96x768xbf16> to vector<96x768xbf16>
    %cst_101 = arith.constant dense<0.000000e+00> : vector<16x96xf32>
    %149 = tpu.matmul %2, %148, %cst_101 {dimension_numbers = #tpu.dot_dimension_numbers<[1], [1], [0], [0], [0, 0, 1, 0], [], []>} : vector<16x768xbf16>, vector<96x768xbf16>, vector<16x96xf32> -> vector<16x96xf32>
    %c3_102 = arith.constant 3 : index
    %c0_103 = arith.constant 0 : index
    %c0_104 = arith.constant 0 : index
    %150 = vector.load %arg6[%c3_102, %c0_103, %c0_104] : memref<8x1x96xf32, #tpu.memory_space<vmem>>, vector<1x1x96xf32>
    %151 = vector.shape_cast %150 : vector<1x1x96xf32> to vector<1x96xf32>
    %152 = vector.broadcast %151 : vector<1x96xf32> to vector<16x96xf32>
    %153 = arith.addf %149, %152 : vector<16x96xf32>
    %154 = vector.shape_cast %139 : vector<16x96xf32> to vector<2x8x96xf32>
    %155 = vector.shape_cast %146 : vector<16x96xf32> to vector<2x8x96xf32>
    %156 = vector.shape_cast %153 : vector<16x96xf32> to vector<2x8x96xf32>
    "tpu.trace_start"() <{level = 10 : i32, message = "bqd,bkd->bqk"}> : () -> ()
    %cst_105 = arith.constant dense<0.000000e+00> : vector<2x8x8xf32>
    %157 = tpu.matmul %154, %155, %cst_105 {dimension_numbers = #tpu.dot_dimension_numbers<[2], [2], [1], [1], [0, 0, 0, 1, 1, 1], [0], [0]>} : vector<2x8x96xf32>, vector<2x8x96xf32>, vector<2x8x8xf32> -> vector<2x8x8xf32>
    "tpu.trace_stop"() : () -> ()
    %cst_106 = arith.constant 0.102062076 : f32
    %158 = vector.broadcast %cst_106 : f32 to vector<2x8x8xf32>
    %159 = arith.mulf %157, %158 : vector<2x8x8xf32>
    %cst_107 = arith.constant dense<0xFF800000> : vector<2x8xf32>
    %160 = vector.multi_reduction <maximumf>, %159, %cst_107 [2] : vector<2x8x8xf32> to vector<2x8xf32>
    %161 = vector.shape_cast %160 : vector<2x8xf32> to vector<2x8x1xf32>
    %162 = vector.broadcast %161 : vector<2x8x1xf32> to vector<2x8x8xf32>
    %163 = arith.subf %159, %162 : vector<2x8x8xf32>
    %164 = math.exp %163 : vector<2x8x8xf32>
    %cst_108 = arith.constant dense<0.000000e+00> : vector<2x8xf32>
    %165 = vector.multi_reduction <add>, %164, %cst_108 [2] : vector<2x8x8xf32> to vector<2x8xf32>
    %166 = vector.shape_cast %165 : vector<2x8xf32> to vector<2x8x1xf32>
    %167 = tpu.reciprocal %166 {approx = true} : vector<2x8x1xf32> -> vector<2x8x1xf32>
    %168 = vector.broadcast %167 : vector<2x8x1xf32> to vector<2x8x8xf32>
    %169 = arith.mulf %164, %168 : vector<2x8x8xf32>
    "tpu.trace_start"() <{level = 10 : i32, message = "bqk,bkd->bqd"}> : () -> ()
    %cst_109 = arith.constant dense<0.000000e+00> : vector<2x8x96xf32>
    %170 = tpu.matmul %169, %156, %cst_109 {dimension_numbers = #tpu.dot_dimension_numbers<[2], [1], [1], [2], [0, 0, 0, 1, 1, 2], [0], [0]>} : vector<2x8x8xf32>, vector<2x8x96xf32>, vector<2x8x96xf32> -> vector<2x8x96xf32>
    "tpu.trace_stop"() : () -> ()
    %171 = vector.shape_cast %170 : vector<2x8x96xf32> to vector<16x96xf32>
    %172 = arith.truncf %171 : vector<16x96xf32> to vector<16x96xbf16>
    %c288 = arith.constant 288 : index
    %c0_110 = arith.constant 0 : index
    %173 = vector.load %arg7[%c288, %c0_110] : memref<768x768xbf16, #tpu.memory_space<vmem>>, vector<96x768xbf16>
    %cst_111 = arith.constant dense<0.000000e+00> : vector<16x768xf32>
    %174 = tpu.matmul %172, %173, %cst_111 {dimension_numbers = #tpu.dot_dimension_numbers<[1], [0], [0], [1], [0, 0, 1, 1], [], []>} : vector<16x96xbf16>, vector<96x768xbf16>, vector<16x768xf32> -> vector<16x768xf32>
    %175 = arith.addf %132, %174 : vector<16x768xf32>
    %c4 = arith.constant 4 : index
    %c0_112 = arith.constant 0 : index
    %c0_113 = arith.constant 0 : index
    %176 = vector.load %arg1[%c4, %c0_112, %c0_113] : memref<8x96x768xbf16, #tpu.memory_space<vmem>>, vector<1x96x768xbf16>
    %177 = vector.shape_cast %176 : vector<1x96x768xbf16> to vector<96x768xbf16>
    %cst_114 = arith.constant dense<0.000000e+00> : vector<16x96xf32>
    %178 = tpu.matmul %2, %177, %cst_114 {dimension_numbers = #tpu.dot_dimension_numbers<[1], [1], [0], [0], [0, 0, 1, 0], [], []>} : vector<16x768xbf16>, vector<96x768xbf16>, vector<16x96xf32> -> vector<16x96xf32>
    %c4_115 = arith.constant 4 : index
    %c0_116 = arith.constant 0 : index
    %c0_117 = arith.constant 0 : index
    %179 = vector.load %arg4[%c4_115, %c0_116, %c0_117] : memref<8x1x96xf32, #tpu.memory_space<vmem>>, vector<1x1x96xf32>
    %180 = vector.shape_cast %179 : vector<1x1x96xf32> to vector<1x96xf32>
    %181 = vector.broadcast %180 : vector<1x96xf32> to vector<16x96xf32>
    %182 = arith.addf %178, %181 : vector<16x96xf32>
    %c4_118 = arith.constant 4 : index
    %c0_119 = arith.constant 0 : index
    %c0_120 = arith.constant 0 : index
    %183 = vector.load %arg2[%c4_118, %c0_119, %c0_120] : memref<8x96x768xbf16, #tpu.memory_space<vmem>>, vector<1x96x768xbf16>
    %184 = vector.shape_cast %183 : vector<1x96x768xbf16> to vector<96x768xbf16>
    %cst_121 = arith.constant dense<0.000000e+00> : vector<16x96xf32>
    %185 = tpu.matmul %2, %184, %cst_121 {dimension_numbers = #tpu.dot_dimension_numbers<[1], [1], [0], [0], [0, 0, 1, 0], [], []>} : vector<16x768xbf16>, vector<96x768xbf16>, vector<16x96xf32> -> vector<16x96xf32>
    %c4_122 = arith.constant 4 : index
    %c0_123 = arith.constant 0 : index
    %c0_124 = arith.constant 0 : index
    %186 = vector.load %arg5[%c4_122, %c0_123, %c0_124] : memref<8x1x96xf32, #tpu.memory_space<vmem>>, vector<1x1x96xf32>
    %187 = vector.shape_cast %186 : vector<1x1x96xf32> to vector<1x96xf32>
    %188 = vector.broadcast %187 : vector<1x96xf32> to vector<16x96xf32>
    %189 = arith.addf %185, %188 : vector<16x96xf32>
    %c4_125 = arith.constant 4 : index
    %c0_126 = arith.constant 0 : index
    %c0_127 = arith.constant 0 : index
    %190 = vector.load %arg3[%c4_125, %c0_126, %c0_127] : memref<8x96x768xbf16, #tpu.memory_space<vmem>>, vector<1x96x768xbf16>
    %191 = vector.shape_cast %190 : vector<1x96x768xbf16> to vector<96x768xbf16>
    %cst_128 = arith.constant dense<0.000000e+00> : vector<16x96xf32>
    %192 = tpu.matmul %2, %191, %cst_128 {dimension_numbers = #tpu.dot_dimension_numbers<[1], [1], [0], [0], [0, 0, 1, 0], [], []>} : vector<16x768xbf16>, vector<96x768xbf16>, vector<16x96xf32> -> vector<16x96xf32>
    %c4_129 = arith.constant 4 : index
    %c0_130 = arith.constant 0 : index
    %c0_131 = arith.constant 0 : index
    %193 = vector.load %arg6[%c4_129, %c0_130, %c0_131] : memref<8x1x96xf32, #tpu.memory_space<vmem>>, vector<1x1x96xf32>
    %194 = vector.shape_cast %193 : vector<1x1x96xf32> to vector<1x96xf32>
    %195 = vector.broadcast %194 : vector<1x96xf32> to vector<16x96xf32>
    %196 = arith.addf %192, %195 : vector<16x96xf32>
    %197 = vector.shape_cast %182 : vector<16x96xf32> to vector<2x8x96xf32>
    %198 = vector.shape_cast %189 : vector<16x96xf32> to vector<2x8x96xf32>
    %199 = vector.shape_cast %196 : vector<16x96xf32> to vector<2x8x96xf32>
    "tpu.trace_start"() <{level = 10 : i32, message = "bqd,bkd->bqk"}> : () -> ()
    %cst_132 = arith.constant dense<0.000000e+00> : vector<2x8x8xf32>
    %200 = tpu.matmul %197, %198, %cst_132 {dimension_numbers = #tpu.dot_dimension_numbers<[2], [2], [1], [1], [0, 0, 0, 1, 1, 1], [0], [0]>} : vector<2x8x96xf32>, vector<2x8x96xf32>, vector<2x8x8xf32> -> vector<2x8x8xf32>
    "tpu.trace_stop"() : () -> ()
    %cst_133 = arith.constant 0.102062076 : f32
    %201 = vector.broadcast %cst_133 : f32 to vector<2x8x8xf32>
    %202 = arith.mulf %200, %201 : vector<2x8x8xf32>
    %cst_134 = arith.constant dense<0xFF800000> : vector<2x8xf32>
    %203 = vector.multi_reduction <maximumf>, %202, %cst_134 [2] : vector<2x8x8xf32> to vector<2x8xf32>
    %204 = vector.shape_cast %203 : vector<2x8xf32> to vector<2x8x1xf32>
    %205 = vector.broadcast %204 : vector<2x8x1xf32> to vector<2x8x8xf32>
    %206 = arith.subf %202, %205 : vector<2x8x8xf32>
    %207 = math.exp %206 : vector<2x8x8xf32>
    %cst_135 = arith.constant dense<0.000000e+00> : vector<2x8xf32>
    %208 = vector.multi_reduction <add>, %207, %cst_135 [2] : vector<2x8x8xf32> to vector<2x8xf32>
    %209 = vector.shape_cast %208 : vector<2x8xf32> to vector<2x8x1xf32>
    %210 = tpu.reciprocal %209 {approx = true} : vector<2x8x1xf32> -> vector<2x8x1xf32>
    %211 = vector.broadcast %210 : vector<2x8x1xf32> to vector<2x8x8xf32>
    %212 = arith.mulf %207, %211 : vector<2x8x8xf32>
    "tpu.trace_start"() <{level = 10 : i32, message = "bqk,bkd->bqd"}> : () -> ()
    %cst_136 = arith.constant dense<0.000000e+00> : vector<2x8x96xf32>
    %213 = tpu.matmul %212, %199, %cst_136 {dimension_numbers = #tpu.dot_dimension_numbers<[2], [1], [1], [2], [0, 0, 0, 1, 1, 2], [0], [0]>} : vector<2x8x8xf32>, vector<2x8x96xf32>, vector<2x8x96xf32> -> vector<2x8x96xf32>
    "tpu.trace_stop"() : () -> ()
    %214 = vector.shape_cast %213 : vector<2x8x96xf32> to vector<16x96xf32>
    %215 = arith.truncf %214 : vector<16x96xf32> to vector<16x96xbf16>
    %c384 = arith.constant 384 : index
    %c0_137 = arith.constant 0 : index
    %216 = vector.load %arg7[%c384, %c0_137] : memref<768x768xbf16, #tpu.memory_space<vmem>>, vector<96x768xbf16>
    %cst_138 = arith.constant dense<0.000000e+00> : vector<16x768xf32>
    %217 = tpu.matmul %215, %216, %cst_138 {dimension_numbers = #tpu.dot_dimension_numbers<[1], [0], [0], [1], [0, 0, 1, 1], [], []>} : vector<16x96xbf16>, vector<96x768xbf16>, vector<16x768xf32> -> vector<16x768xf32>
    %218 = arith.addf %175, %217 : vector<16x768xf32>
    %c5 = arith.constant 5 : index
    %c0_139 = arith.constant 0 : index
    %c0_140 = arith.constant 0 : index
    %219 = vector.load %arg1[%c5, %c0_139, %c0_140] : memref<8x96x768xbf16, #tpu.memory_space<vmem>>, vector<1x96x768xbf16>
    %220 = vector.shape_cast %219 : vector<1x96x768xbf16> to vector<96x768xbf16>
    %cst_141 = arith.constant dense<0.000000e+00> : vector<16x96xf32>
    %221 = tpu.matmul %2, %220, %cst_141 {dimension_numbers = #tpu.dot_dimension_numbers<[1], [1], [0], [0], [0, 0, 1, 0], [], []>} : vector<16x768xbf16>, vector<96x768xbf16>, vector<16x96xf32> -> vector<16x96xf32>
    %c5_142 = arith.constant 5 : index
    %c0_143 = arith.constant 0 : index
    %c0_144 = arith.constant 0 : index
    %222 = vector.load %arg4[%c5_142, %c0_143, %c0_144] : memref<8x1x96xf32, #tpu.memory_space<vmem>>, vector<1x1x96xf32>
    %223 = vector.shape_cast %222 : vector<1x1x96xf32> to vector<1x96xf32>
    %224 = vector.broadcast %223 : vector<1x96xf32> to vector<16x96xf32>
    %225 = arith.addf %221, %224 : vector<16x96xf32>
    %c5_145 = arith.constant 5 : index
    %c0_146 = arith.constant 0 : index
    %c0_147 = arith.constant 0 : index
    %226 = vector.load %arg2[%c5_145, %c0_146, %c0_147] : memref<8x96x768xbf16, #tpu.memory_space<vmem>>, vector<1x96x768xbf16>
    %227 = vector.shape_cast %226 : vector<1x96x768xbf16> to vector<96x768xbf16>
    %cst_148 = arith.constant dense<0.000000e+00> : vector<16x96xf32>
    %228 = tpu.matmul %2, %227, %cst_148 {dimension_numbers = #tpu.dot_dimension_numbers<[1], [1], [0], [0], [0, 0, 1, 0], [], []>} : vector<16x768xbf16>, vector<96x768xbf16>, vector<16x96xf32> -> vector<16x96xf32>
    %c5_149 = arith.constant 5 : index
    %c0_150 = arith.constant 0 : index
    %c0_151 = arith.constant 0 : index
    %229 = vector.load %arg5[%c5_149, %c0_150, %c0_151] : memref<8x1x96xf32, #tpu.memory_space<vmem>>, vector<1x1x96xf32>
    %230 = vector.shape_cast %229 : vector<1x1x96xf32> to vector<1x96xf32>
    %231 = vector.broadcast %230 : vector<1x96xf32> to vector<16x96xf32>
    %232 = arith.addf %228, %231 : vector<16x96xf32>
    %c5_152 = arith.constant 5 : index
    %c0_153 = arith.constant 0 : index
    %c0_154 = arith.constant 0 : index
    %233 = vector.load %arg3[%c5_152, %c0_153, %c0_154] : memref<8x96x768xbf16, #tpu.memory_space<vmem>>, vector<1x96x768xbf16>
    %234 = vector.shape_cast %233 : vector<1x96x768xbf16> to vector<96x768xbf16>
    %cst_155 = arith.constant dense<0.000000e+00> : vector<16x96xf32>
    %235 = tpu.matmul %2, %234, %cst_155 {dimension_numbers = #tpu.dot_dimension_numbers<[1], [1], [0], [0], [0, 0, 1, 0], [], []>} : vector<16x768xbf16>, vector<96x768xbf16>, vector<16x96xf32> -> vector<16x96xf32>
    %c5_156 = arith.constant 5 : index
    %c0_157 = arith.constant 0 : index
    %c0_158 = arith.constant 0 : index
    %236 = vector.load %arg6[%c5_156, %c0_157, %c0_158] : memref<8x1x96xf32, #tpu.memory_space<vmem>>, vector<1x1x96xf32>
    %237 = vector.shape_cast %236 : vector<1x1x96xf32> to vector<1x96xf32>
    %238 = vector.broadcast %237 : vector<1x96xf32> to vector<16x96xf32>
    %239 = arith.addf %235, %238 : vector<16x96xf32>
    %240 = vector.shape_cast %225 : vector<16x96xf32> to vector<2x8x96xf32>
    %241 = vector.shape_cast %232 : vector<16x96xf32> to vector<2x8x96xf32>
    %242 = vector.shape_cast %239 : vector<16x96xf32> to vector<2x8x96xf32>
    "tpu.trace_start"() <{level = 10 : i32, message = "bqd,bkd->bqk"}> : () -> ()
    %cst_159 = arith.constant dense<0.000000e+00> : vector<2x8x8xf32>
    %243 = tpu.matmul %240, %241, %cst_159 {dimension_numbers = #tpu.dot_dimension_numbers<[2], [2], [1], [1], [0, 0, 0, 1, 1, 1], [0], [0]>} : vector<2x8x96xf32>, vector<2x8x96xf32>, vector<2x8x8xf32> -> vector<2x8x8xf32>
    "tpu.trace_stop"() : () -> ()
    %cst_160 = arith.constant 0.102062076 : f32
    %244 = vector.broadcast %cst_160 : f32 to vector<2x8x8xf32>
    %245 = arith.mulf %243, %244 : vector<2x8x8xf32>
    %cst_161 = arith.constant dense<0xFF800000> : vector<2x8xf32>
    %246 = vector.multi_reduction <maximumf>, %245, %cst_161 [2] : vector<2x8x8xf32> to vector<2x8xf32>
    %247 = vector.shape_cast %246 : vector<2x8xf32> to vector<2x8x1xf32>
    %248 = vector.broadcast %247 : vector<2x8x1xf32> to vector<2x8x8xf32>
    %249 = arith.subf %245, %248 : vector<2x8x8xf32>
    %250 = math.exp %249 : vector<2x8x8xf32>
    %cst_162 = arith.constant dense<0.000000e+00> : vector<2x8xf32>
    %251 = vector.multi_reduction <add>, %250, %cst_162 [2] : vector<2x8x8xf32> to vector<2x8xf32>
    %252 = vector.shape_cast %251 : vector<2x8xf32> to vector<2x8x1xf32>
    %253 = tpu.reciprocal %252 {approx = true} : vector<2x8x1xf32> -> vector<2x8x1xf32>
    %254 = vector.broadcast %253 : vector<2x8x1xf32> to vector<2x8x8xf32>
    %255 = arith.mulf %250, %254 : vector<2x8x8xf32>
    "tpu.trace_start"() <{level = 10 : i32, message = "bqk,bkd->bqd"}> : () -> ()
    %cst_163 = arith.constant dense<0.000000e+00> : vector<2x8x96xf32>
    %256 = tpu.matmul %255, %242, %cst_163 {dimension_numbers = #tpu.dot_dimension_numbers<[2], [1], [1], [2], [0, 0, 0, 1, 1, 2], [0], [0]>} : vector<2x8x8xf32>, vector<2x8x96xf32>, vector<2x8x96xf32> -> vector<2x8x96xf32>
    "tpu.trace_stop"() : () -> ()
    %257 = vector.shape_cast %256 : vector<2x8x96xf32> to vector<16x96xf32>
    %258 = arith.truncf %257 : vector<16x96xf32> to vector<16x96xbf16>
    %c480 = arith.constant 480 : index
    %c0_164 = arith.constant 0 : index
    %259 = vector.load %arg7[%c480, %c0_164] : memref<768x768xbf16, #tpu.memory_space<vmem>>, vector<96x768xbf16>
    %cst_165 = arith.constant dense<0.000000e+00> : vector<16x768xf32>
    %260 = tpu.matmul %258, %259, %cst_165 {dimension_numbers = #tpu.dot_dimension_numbers<[1], [0], [0], [1], [0, 0, 1, 1], [], []>} : vector<16x96xbf16>, vector<96x768xbf16>, vector<16x768xf32> -> vector<16x768xf32>
    %261 = arith.addf %218, %260 : vector<16x768xf32>
    %c6 = arith.constant 6 : index
    %c0_166 = arith.constant 0 : index
    %c0_167 = arith.constant 0 : index
    %262 = vector.load %arg1[%c6, %c0_166, %c0_167] : memref<8x96x768xbf16, #tpu.memory_space<vmem>>, vector<1x96x768xbf16>
    %263 = vector.shape_cast %262 : vector<1x96x768xbf16> to vector<96x768xbf16>
    %cst_168 = arith.constant dense<0.000000e+00> : vector<16x96xf32>
    %264 = tpu.matmul %2, %263, %cst_168 {dimension_numbers = #tpu.dot_dimension_numbers<[1], [1], [0], [0], [0, 0, 1, 0], [], []>} : vector<16x768xbf16>, vector<96x768xbf16>, vector<16x96xf32> -> vector<16x96xf32>
    %c6_169 = arith.constant 6 : index
    %c0_170 = arith.constant 0 : index
    %c0_171 = arith.constant 0 : index
    %265 = vector.load %arg4[%c6_169, %c0_170, %c0_171] : memref<8x1x96xf32, #tpu.memory_space<vmem>>, vector<1x1x96xf32>
    %266 = vector.shape_cast %265 : vector<1x1x96xf32> to vector<1x96xf32>
    %267 = vector.broadcast %266 : vector<1x96xf32> to vector<16x96xf32>
    %268 = arith.addf %264, %267 : vector<16x96xf32>
    %c6_172 = arith.constant 6 : index
    %c0_173 = arith.constant 0 : index
    %c0_174 = arith.constant 0 : index
    %269 = vector.load %arg2[%c6_172, %c0_173, %c0_174] : memref<8x96x768xbf16, #tpu.memory_space<vmem>>, vector<1x96x768xbf16>
    %270 = vector.shape_cast %269 : vector<1x96x768xbf16> to vector<96x768xbf16>
    %cst_175 = arith.constant dense<0.000000e+00> : vector<16x96xf32>
    %271 = tpu.matmul %2, %270, %cst_175 {dimension_numbers = #tpu.dot_dimension_numbers<[1], [1], [0], [0], [0, 0, 1, 0], [], []>} : vector<16x768xbf16>, vector<96x768xbf16>, vector<16x96xf32> -> vector<16x96xf32>
    %c6_176 = arith.constant 6 : index
    %c0_177 = arith.constant 0 : index
    %c0_178 = arith.constant 0 : index
    %272 = vector.load %arg5[%c6_176, %c0_177, %c0_178] : memref<8x1x96xf32, #tpu.memory_space<vmem>>, vector<1x1x96xf32>
    %273 = vector.shape_cast %272 : vector<1x1x96xf32> to vector<1x96xf32>
    %274 = vector.broadcast %273 : vector<1x96xf32> to vector<16x96xf32>
    %275 = arith.addf %271, %274 : vector<16x96xf32>
    %c6_179 = arith.constant 6 : index
    %c0_180 = arith.constant 0 : index
    %c0_181 = arith.constant 0 : index
    %276 = vector.load %arg3[%c6_179, %c0_180, %c0_181] : memref<8x96x768xbf16, #tpu.memory_space<vmem>>, vector<1x96x768xbf16>
    %277 = vector.shape_cast %276 : vector<1x96x768xbf16> to vector<96x768xbf16>
    %cst_182 = arith.constant dense<0.000000e+00> : vector<16x96xf32>
    %278 = tpu.matmul %2, %277, %cst_182 {dimension_numbers = #tpu.dot_dimension_numbers<[1], [1], [0], [0], [0, 0, 1, 0], [], []>} : vector<16x768xbf16>, vector<96x768xbf16>, vector<16x96xf32> -> vector<16x96xf32>
    %c6_183 = arith.constant 6 : index
    %c0_184 = arith.constant 0 : index
    %c0_185 = arith.constant 0 : index
    %279 = vector.load %arg6[%c6_183, %c0_184, %c0_185] : memref<8x1x96xf32, #tpu.memory_space<vmem>>, vector<1x1x96xf32>
    %280 = vector.shape_cast %279 : vector<1x1x96xf32> to vector<1x96xf32>
    %281 = vector.broadcast %280 : vector<1x96xf32> to vector<16x96xf32>
    %282 = arith.addf %278, %281 : vector<16x96xf32>
    %283 = vector.shape_cast %268 : vector<16x96xf32> to vector<2x8x96xf32>
    %284 = vector.shape_cast %275 : vector<16x96xf32> to vector<2x8x96xf32>
    %285 = vector.shape_cast %282 : vector<16x96xf32> to vector<2x8x96xf32>
    "tpu.trace_start"() <{level = 10 : i32, message = "bqd,bkd->bqk"}> : () -> ()
    %cst_186 = arith.constant dense<0.000000e+00> : vector<2x8x8xf32>
    %286 = tpu.matmul %283, %284, %cst_186 {dimension_numbers = #tpu.dot_dimension_numbers<[2], [2], [1], [1], [0, 0, 0, 1, 1, 1], [0], [0]>} : vector<2x8x96xf32>, vector<2x8x96xf32>, vector<2x8x8xf32> -> vector<2x8x8xf32>
    "tpu.trace_stop"() : () -> ()
    %cst_187 = arith.constant 0.102062076 : f32
    %287 = vector.broadcast %cst_187 : f32 to vector<2x8x8xf32>
    %288 = arith.mulf %286, %287 : vector<2x8x8xf32>
    %cst_188 = arith.constant dense<0xFF800000> : vector<2x8xf32>
    %289 = vector.multi_reduction <maximumf>, %288, %cst_188 [2] : vector<2x8x8xf32> to vector<2x8xf32>
    %290 = vector.shape_cast %289 : vector<2x8xf32> to vector<2x8x1xf32>
    %291 = vector.broadcast %290 : vector<2x8x1xf32> to vector<2x8x8xf32>
    %292 = arith.subf %288, %291 : vector<2x8x8xf32>
    %293 = math.exp %292 : vector<2x8x8xf32>
    %cst_189 = arith.constant dense<0.000000e+00> : vector<2x8xf32>
    %294 = vector.multi_reduction <add>, %293, %cst_189 [2] : vector<2x8x8xf32> to vector<2x8xf32>
    %295 = vector.shape_cast %294 : vector<2x8xf32> to vector<2x8x1xf32>
    %296 = tpu.reciprocal %295 {approx = true} : vector<2x8x1xf32> -> vector<2x8x1xf32>
    %297 = vector.broadcast %296 : vector<2x8x1xf32> to vector<2x8x8xf32>
    %298 = arith.mulf %293, %297 : vector<2x8x8xf32>
    "tpu.trace_start"() <{level = 10 : i32, message = "bqk,bkd->bqd"}> : () -> ()
    %cst_190 = arith.constant dense<0.000000e+00> : vector<2x8x96xf32>
    %299 = tpu.matmul %298, %285, %cst_190 {dimension_numbers = #tpu.dot_dimension_numbers<[2], [1], [1], [2], [0, 0, 0, 1, 1, 2], [0], [0]>} : vector<2x8x8xf32>, vector<2x8x96xf32>, vector<2x8x96xf32> -> vector<2x8x96xf32>
    "tpu.trace_stop"() : () -> ()
    %300 = vector.shape_cast %299 : vector<2x8x96xf32> to vector<16x96xf32>
    %301 = arith.truncf %300 : vector<16x96xf32> to vector<16x96xbf16>
    %c576 = arith.constant 576 : index
    %c0_191 = arith.constant 0 : index
    %302 = vector.load %arg7[%c576, %c0_191] : memref<768x768xbf16, #tpu.memory_space<vmem>>, vector<96x768xbf16>
    %cst_192 = arith.constant dense<0.000000e+00> : vector<16x768xf32>
    %303 = tpu.matmul %301, %302, %cst_192 {dimension_numbers = #tpu.dot_dimension_numbers<[1], [0], [0], [1], [0, 0, 1, 1], [], []>} : vector<16x96xbf16>, vector<96x768xbf16>, vector<16x768xf32> -> vector<16x768xf32>
    %304 = arith.addf %261, %303 : vector<16x768xf32>
    %c7 = arith.constant 7 : index
    %c0_193 = arith.constant 0 : index
    %c0_194 = arith.constant 0 : index
    %305 = vector.load %arg1[%c7, %c0_193, %c0_194] : memref<8x96x768xbf16, #tpu.memory_space<vmem>>, vector<1x96x768xbf16>
    %306 = vector.shape_cast %305 : vector<1x96x768xbf16> to vector<96x768xbf16>
    %cst_195 = arith.constant dense<0.000000e+00> : vector<16x96xf32>
    %307 = tpu.matmul %2, %306, %cst_195 {dimension_numbers = #tpu.dot_dimension_numbers<[1], [1], [0], [0], [0, 0, 1, 0], [], []>} : vector<16x768xbf16>, vector<96x768xbf16>, vector<16x96xf32> -> vector<16x96xf32>
    %c7_196 = arith.constant 7 : index
    %c0_197 = arith.constant 0 : index
    %c0_198 = arith.constant 0 : index
    %308 = vector.load %arg4[%c7_196, %c0_197, %c0_198] : memref<8x1x96xf32, #tpu.memory_space<vmem>>, vector<1x1x96xf32>
    %309 = vector.shape_cast %308 : vector<1x1x96xf32> to vector<1x96xf32>
    %310 = vector.broadcast %309 : vector<1x96xf32> to vector<16x96xf32>
    %311 = arith.addf %307, %310 : vector<16x96xf32>
    %c7_199 = arith.constant 7 : index
    %c0_200 = arith.constant 0 : index
    %c0_201 = arith.constant 0 : index
    %312 = vector.load %arg2[%c7_199, %c0_200, %c0_201] : memref<8x96x768xbf16, #tpu.memory_space<vmem>>, vector<1x96x768xbf16>
    %313 = vector.shape_cast %312 : vector<1x96x768xbf16> to vector<96x768xbf16>
    %cst_202 = arith.constant dense<0.000000e+00> : vector<16x96xf32>
    %314 = tpu.matmul %2, %313, %cst_202 {dimension_numbers = #tpu.dot_dimension_numbers<[1], [1], [0], [0], [0, 0, 1, 0], [], []>} : vector<16x768xbf16>, vector<96x768xbf16>, vector<16x96xf32> -> vector<16x96xf32>
    %c7_203 = arith.constant 7 : index
    %c0_204 = arith.constant 0 : index
    %c0_205 = arith.constant 0 : index
    %315 = vector.load %arg5[%c7_203, %c0_204, %c0_205] : memref<8x1x96xf32, #tpu.memory_space<vmem>>, vector<1x1x96xf32>
    %316 = vector.shape_cast %315 : vector<1x1x96xf32> to vector<1x96xf32>
    %317 = vector.broadcast %316 : vector<1x96xf32> to vector<16x96xf32>
    %318 = arith.addf %314, %317 : vector<16x96xf32>
    %c7_206 = arith.constant 7 : index
    %c0_207 = arith.constant 0 : index
    %c0_208 = arith.constant 0 : index
    %319 = vector.load %arg3[%c7_206, %c0_207, %c0_208] : memref<8x96x768xbf16, #tpu.memory_space<vmem>>, vector<1x96x768xbf16>
    %320 = vector.shape_cast %319 : vector<1x96x768xbf16> to vector<96x768xbf16>
    %cst_209 = arith.constant dense<0.000000e+00> : vector<16x96xf32>
    %321 = tpu.matmul %2, %320, %cst_209 {dimension_numbers = #tpu.dot_dimension_numbers<[1], [1], [0], [0], [0, 0, 1, 0], [], []>} : vector<16x768xbf16>, vector<96x768xbf16>, vector<16x96xf32> -> vector<16x96xf32>
    %c7_210 = arith.constant 7 : index
    %c0_211 = arith.constant 0 : index
    %c0_212 = arith.constant 0 : index
    %322 = vector.load %arg6[%c7_210, %c0_211, %c0_212] : memref<8x1x96xf32, #tpu.memory_space<vmem>>, vector<1x1x96xf32>
    %323 = vector.shape_cast %322 : vector<1x1x96xf32> to vector<1x96xf32>
    %324 = vector.broadcast %323 : vector<1x96xf32> to vector<16x96xf32>
    %325 = arith.addf %321, %324 : vector<16x96xf32>
    %326 = vector.shape_cast %311 : vector<16x96xf32> to vector<2x8x96xf32>
    %327 = vector.shape_cast %318 : vector<16x96xf32> to vector<2x8x96xf32>
    %328 = vector.shape_cast %325 : vector<16x96xf32> to vector<2x8x96xf32>
    "tpu.trace_start"() <{level = 10 : i32, message = "bqd,bkd->bqk"}> : () -> ()
    %cst_213 = arith.constant dense<0.000000e+00> : vector<2x8x8xf32>
    %329 = tpu.matmul %326, %327, %cst_213 {dimension_numbers = #tpu.dot_dimension_numbers<[2], [2], [1], [1], [0, 0, 0, 1, 1, 1], [0], [0]>} : vector<2x8x96xf32>, vector<2x8x96xf32>, vector<2x8x8xf32> -> vector<2x8x8xf32>
    "tpu.trace_stop"() : () -> ()
    %cst_214 = arith.constant 0.102062076 : f32
    %330 = vector.broadcast %cst_214 : f32 to vector<2x8x8xf32>
    %331 = arith.mulf %329, %330 : vector<2x8x8xf32>
    %cst_215 = arith.constant dense<0xFF800000> : vector<2x8xf32>
    %332 = vector.multi_reduction <maximumf>, %331, %cst_215 [2] : vector<2x8x8xf32> to vector<2x8xf32>
    %333 = vector.shape_cast %332 : vector<2x8xf32> to vector<2x8x1xf32>
    %334 = vector.broadcast %333 : vector<2x8x1xf32> to vector<2x8x8xf32>
    %335 = arith.subf %331, %334 : vector<2x8x8xf32>
    %336 = math.exp %335 : vector<2x8x8xf32>
    %cst_216 = arith.constant dense<0.000000e+00> : vector<2x8xf32>
    %337 = vector.multi_reduction <add>, %336, %cst_216 [2] : vector<2x8x8xf32> to vector<2x8xf32>
    %338 = vector.shape_cast %337 : vector<2x8xf32> to vector<2x8x1xf32>
    %339 = tpu.reciprocal %338 {approx = true} : vector<2x8x1xf32> -> vector<2x8x1xf32>
    %340 = vector.broadcast %339 : vector<2x8x1xf32> to vector<2x8x8xf32>
    %341 = arith.mulf %336, %340 : vector<2x8x8xf32>
    "tpu.trace_start"() <{level = 10 : i32, message = "bqk,bkd->bqd"}> : () -> ()
    %cst_217 = arith.constant dense<0.000000e+00> : vector<2x8x96xf32>
    %342 = tpu.matmul %341, %328, %cst_217 {dimension_numbers = #tpu.dot_dimension_numbers<[2], [1], [1], [2], [0, 0, 0, 1, 1, 2], [0], [0]>} : vector<2x8x8xf32>, vector<2x8x96xf32>, vector<2x8x96xf32> -> vector<2x8x96xf32>
    "tpu.trace_stop"() : () -> ()
    %343 = vector.shape_cast %342 : vector<2x8x96xf32> to vector<16x96xf32>
    %344 = arith.truncf %343 : vector<16x96xf32> to vector<16x96xbf16>
    %c672 = arith.constant 672 : index
    %c0_218 = arith.constant 0 : index
    %345 = vector.load %arg7[%c672, %c0_218] : memref<768x768xbf16, #tpu.memory_space<vmem>>, vector<96x768xbf16>
    %cst_219 = arith.constant dense<0.000000e+00> : vector<16x768xf32>
    %346 = tpu.matmul %344, %345, %cst_219 {dimension_numbers = #tpu.dot_dimension_numbers<[1], [0], [0], [1], [0, 0, 1, 1], [], []>} : vector<16x96xbf16>, vector<96x768xbf16>, vector<16x768xf32> -> vector<16x768xf32>
    %347 = arith.addf %304, %346 : vector<16x768xf32>
    %c0_220 = arith.constant 0 : index
    %c0_221 = arith.constant 0 : index
    %348 = vector.load %arg8[%c0_220, %c0_221] : memref<1x768xf32, #tpu.memory_space<vmem>>, vector<1x768xf32>
    %349 = vector.broadcast %348 : vector<1x768xf32> to vector<16x768xf32>
    %350 = arith.addf %347, %349 : vector<16x768xf32>
    %351 = arith.truncf %350 : vector<16x768xf32> to vector<16x768xbf16>
    %c0_222 = arith.constant 0 : index
    %c0_223 = arith.constant 0 : index
    %352 = vector.load %arg9[%c0_222, %c0_223] : memref<768x128xbf16, #tpu.memory_space<vmem>>, vector<768x128xbf16>
    %cst_224 = arith.constant dense<0.000000e+00> : vector<16x128xf32>
    %353 = tpu.matmul %351, %352, %cst_224 {dimension_numbers = #tpu.dot_dimension_numbers<[1], [0], [0], [1], [0, 0, 1, 1], [], []>} : vector<16x768xbf16>, vector<768x128xbf16>, vector<16x128xf32> -> vector<16x128xf32>
    %c0_225 = arith.constant 0 : index
    %c0_226 = arith.constant 0 : index
    %354 = vector.load %arg10[%c0_225, %c0_226] : memref<1x128xf32, #tpu.memory_space<vmem>>, vector<1x128xf32>
    %355 = vector.broadcast %354 : vector<1x128xf32> to vector<16x128xf32>
    %356 = arith.addf %353, %355 : vector<16x128xf32>
    %c0_227 = arith.constant 0 : index
    %c0_228 = arith.constant 0 : index
    %357 = vector.load %arg11[%c0_227, %c0_228] : memref<1x128xf32, #tpu.memory_space<vmem>>, vector<1x128xf32>
    %c0_229 = arith.constant 0 : index
    %c0_230 = arith.constant 0 : index
    %358 = vector.load %arg12[%c0_229, %c0_230] : memref<1x128xf32, #tpu.memory_space<vmem>>, vector<1x128xf32>
    %cst_231 = arith.constant dense<0.000000e+00> : vector<16xf32>
    %359 = vector.multi_reduction <add>, %356, %cst_231 [1] : vector<16x128xf32> to vector<16xf32>
    %360 = vector.shape_cast %359 : vector<16xf32> to vector<16x1xf32>
    %cst_232 = arith.constant 1.280000e+02 : f32
    %361 = vector.broadcast %cst_232 : f32 to vector<16x1xf32>
    %362 = arith.divf %360, %361 : vector<16x1xf32>
    %363 = vector.broadcast %362 : vector<16x1xf32> to vector<16x128xf32>
    %364 = arith.subf %356, %363 : vector<16x128xf32>
    %365 = vector.broadcast %362 : vector<16x1xf32> to vector<16x128xf32>
    %366 = arith.subf %356, %365 : vector<16x128xf32>
    %367 = arith.mulf %364, %366 : vector<16x128xf32>
    %cst_233 = arith.constant dense<0.000000e+00> : vector<16xf32>
    %368 = vector.multi_reduction <add>, %367, %cst_233 [1] : vector<16x128xf32> to vector<16xf32>
    %369 = vector.shape_cast %368 : vector<16xf32> to vector<16x1xf32>
    %cst_234 = arith.constant 1.280000e+02 : f32
    %370 = vector.broadcast %cst_234 : f32 to vector<16x1xf32>
    %371 = arith.divf %369, %370 : vector<16x1xf32>
    %372 = vector.broadcast %362 : vector<16x1xf32> to vector<16x128xf32>
    %373 = arith.subf %356, %372 : vector<16x128xf32>
    %cst_235 = arith.constant 9.99999974E-6 : f32
    %374 = vector.broadcast %cst_235 : f32 to vector<16x1xf32>
    %375 = arith.addf %371, %374 : vector<16x1xf32>
    %376 = math.rsqrt %375 : vector<16x1xf32>
    %377 = vector.broadcast %376 : vector<16x1xf32> to vector<16x128xf32>
    %378 = arith.mulf %373, %377 : vector<16x128xf32>
    %379 = vector.broadcast %357 : vector<1x128xf32> to vector<16x128xf32>
    %380 = arith.mulf %378, %379 : vector<16x128xf32>
    %381 = vector.broadcast %358 : vector<1x128xf32> to vector<16x128xf32>
    %382 = arith.addf %380, %381 : vector<16x128xf32>
    %383 = vector.shape_cast %382 : vector<16x128xf32> to vector<2x8x128xf32>
    %c0_236 = arith.constant 0 : index
    %c0_237 = arith.constant 0 : index
    %c0_238 = arith.constant 0 : index
    %384 = vector.load %arg13[%c0_236, %c0_237, %c0_238] : memref<2x8x128xf32, #tpu.memory_space<vmem>>, vector<2x8x128xf32>
    tpu.vector_store %arg13[%c0_236, %c0_237, %c0_238], %383 {strides = array<i32>} : memref<2x8x128xf32, #tpu.memory_space<vmem>>, vector<2x8x128xf32>,
    %cst_239 = arith.constant dense<0.000000e+00> : vector<2x128xf32>
    %385 = vector.multi_reduction <add>, %383, %cst_239 [1] : vector<2x8x128xf32> to vector<2x128xf32>
    %cst_240 = arith.constant 8.000000e+00 : f32
    %386 = vector.broadcast %cst_240 : f32 to vector<2x128xf32>
    %387 = arith.divf %385, %386 : vector<2x128xf32>
    %c0_241 = arith.constant 0 : index
    %c0_242 = arith.constant 0 : index
    %388 = vector.load %arg14[%c0_241, %c0_242] : memref<2x128xf32, #tpu.memory_space<vmem>>, vector<2x128xf32>
    tpu.vector_store %arg14[%c0_241, %c0_242], %387 {strides = array<i32>} : memref<2x128xf32, #tpu.memory_space<vmem>>, vector<2x128xf32>,
    return
  }
}

</mosaic_0001>

<bundles_post_ra>
// kernel: tpu_custom_call.1
= control target key start
LH: loop header
LB: loop body
LE: loop exit
PB: predicated region body
PF: predicated region fallthrough
CT: control target
= control target key end

     0   :  { %20 = vsyncpa [#allocation3], 0  ;;  %s19538_s0 = inlined_call_operand.hbm [shape: f32[2,8,768], index: 0, kind: input, shape index: {}]   ;;  %s19539_s1 = inlined_call_operand.hbm [shape: bf16[8,96,768], index: 1, kind: input, shape index: {}]   ;;  %s19540_s2 = inlined_call_operand.hbm [shape: bf16[8,96,768], index: 2, kind: input, shape index: {}]   ;;  %s19541_s3 = inlined_call_operand.hbm [shape: bf16[8,96,768], index: 3, kind: input, shape index: {}]   ;;  %s19542_s4 = inlined_call_operand.hbm [shape: f32[8,1,96], index: 4, kind: input, shape index: {}]   ;;  %s19543_s5 = inlined_call_operand.hbm [shape: f32[8,1,96], index: 5, kind: input, shape index: {}]   ;;  %s19544_s6 = inlined_call_operand.hbm [shape: f32[8,1,96], index: 6, kind: input, shape index: {}]   ;;  %s19545_s7 = inlined_call_operand.hbm [shape: bf16[768,768], index: 7, kind: input, shape index: {}]   ;;  %s19546_s8 = inlined_call_operand.hbm [shape: f32[1,768], index: 8, kind: input, shape index: {}]   ;;  %s19547_s9 = inlined_call_operand.hbm [shape: bf16[768,128], index: 9, kind: input, shape index: {}]   ;;  %s19548_s10 = inlined_call_operand.hbm [shape: f32[1,128], index: 10, kind: input, shape index: {}]   ;;  %s19549_s11 = inlined_call_operand.hbm [shape: f32[1,128], index: 11, kind: input, shape index: {}]   ;;  %s19550_s12 = inlined_call_operand.hbm [shape: f32[1,128], index: 12, kind: input, shape index: {}]   ;;  %s19551_s13 = inlined_call_operand.hbm [shape: f32[2,8,128], index: 13, kind: output, shape index: {0}]   ;;  %s19552_s14 = inlined_call_operand.hbm [shape: f32[2,128], index: 14, kind: output, shape index: {1}]  }
   0x1   :  { %21 = vsyncpa [#allocation6], 0 }
   0x2   :  { %22 = vsyncpa [#allocation9], 0 }
   0x3   :  { %23 = vsyncpa [#allocation12], 0 }
   0x4   :  { %24 = vsyncpa [#allocation15], 0 }
   0x5   :  { %25 = vsyncpa [#allocation18], 0 }
   0x6   :  { %26 = vsyncpa [#allocation21], 0 }
   0x7   :  { %27 = vsyncpa [#allocation4], 0 }
   0x8   :  { %28 = vsyncpa [#allocation25], 0  ;;  %s18821_s29 = smov [#allocation5]   ;;  %s18473_s17 = scalar_lea.hbm %s19539_s1, 36864 }
   0x9   :  { %s46_s30 = sshll.u32 %s18821_s29, 4  ;;  %p18474_p0 = scmp.ne.s32.totalorder %s19539_s1, %s18473_s17  ;;  %s47_s30 = int_to_ptr.vmem [resolvable:$true] %s46_s30 }
   0xa   :  { %p18477_p1 = scmp.lt.u32.totalorder %s18473_s17, %s19539_s1 }
   0xc   :  { %p18479_p2 = pnand %p18477_p1, %p18474_p0 }
   0xe   :  { %18482 = shalt.err (!%p18479_p2)
}
   0xf   :  { %s18483_s22 = scalar_lea.vmem %s47_s30, 36864  ;;  %p18488_p4 = scmp.lt.s32.totalorder %s47_s30, %s47_s30 }
  0x10   :  { %p18484_p3 = scmp.ne.s32.totalorder %s47_s30, %s18483_s22  ;;  %p18489_p5 = scmp.lt.s32.totalorder %s18483_s22, %s18483_s22 }
  0x12   :  { %p18490_p6 = por %p18489_p5, %p18488_p4 }
  0x14   :  { %p18491_p7 = pnand %p18490_p6, %p18484_p3 }
  0x16   :  { %18494 = shalt.err (!%p18491_p7)
}
  0x17   :  { %s18822_s23 = smov 384   ;;  %s18823_s24 = smov 24  }
  0x18   :  { %52 = dma.hbm_to_vmem [thread:$0]  %s19539_s1, 36864, %s47_s30, [#allocation6], %s18822_s23, %s18822_s23, %s18823_s24  }
  0x19   :  { %s18824_s27 = smov [#allocation8]   ;;  %s18495_s16 = scalar_lea.hbm %s19541_s3, 36864 }
  0x1a   :  { %s70_s28 = sshll.u32 %s18824_s27, 4  ;;  %p18496_p8 = scmp.ne.s32.totalorder %s19541_s3, %s18495_s16  ;;  %s71_s28 = int_to_ptr.vmem [resolvable:$true] %s70_s28 }
  0x1b   :  { %p18499_p9 = scmp.lt.u32.totalorder %s18495_s16, %s19541_s3 }
  0x1d   :  { %p18501_p10 = pnand %p18499_p9, %p18496_p8 }
  0x1f   :  { %18504 = shalt.err (!%p18501_p10)
}
  0x20   :  { %s18505_s21 = scalar_lea.vmem %s71_s28, 36864  ;;  %p18510_p12 = scmp.lt.s32.totalorder %s71_s28, %s71_s28 }
  0x21   :  { %p18506_p11 = scmp.ne.s32.totalorder %s71_s28, %s18505_s21  ;;  %p18511_p13 = scmp.lt.s32.totalorder %s18505_s21, %s18505_s21 }
  0x23   :  { %p18512_p0 = por %p18511_p13, %p18510_p12 }
  0x25   :  { %p18513_p1 = pnand %p18512_p0, %p18506_p11 }
  0x27   :  { %18516 = shalt.err (!%p18513_p1)
}
  0x28   :  { %76 = dma.hbm_to_vmem [thread:$0]  %s19541_s3, 36864, %s71_s28, [#allocation9], %s18822_s23, %s18822_s23, %s18823_s24  }
  0x29   :  { %s18825_s22 = smov [#allocation11]   ;;  %s18826_s26 = smov [#allocation14]  }
  0x2a   :  { %s94_s25 = sshll.u32 %s18825_s22, 4  ;;  %s118_s27 = sshll.u32 %s18826_s26, 4  ;;  %s95_s25 = int_to_ptr.vmem [resolvable:$true] %s94_s25  ;;  %s18954_s27 = int_to_ptr.vmem [resolvable:$true] %s118_s27 }
  0x2b   :  { %s18517_s16 = scalar_lea.hbm %s19543_s5, 128 }
  0x2c   :  { %p18518_p2 = scmp.ne.s32.totalorder %s19543_s5, %s18517_s16  ;;  %p18521_p3 = scmp.lt.u32.totalorder %s18517_s16, %s19543_s5 }
  0x2e   :  { %p18523_p4 = pnand %p18521_p3, %p18518_p2 }
  0x30   :  { %18526 = shalt.err (!%p18523_p4)
}
  0x31   :  { %s18527_s3 = scalar_lea.vmem %s95_s25, 128  ;;  %p18532_p6 = scmp.lt.s32.totalorder %s95_s25, %s95_s25 }
  0x32   :  { %p18528_p5 = scmp.ne.s32.totalorder %s95_s25, %s18527_s3  ;;  %p18533_p7 = scmp.lt.s32.totalorder %s18527_s3, %s18527_s3 }
  0x34   :  { %p18534_p8 = por %p18533_p7, %p18532_p6 }
  0x36   :  { %p18535_p9 = pnand %p18534_p8, %p18528_p5 }
  0x38   :  { %18538 = shalt.err (!%p18535_p9)
}
  0x39   :  { %s18827_s28 = smov 16   ;;  %s18828_s21 = smov 1  }
  0x3a   :  { %100 = dma.hbm_to_vmem [thread:$0]  %s19543_s5, 128, %s95_s25, [#allocation12], %s18827_s28, %s18827_s28, %s18828_s21  }
  0x3b   :  { %s18539_s29 = scalar_lea.hbm %s19545_s7, 36864 }
  0x3c   :  { %p18540_p10 = scmp.ne.s32.totalorder %s19545_s7, %s18539_s29  ;;  %p18543_p11 = scmp.lt.u32.totalorder %s18539_s29, %s19545_s7 }
  0x3e   :  { %p18545_p12 = pnand %p18543_p11, %p18540_p10 }
  0x40   :  { %18548 = shalt.err (!%p18545_p12)
}
  0x41   :  { %s18549_s19 = scalar_lea.vmem %s18954_s27, 36864  ;;  %p18554_p0 = scmp.lt.s32.totalorder %s18954_s27, %s18954_s27 }
  0x42   :  { %p18550_p13 = scmp.ne.s32.totalorder %s18954_s27, %s18549_s19  ;;  %p18555_p1 = scmp.lt.s32.totalorder %s18549_s19, %s18549_s19 }
  0x44   :  { %p18556_p2 = por %p18555_p1, %p18554_p0 }
  0x46   :  { %p18557_p3 = pnand %p18556_p2, %p18550_p13 }
  0x48   :  { %18560 = shalt.err (!%p18557_p3)
}
  0x49   :  { %124 = dma.hbm_to_vmem [thread:$0]  %s19545_s7, 36864, %s18954_s27, [#allocation15], %s18822_s23, %s18822_s23, %s18823_s24  }
  0x4a   :  { %s18829_s20 = smov [#allocation17]   ;;  %s18561_s22 = scalar_lea.hbm %s19547_s9, 6144 }
  0x4b   :  { %s140_s3 = sshll.u32 %s18829_s20, 4  ;;  %p18562_p4 = scmp.ne.s32.totalorder %s19547_s9, %s18561_s22  ;;  %s141_s3 = int_to_ptr.vmem [resolvable:$true] %s140_s3 }
  0x4c   :  { %p18565_p5 = scmp.lt.u32.totalorder %s18561_s22, %s19547_s9 }
  0x4e   :  { %p18567_p6 = pnand %p18565_p5, %p18562_p4 }
  0x50   :  { %18570 = shalt.err (!%p18567_p6)
}
  0x51   :  { %s18571_s17 = scalar_lea.vmem %s141_s3, 6144  ;;  %p18576_p8 = scmp.lt.s32.totalorder %s141_s3, %s141_s3 }
  0x52   :  { %p18572_p7 = scmp.ne.s32.totalorder %s141_s3, %s18571_s17  ;;  %p18577_p9 = scmp.lt.s32.totalorder %s18571_s17, %s18571_s17 }
  0x54   :  { %p18578_p10 = por %p18577_p9, %p18576_p8 }
  0x56   :  { %p18579_p11 = pnand %p18578_p10, %p18572_p7 }
  0x58   :  { %18582 = shalt.err (!%p18579_p11)
}
  0x59   :  { %s18830_s7 = smov 64   ;;  %s18831_s27 = smov 4  }
  0x5a   :  { %146 = dma.hbm_to_vmem [thread:$0]  %s19547_s9, 6144, %s141_s3, [#allocation18], %s18830_s7, %s18830_s7, %s18831_s27  }
  0x5b   :  { %s18832_s5 = smov [#allocation20]   ;;  %s18833_s20 = smov [#allocation2]  }
  0x5c   :  { %s163_s25 = sshll.u32 %s18832_s5, 4  ;;  %s34_s1 = sshll.u32 %s18833_s20, 4  ;;  %s164_s25 = int_to_ptr.vmem [resolvable:$true] %s163_s25  ;;  %s35_s1 = int_to_ptr.vmem [resolvable:$true] %s34_s1 }
  0x5d   :  { %s18583_s26 = scalar_lea.hbm %s19549_s11, 16 }
  0x5e   :  { %p18584_p12 = scmp.ne.s32.totalorder %s19549_s11, %s18583_s26  ;;  %p18587_p13 = scmp.lt.u32.totalorder %s18583_s26, %s19549_s11 }
  0x60   :  { %p18589_p0 = pnand %p18587_p13, %p18584_p12 }
  0x62   :  { %18592 = shalt.err (!%p18589_p0)
}
  0x63   :  { %s18593_s9 = scalar_lea.vmem %s164_s25, 16  ;;  %s18597_s3 = scalar_lea.vmem %s164_s25, 32 }
  0x64   :  { %p18594_p1 = scmp.ne.s32.totalorder %s164_s25, %s18593_s9  ;;  %p18598_p2 = scmp.lt.s32.totalorder %s164_s25, %s164_s25 }
  0x65   :  { %p18599_p3 = scmp.lt.s32.totalorder %s18597_s3, %s18593_s9 }
  0x67   :  { %p18600_p4 = por %p18599_p3, %p18598_p2 }
  0x69   :  { %p18601_p5 = pnand %p18600_p4, %p18594_p1 }
  0x6b   :  { %18604 = shalt.err (!%p18601_p5)
}
  0x6c   :  { %166 = dma.hbm_to_vmem [thread:$0]  %s19549_s11, 16, %s164_s25, [#allocation21]  }
  0x6d   :  { %s18605_s5 = scalar_lea.hbm %s19538_s0, 1536 }
  0x6e   :  { %p18606_p6 = scmp.ne.s32.totalorder %s19538_s0, %s18605_s5  ;;  %p18609_p7 = scmp.lt.u32.totalorder %s18605_s5, %s19538_s0 }
  0x70   :  { %p18611_p8 = pnand %p18609_p7, %p18606_p6 }
  0x72   :  { %18614 = shalt.err (!%p18611_p8)
}
  0x73   :  { %s18615_s29 = scalar_lea.vmem %s35_s1, 1536  ;;  %p18620_p10 = scmp.lt.s32.totalorder %s35_s1, %s35_s1 }
  0x74   :  { %p18616_p9 = scmp.ne.s32.totalorder %s35_s1, %s18615_s29  ;;  %p18621_p11 = scmp.lt.s32.totalorder %s18615_s29, %s18615_s29 }
  0x76   :  { %p18622_p12 = por %p18621_p11, %p18620_p10 }
  0x78   :  { %p18623_p13 = pnand %p18622_p12, %p18616_p9 }
  0x7a   :  { %18626 = shalt.err (!%p18623_p13)
}
  0x7b   :  { %s18834_s11 = smov 768   ;;  %s18835_s25 = smov 48  }
  0x7c   :  { %40 = dma.hbm_to_vmem [thread:$0]  %s19538_s0, 1536, %s35_s1, [#allocation3], %s18834_s11, %s18834_s11, %s18835_s25  }
  0x7d   :  { %s18836_s17 = smov [#allocation7]   ;;  %s18837_s3 = smov [#allocation10]  }
  0x7e   :  { %s58_s9 = sshll.u32 %s18836_s17, 4  ;;  %s82_s7 = sshll.u32 %s18837_s3, 4  ;;  %s59_s9 = int_to_ptr.vmem [resolvable:$true] %s58_s9  ;;  %s83_s7 = int_to_ptr.vmem [resolvable:$true] %s82_s7 }
  0x7f   :  { %s18627_s19 = scalar_lea.hbm %s19540_s2, 36864 }
  0x80   :  { %p18628_p0 = scmp.ne.s32.totalorder %s19540_s2, %s18627_s19  ;;  %p18631_p1 = scmp.lt.u32.totalorder %s18627_s19, %s19540_s2 }
  0x82   :  { %p18633_p2 = pnand %p18631_p1, %p18628_p0 }
  0x84   :  { %18636 = shalt.err (!%p18633_p2)
}
  0x85   :  { %s18637_s0 = scalar_lea.vmem %s59_s9, 36864  ;;  %p18642_p4 = scmp.lt.s32.totalorder %s59_s9, %s59_s9 }
  0x86   :  { %p18638_p3 = scmp.ne.s32.totalorder %s59_s9, %s18637_s0  ;;  %p18643_p5 = scmp.lt.s32.totalorder %s18637_s0, %s18637_s0 }
  0x88   :  { %p18644_p6 = por %p18643_p5, %p18642_p4 }
  0x8a   :  { %p18645_p7 = pnand %p18644_p6, %p18638_p3 }
  0x8c   :  { %18648 = shalt.err (!%p18645_p7)
}
  0x8d   :  { %64 = dma.hbm_to_vmem [thread:$0]  %s19540_s2, 36864, %s59_s9, [#allocation6], %s18822_s23, %s18822_s23, %s18823_s24  }
  0x8e   :  { %s18649_s25 = scalar_lea.hbm %s19542_s4, 128 }
  0x8f   :  { %p18650_p8 = scmp.ne.s32.totalorder %s19542_s4, %s18649_s25  ;;  %p18653_p9 = scmp.lt.u32.totalorder %s18649_s25, %s19542_s4 }
  0x91   :  { %p18655_p10 = pnand %p18653_p9, %p18650_p8 }
  0x93   :  { %18658 = shalt.err (!%p18655_p10)
}
  0x94   :  { %s18659_s27 = scalar_lea.vmem %s83_s7, 128  ;;  %p18664_p12 = scmp.lt.s32.totalorder %s83_s7, %s83_s7 }
  0x95   :  { %p18660_p11 = scmp.ne.s32.totalorder %s83_s7, %s18659_s27  ;;  %p18665_p13 = scmp.lt.s32.totalorder %s18659_s27, %s18659_s27 }
  0x97   :  { %p18666_p0 = por %p18665_p13, %p18664_p12 }
  0x99   :  { %p18667_p1 = pnand %p18666_p0, %p18660_p11 }
  0x9b   :  { %18670 = shalt.err (!%p18667_p1)
}
  0x9c   :  { %88 = dma.hbm_to_vmem [thread:$0]  %s19542_s4, 128, %s83_s7, [#allocation9], %s18827_s28, %s18827_s28, %s18828_s21  }
  0x9d   :  { %s18838_s24 = smov [#allocation13]   ;;  %s18839_s18 = smov [#allocation16]  }
  0x9e   :  { %s106_s9 = sshll.u32 %s18838_s24, 4  ;;  %s131_s19 = sshll.u32 %s18839_s18, 4  ;;  %s107_s9 = int_to_ptr.vmem [resolvable:$true] %s106_s9  ;;  %s132_s19 = int_to_ptr.vmem [resolvable:$true] %s131_s19 }
  0x9f   :  { %s18671_s30 = scalar_lea.hbm %s19544_s6, 128 }
  0xa0   :  { %p18672_p2 = scmp.ne.s32.totalorder %s19544_s6, %s18671_s30  ;;  %p18675_p3 = scmp.lt.u32.totalorder %s18671_s30, %s19544_s6 }
  0xa2   :  { %p18677_p4 = pnand %p18675_p3, %p18672_p2 }
  0xa4   :  { %18680 = shalt.err (!%p18677_p4)
}
  0xa5   :  { %s18681_s4 = scalar_lea.vmem %s107_s9, 128  ;;  %p18686_p6 = scmp.lt.s32.totalorder %s107_s9, %s107_s9 }
  0xa6   :  { %p18682_p5 = scmp.ne.s32.totalorder %s107_s9, %s18681_s4  ;;  %p18687_p7 = scmp.lt.s32.totalorder %s18681_s4, %s18681_s4 }
  0xa8   :  { %p18688_p8 = por %p18687_p7, %p18686_p6 }
  0xaa   :  { %p18689_p9 = pnand %p18688_p8, %p18682_p5 }
  0xac   :  { %18692 = shalt.err (!%p18689_p9)
}
  0xad   :  { %112 = dma.hbm_to_vmem [thread:$0]  %s19544_s6, 128, %s107_s9, [#allocation12], %s18827_s28, %s18827_s28, %s18828_s21  }
  0xae   :  { %s18693_s15 = scalar_lea.hbm %s19546_s8, 96 }
  0xaf   :  { %p18694_p10 = scmp.ne.s32.totalorder %s19546_s8, %s18693_s15  ;;  %p18697_p11 = scmp.lt.u32.totalorder %s18693_s15, %s19546_s8 }
  0xb1   :  { %p18699_p12 = pnand %p18697_p11, %p18694_p10 }
  0xb3   :  { %18702 = shalt.err (!%p18699_p12)
}
  0xb4   :  { %s18703_s2 = scalar_lea.vmem %s132_s19, 96  ;;  %p18708_p0 = scmp.lt.s32.totalorder %s132_s19, %s132_s19 }
  0xb5   :  { %p18704_p13 = scmp.ne.s32.totalorder %s132_s19, %s18703_s2  ;;  %p18709_p1 = scmp.lt.s32.totalorder %s18703_s2, %s18703_s2 }
  0xb7   :  { %p18710_p2 = por %p18709_p1, %p18708_p0 }
  0xb9   :  { %p18711_p3 = pnand %p18710_p2, %p18704_p13 }
  0xbb   :  { %18714 = shalt.err (!%p18711_p3)
}
  0xbc   :  { %134 = dma.hbm_to_vmem [thread:$0]  %s19546_s8, 96, %s132_s19, [#allocation15]  }
  0xbd   :  { %s18840_s21 = smov [#allocation19]   ;;  %s18841_s24 = smov [#allocation22]  }
  0xbe   :  { %s153_s23 = sshll.u32 %s18840_s21, 4  ;;  %s173_s9 = sshll.u32 %s18841_s24, 4  ;;  %s154_s23 = int_to_ptr.vmem [resolvable:$true] %s153_s23  ;;  %s174_s9 = int_to_ptr.vmem [resolvable:$true] %s173_s9 }
  0xbf   :  { %s18715_s20 = scalar_lea.hbm %s19548_s10, 16 }
  0xc0   :  { %p18716_p4 = scmp.ne.s32.totalorder %s19548_s10, %s18715_s20  ;;  %p18719_p5 = scmp.lt.u32.totalorder %s18715_s20, %s19548_s10 }
  0xc2   :  { %p18721_p6 = pnand %p18719_p5, %p18716_p4 }
  0xc4   :  { %18724 = shalt.err (!%p18721_p6)
}
  0xc5   :  { %s18725_s8 = scalar_lea.vmem %s154_s23, 16  ;;  %s18729_s19 = scalar_lea.vmem %s154_s23, 32 }
  0xc6   :  { %p18726_p7 = scmp.ne.s32.totalorder %s154_s23, %s18725_s8  ;;  %p18730_p8 = scmp.lt.s32.totalorder %s154_s23, %s154_s23 }
  0xc7   :  { %p18731_p9 = scmp.lt.s32.totalorder %s18729_s19, %s18725_s8 }
  0xc9   :  { %p18732_p10 = por %p18731_p9, %p18730_p8 }
  0xcb   :  { %p18733_p11 = pnand %p18732_p10, %p18726_p7 }
  0xcd   :  { %18736 = shalt.err (!%p18733_p11)
}
  0xce   :  { %156 = dma.hbm_to_vmem [thread:$0]  %s19548_s10, 16, %s154_s23, [#allocation18]  }
  0xcf   :  { %s18737_s11 = scalar_lea.hbm %s19550_s12, 16 }
  0xd0   :  { %p18738_p12 = scmp.ne.s32.totalorder %s19550_s12, %s18737_s11  ;;  %p18741_p13 = scmp.lt.u32.totalorder %s18737_s11, %s19550_s12 }
  0xd2   :  { %p18743_p0 = pnand %p18741_p13, %p18738_p12 }
  0xd4   :  { %18746 = shalt.err (!%p18743_p0)
}
  0xd5   :  { %s18747_s3 = scalar_lea.vmem %s174_s9, 16  ;;  %s18751_s27 = scalar_lea.vmem %s174_s9, 32 }
  0xd6   :  { %p18748_p1 = scmp.ne.s32.totalorder %s174_s9, %s18747_s3  ;;  %p18752_p2 = scmp.lt.s32.totalorder %s174_s9, %s174_s9 }
  0xd7   :  { %p18753_p3 = scmp.lt.s32.totalorder %s18751_s27, %s18747_s3 }
  0xd9   :  { %p18754_p4 = por %p18753_p3, %p18752_p2 }
  0xdb   :  { %p18755_p5 = pnand %p18754_p4, %p18748_p1 }
  0xdd   :  { %18758 = shalt.err (!%p18755_p5)
}
  0xde   :  { %176 = dma.hbm_to_vmem [thread:$0]  %s19550_s12, 16, %s174_s9, [#allocation21]  }
  0xdf   :  { %18803 = dma.done.wait [#allocation3], 1536  }
  0xe0   :  { %18804 = vsyncadd [#allocation3], 4294965760 }
  0xe1   :  { %18805 = dma.done.wait [#allocation6], 73728  }
  0xe2   :  { %18806 = vsyncadd [#allocation6], 4294893568 }
  0xe3   :  { %18807 = dma.done.wait [#allocation9], 36992  }
  0xe4   :  { %18808 = vsyncadd [#allocation9], 4294930304 }
  0xe5   :  { %18809 = dma.done.wait [#allocation12], 256  }
  0xe6   :  { %18810 = vsyncadd [#allocation12], 4294967040 }
  0xe7   :  { %18811 = dma.done.wait [#allocation15], 36960  }
  0xe8   :  { %18812 = vsyncadd [#allocation15], 4294930336 }
  0xe9   :  { %18813 = dma.done.wait [#allocation18], 6160  }
  0xea   :  { %18814 = vsyncadd [#allocation18], 4294961136 }
  0xeb   :  { %18815 = dma.done.wait [#allocation21], 32  }
  0xec   :  { %18816 = vsyncadd [#allocation21], 4294967264  ;;  %v16629_v0 = vld [vmem:[#allocation5 + $0x4] ss:$24 sps:$4 sm:$0xff]   ;;  %v16633_v2 = vld [vmem:[#allocation5] ss:$24 sps:$4 sm:$0xff]  }
  0xed   :  { %v16631_v1 = vld [vmem:[#allocation7 + $0x4] ss:$24 sps:$4 sm:$0xff]   ;;  %458 = vmatprep.subr.bf16.mxu0 %v16629_v0  ;;  %v16634_v3 = vld [vmem:[#allocation7] ss:$24 sps:$4 sm:$0xff]   ;;  %v16635_v4 = vld [vmem:[#allocation5 + $0x34] ss:$24 sps:$4 sm:$0xff]  }
  0xee   :  { %804 = vmatprep.subr.bf16.mxu1 %v16631_v1  ;;  %459 = vmatpush1.bf16.xpose.msra.mxu0 %v16633_v2  ;;  %v16637_v5 = vld [vmem:[#allocation7 + $0x34] ss:$24 sps:$4 sm:$0xff]   ;;  %v16639_v6 = vld [vmem:[#allocation5 + $0x30] ss:$24 sps:$4 sm:$0xff]   ;;  %v16641_v8 = vld [vmem:[#allocation5 + $0x64] ss:$24 sps:$4 sm:$0xff]  }
  0xef   :  { %805 = vmatpush1.bf16.xpose.msra.mxu1 %v16634_v3  ;;  %460 = vmatprep.subr.bf16.mxu0 %v16635_v4  ;;  %v16640_v7 = vld [vmem:[#allocation7 + $0x30] ss:$24 sps:$4 sm:$0xff]   ;;  %v16643_v9 = vld [vmem:[#allocation7 + $0x64] ss:$24 sps:$4 sm:$0xff]   ;;  %v16645_v10 = vld [vmem:[#allocation5 + $0x60] ss:$24 sps:$4 sm:$0xff]  }
  0xf0   :  { %806 = vmatprep.subr.bf16.mxu1 %v16637_v5  ;;  %v16646_v11 = vld [vmem:[#allocation7 + $0x60] ss:$24 sps:$4 sm:$0xff]   ;;  %v218_v12 = vld [vmem:[#allocation2 + $0x8] sm:$0xff]  ;;  %v16653_v19 = vld [vmem:[#allocation5 + $0xc4] ss:$24 sps:$4 sm:$0xff]   ;;  %vm18843_vm0 = vmmov 0  }
  0xf1   :  { %v224_v13 = vld [vmem:[#allocation2 + $0x38] sm:$0xff]  ;;  %v16647_v14 = vld [vmem:[#allocation5 + $0x94] ss:$24 sps:$4 sm:$0xff]   ;;  %v16651_v17 = vld [vmem:[#allocation5 + $0x90] ss:$24 sps:$4 sm:$0xff]   ;;  %vm1273_vm1 = vcmask 785408  }
  0xf2   :  { %v16649_v15 = vld [vmem:[#allocation7 + $0x94] ss:$24 sps:$4 sm:$0xff]   ;;  %v19108_v16 = vpack.c.bf16 %v224_v13, %v218_v12  ;;  %v16652_v18 = vld [vmem:[#allocation7 + $0x90] ss:$24 sps:$4 sm:$0xff]   ;;  %v16655_v20 = vld [vmem:[#allocation7 + $0xc4] ss:$24 sps:$4 sm:$0xff]  }
  0xf3   :  { %v16657_v21 = vld [vmem:[#allocation5 + $0xc0] ss:$24 sps:$4 sm:$0xff]   ;;  %v16659_v23 = vld [vmem:[#allocation5 + $0xf4] ss:$24 sps:$4 sm:$0xff]   ;;  %v16663_v25 = vld [vmem:[#allocation5 + $0xf0] ss:$24 sps:$4 sm:$0xff]  }
  0xf4   :  { %490 = vmatprep.mubr.bf16.mxu0 %v19108_v16  ;;  %836 = vmatprep.mubr.bf16.mxu1 %v19108_v16  ;;  %v16658_v22 = vld [vmem:[#allocation7 + $0xc0] ss:$24 sps:$4 sm:$0xff]   ;;  %v16661_v24 = vld [vmem:[#allocation7 + $0xf4] ss:$24 sps:$4 sm:$0xff]   ;;  %v16664_v26 = vld [vmem:[#allocation7 + $0xf0] ss:$24 sps:$4 sm:$0xff]  }
  0xf5   :  { %v16667_v27 = vld [vmem:[#allocation5 + $0xc] ss:$24 sps:$4 sm:$0xff]   ;;  %v223_v30 = vld [vmem:[#allocation2 + $0x30] sm:$0xff]  ;;  %v16665_v31 = vld [vmem:[#allocation5 + $0x8] ss:$24 sps:$4 sm:$0xff]   ;;  %vm1428_vm2 = vcmask 64512  }
  0xf6   :  { %461 = vmatpush1.bf16.xpose.msra.mxu0 %v16639_v6  ;;  %v16670_v28 = vld [vmem:[#allocation7 + $0xc] ss:$24 sps:$4 sm:$0xff]   ;;  %v16668_v32 = vld [vmem:[#allocation7 + $0x8] ss:$24 sps:$4 sm:$0xff]   ;;  %v220_v34 = vld [vmem:[#allocation2 + $0x18] sm:$0xff]  ;;  %s18845_s12 = smov [#allocation23]  }
  0xf7   :  { %807 = vmatpush1.bf16.xpose.msra.mxu1 %v16640_v7  ;;  %462 = vmatprep.subr.bf16.mxu0 %v16641_v8  ;;  %v217_v29 = vld [vmem:[#allocation2] sm:$0xff]  ;;  %v226_v35 = vld [vmem:[#allocation2 + $0x48] sm:$0xff]  ;;  %v16673_v36 = vld [vmem:[#allocation5 + $0x3c] ss:$24 sps:$4 sm:$0xff]   ;;  %s14656_s6 = sshll.u32 %s18845_s12, 4  ;;  %s14657_s6 = int_to_ptr.vmem [resolvable:$true] %s14656_s6 }
  0xf8   :  { %808 = vmatprep.subr.bf16.mxu1 %v16643_v9  ;;  %v19112_v33 = vpack.c.bf16 %v223_v30, %v217_v29  ;;  %v16676_v37 = vld [vmem:[#allocation7 + $0x3c] ss:$24 sps:$4 sm:$0xff]   ;;  %v19114_v38 = vpack.c.bf16 %v226_v35, %v220_v34  ;;  %v16671_v39 = vld [vmem:[#allocation5 + $0x38] ss:$24 sps:$4 sm:$0xff]   ;;  %v16679_v41 = vld [vmem:[#allocation5 + $0x6c] ss:$24 sps:$4 sm:$0xff]   ;;  %p18764_p7 = scmp.lt.s32.totalorder %s14657_s6, %s14657_s6 }
  0xf9   :  { %v16674_v40 = vld [vmem:[#allocation7 + $0x38] ss:$24 sps:$4 sm:$0xff]   ;;  %v16682_v42 = vld [vmem:[#allocation7 + $0x6c] ss:$24 sps:$4 sm:$0xff]   ;;  %v16677_v43 = vld [vmem:[#allocation5 + $0x68] ss:$24 sps:$4 sm:$0xff]  }
  0xfa   :  { %v16680_v44 = vld [vmem:[#allocation7 + $0x68] ss:$24 sps:$4 sm:$0xff]   ;;  %v16685_v45 = vld [vmem:[#allocation5 + $0x9c] ss:$24 sps:$4 sm:$0xff]   ;;  %v16683_v47 = vld [vmem:[#allocation5 + $0x98] ss:$24 sps:$4 sm:$0xff]  }
  0xfb   :  { %v16688_v46 = vld [vmem:[#allocation7 + $0x9c] ss:$24 sps:$4 sm:$0xff]   ;;  %v16686_v48 = vld [vmem:[#allocation7 + $0x98] ss:$24 sps:$4 sm:$0xff]   ;;  %v16691_v49 = vld [vmem:[#allocation5 + $0xcc] ss:$24 sps:$4 sm:$0xff]  }
  0xfc   :  { %v16694_v50 = vld [vmem:[#allocation7 + $0xcc] ss:$24 sps:$4 sm:$0xff]   ;;  %v16689_v51 = vld [vmem:[#allocation5 + $0xc8] ss:$24 sps:$4 sm:$0xff]   ;;  %v16697_v53 = vld [vmem:[#allocation5 + $0xfc] ss:$24 sps:$4 sm:$0xff]  }
  0xfd   :  { %v16692_v52 = vld [vmem:[#allocation7 + $0xc8] ss:$24 sps:$4 sm:$0xff]   ;;  %v16700_v54 = vld [vmem:[#allocation7 + $0xfc] ss:$24 sps:$4 sm:$0xff]   ;;  %v16695_v55 = vld [vmem:[#allocation5 + $0xf8] ss:$24 sps:$4 sm:$0xff]  }
  0xfe   :  { %463 = vmatpush1.bf16.xpose.msra.mxu0 %v16645_v10  ;;  %v16698_v56 = vld [vmem:[#allocation7 + $0xf8] ss:$24 sps:$4 sm:$0xff]   ;;  %v16703_v57 = vld [vmem:[#allocation5 + $0x14] ss:$24 sps:$4 sm:$0xff]   ;;  %v225_v60 = vld [vmem:[#allocation2 + $0x40] sm:$0xff]  ;;  %s18759_s28 = scalar_lea.vmem %s14657_s6, 256 }
  0xff   :  { %809 = vmatpush1.bf16.xpose.msra.mxu1 %v16646_v11  ;;  %464 = vmatprep.subr.bf16.mxu0 %v16647_v14  ;;  %v16706_v58 = vld [vmem:[#allocation7 + $0x14] ss:$24 sps:$4 sm:$0xff]   ;;  %v228_v62 = vld [vmem:[#allocation2 + $0x58] sm:$0xff]  ;;  %v16701_v63 = vld [vmem:[#allocation5 + $0x10] ss:$24 sps:$4 sm:$0xff]   ;;  %p18760_p6 = scmp.ne.s32.totalorder %s14657_s6, %s18759_s28  ;;  %p18765_p8 = scmp.lt.s32.totalorder %s18759_s28, %s18759_s28 }
 0x100   :  { %810 = vmatprep.subr.bf16.mxu1 %v16649_v15  ;;  %v219_v59 = vld [vmem:[#allocation2 + $0x10] sm:$0xff]  ;;  %v222_v61 = vld [vmem:[#allocation2 + $0x28] sm:$0xff]  ;;  %v16709_v2 = vld [vmem:[#allocation5 + $0x44] ss:$24 sps:$4 sm:$0xff]  }
 0x101   :  { %v16704_v0 = vld [vmem:[#allocation7 + $0x10] ss:$24 sps:$4 sm:$0xff]   ;;  %v19120_v1 = vpack.c.bf16 %v225_v60, %v219_v59  ;;  %v16712_v3 = vld [vmem:[#allocation7 + $0x44] ss:$24 sps:$4 sm:$0xff]   ;;  %v19122_v4 = vpack.c.bf16 %v228_v62, %v222_v61  ;;  %v16707_v5 = vld [vmem:[#allocation5 + $0x40] ss:$24 sps:$4 sm:$0xff]   ;;  %p18766_p9 = por %p18765_p8, %p18764_p7 }
 0x102   :  { %v16710_v6 = vld [vmem:[#allocation7 + $0x40] ss:$24 sps:$4 sm:$0xff]   ;;  %v16715_v7 = vld [vmem:[#allocation5 + $0x74] ss:$24 sps:$4 sm:$0xff]   ;;  %v16713_v9 = vld [vmem:[#allocation5 + $0x70] ss:$24 sps:$4 sm:$0xff]  }
 0x103   :  { %v16718_v8 = vld [vmem:[#allocation7 + $0x74] ss:$24 sps:$4 sm:$0xff]   ;;  %v16716_v10 = vld [vmem:[#allocation7 + $0x70] ss:$24 sps:$4 sm:$0xff]   ;;  %v16721_v11 = vld [vmem:[#allocation5 + $0xa4] ss:$24 sps:$4 sm:$0xff]   ;;  %p18767_p10 = pnand %p18766_p9, %p18760_p6 }
 0x104   :  { %v16724_v12 = vld [vmem:[#allocation7 + $0xa4] ss:$24 sps:$4 sm:$0xff]   ;;  %v16719_v13 = vld [vmem:[#allocation5 + $0xa0] ss:$24 sps:$4 sm:$0xff]   ;;  %v16727_v15 = vld [vmem:[#allocation5 + $0xd4] ss:$24 sps:$4 sm:$0xff]  }
 0x105   :  { %v16722_v14 = vld [vmem:[#allocation7 + $0xa0] ss:$24 sps:$4 sm:$0xff]   ;;  %v16739_v29 = vld [vmem:[#allocation8 + $0x4] ss:$24 sps:$4 sm:$0xff]   ;;  %v16742_v30 = vld [vmem:[#allocation8 + $0x34] ss:$24 sps:$4 sm:$0xff]  }
 0x106   :  { %465 = vmatpush1.bf16.xpose.msra.mxu0 %v16651_v17  ;;  %v16730_v17 = vld [vmem:[#allocation7 + $0xd4] ss:$24 sps:$4 sm:$0xff]   ;;  %v16743_v34 = vld [vmem:[#allocation8 + $0x60] ss:$24 sps:$4 sm:$0xff]   ;;  %v16779_v59 = vld [vmem:[#allocation8 + $0x70] ss:$24 sps:$4 sm:$0xff]  }
 0x107   :  { %811 = vmatpush1.bf16.xpose.msra.mxu1 %v16652_v18  ;;  %466 = vmatprep.subr.bf16.mxu0 %v16653_v19  ;;  %v16725_v18 = vld [vmem:[#allocation5 + $0xd0] ss:$24 sps:$4 sm:$0xff]   ;;  %v16748_v35 = vld [vmem:[#allocation8 + $0x94] ss:$24 sps:$4 sm:$0xff]   ;;  %v16784_v60 = vld [vmem:[#allocation8 + $0xa4] ss:$24 sps:$4 sm:$0xff]  }
 0x108   :  { %812 = vmatprep.subr.bf16.mxu1 %v16655_v20  ;;  %v16728_v19 = vld [vmem:[#allocation7 + $0xd0] ss:$24 sps:$4 sm:$0xff]   ;;  %v16733_v20 = vld [vmem:[#allocation5 + $0x104] ss:$24 sps:$4 sm:$0xff]   ;;  %v14688_v62 = vld [vmem:[#allocation10] ss:$0 sm:$0xff] }
 0x109   :  { %v14725_v61 = vld [vmem:[#allocation11] ss:$0 sm:$0xff] }
 0x10e   :  { %467 = vmatpush1.bf16.xpose.msra.mxu0 %v16657_v21  ;;  %v16736_v21 = vld [vmem:[#allocation7 + $0x104] ss:$24 sps:$4 sm:$0xff]  }
 0x10f   :  { %813 = vmatpush1.bf16.xpose.msra.mxu1 %v16658_v22  ;;  %468 = vmatprep.subr.bf16.mxu0 %v16659_v23  ;;  %v16731_v22 = vld [vmem:[#allocation5 + $0x100] ss:$24 sps:$4 sm:$0xff]  }
 0x110   :  { %814 = vmatprep.subr.bf16.mxu1 %v16661_v24  ;;  %v16734_v23 = vld [vmem:[#allocation7 + $0x100] ss:$24 sps:$4 sm:$0xff]  }
 0x111   :  { %v221_v24 = vld [vmem:[#allocation2 + $0x20] sm:$0xff] }
 0x116   :  { %469 = vmatpush1.bf16.xpose.msra.mxu0 %v16663_v25  ;;  %v227_v25 = vld [vmem:[#allocation2 + $0x50] sm:$0xff] }
 0x117   :  { %815 = vmatpush1.bf16.xpose.msra.mxu1 %v16664_v26  ;;  %499 = vmatprep.subr.bf16.mxu0 %v16667_v27  ;;  %v19128_v26 = vpack.c.bf16 %v227_v25, %v221_v24  ;;  %v18842_v27 = vmov 0.0  }
 0x118   :  { %845 = vmatprep.subr.bf16.mxu1 %v16670_v28  ;;  %v16737_v28 = vld [vmem:[#allocation8] ss:$24 sps:$4 sm:$0xff]  }
 0x11d   :  { %491 = vmatmul.mubr.bf16.vlgmr.msra.gmra.mrb[0].mxu0 %v19112_v33 }
 0x11e   :  { %837 = vmatmul.mubr.bf16.vlgmr.msra.gmra.mrb[0].mxu1 %v19112_v33  ;;  %500 = vmatpush1.bf16.xpose.msra.mxu0 %v16665_v31  ;;  %v16740_v31 = vld [vmem:[#allocation8 + $0x30] ss:$24 sps:$4 sm:$0xff]  }
 0x11f   :  { %846 = vmatpush1.bf16.xpose.msra.mxu1 %v16668_v32  ;;  %501 = vmatprep.subr.bf16.mxu0 %v16673_v36  ;;  %v16745_v32 = vld [vmem:[#allocation8 + $0x64] ss:$24 sps:$4 sm:$0xff]   ;;  %v16746_v36 = vld [vmem:[#allocation8 + $0x90] ss:$24 sps:$4 sm:$0xff]  }
 0x120   :  { %847 = vmatprep.subr.bf16.mxu1 %v16676_v37  ;;  %531 = vmatprep.mubr.bf16.mxu0 %v19114_v38  ;;  %v16751_v37 = vld [vmem:[#allocation8 + $0xc4] ss:$24 sps:$4 sm:$0xff]  }
 0x121   :  { %877 = vmatprep.mubr.bf16.mxu1 %v19114_v38 }
 0x126   :  { %502 = vmatpush1.bf16.xpose.msra.mxu0 %v16671_v39  ;;  %v16749_v39 = vld [vmem:[#allocation8 + $0xc0] ss:$24 sps:$4 sm:$0xff]  }
 0x127   :  { %848 = vmatpush1.bf16.xpose.msra.mxu1 %v16674_v40  ;;  %503 = vmatprep.subr.bf16.mxu0 %v16679_v41  ;;  %v16754_v40 = vld [vmem:[#allocation8 + $0xf4] ss:$24 sps:$4 sm:$0xff]   ;;  %v16752_v41 = vld [vmem:[#allocation8 + $0xf0] ss:$24 sps:$4 sm:$0xff]  }
 0x128   :  { %849 = vmatprep.subr.bf16.mxu1 %v16682_v42  ;;  %v16757_v42 = vld [vmem:[#allocation8 + $0xc] ss:$24 sps:$4 sm:$0xff]  }
 0x12e   :  { %504 = vmatpush1.bf16.xpose.msra.mxu0 %v16677_v43  ;;  %v16755_v43 = vld [vmem:[#allocation8 + $0x8] ss:$24 sps:$4 sm:$0xff]  }
 0x12f   :  { %850 = vmatpush1.bf16.xpose.msra.mxu1 %v16680_v44  ;;  %505 = vmatprep.subr.bf16.mxu0 %v16685_v45  ;;  %v16760_v44 = vld [vmem:[#allocation8 + $0x3c] ss:$24 sps:$4 sm:$0xff]   ;;  %v16758_v45 = vld [vmem:[#allocation8 + $0x38] ss:$24 sps:$4 sm:$0xff]  }
 0x130   :  { %851 = vmatprep.subr.bf16.mxu1 %v16688_v46  ;;  %v16763_v46 = vld [vmem:[#allocation8 + $0x6c] ss:$24 sps:$4 sm:$0xff]  }
 0x136   :  { %506 = vmatpush1.bf16.xpose.msra.mxu0 %v16683_v47  ;;  %v16761_v47 = vld [vmem:[#allocation8 + $0x68] ss:$24 sps:$4 sm:$0xff]  }
 0x137   :  { %852 = vmatpush1.bf16.xpose.msra.mxu1 %v16686_v48  ;;  %507 = vmatprep.subr.bf16.mxu0 %v16691_v49  ;;  %v16766_v48 = vld [vmem:[#allocation8 + $0x9c] ss:$24 sps:$4 sm:$0xff]   ;;  %v16764_v49 = vld [vmem:[#allocation8 + $0x98] ss:$24 sps:$4 sm:$0xff]  }
 0x138   :  { %853 = vmatprep.subr.bf16.mxu1 %v16694_v50  ;;  %v16769_v50 = vld [vmem:[#allocation8 + $0xcc] ss:$24 sps:$4 sm:$0xff]  }
 0x13e   :  { %508 = vmatpush1.bf16.xpose.msra.mxu0 %v16689_v51  ;;  %v16767_v51 = vld [vmem:[#allocation8 + $0xc8] ss:$24 sps:$4 sm:$0xff]  }
 0x13f   :  { %854 = vmatpush1.bf16.xpose.msra.mxu1 %v16692_v52  ;;  %509 = vmatprep.subr.bf16.mxu0 %v16697_v53  ;;  %v16772_v52 = vld [vmem:[#allocation8 + $0xfc] ss:$24 sps:$4 sm:$0xff]   ;;  %v16770_v53 = vld [vmem:[#allocation8 + $0xf8] ss:$24 sps:$4 sm:$0xff]  }
 0x140   :  { %855 = vmatprep.subr.bf16.mxu1 %v16700_v54  ;;  %v16775_v54 = vld [vmem:[#allocation8 + $0x14] ss:$24 sps:$4 sm:$0xff]  }
 0x146   :  { %510 = vmatpush1.bf16.xpose.msra.mxu0 %v16695_v55  ;;  %v16773_v55 = vld [vmem:[#allocation8 + $0x10] ss:$24 sps:$4 sm:$0xff]  }
 0x147   :  { %856 = vmatpush1.bf16.xpose.msra.mxu1 %v16698_v56  ;;  %540 = vmatprep.subr.bf16.mxu0 %v16703_v57  ;;  %v16778_v56 = vld [vmem:[#allocation8 + $0x44] ss:$24 sps:$4 sm:$0xff]   ;;  %v16776_v57 = vld [vmem:[#allocation8 + $0x40] ss:$24 sps:$4 sm:$0xff]  }
 0x148   :  { %886 = vmatprep.subr.bf16.mxu1 %v16706_v58  ;;  %v16781_v58 = vld [vmem:[#allocation8 + $0x74] ss:$24 sps:$4 sm:$0xff]  }
 0x14d   :  { %532 = vmatmul.mubr.bf16.vlgmr.msra.gmra.mrb[0].mxu0 %v19120_v1 }
 0x14e   :  { %878 = vmatmul.mubr.bf16.vlgmr.msra.gmra.mrb[0].mxu1 %v19120_v1  ;;  %541 = vmatpush1.bf16.xpose.msra.mxu0 %v16701_v63  ;;  %v16782_v63 = vld [vmem:[#allocation8 + $0xa0] ss:$24 sps:$4 sm:$0xff]  }
 0x14f   :  { %887 = vmatpush1.bf16.xpose.msra.mxu1 %v16704_v0  ;;  %542 = vmatprep.subr.bf16.mxu0 %v16709_v2 }
 0x150   :  { %888 = vmatprep.subr.bf16.mxu1 %v16712_v3  ;;  %572 = vmatprep.mubr.bf16.mxu0 %v19122_v4  ;;  %v16787_v3 = vld [vmem:[#allocation8 + $0xd4] ss:$24 sps:$4 sm:$0xff]  }
 0x151   :  { %918 = vmatprep.mubr.bf16.mxu1 %v19122_v4 }
 0x156   :  { %543 = vmatpush1.bf16.xpose.msra.mxu0 %v16707_v5 }
 0x157   :  { %889 = vmatpush1.bf16.xpose.msra.mxu1 %v16710_v6  ;;  %544 = vmatprep.subr.bf16.mxu0 %v16715_v7 }
 0x158   :  { %890 = vmatprep.subr.bf16.mxu1 %v16718_v8 }
 0x15e   :  { %545 = vmatpush1.bf16.xpose.msra.mxu0 %v16713_v9 }
 0x15f   :  { %891 = vmatpush1.bf16.xpose.msra.mxu1 %v16716_v10  ;;  %546 = vmatprep.subr.bf16.mxu0 %v16721_v11 }
 0x160   :  { %892 = vmatprep.subr.bf16.mxu1 %v16724_v12 }
 0x166   :  { %547 = vmatpush1.bf16.xpose.msra.mxu0 %v16719_v13 }
 0x167   :  { %893 = vmatpush1.bf16.xpose.msra.mxu1 %v16722_v14  ;;  %548 = vmatprep.subr.bf16.mxu0 %v16727_v15  ;;  %v16785_v14 = vld [vmem:[#allocation8 + $0xd0] ss:$24 sps:$4 sm:$0xff]  }
 0x168   :  { %894 = vmatprep.subr.bf16.mxu1 %v16730_v17  ;;  %v16790_v17 = vld [vmem:[#allocation8 + $0x104] ss:$24 sps:$4 sm:$0xff]  }
 0x16e   :  { %549 = vmatpush1.bf16.xpose.msra.mxu0 %v16725_v18  ;;  %v16788_v18 = vld [vmem:[#allocation8 + $0x100] ss:$24 sps:$4 sm:$0xff]  }
 0x16f   :  { %895 = vmatpush1.bf16.xpose.msra.mxu1 %v16728_v19  ;;  %550 = vmatprep.subr.bf16.mxu0 %v16733_v20 }
 0x170   :  { %896 = vmatprep.subr.bf16.mxu1 %v16736_v21 }
 0x176   :  { %551 = vmatpush1.bf16.xpose.msra.mxu0 %v16731_v22 }
 0x177   :  { %897 = vmatpush1.bf16.xpose.msra.mxu1 %v16734_v23  ;;  %1150 = vmatprep.subr.bf16.mxu0 %v16739_v29  ;;  %v14762_v29 = vld [vmem:[#allocation13] ss:$0 sm:$0xff] }
 0x178   :  { %16117 = vmatprep.subr.mxu1 %v18842_v27 }
 0x17d   :  { %573 = vmatmul.mubr.bf16.vlgmr.msra.gmra.mrb[0].mxu0 %v19128_v26 }
 0x17e   :  { %919 = vmatmul.mubr.bf16.vlgmr.msra.gmra.mrb[0].mxu1 %v19128_v26  ;;  %1182 = vmatprep.mubr.bf16.mxu0 %v19108_v16 }
 0x17f   :  { %16119 = vmatprep.mubr.msk.f32.mxu1 %vm18843_vm0, %v18842_v27  ;;  %1151 = vmatpush1.bf16.xpose.msra.mxu0 %v16737_v28 }
 0x180   :  { %1152 = vmatprep.subr.bf16.mxu0 %v16742_v30 }
 0x187   :  { %1153 = vmatpush1.bf16.xpose.msra.mxu0 %v16740_v31  ;;  %v16791_v31 = vld [vmem:[#allocation7 + $0x120] ss:$24 sps:$4 sm:$0xff]  }
 0x188   :  { %1154 = vmatprep.subr.bf16.mxu0 %v16745_v32 }
 0x18f   :  { %1155 = vmatpush1.bf16.xpose.msra.mxu0 %v16743_v34 }
 0x190   :  { %1156 = vmatprep.subr.bf16.mxu0 %v16748_v35  ;;  %v16793_v35 = vld [vmem:[#allocation7 + $0x124] ss:$24 sps:$4 sm:$0xff]  }
 0x197   :  { %1157 = vmatpush1.bf16.xpose.msra.mxu0 %v16746_v36 }
 0x198   :  { %1158 = vmatprep.subr.bf16.mxu0 %v16751_v37  ;;  %v16796_v37 = vld [vmem:[#allocation7 + $0x154] ss:$24 sps:$4 sm:$0xff]  }
 0x19f   :  { %1159 = vmatpush1.bf16.xpose.msra.mxu0 %v16749_v39 }
 0x1a0   :  { %1160 = vmatprep.subr.bf16.mxu0 %v16754_v40 }
 0x1a7   :  { %1161 = vmatpush1.bf16.xpose.msra.mxu0 %v16752_v41  ;;  %v16794_v41 = vld [vmem:[#allocation7 + $0x150] ss:$24 sps:$4 sm:$0xff]  }
 0x1a8   :  { %1191 = vmatprep.subr.bf16.mxu0 %v16757_v42  ;;  %v16799_v42 = vld [vmem:[#allocation7 + $0x184] ss:$24 sps:$4 sm:$0xff]  }
 0x1ae   :  { %1183 = vmatmul.mubr.bf16.vlgmr.msra.gmra.mrb[4].mxu0 %v19112_v33 }
 0x1af   :  { %1192 = vmatpush1.bf16.xpose.msra.mxu0 %v16755_v43  ;;  %1223 = vmatprep.mubr.bf16.mxu0 %v19114_v38  ;;  %v16797_v43 = vld [vmem:[#allocation7 + $0x180] ss:$24 sps:$4 sm:$0xff]  }
 0x1b0   :  { %1193 = vmatprep.subr.bf16.mxu0 %v16760_v44  ;;  %v16802_v44 = vld [vmem:[#allocation7 + $0x1b4] ss:$24 sps:$4 sm:$0xff]  }
 0x1b7   :  { %1194 = vmatpush1.bf16.xpose.msra.mxu0 %v16758_v45  ;;  %v16800_v45 = vld [vmem:[#allocation7 + $0x1b0] ss:$24 sps:$4 sm:$0xff]  }
 0x1b8   :  { %1195 = vmatprep.subr.bf16.mxu0 %v16763_v46  ;;  %v16805_v46 = vld [vmem:[#allocation7 + $0x1e4] ss:$24 sps:$4 sm:$0xff]  }
 0x1bf   :  { %1196 = vmatpush1.bf16.xpose.msra.mxu0 %v16761_v47  ;;  %v16803_v47 = vld [vmem:[#allocation7 + $0x1e0] ss:$24 sps:$4 sm:$0xff]  }
 0x1c0   :  { %1197 = vmatprep.subr.bf16.mxu0 %v16766_v48  ;;  %v16808_v48 = vld [vmem:[#allocation7 + $0x214] ss:$24 sps:$4 sm:$0xff]  }
 0x1c7   :  { %1198 = vmatpush1.bf16.xpose.msra.mxu0 %v16764_v49  ;;  %v16806_v49 = vld [vmem:[#allocation7 + $0x210] ss:$24 sps:$4 sm:$0xff]  }
 0x1c8   :  { %1199 = vmatprep.subr.bf16.mxu0 %v16769_v50  ;;  %v16811_v50 = vld [vmem:[#allocation7 + $0x12c] ss:$24 sps:$4 sm:$0xff]  }
 0x1cf   :  { %1200 = vmatpush1.bf16.xpose.msra.mxu0 %v16767_v51  ;;  %v16809_v51 = vld [vmem:[#allocation7 + $0x128] ss:$24 sps:$4 sm:$0xff]  }
 0x1d0   :  { %1201 = vmatprep.subr.bf16.mxu0 %v16772_v52  ;;  %v16814_v52 = vld [vmem:[#allocation7 + $0x15c] ss:$24 sps:$4 sm:$0xff]  }
 0x1d7   :  { %1202 = vmatpush1.bf16.xpose.msra.mxu0 %v16770_v53  ;;  %v16812_v53 = vld [vmem:[#allocation7 + $0x158] ss:$24 sps:$4 sm:$0xff]  }
 0x1d8   :  { %1232 = vmatprep.subr.bf16.mxu0 %v16775_v54  ;;  %v16817_v54 = vld [vmem:[#allocation7 + $0x18c] ss:$24 sps:$4 sm:$0xff]  }
 0x1de   :  { %1224 = vmatmul.mubr.bf16.vlgmr.msra.gmra.mrb[4].mxu0 %v19120_v1 }
 0x1df   :  { %1233 = vmatpush1.bf16.xpose.msra.mxu0 %v16773_v55  ;;  %1264 = vmatprep.mubr.bf16.mxu0 %v19122_v4  ;;  %v16815_v55 = vld [vmem:[#allocation7 + $0x188] ss:$24 sps:$4 sm:$0xff]  }
 0x1e0   :  { %1234 = vmatprep.subr.bf16.mxu0 %v16778_v56  ;;  %v16820_v56 = vld [vmem:[#allocation7 + $0x1bc] ss:$24 sps:$4 sm:$0xff]  }
 0x1e7   :  { %1235 = vmatpush1.bf16.xpose.msra.mxu0 %v16776_v57  ;;  %v16818_v57 = vld [vmem:[#allocation7 + $0x1b8] ss:$24 sps:$4 sm:$0xff]  }
 0x1e8   :  { %1236 = vmatprep.subr.bf16.mxu0 %v16781_v58  ;;  %v16823_v58 = vld [vmem:[#allocation7 + $0x1ec] ss:$24 sps:$4 sm:$0xff]  }
 0x1ef   :  { %1237 = vmatpush1.bf16.xpose.msra.mxu0 %v16779_v59  ;;  %v16821_v59 = vld [vmem:[#allocation7 + $0x1e8] ss:$24 sps:$4 sm:$0xff]  }
 0x1f0   :  { %1238 = vmatprep.subr.bf16.mxu0 %v16784_v60 }
 0x1f7   :  { %1239 = vmatpush1.bf16.xpose.msra.mxu0 %v16782_v63 }
 0x1f8   :  { %1240 = vmatprep.subr.bf16.mxu0 %v16787_v3 }
 0x1ff   :  { %1241 = vmatpush1.bf16.xpose.msra.mxu0 %v16785_v14  ;;  %v16839_v14 = vld [vmem:[#allocation7 + $0x190] ss:$24 sps:$4 sm:$0xff]  }
 0x200   :  { %1242 = vmatprep.subr.bf16.mxu0 %v16790_v17  ;;  %v16845_v17 = vld [vmem:[#allocation7 + $0x1c0] ss:$24 sps:$4 sm:$0xff]  }
 0x207   :  { %1243 = vmatpush1.bf16.xpose.msra.mxu0 %v16788_v18  ;;  %v16847_v18 = vld [vmem:[#allocation7 + $0x1c4] ss:$24 sps:$4 sm:$0xff]  }
 0x208   :  { %2207 = vmatprep.subr.bf16.mxu0 %v16793_v35  ;;  %v16836_v35 = vld [vmem:[#allocation5 + $0x150] ss:$24 sps:$4 sm:$0xff]  }
 0x20e   :  { %1265 = vmatmul.mubr.bf16.vlgmr.msra.gmra.mrb[4].mxu0 %v19128_v26 }
 0x20f   :  { %2239 = vmatprep.mubr.bf16.mxu0 %v19108_v16  ;;  %2208 = vmatpush1.bf16.xpose.msra.mxu0 %v16791_v31 }
 0x210   :  { %2209 = vmatprep.subr.bf16.mxu0 %v16796_v37  ;;  %v16842_v37 = vld [vmem:[#allocation5 + $0x180] ss:$24 sps:$4 sm:$0xff]  }
 0x217   :  { %2210 = vmatpush1.bf16.xpose.msra.mxu0 %v16794_v41  ;;  %v16856_v41 = vld [vmem:[#allocation5 + $0x1e4] ss:$24 sps:$4 sm:$0xff]  }
 0x218   :  { %2211 = vmatprep.subr.bf16.mxu0 %v16799_v42  ;;  %v16854_v42 = vld [vmem:[#allocation5 + $0x1e0] ss:$24 sps:$4 sm:$0xff]  }
 0x21f   :  { %2212 = vmatpush1.bf16.xpose.msra.mxu0 %v16797_v43  ;;  %v16862_v43 = vld [vmem:[#allocation5 + $0x214] ss:$24 sps:$4 sm:$0xff]  }
 0x220   :  { %2213 = vmatprep.subr.bf16.mxu0 %v16802_v44  ;;  %v16860_v44 = vld [vmem:[#allocation5 + $0x210] ss:$24 sps:$4 sm:$0xff]  }
 0x227   :  { %2214 = vmatpush1.bf16.xpose.msra.mxu0 %v16800_v45  ;;  %v16865_v45 = vld [vmem:[#allocation5 + $0x12c] ss:$24 sps:$4 sm:$0xff]  }
 0x228   :  { %2215 = vmatprep.subr.bf16.mxu0 %v16805_v46  ;;  %v16863_v46 = vld [vmem:[#allocation5 + $0x128] ss:$24 sps:$4 sm:$0xff]  }
 0x22f   :  { %2216 = vmatpush1.bf16.xpose.msra.mxu0 %v16803_v47  ;;  %v16868_v47 = vld [vmem:[#allocation5 + $0x15c] ss:$24 sps:$4 sm:$0xff]  }
 0x230   :  { %2217 = vmatprep.subr.bf16.mxu0 %v16808_v48  ;;  %v16866_v48 = vld [vmem:[#allocation5 + $0x158] ss:$24 sps:$4 sm:$0xff]  }
 0x237   :  { %2218 = vmatpush1.bf16.xpose.msra.mxu0 %v16806_v49  ;;  %v16871_v49 = vld [vmem:[#allocation5 + $0x18c] ss:$24 sps:$4 sm:$0xff]  }
 0x238   :  { %2248 = vmatprep.subr.bf16.mxu0 %v16811_v50  ;;  %v16869_v50 = vld [vmem:[#allocation5 + $0x188] ss:$24 sps:$4 sm:$0xff]  }
 0x23e   :  { %2240 = vmatmul.mubr.bf16.vlgmr.msra.gmra.mrb[8].mxu0 %v19112_v33 }
 0x23f   :  { %2249 = vmatpush1.bf16.xpose.msra.mxu0 %v16809_v51  ;;  %2280 = vmatprep.mubr.bf16.mxu0 %v19114_v38  ;;  %v16874_v51 = vld [vmem:[#allocation5 + $0x1bc] ss:$24 sps:$4 sm:$0xff]  }
 0x240   :  { %2250 = vmatprep.subr.bf16.mxu0 %v16814_v52  ;;  %v16872_v52 = vld [vmem:[#allocation5 + $0x1b8] ss:$24 sps:$4 sm:$0xff]  }
 0x247   :  { %2251 = vmatpush1.bf16.xpose.msra.mxu0 %v16812_v53  ;;  %v16877_v53 = vld [vmem:[#allocation5 + $0x1ec] ss:$24 sps:$4 sm:$0xff]  }
 0x248   :  { %2252 = vmatprep.subr.bf16.mxu0 %v16817_v54  ;;  %v16875_v54 = vld [vmem:[#allocation5 + $0x1e8] ss:$24 sps:$4 sm:$0xff]  }
 0x24f   :  { %2253 = vmatpush1.bf16.xpose.msra.mxu0 %v16815_v55  ;;  %v16880_v55 = vld [vmem:[#allocation5 + $0x21c] ss:$24 sps:$4 sm:$0xff]  }
 0x250   :  { %v574_v0 = vpop.f32.mrb[0].mxu0  ;;  %2254 = vmatprep.subr.bf16.mxu0 %v16820_v56  ;;  %v16878_v56 = vld [vmem:[#allocation5 + $0x218] ss:$24 sps:$4 sm:$0xff]  }
 0x251   :  { %v920_v2 = vpop.f32.mrb[0].mxu1  ;;  %v576_v6 = vpop.f32.mrb[1].mxu0  ;;  %v16277_v12 = vadd.f32 %v14688_v62, %v574_v0 }
 0x252   :  { %v16279_v5 = vadd.f32 %v14725_v61, %v920_v2  ;;  %v922_v7 = vpop.f32.mrb[1].mxu1  ;;  %v577_v8 = vpop.f32.mrb[2].mxu0 }
 0x253   :  { %v923_v9 = vpop.f32.mrb[2].mxu1  ;;  %v579_v10 = vpop.f32.mrb[3].mxu0  ;;  %v16278_v15 = vadd.f32 %v14688_v62, %v577_v8  ;;  %v16826_v8 = vld [vmem:[#allocation7 + $0x21c] ss:$24 sps:$4 sm:$0xff]  }
 0x254   :  { %v925_v11 = vpop.f32.mrb[3].mxu1  ;;  %16118 = vmatpush3.xpose.msk.msra.mxu1 %vm1273_vm1, %v16279_v5  ;;  %v16280_v13 = vadd.f32 %v14725_v61, %v923_v9  ;;  %v16824_v9 = vld [vmem:[#allocation7 + $0x218] ss:$24 sps:$4 sm:$0xff]   ;;  %v16829_v10 = vld [vmem:[#allocation7 + $0x134] ss:$24 sps:$4 sm:$0xff]  }
 0x255   :  { %16122 = vmatprep.subr.mxu1 %v18842_v27  ;;  %v16827_v11 = vld [vmem:[#allocation7 + $0x130] ss:$24 sps:$4 sm:$0xff]  }
 0x257   :  { %16120 = vmatmul.mubr.msk.f32.vlgmr.msra.gmra.mrb[4].mxu1 %vm1273_vm1, %v16277_v12  ;;  %2255 = vmatpush1.bf16.xpose.msra.mxu0 %v16818_v57  ;;  %v16833_v12 = vld [vmem:[#allocation7 + $0x160] ss:$24 sps:$4 sm:$0xff]   ;;  %v16883_v57 = vld [vmem:[#allocation5 + $0x134] ss:$24 sps:$4 sm:$0xff]  }
 0x258   :  { %16123 = vmatpush3.xpose.msk.msra.mxu1 %vm1273_vm1, %v16280_v13  ;;  %16124 = vmatprep.mubr.msk.f32.mxu1 %vm18843_vm0, %v18842_v27  ;;  %v16835_v13 = vld [vmem:[#allocation7 + $0x164] ss:$24 sps:$4 sm:$0xff]  }
 0x259   :  { %16127 = vmatprep.subr.mxu1 %v18842_v27  ;;  %2256 = vmatprep.subr.bf16.mxu0 %v16823_v58  ;;  %v16881_v58 = vld [vmem:[#allocation5 + $0x130] ss:$24 sps:$4 sm:$0xff]  }
 0x25b   :  { %16125 = vmatmul.mubr.msk.f32.vlgmr.msra.gmra.mrb[6].mxu1 %vm1273_vm1, %v16278_v15  ;;  %v16841_v15 = vld [vmem:[#allocation7 + $0x194] ss:$24 sps:$4 sm:$0xff]  }
 0x25c   :  { %16129 = vmatprep.mubr.msk.f32.mxu1 %vm18843_vm0, %v18842_v27 }
 0x25f   :  { %2257 = vmatpush1.bf16.xpose.msra.mxu0 %v16821_v59  ;;  %v16886_v59 = vld [vmem:[#allocation5 + $0x164] ss:$24 sps:$4 sm:$0xff]  }
 0x260   :  { %2258 = vmatprep.subr.bf16.mxu0 %v16826_v8 }
 0x267   :  { %2259 = vmatpush1.bf16.xpose.msra.mxu0 %v16824_v9 }
 0x268   :  { %2289 = vmatprep.subr.bf16.mxu0 %v16829_v10 }
 0x26e   :  { %2281 = vmatmul.mubr.bf16.vlgmr.msra.gmra.mrb[8].mxu0 %v19120_v1 }
 0x26f   :  { %2321 = vmatprep.mubr.bf16.mxu0 %v19122_v4  ;;  %2290 = vmatpush1.bf16.xpose.msra.mxu0 %v16827_v11 }
 0x270   :  { %2291 = vmatprep.subr.bf16.mxu0 %v16835_v13  ;;  %v16901_v13 = vld [vmem:[#allocation8 + $0x124] ss:$24 sps:$4 sm:$0xff]  }
 0x277   :  { %2292 = vmatpush1.bf16.xpose.msra.mxu0 %v16833_v12  ;;  %v16896_v12 = vld [vmem:[#allocation5 + $0x220] ss:$24 sps:$4 sm:$0xff]  }
 0x278   :  { %2293 = vmatprep.subr.bf16.mxu0 %v16841_v15  ;;  %v16904_v15 = vld [vmem:[#allocation8 + $0x154] ss:$24 sps:$4 sm:$0xff]  }
 0x27f   :  { %2294 = vmatpush1.bf16.xpose.msra.mxu0 %v16839_v14  ;;  %v16899_v14 = vld [vmem:[#allocation8 + $0x120] ss:$24 sps:$4 sm:$0xff]  }
 0x280   :  { %2295 = vmatprep.subr.bf16.mxu0 %v16847_v18  ;;  %v16907_v18 = vld [vmem:[#allocation8 + $0x184] ss:$24 sps:$4 sm:$0xff]  }
 0x287   :  { %2296 = vmatpush1.bf16.xpose.msra.mxu0 %v16845_v17  ;;  %v16902_v17 = vld [vmem:[#allocation8 + $0x150] ss:$24 sps:$4 sm:$0xff]  }
 0x2e1   :  { %v1266_v30 = vpop.f32.mrb[4].mxu0 }
 0x2e2   :  { %v16281_v32 = vadd.f32 %v14762_v29, %v1266_v30  ;;  %v1268_v34 = vpop.f32.mrb[5].mxu0 }
 0x2e3   :  { %v1269_v36 = vpop.f32.mrb[6].mxu0  ;;  %v16838_v34 = vld [vmem:[#allocation5 + $0x154] ss:$24 sps:$4 sm:$0xff]  }
 0x2e4   :  { %v19160_v39 = vadd.f32 %v14762_v29, %v1269_v36  ;;  %v1271_v40 = vpop.f32.mrb[7].mxu0  ;;  %16128 = vmatpush3.msra.mxu1 %v16281_v32  ;;  %v16832_v29 = vld [vmem:[#allocation5 + $0x124] ss:$24 sps:$4 sm:$0xff]   ;;  %v16830_v32 = vld [vmem:[#allocation5 + $0x120] ss:$24 sps:$4 sm:$0xff]  }
 0x2e5   :  { %16132 = vmatprep.subr.mxu1 %v18842_v27  ;;  %v16844_v36 = vld [vmem:[#allocation5 + $0x184] ss:$24 sps:$4 sm:$0xff]   ;;  %v16850_v40 = vld [vmem:[#allocation5 + $0x1b4] ss:$24 sps:$4 sm:$0xff]  }
 0x32a   :  { %v1346_v19 = vpop.f32.mrb[4].mxu1 }
 0x32b   :  { %v19152_v20 = vmul.f32 0.10206208, %v1346_v19  ;;  %v16121_v21 = vpop.f32.mrb[5].mxu1  ;;  %v16851_v19 = vld [vmem:[#allocation7 + $0x1f0] ss:$24 sps:$4 sm:$0xff]  }
 0x32c   :  { %v16857_v21 = vld [vmem:[#allocation7 + $0x220] ss:$24 sps:$4 sm:$0xff]  }
 0x32d   :  { %v1429_v22 = vsel %vm1428_vm2, %v19152_v20, -inf }
 0x32e   :  { %1430 = vmax.xlane.f32.xlu0 %v1429_v22  ;;  %v1422_v23 = vpop.f32.mrb[6].mxu1  ;;  %v16859_v22 = vld [vmem:[#allocation7 + $0x224] ss:$24 sps:$4 sm:$0xff]  }
 0x32f   :  { %v19156_v24 = vmul.f32 0.10206208, %v1422_v23  ;;  %v16126_v25 = vpop.f32.mrb[7].mxu1 }
 0x331   :  { %v1432_v28 = vsel %vm1428_vm2, %v19156_v24, -inf }
 0x332   :  { %1433 = vmax.xlane.f32.xlu0 %v1432_v28 }
 0x3bb   :  { %v1431_v60 = vpop.xlane.xlu0 %1430 }
 0x3bc   :  { %v1435_v61 = vsub.f32 %v19152_v20, %v1431_v60  ;;  %v16853_v20 = vld [vmem:[#allocation7 + $0x1f4] ss:$24 sps:$4 sm:$0xff]   ;;  %v16884_v60 = vld [vmem:[#allocation5 + $0x160] ss:$24 sps:$4 sm:$0xff]  }
 0x3bd   :  { %2297 = vmatprep.subr.bf16.mxu0 %v16853_v20  ;;  %v16910_v20 = vld [vmem:[#allocation8 + $0x1b4] ss:$24 sps:$4 sm:$0xff]  }
 0x3be   :  { %v1437_v62 = vmul.f32 1.442695, %v1435_v61  ;;  %2298 = vmatpush1.bf16.xpose.msra.mxu0 %v16851_v19  ;;  %v16889_v61 = vld [vmem:[#allocation5 + $0x194] ss:$24 sps:$4 sm:$0xff]   ;;  %v16905_v19 = vld [vmem:[#allocation8 + $0x180] ss:$24 sps:$4 sm:$0xff]  }
 0x3bf   :  { %v1434_v63 = vpop.xlane.xlu0 %1433  ;;  %2299 = vmatprep.subr.bf16.mxu0 %v16859_v22  ;;  %v16913_v22 = vld [vmem:[#allocation8 + $0x1e4] ss:$24 sps:$4 sm:$0xff]  }
 0x3c0   :  { %18405 = vpow2.f32 %v1437_v62  ;;  %v1436_v0 = vsub.f32 %v19156_v24, %v1434_v63  ;;  %v16887_v62 = vld [vmem:[#allocation5 + $0x190] ss:$24 sps:$4 sm:$0xff]   ;;  %v16892_v63 = vld [vmem:[#allocation5 + $0x1c4] ss:$24 sps:$4 sm:$0xff]  }
 0x3c2   :  { %v1439_v2 = vmul.f32 1.442695, %v1436_v0  ;;  %v16890_v0 = vld [vmem:[#allocation5 + $0x1c0] ss:$24 sps:$4 sm:$0xff]  }
 0x3c4   :  { %18407 = vpow2.f32 %v1439_v2  ;;  %v16895_v2 = vld [vmem:[#allocation5 + $0x1f4] ss:$24 sps:$4 sm:$0xff]  }
 0x3c6   :  { %2300 = vmatpush1.bf16.xpose.msra.mxu0 %v16857_v21  ;;  %v16908_v21 = vld [vmem:[#allocation8 + $0x1b0] ss:$24 sps:$4 sm:$0xff]  }
 0x3c7   :  { %16147 = vmatprep.subr.mxu0 %v18842_v27 }
 0x3ca   :  { %v18406_v3 = vpop.eup %18405 }
 0x3cb   :  { %v1441_v5 = vsel %vm1428_vm2, %v18406_v3, 0.0 }
 0x3cc   :  { %1442 = vadd.xlane.f32.xlu1 %v1441_v5  ;;  %v16898_v5 = vld [vmem:[#allocation5 + $0x224] ss:$24 sps:$4 sm:$0xff]  }
 0x3cd   :  { %2322 = vmatmul.mubr.bf16.vlgmr.msra.gmra.mrb[8].mxu0 %v19128_v26 }
 0x3ce   :  { %v18408_v6 = vpop.eup %18407  ;;  %16149 = vmatprep.mubr.msk.f32.mxu0 %vm18843_vm0, %v18842_v27 }
 0x3cf   :  { %v1444_v7 = vsel %vm1428_vm2, %v18408_v6, 0.0 }
 0x3d0   :  { %1445 = vadd.xlane.f32.xlu1 %v1444_v7 }
 0x459   :  { %v1443_v23 = vpop.xlane.xlu1 %1442 }
 0x45a   :  { %18409 = vrcp.f32 %v1443_v23  ;;  %v16911_v23 = vld [vmem:[#allocation8 + $0x1e0] ss:$24 sps:$4 sm:$0xff]  }
 0x45d   :  { %v1446_v24 = vpop.xlane.xlu1 %1445 }
 0x45e   :  { %18411 = vrcp.f32 %v1446_v24  ;;  %v16916_v24 = vld [vmem:[#allocation8 + $0x214] ss:$24 sps:$4 sm:$0xff]  }
 0x464   :  { %v18410_v25 = vpop.eup %18409 }
 0x465   :  { %v1449_v28 = vmul.f32 %v18410_v25, %v18406_v3  ;;  %v16893_v3 = vld [vmem:[#allocation5 + $0x1f0] ss:$24 sps:$4 sm:$0xff]  }
 0x466   :  { %v16914_v25 = vld [vmem:[#allocation8 + $0x210] ss:$24 sps:$4 sm:$0xff]  }
 0x467   :  { %16130 = vmatmul.mubr.msk.f32.vlgmr.msra.gmra.mrb[8].mxu1 %vm1428_vm2, %v1449_v28  ;;  %v16919_v28 = vld [vmem:[#allocation8 + $0x12c] ss:$24 sps:$4 sm:$0xff]  }
 0x468   :  { %v18412_v30 = vpop.eup %18411  ;;  %16133 = vmatpush3.msra.mxu1 %v19160_v39  ;;  %16134 = vmatprep.mubr.msk.f32.mxu1 %vm18843_vm0, %v18842_v27  ;;  %v16848_v39 = vld [vmem:[#allocation5 + $0x1b0] ss:$24 sps:$4 sm:$0xff]  }
 0x469   :  { %v1450_v31 = vmul.f32 %v18412_v30, %v18408_v6  ;;  %1859 = vmatprep.subr.bf16.mxu1 %v16832_v29  ;;  %v19185_v6 = vld [vmem:[#allocation11 + $0x1] ss:$0 sm:$0xff]  ;;  %v16922_v30 = vld [vmem:[#allocation8 + $0x15c] ss:$24 sps:$4 sm:$0xff]  }
 0x46a   :  { %v16917_v29 = vld [vmem:[#allocation8 + $0x128] ss:$24 sps:$4 sm:$0xff]  }
 0x46b   :  { %16135 = vmatmul.mubr.msk.f32.vlgmr.msra.gmra.mrb[10].mxu1 %vm1428_vm2, %v1450_v31  ;;  %v16920_v31 = vld [vmem:[#allocation8 + $0x158] ss:$24 sps:$4 sm:$0xff]  }
 0x46c   :  { %1891 = vmatprep.mubr.bf16.mxu1 %v19108_v16 }
 0x46f   :  { %1860 = vmatpush1.bf16.xpose.msra.mxu1 %v16830_v32  ;;  %v16925_v32 = vld [vmem:[#allocation8 + $0x18c] ss:$24 sps:$4 sm:$0xff]  }
 0x470   :  { %1861 = vmatprep.subr.bf16.mxu1 %v16838_v34 }
 0x477   :  { %1862 = vmatpush1.bf16.xpose.msra.mxu1 %v16836_v35 }
 0x478   :  { %1863 = vmatprep.subr.bf16.mxu1 %v16844_v36  ;;  %v16923_v36 = vld [vmem:[#allocation8 + $0x188] ss:$24 sps:$4 sm:$0xff]  }
 0x47f   :  { %1864 = vmatpush1.bf16.xpose.msra.mxu1 %v16842_v37  ;;  %v16928_v37 = vld [vmem:[#allocation8 + $0x1bc] ss:$24 sps:$4 sm:$0xff]  }
 0x480   :  { %1865 = vmatprep.subr.bf16.mxu1 %v16850_v40 }
 0x487   :  { %1866 = vmatpush1.bf16.xpose.msra.mxu1 %v16848_v39 }
 0x488   :  { %1867 = vmatprep.subr.bf16.mxu1 %v16856_v41 }
 0x48f   :  { %1868 = vmatpush1.bf16.xpose.msra.mxu1 %v16854_v42  ;;  %v16926_v42 = vld [vmem:[#allocation8 + $0x1b8] ss:$24 sps:$4 sm:$0xff]  }
 0x490   :  { %1869 = vmatprep.subr.bf16.mxu1 %v16862_v43  ;;  %v16931_v43 = vld [vmem:[#allocation8 + $0x1ec] ss:$24 sps:$4 sm:$0xff]  }
 0x497   :  { %1870 = vmatpush1.bf16.xpose.msra.mxu1 %v16860_v44  ;;  %v16929_v44 = vld [vmem:[#allocation8 + $0x1e8] ss:$24 sps:$4 sm:$0xff]  }
 0x498   :  { %1900 = vmatprep.subr.bf16.mxu1 %v16865_v45  ;;  %v16934_v45 = vld [vmem:[#allocation8 + $0x21c] ss:$24 sps:$4 sm:$0xff]  }
 0x49e   :  { %1892 = vmatmul.mubr.bf16.vlgmr.msra.gmra.mrb[12].mxu1 %v19112_v33 }
 0x49f   :  { %1901 = vmatpush1.bf16.xpose.msra.mxu1 %v16863_v46  ;;  %1932 = vmatprep.mubr.bf16.mxu1 %v19114_v38  ;;  %v16932_v46 = vld [vmem:[#allocation8 + $0x218] ss:$24 sps:$4 sm:$0xff]  }
 0x4a0   :  { %1902 = vmatprep.subr.bf16.mxu1 %v16868_v47  ;;  %v19187_v7 = vpop.f32.mrb[8].mxu0  ;;  %v16937_v47 = vld [vmem:[#allocation8 + $0x134] ss:$24 sps:$4 sm:$0xff]  }
 0x4a1   :  { %v2325_v8 = vpop.f32.mrb[9].mxu0 }
 0x4a2   :  { %v2326_v9 = vpop.f32.mrb[10].mxu0 }
 0x4a3   :  { %v19190_v10 = vadd.f32 %v19185_v6, %v2326_v9  ;;  %v2328_v11 = vpop.f32.mrb[11].mxu0 }
 0x4a7   :  { %1903 = vmatpush1.bf16.xpose.msra.mxu1 %v16866_v48  ;;  %v16935_v48 = vld [vmem:[#allocation8 + $0x130] ss:$24 sps:$4 sm:$0xff]  }
 0x4a8   :  { %1904 = vmatprep.subr.bf16.mxu1 %v16871_v49  ;;  %v16940_v49 = vld [vmem:[#allocation8 + $0x164] ss:$24 sps:$4 sm:$0xff]  }
 0x4af   :  { %1905 = vmatpush1.bf16.xpose.msra.mxu1 %v16869_v50  ;;  %v16938_v50 = vld [vmem:[#allocation8 + $0x160] ss:$24 sps:$4 sm:$0xff]  }
 0x4b0   :  { %1906 = vmatprep.subr.bf16.mxu1 %v16874_v51  ;;  %v16943_v51 = vld [vmem:[#allocation8 + $0x194] ss:$24 sps:$4 sm:$0xff]  }
 0x4b7   :  { %1907 = vmatpush1.bf16.xpose.msra.mxu1 %v16872_v52  ;;  %v16941_v52 = vld [vmem:[#allocation8 + $0x190] ss:$24 sps:$4 sm:$0xff]  }
 0x4b8   :  { %1908 = vmatprep.subr.bf16.mxu1 %v16877_v53  ;;  %v16946_v53 = vld [vmem:[#allocation8 + $0x1c4] ss:$24 sps:$4 sm:$0xff]  }
 0x4bf   :  { %1909 = vmatpush1.bf16.xpose.msra.mxu1 %v16875_v54  ;;  %v16944_v54 = vld [vmem:[#allocation8 + $0x1c0] ss:$24 sps:$4 sm:$0xff]  }
 0x4c0   :  { %1910 = vmatprep.subr.bf16.mxu1 %v16880_v55  ;;  %v16949_v55 = vld [vmem:[#allocation8 + $0x1f4] ss:$24 sps:$4 sm:$0xff]  }
 0x4c7   :  { %1911 = vmatpush1.bf16.xpose.msra.mxu1 %v16878_v56  ;;  %v16947_v56 = vld [vmem:[#allocation8 + $0x1f0] ss:$24 sps:$4 sm:$0xff]  }
 0x4c8   :  { %1941 = vmatprep.subr.bf16.mxu1 %v16883_v57  ;;  %v16952_v57 = vld [vmem:[#allocation8 + $0x224] ss:$24 sps:$4 sm:$0xff]  }
 0x4ce   :  { %1933 = vmatmul.mubr.bf16.vlgmr.msra.gmra.mrb[12].mxu1 %v19120_v1 }
 0x4cf   :  { %1942 = vmatpush1.bf16.xpose.msra.mxu1 %v16881_v58  ;;  %1973 = vmatprep.mubr.bf16.mxu1 %v19122_v4  ;;  %v16950_v58 = vld [vmem:[#allocation8 + $0x220] ss:$24 sps:$4 sm:$0xff]  }
 0x4d0   :  { %1943 = vmatprep.subr.bf16.mxu1 %v16886_v59  ;;  %v16285_v59 = vadd.f32 %v19185_v6, %v19187_v7 }
 0x4d7   :  { %1944 = vmatpush1.bf16.xpose.msra.mxu1 %v16884_v60  ;;  %v14805_v60 = vld [vmem:[#allocation10 + $0x1] ss:$0 sm:$0xff] }
 0x4d8   :  { %1945 = vmatprep.subr.bf16.mxu1 %v16889_v61 }
 0x4df   :  { %1946 = vmatpush1.bf16.xpose.msra.mxu1 %v16887_v62 }
 0x4e0   :  { %1947 = vmatprep.subr.bf16.mxu1 %v16892_v63 }
 0x4e7   :  { %1948 = vmatpush1.bf16.xpose.msra.mxu1 %v16890_v0 }
 0x4e8   :  { %1949 = vmatprep.subr.bf16.mxu1 %v16895_v2 }
 0x4ef   :  { %1950 = vmatpush1.bf16.xpose.msra.mxu1 %v16893_v3 }
 0x4f0   :  { %1951 = vmatprep.subr.bf16.mxu1 %v16898_v5  ;;  %v14879_v5 = vld [vmem:[#allocation13 + $0x1] ss:$0 sm:$0xff] }
 0x4f7   :  { %1952 = vmatpush1.bf16.xpose.msra.mxu1 %v16896_v12 }
 0x4f8   :  { %2555 = vmatprep.subr.bf16.mxu1 %v16901_v13 }
 0x4fe   :  { %1974 = vmatmul.mubr.bf16.vlgmr.msra.gmra.mrb[12].mxu1 %v19128_v26 }
 0x4ff   :  { %2556 = vmatpush1.bf16.xpose.msra.mxu1 %v16899_v14  ;;  %2587 = vmatprep.mubr.bf16.mxu1 %v19108_v16 }
 0x500   :  { %2557 = vmatprep.subr.bf16.mxu1 %v16904_v15 }
 0x507   :  { %2558 = vmatpush1.bf16.xpose.msra.mxu1 %v16902_v17 }
 0x508   :  { %2559 = vmatprep.subr.bf16.mxu1 %v16907_v18 }
 0x50f   :  { %2560 = vmatpush1.bf16.xpose.msra.mxu1 %v16905_v19 }
 0x510   :  { %2561 = vmatprep.subr.bf16.mxu1 %v16910_v20 }
 0x517   :  { %2562 = vmatpush1.bf16.xpose.msra.mxu1 %v16908_v21 }
 0x518   :  { %2563 = vmatprep.subr.bf16.mxu1 %v16913_v22 }
 0x51f   :  { %2564 = vmatpush1.bf16.xpose.msra.mxu1 %v16911_v23 }
 0x520   :  { %2565 = vmatprep.subr.bf16.mxu1 %v16916_v24 }
 0x527   :  { %2566 = vmatpush1.bf16.xpose.msra.mxu1 %v16914_v25 }
 0x528   :  { %2596 = vmatprep.subr.bf16.mxu1 %v16919_v28 }
 0x52e   :  { %2588 = vmatmul.mubr.bf16.vlgmr.msra.gmra.mrb[16].mxu1 %v19112_v33 }
 0x52f   :  { %2597 = vmatpush1.bf16.xpose.msra.mxu1 %v16917_v29  ;;  %2628 = vmatprep.mubr.bf16.mxu1 %v19114_v38 }
 0x530   :  { %2598 = vmatprep.subr.bf16.mxu1 %v16922_v30 }
 0x537   :  { %2599 = vmatpush1.bf16.xpose.msra.mxu1 %v16920_v31 }
 0x538   :  { %2600 = vmatprep.subr.bf16.mxu1 %v16925_v32 }
 0x53a   :  { %v1520_v34 = vpop.f32.mrb[8].mxu1 }
 0x53b   :  { %v16131_v35 = vpop.f32.mrb[9].mxu1 }
 0x53c   :  { %v16958_v35 = vld [vmem:[#allocation14 + $0x12c] ss:$24 sps:$4 sm:$0xff]  }
 0x53e   :  { %v1593_v40 = vpop.f32.mrb[10].mxu1 }
 0x53f   :  { %v19196_v39 = vpack.c.bf16 %v1593_v40, %v1520_v34  ;;  %2601 = vmatpush1.bf16.xpose.msra.mxu1 %v16923_v36  ;;  %v16136_v41 = vpop.f32.mrb[11].mxu1  ;;  %v16956_v34 = vld [vmem:[#allocation14 + $0x128] ss:$24 sps:$4 sm:$0xff]   ;;  %v16964_v36 = vld [vmem:[#allocation14 + $0x15c] ss:$24 sps:$4 sm:$0xff]  }
 0x540   :  { %2602 = vmatprep.subr.bf16.mxu1 %v16928_v37  ;;  %v16962_v37 = vld [vmem:[#allocation14 + $0x158] ss:$24 sps:$4 sm:$0xff]   ;;  %v16970_v40 = vld [vmem:[#allocation14 + $0x18c] ss:$24 sps:$4 sm:$0xff]   ;;  %v16968_v41 = vld [vmem:[#allocation14 + $0x188] ss:$24 sps:$4 sm:$0xff]  }
 0x547   :  { %2603 = vmatpush1.bf16.xpose.msra.mxu1 %v16926_v42  ;;  %v16976_v42 = vld [vmem:[#allocation14 + $0x1bc] ss:$24 sps:$4 sm:$0xff]  }
 0x548   :  { %2604 = vmatprep.subr.bf16.mxu1 %v16931_v43  ;;  %v16974_v43 = vld [vmem:[#allocation14 + $0x1b8] ss:$24 sps:$4 sm:$0xff]  }
 0x54f   :  { %2605 = vmatpush1.bf16.xpose.msra.mxu1 %v16929_v44  ;;  %v16982_v44 = vld [vmem:[#allocation14 + $0x1ec] ss:$24 sps:$4 sm:$0xff]  }
 0x550   :  { %2606 = vmatprep.subr.bf16.mxu1 %v16934_v45  ;;  %v16980_v45 = vld [vmem:[#allocation14 + $0x1e8] ss:$24 sps:$4 sm:$0xff]  }
 0x557   :  { %2607 = vmatpush1.bf16.xpose.msra.mxu1 %v16932_v46 }
 0x558   :  { %2637 = vmatprep.subr.bf16.mxu1 %v16937_v47 }
 0x55e   :  { %2629 = vmatmul.mubr.bf16.vlgmr.msra.gmra.mrb[16].mxu1 %v19120_v1 }
 0x55f   :  { %2638 = vmatpush1.bf16.xpose.msra.mxu1 %v16935_v48  ;;  %2669 = vmatprep.mubr.bf16.mxu1 %v19122_v4 }
 0x560   :  { %2639 = vmatprep.subr.bf16.mxu1 %v16940_v49 }
 0x567   :  { %2640 = vmatpush1.bf16.xpose.msra.mxu1 %v16938_v50  ;;  %v16955_v50 = vld [vmem:[#allocation14 + $0x124] ss:$24 sps:$4 sm:$0xff]  }
 0x568   :  { %2641 = vmatprep.subr.bf16.mxu1 %v16943_v51 }
 0x56f   :  { %2642 = vmatpush1.bf16.xpose.msra.mxu1 %v16941_v52  ;;  %v16953_v52 = vld [vmem:[#allocation14 + $0x120] ss:$24 sps:$4 sm:$0xff]  }
 0x570   :  { %2643 = vmatprep.subr.bf16.mxu1 %v16946_v53 }
 0x577   :  { %2644 = vmatpush1.bf16.xpose.msra.mxu1 %v16944_v54  ;;  %v16961_v54 = vld [vmem:[#allocation14 + $0x154] ss:$24 sps:$4 sm:$0xff]  }
 0x578   :  { %2645 = vmatprep.subr.bf16.mxu1 %v16949_v55  ;;  %v16959_v55 = vld [vmem:[#allocation14 + $0x150] ss:$24 sps:$4 sm:$0xff]  }
 0x57f   :  { %2646 = vmatpush1.bf16.xpose.msra.mxu1 %v16947_v56  ;;  %v16967_v56 = vld [vmem:[#allocation14 + $0x184] ss:$24 sps:$4 sm:$0xff]  }
 0x580   :  { %2647 = vmatprep.subr.bf16.mxu1 %v16952_v57  ;;  %v16965_v57 = vld [vmem:[#allocation14 + $0x180] ss:$24 sps:$4 sm:$0xff]  }
 0x587   :  { %2648 = vmatpush1.bf16.xpose.msra.mxu1 %v16950_v58  ;;  %v16973_v58 = vld [vmem:[#allocation14 + $0x1b4] ss:$24 sps:$4 sm:$0xff]  }
 0x588   :  { %16137 = vmatprep.subr.mxu1 %v18842_v27 }
 0x58e   :  { %2670 = vmatmul.mubr.bf16.vlgmr.msra.gmra.mrb[16].mxu1 %v19128_v26 }
 0x58f   :  { %16138 = vmatpush3.xpose.msk.msra.mxu1 %vm1273_vm1, %v16285_v59  ;;  %16139 = vmatprep.mubr.msk.f32.mxu1 %vm18843_vm0, %v18842_v27  ;;  %v16971_v59 = vld [vmem:[#allocation14 + $0x1b0] ss:$24 sps:$4 sm:$0xff]  }
 0x590   :  { %16142 = vmatprep.subr.mxu1 %v18842_v27 }
 0x5d1   :  { %v1975_v61 = vpop.f32.mrb[12].mxu1 }
 0x5d2   :  { %v16283_v62 = vadd.f32 %v14805_v60, %v1975_v61  ;;  %v1977_v63 = vpop.f32.mrb[13].mxu1  ;;  %v16977_v61 = vld [vmem:[#allocation14 + $0x1e0] ss:$24 sps:$4 sm:$0xff]  }
 0x5d3   :  { %v1978_v0 = vpop.f32.mrb[14].mxu1  ;;  %v16985_v63 = vld [vmem:[#allocation14 + $0x214] ss:$24 sps:$4 sm:$0xff]  }
 0x5d4   :  { %v1980_v2 = vpop.f32.mrb[15].mxu1  ;;  %16140 = vmatmul.mubr.msk.f32.vlgmr.msra.gmra.mrb[20].mxu1 %vm1273_vm1, %v16283_v62  ;;  %v16284_v3 = vadd.f32 %v14805_v60, %v1978_v0  ;;  %v16979_v60 = vld [vmem:[#allocation14 + $0x1e4] ss:$24 sps:$4 sm:$0xff]   ;;  %v16983_v62 = vld [vmem:[#allocation14 + $0x210] ss:$24 sps:$4 sm:$0xff]  }
 0x5d5   :  { %16143 = vmatpush3.xpose.msk.msra.mxu1 %vm1273_vm1, %v19190_v10  ;;  %16144 = vmatprep.mubr.msk.f32.mxu1 %vm18843_vm0, %v18842_v27  ;;  %v16986_v0 = vld [vmem:[#allocation14 + $0x218] ss:$24 sps:$4 sm:$0xff]   ;;  %v16988_v2 = vld [vmem:[#allocation14 + $0x21c] ss:$24 sps:$4 sm:$0xff]  }
 0x5d6   :  { %3263 = vmatprep.subr.bf16.mxu1 %v16958_v35  ;;  %v17024_v35 = vld [vmem:[#allocation14 + $0xfc] ss:$24 sps:$4 sm:$0xff]  }
 0x5d8   :  { %16145 = vmatmul.mubr.msk.f32.vlgmr.msra.gmra.mrb[22].mxu1 %vm1273_vm1, %v16284_v3  ;;  %v16991_v3 = vld [vmem:[#allocation14 + $0x134] ss:$24 sps:$4 sm:$0xff]  }
 0x5d9   :  { %3264 = vmatpush1.bf16.msra.mxu1 %v16956_v34  ;;  %v17021_v34 = vld [vmem:[#allocation14 + $0x224] ss:$24 sps:$4 sm:$0xff]  }
 0x5da   :  { %3265 = vmatprep.subr.bf16.mxu1 %v16964_v36  ;;  %v17019_v36 = vld [vmem:[#allocation14 + $0x220] ss:$24 sps:$4 sm:$0xff]  }
 0x5dd   :  { %3266 = vmatpush1.bf16.msra.mxu1 %v16962_v37  ;;  %v17022_v37 = vld [vmem:[#allocation14 + $0xf8] ss:$24 sps:$4 sm:$0xff]  }
 0x5de   :  { %3267 = vmatprep.subr.bf16.mxu1 %v16970_v40  ;;  %v17027_v40 = vld [vmem:[#allocation14 + $0x4] ss:$24 sps:$4 sm:$0xff]  }
 0x5e1   :  { %3268 = vmatpush1.bf16.msra.mxu1 %v16968_v41  ;;  %v17033_v41 = vld [vmem:[#allocation5 + $0x244] ss:$24 sps:$4 sm:$0xff]  }
 0x5e2   :  { %3269 = vmatprep.subr.bf16.mxu1 %v16976_v42  ;;  %v17025_v42 = vld [vmem:[#allocation14] ss:$24 sps:$4 sm:$0xff]  }
 0x5e5   :  { %3270 = vmatpush1.bf16.msra.mxu1 %v16974_v43  ;;  %v17030_v43 = vld [vmem:[#allocation14 + $0x34] ss:$24 sps:$4 sm:$0xff]  }
 0x5e6   :  { %3271 = vmatprep.subr.bf16.mxu1 %v16982_v44  ;;  %v17028_v44 = vld [vmem:[#allocation14 + $0x30] ss:$24 sps:$4 sm:$0xff]  }
 0x5e9   :  { %3272 = vmatpush1.bf16.msra.mxu1 %v16980_v45  ;;  %v17031_v45 = vld [vmem:[#allocation5 + $0x240] ss:$24 sps:$4 sm:$0xff]  }
 0x5ea   :  { %3273 = vmatprep.subr.bf16.mxu1 %v16988_v2  ;;  %v17069_v2 = vld [vmem:[#allocation5 + $0x304] ss:$24 sps:$4 sm:$0xff]  }
 0x5ed   :  { %3274 = vmatpush1.bf16.msra.mxu1 %v16986_v0  ;;  %v17063_v0 = vld [vmem:[#allocation14 + $0x74] ss:$24 sps:$4 sm:$0xff]  }
 0x661   :  { %v2671_v6 = vpop.f32.mrb[16].mxu1 }
 0x662   :  { %v16287_v7 = vadd.f32 %v14879_v5, %v2671_v6  ;;  %v2673_v8 = vpop.f32.mrb[17].mxu1  ;;  %v16994_v6 = vld [vmem:[#allocation14 + $0xc] ss:$24 sps:$4 sm:$0xff]  }
 0x663   :  { %v2674_v9 = vpop.f32.mrb[18].mxu1  ;;  %3575 = vmatprep.subr.bf16.mxu1 %v16994_v6  ;;  %v17066_v6 = vld [vmem:[#allocation14 + $0xa4] ss:$24 sps:$4 sm:$0xff]  }
 0x664   :  { %v16288_v11 = vadd.f32 %v14879_v5, %v2674_v9  ;;  %v2676_v12 = vpop.f32.mrb[19].mxu1  ;;  %16148 = vmatpush3.msra.mxu0 %v16287_v7  ;;  %v18844_v5 = vmov 0  }
 0x665   :  { %16152 = vmatprep.subr.mxu0 %v18842_v27  ;;  %3295 = vmatprep.mubr.bf16.mxu1 %v18844_v5  ;;  %v16992_v12 = vld [vmem:[#allocation14 + $0x8] ss:$24 sps:$4 sm:$0xff]  }
 0x6a7   :  { %v2750_v13 = vpop.f32.mrb[20].mxu1 }
 0x6a8   :  { %v2830_v14 = vmul.f32 0.10206208, %v2750_v13  ;;  %v16141_v15 = vpop.f32.mrb[21].mxu1 }
 0x6a9   :  { %v16997_v15 = vld [vmem:[#allocation14 + $0x164] ss:$24 sps:$4 sm:$0xff]  }
 0x6aa   :  { %v2832_v10 = vsel %vm1428_vm2, %v2830_v14, -inf }
 0x6ab   :  { %2833 = vmax.xlane.f32.xlu0 %v2832_v10  ;;  %v2826_v17 = vpop.f32.mrb[22].mxu1  ;;  %v17000_v10 = vld [vmem:[#allocation14 + $0x3c] ss:$24 sps:$4 sm:$0xff]  }
 0x6ac   :  { %v2831_v18 = vmul.f32 0.10206208, %v2826_v17  ;;  %v16146_v19 = vpop.f32.mrb[23].mxu1  ;;  %v16995_v17 = vld [vmem:[#allocation14 + $0x160] ss:$24 sps:$4 sm:$0xff]  }
 0x6ad   :  { %v17003_v19 = vld [vmem:[#allocation14 + $0x194] ss:$24 sps:$4 sm:$0xff]  }
 0x6ae   :  { %v2835_v20 = vsel %vm1428_vm2, %v2831_v18, -inf }
 0x6af   :  { %2836 = vmax.xlane.f32.xlu1 %v2835_v20  ;;  %v17006_v20 = vld [vmem:[#allocation14 + $0x6c] ss:$24 sps:$4 sm:$0xff]  }
 0x738   :  { %v2834_v21 = vpop.xlane.xlu0 %2833 }
 0x739   :  { %v2838_v22 = vsub.f32 %v2830_v14, %v2834_v21  ;;  %v17001_v21 = vld [vmem:[#allocation14 + $0x190] ss:$24 sps:$4 sm:$0xff]  }
 0x73b   :  { %v2840_v23 = vmul.f32 1.442695, %v2838_v22  ;;  %v17004_v22 = vld [vmem:[#allocation14 + $0x68] ss:$24 sps:$4 sm:$0xff]  }
 0x73c   :  { %v2837_v24 = vpop.xlane.xlu1 %2836 }
 0x73d   :  { %18413 = vpow2.f32 %v2840_v23  ;;  %v2839_v25 = vsub.f32 %v2831_v18, %v2837_v24  ;;  %v16998_v18 = vld [vmem:[#allocation14 + $0x38] ss:$24 sps:$4 sm:$0xff]   ;;  %v17009_v23 = vld [vmem:[#allocation14 + $0x1c4] ss:$24 sps:$4 sm:$0xff]  }
 0x73e   :  { %v17012_v24 = vld [vmem:[#allocation14 + $0x9c] ss:$24 sps:$4 sm:$0xff]  }
 0x73f   :  { %v2842_v28 = vmul.f32 1.442695, %v2839_v25  ;;  %v17007_v25 = vld [vmem:[#allocation14 + $0x1c0] ss:$24 sps:$4 sm:$0xff]  }
 0x741   :  { %18415 = vpow2.f32 %v2842_v28  ;;  %v17010_v28 = vld [vmem:[#allocation14 + $0x98] ss:$24 sps:$4 sm:$0xff]  }
 0x747   :  { %v18414_v29 = vpop.eup %18413 }
 0x748   :  { %v2844_v30 = vsel %vm1428_vm2, %v18414_v29, 0.0 }
 0x749   :  { %2845 = vadd.xlane.f32.xlu0 %v2844_v30  ;;  %v17018_v30 = vld [vmem:[#allocation14 + $0xcc] ss:$24 sps:$4 sm:$0xff]  }
 0x74b   :  { %v18416_v31 = vpop.eup %18415 }
 0x74c   :  { %v2847_v32 = vsel %vm1428_vm2, %v18416_v31, 0.0 }
 0x74d   :  { %2848 = vadd.xlane.f32.xlu1 %v2847_v32  ;;  %v17016_v32 = vld [vmem:[#allocation14 + $0xc8] ss:$24 sps:$4 sm:$0xff]  }
 0x7d6   :  { %v2846_v46 = vpop.xlane.xlu0 %2845 }
 0x7d7   :  { %18417 = vrcp.f32 %v2846_v46  ;;  %v17036_v46 = vld [vmem:[#allocation14 + $0x64] ss:$24 sps:$4 sm:$0xff]  }
 0x7da   :  { %v2849_v47 = vpop.xlane.xlu1 %2848 }
 0x7db   :  { %18419 = vrcp.f32 %v2849_v47  ;;  %v17042_v47 = vld [vmem:[#allocation5 + $0x274] ss:$24 sps:$4 sm:$0xff]  }
 0x7e1   :  { %v18418_v48 = vpop.eup %18417 }
 0x7e2   :  { %v2852_v49 = vmul.f32 %v18418_v48, %v18414_v29  ;;  %v17015_v29 = vld [vmem:[#allocation14 + $0x1f4] ss:$24 sps:$4 sm:$0xff]   ;;  %v17034_v48 = vld [vmem:[#allocation14 + $0x60] ss:$24 sps:$4 sm:$0xff]  }
 0x7e4   :  { %16150 = vmatmul.mubr.msk.f32.vlgmr.msra.gmra.mrb[12].mxu0 %vm1428_vm2, %v2852_v49  ;;  %v17039_v49 = vld [vmem:[#allocation14 + $0x94] ss:$24 sps:$4 sm:$0xff]  }
 0x7e5   :  { %v18420_v51 = vpop.eup %18419  ;;  %16153 = vmatpush3.msra.mxu0 %v16288_v11  ;;  %16154 = vmatprep.mubr.msk.f32.mxu0 %vm18843_vm0, %v18842_v27  ;;  %v16989_v11 = vld [vmem:[#allocation14 + $0x130] ss:$24 sps:$4 sm:$0xff]  }
 0x7e6   :  { %v2853_v53 = vmul.f32 %v18420_v51, %v18416_v31  ;;  %3220 = vmatprep.subr.bf16.mxu0 %v16955_v50  ;;  %v17013_v31 = vld [vmem:[#allocation14 + $0x1f0] ss:$24 sps:$4 sm:$0xff]  }
 0x7e7   :  { %v17037_v50 = vld [vmem:[#allocation14 + $0x90] ss:$24 sps:$4 sm:$0xff]  }
 0x7e8   :  { %16155 = vmatmul.mubr.msk.f32.vlgmr.msra.gmra.mrb[14].mxu0 %vm1428_vm2, %v2853_v53  ;;  %v17040_v51 = vld [vmem:[#allocation5 + $0x270] ss:$24 sps:$4 sm:$0xff]   ;;  %v17051_v53 = vld [vmem:[#allocation5 + $0x2a4] ss:$24 sps:$4 sm:$0xff]  }
 0x7e9   :  { %3221 = vmatpush1.bf16.msra.mxu0 %v16953_v52  ;;  %3252 = vmatprep.mubr.bf16.mxu0 %v18844_v5  ;;  %v17045_v52 = vld [vmem:[#allocation14 + $0xc4] ss:$24 sps:$4 sm:$0xff]  }
 0x7ea   :  { %3222 = vmatprep.subr.bf16.mxu0 %v16961_v54  ;;  %v17043_v54 = vld [vmem:[#allocation14 + $0xc0] ss:$24 sps:$4 sm:$0xff]  }
 0x7ed   :  { %3223 = vmatpush1.bf16.msra.mxu0 %v16959_v55  ;;  %v17048_v55 = vld [vmem:[#allocation14 + $0xf4] ss:$24 sps:$4 sm:$0xff]  }
 0x7ee   :  { %3224 = vmatprep.subr.bf16.mxu0 %v16967_v56  ;;  %v17046_v56 = vld [vmem:[#allocation14 + $0xf0] ss:$24 sps:$4 sm:$0xff]  }
 0x7f1   :  { %3225 = vmatpush1.bf16.msra.mxu0 %v16965_v57  ;;  %v17049_v57 = vld [vmem:[#allocation5 + $0x2a0] ss:$24 sps:$4 sm:$0xff]  }
 0x7f2   :  { %3226 = vmatprep.subr.bf16.mxu0 %v16973_v58  ;;  %v17054_v58 = vld [vmem:[#allocation14 + $0x14] ss:$24 sps:$4 sm:$0xff]  }
 0x7f5   :  { %3227 = vmatpush1.bf16.msra.mxu0 %v16971_v59  ;;  %v17060_v59 = vld [vmem:[#allocation5 + $0x2d4] ss:$24 sps:$4 sm:$0xff]  }
 0x7f6   :  { %3228 = vmatprep.subr.bf16.mxu0 %v16979_v60  ;;  %v17052_v60 = vld [vmem:[#allocation14 + $0x10] ss:$24 sps:$4 sm:$0xff]  }
 0x7f9   :  { %3229 = vmatpush1.bf16.msra.mxu0 %v16977_v61  ;;  %v17057_v61 = vld [vmem:[#allocation14 + $0x44] ss:$24 sps:$4 sm:$0xff]  }
 0x7fa   :  { %3230 = vmatprep.subr.bf16.mxu0 %v16985_v63  ;;  %v17058_v63 = vld [vmem:[#allocation5 + $0x2d0] ss:$24 sps:$4 sm:$0xff]  }
 0x7fd   :  { %3231 = vmatpush1.bf16.msra.mxu0 %v16983_v62  ;;  %v17055_v62 = vld [vmem:[#allocation14 + $0x40] ss:$24 sps:$4 sm:$0xff]  }
 0x7fe   :  { %3306 = vmatprep.subr.bf16.mxu0 %v16991_v3  ;;  %v17061_v3 = vld [vmem:[#allocation14 + $0x70] ss:$24 sps:$4 sm:$0xff]  }
 0x8b7   :  { %v2923_v7 = vpop.f32.mrb[12].mxu0 }
 0x8b8   :  { %v16151_v8 = vpop.f32.mrb[13].mxu0 }
 0x8b9   :  { %v17067_v8 = vld [vmem:[#allocation5 + $0x300] ss:$24 sps:$4 sm:$0xff]  }
 0x8bb   :  { %v2996_v9 = vpop.f32.mrb[14].mxu0 }
 0x8bc   :  { %v3000_v13 = vpack.c.bf16 %v2996_v9, %v2923_v7  ;;  %v16156_v14 = vpop.f32.mrb[15].mxu0  ;;  %v17064_v7 = vld [vmem:[#allocation14 + $0xa0] ss:$24 sps:$4 sm:$0xff]   ;;  %v17072_v9 = vld [vmem:[#allocation14 + $0xd4] ss:$24 sps:$4 sm:$0xff]  }
 0x8bd   :  { %v17073_v14 = vld [vmem:[#allocation14 + $0x100] ss:$24 sps:$4 sm:$0xff]  }
 0x8be   :  { %14958 = vmatmul.mubr.msk.bf16.vlgmr.msra.gmra.mrb[16].mxu0 %vm1273_vm1, %v3000_v13  ;;  %14959 = vmatmul.mubr.msk.bf16.vlgmr.msra.gmra.mrb[24].mxu1 %vm1273_vm1, %v3000_v13 }
 0x8bf   :  { %3307 = vmatpush1.bf16.msra.mxu0 %v16989_v11  ;;  %3576 = vmatpush1.bf16.msra.mxu1 %v16992_v12  ;;  %v17078_v11 = vld [vmem:[#allocation5 + $0x334] ss:$24 sps:$4 sm:$0xff]   ;;  %v17070_v12 = vld [vmem:[#allocation14 + $0xd0] ss:$24 sps:$4 sm:$0xff]  }
 0x8c0   :  { %3308 = vmatprep.subr.bf16.mxu0 %v16997_v15  ;;  %3577 = vmatprep.subr.bf16.mxu1 %v17000_v10  ;;  %v17076_v15 = vld [vmem:[#allocation5 + $0x330] ss:$24 sps:$4 sm:$0xff]   ;;  %v17084_v10 = vld [vmem:[#allocation7 + $0x244] ss:$24 sps:$4 sm:$0xff]  }
 0x8c1   :  { %3338 = vmatprep.mubr.bf16.mxu0 %v18844_v5  ;;  %3607 = vmatprep.mubr.bf16.mxu1 %v18844_v5 }
 0x8c3   :  { %3309 = vmatpush1.bf16.msra.mxu0 %v16995_v17  ;;  %3578 = vmatpush1.bf16.msra.mxu1 %v16998_v18  ;;  %v17081_v17 = vld [vmem:[#allocation5 + $0x24c] ss:$24 sps:$4 sm:$0xff]   ;;  %v17079_v18 = vld [vmem:[#allocation5 + $0x248] ss:$24 sps:$4 sm:$0xff]  }
 0x8c4   :  { %3310 = vmatprep.subr.bf16.mxu0 %v17003_v19  ;;  %3579 = vmatprep.subr.bf16.mxu1 %v17006_v20  ;;  %v17082_v19 = vld [vmem:[#allocation7 + $0x240] ss:$24 sps:$4 sm:$0xff]   ;;  %v17087_v20 = vld [vmem:[#allocation5 + $0x27c] ss:$24 sps:$4 sm:$0xff]  }
 0x8c7   :  { %3311 = vmatpush1.bf16.msra.mxu0 %v17001_v21  ;;  %3580 = vmatpush1.bf16.msra.mxu1 %v17004_v22  ;;  %v17090_v21 = vld [vmem:[#allocation7 + $0x274] ss:$24 sps:$4 sm:$0xff]   ;;  %v17085_v22 = vld [vmem:[#allocation5 + $0x278] ss:$24 sps:$4 sm:$0xff]  }
 0x8c8   :  { %3312 = vmatprep.subr.bf16.mxu0 %v17009_v23  ;;  %3581 = vmatprep.subr.bf16.mxu1 %v17012_v24  ;;  %v17088_v23 = vld [vmem:[#allocation7 + $0x270] ss:$24 sps:$4 sm:$0xff]   ;;  %v17093_v24 = vld [vmem:[#allocation5 + $0x2ac] ss:$24 sps:$4 sm:$0xff]  }
 0x8cb   :  { %3313 = vmatpush1.bf16.msra.mxu0 %v17007_v25  ;;  %3582 = vmatpush1.bf16.msra.mxu1 %v17010_v28  ;;  %v17096_v25 = vld [vmem:[#allocation7 + $0x2a4] ss:$24 sps:$4 sm:$0xff]   ;;  %v17094_v28 = vld [vmem:[#allocation7 + $0x2a0] ss:$24 sps:$4 sm:$0xff]  }
 0x8cc   :  { %3314 = vmatprep.subr.bf16.mxu0 %v17015_v29  ;;  %3583 = vmatprep.subr.bf16.mxu1 %v17018_v30  ;;  %v17099_v29 = vld [vmem:[#allocation5 + $0x2dc] ss:$24 sps:$4 sm:$0xff]  }
 0x8cd   :  { %v17102_v30 = vld [vmem:[#allocation7 + $0x2d4] ss:$24 sps:$4 sm:$0xff]  }
 0x8cf   :  { %3315 = vmatpush1.bf16.msra.mxu0 %v17013_v31  ;;  %3584 = vmatpush1.bf16.msra.mxu1 %v17016_v32  ;;  %v17097_v31 = vld [vmem:[#allocation5 + $0x2d8] ss:$24 sps:$4 sm:$0xff]  }
 0x8d0   :  { %3316 = vmatprep.subr.bf16.mxu0 %v17021_v34  ;;  %3585 = vmatprep.subr.bf16.mxu1 %v17024_v35  ;;  %v17100_v32 = vld [vmem:[#allocation7 + $0x2d0] ss:$24 sps:$4 sm:$0xff]   ;;  %v17105_v34 = vld [vmem:[#allocation5 + $0x30c] ss:$24 sps:$4 sm:$0xff]  }
 0x8d1   :  { %v17108_v35 = vld [vmem:[#allocation7 + $0x304] ss:$24 sps:$4 sm:$0xff]  }
 0x8d3   :  { %3317 = vmatpush1.bf16.msra.mxu0 %v17019_v36  ;;  %3586 = vmatpush1.bf16.msra.mxu1 %v17022_v37  ;;  %v17103_v36 = vld [vmem:[#allocation5 + $0x308] ss:$24 sps:$4 sm:$0xff]  }
 0x8d4   :  { %3532 = vmatprep.subr.bf16.mxu0 %v17027_v40  ;;  %3886 = vmatprep.subr.bf16.mxu1 %v17033_v41  ;;  %v17106_v37 = vld [vmem:[#allocation7 + $0x300] ss:$24 sps:$4 sm:$0xff]   ;;  %v17111_v40 = vld [vmem:[#allocation5 + $0x33c] ss:$24 sps:$4 sm:$0xff]  }
 0x8d5   :  { %v17114_v41 = vld [vmem:[#allocation7 + $0x334] ss:$24 sps:$4 sm:$0xff]  }
 0x8d6   :  { %14960 = vmatmul.mubr.msk.bf16.vlgmr.msra.gmra.mrb[20].mxu0 %vm1273_vm1, %v3000_v13  ;;  %14998 = vmatmul.mubr.msk.bf16.vlgmr.msra.gmra.mrb[24].mxu1 %vm1273_vm1, %v19196_v39  ;;  %v17075_v13 = vld [vmem:[#allocation14 + $0x104] ss:$24 sps:$4 sm:$0xff]  }
 0x8d7   :  { %3533 = vmatpush1.bf16.msra.mxu0 %v17025_v42  ;;  %3564 = vmatprep.mubr.bf16.mxu0 %v18844_v5  ;;  %v17109_v42 = vld [vmem:[#allocation5 + $0x338] ss:$24 sps:$4 sm:$0xff]  }
 0x8d8   :  { %3534 = vmatprep.subr.bf16.mxu0 %v17030_v43  ;;  %3918 = vmatprep.mubr.bf16.mxu1 %v19108_v16  ;;  %v17112_v43 = vld [vmem:[#allocation7 + $0x330] ss:$24 sps:$4 sm:$0xff]  }
 0x8db   :  { %3535 = vmatpush1.bf16.msra.mxu0 %v17028_v44  ;;  %v17117_v44 = vld [vmem:[#allocation5 + $0x254] ss:$24 sps:$4 sm:$0xff]  }
 0x8dc   :  { %3887 = vmatpush1.bf16.xpose.msra.mxu1 %v17031_v45  ;;  %3536 = vmatprep.subr.bf16.mxu0 %v17036_v46  ;;  %v17120_v45 = vld [vmem:[#allocation7 + $0x24c] ss:$24 sps:$4 sm:$0xff]   ;;  %v17115_v46 = vld [vmem:[#allocation5 + $0x250] ss:$24 sps:$4 sm:$0xff]  }
 0x8dd   :  { %3888 = vmatprep.subr.bf16.mxu1 %v17042_v47  ;;  %v17118_v47 = vld [vmem:[#allocation7 + $0x248] ss:$24 sps:$4 sm:$0xff]  }
 0x8df   :  { %3537 = vmatpush1.bf16.msra.mxu0 %v17034_v48  ;;  %v17123_v48 = vld [vmem:[#allocation5 + $0x284] ss:$24 sps:$4 sm:$0xff]  }
 0x8e0   :  { %3538 = vmatprep.subr.bf16.mxu0 %v17039_v49  ;;  %v17126_v49 = vld [vmem:[#allocation7 + $0x27c] ss:$24 sps:$4 sm:$0xff]  }
 0x8e3   :  { %3539 = vmatpush1.bf16.msra.mxu0 %v17037_v50  ;;  %v17121_v50 = vld [vmem:[#allocation5 + $0x280] ss:$24 sps:$4 sm:$0xff]  }
 0x8e4   :  { %3889 = vmatpush1.bf16.xpose.msra.mxu1 %v17040_v51  ;;  %3540 = vmatprep.subr.bf16.mxu0 %v17045_v52  ;;  %v17124_v51 = vld [vmem:[#allocation7 + $0x278] ss:$24 sps:$4 sm:$0xff]   ;;  %v17129_v52 = vld [vmem:[#allocation5 + $0x2b4] ss:$24 sps:$4 sm:$0xff]  }
 0x8e5   :  { %3890 = vmatprep.subr.bf16.mxu1 %v17051_v53  ;;  %v17132_v53 = vld [vmem:[#allocation7 + $0x2ac] ss:$24 sps:$4 sm:$0xff]  }
 0x8e7   :  { %3541 = vmatpush1.bf16.msra.mxu0 %v17043_v54  ;;  %v17127_v54 = vld [vmem:[#allocation5 + $0x2b0] ss:$24 sps:$4 sm:$0xff]  }
 0x8e8   :  { %3542 = vmatprep.subr.bf16.mxu0 %v17048_v55  ;;  %v17130_v55 = vld [vmem:[#allocation7 + $0x2a8] ss:$24 sps:$4 sm:$0xff]  }
 0x8eb   :  { %3543 = vmatpush1.bf16.msra.mxu0 %v17046_v56  ;;  %v17135_v56 = vld [vmem:[#allocation5 + $0x2e4] ss:$24 sps:$4 sm:$0xff]  }
 0x8ec   :  { %3891 = vmatpush1.bf16.xpose.msra.mxu1 %v17049_v57  ;;  %3618 = vmatprep.subr.bf16.mxu0 %v17054_v58  ;;  %v17138_v57 = vld [vmem:[#allocation7 + $0x2dc] ss:$24 sps:$4 sm:$0xff]   ;;  %v17133_v58 = vld [vmem:[#allocation5 + $0x2e0] ss:$24 sps:$4 sm:$0xff]  }
 0x8ed   :  { %3892 = vmatprep.subr.bf16.mxu1 %v17060_v59  ;;  %v17136_v59 = vld [vmem:[#allocation7 + $0x2d8] ss:$24 sps:$4 sm:$0xff]  }
 0x8ee   :  { %14997 = vmatmul.mubr.msk.bf16.vlgmr.msra.gmra.mrb[16].mxu0 %vm1273_vm1, %v19196_v39 }
 0x8ef   :  { %3619 = vmatpush1.bf16.msra.mxu0 %v17052_v60  ;;  %3650 = vmatprep.mubr.bf16.mxu0 %v18844_v5  ;;  %v17141_v60 = vld [vmem:[#allocation5 + $0x314] ss:$24 sps:$4 sm:$0xff]  }
 0x8f0   :  { %3620 = vmatprep.subr.bf16.mxu0 %v17057_v61  ;;  %v17144_v61 = vld [vmem:[#allocation7 + $0x30c] ss:$24 sps:$4 sm:$0xff]  }
 0x8f3   :  { %3621 = vmatpush1.bf16.msra.mxu0 %v17055_v62  ;;  %v17139_v62 = vld [vmem:[#allocation5 + $0x310] ss:$24 sps:$4 sm:$0xff]  }
 0x8f4   :  { %3893 = vmatpush1.bf16.xpose.msra.mxu1 %v17058_v63  ;;  %3622 = vmatprep.subr.bf16.mxu0 %v17063_v0  ;;  %v17142_v63 = vld [vmem:[#allocation7 + $0x308] ss:$24 sps:$4 sm:$0xff]   ;;  %v17147_v0 = vld [vmem:[#allocation5 + $0x344] ss:$24 sps:$4 sm:$0xff]  }
 0x8f5   :  { %3894 = vmatprep.subr.bf16.mxu1 %v17069_v2  ;;  %v17150_v2 = vld [vmem:[#allocation7 + $0x33c] ss:$24 sps:$4 sm:$0xff]  }
 0x8f7   :  { %3623 = vmatpush1.bf16.msra.mxu0 %v17061_v3  ;;  %v17145_v3 = vld [vmem:[#allocation5 + $0x340] ss:$24 sps:$4 sm:$0xff]  }
 0x8f8   :  { %3624 = vmatprep.subr.bf16.mxu0 %v17066_v6  ;;  %v17148_v6 = vld [vmem:[#allocation7 + $0x338] ss:$24 sps:$4 sm:$0xff]  }
 0x8fb   :  { %3625 = vmatpush1.bf16.msra.mxu0 %v17064_v7  ;;  %v17153_v7 = vld [vmem:[#allocation7 + $0x254] ss:$24 sps:$4 sm:$0xff]  }
 0x8fc   :  { %3895 = vmatpush1.bf16.xpose.msra.mxu1 %v17067_v8  ;;  %3626 = vmatprep.subr.bf16.mxu0 %v17072_v9  ;;  %v17151_v8 = vld [vmem:[#allocation7 + $0x250] ss:$24 sps:$4 sm:$0xff]   ;;  %v17156_v9 = vld [vmem:[#allocation7 + $0x284] ss:$24 sps:$4 sm:$0xff]  }
 0x8fd   :  { %3896 = vmatprep.subr.bf16.mxu1 %v17078_v11  ;;  %v17154_v11 = vld [vmem:[#allocation7 + $0x280] ss:$24 sps:$4 sm:$0xff]  }
 0x8ff   :  { %3627 = vmatpush1.bf16.msra.mxu0 %v17070_v12  ;;  %v17159_v12 = vld [vmem:[#allocation7 + $0x2b4] ss:$24 sps:$4 sm:$0xff]  }
 0x900   :  { %3628 = vmatprep.subr.bf16.mxu0 %v17075_v13  ;;  %v17157_v13 = vld [vmem:[#allocation7 + $0x2b0] ss:$24 sps:$4 sm:$0xff]  }
 0x903   :  { %3629 = vmatpush1.bf16.msra.mxu0 %v17073_v14  ;;  %v17162_v14 = vld [vmem:[#allocation7 + $0x2e4] ss:$24 sps:$4 sm:$0xff]  }
 0x904   :  { %3897 = vmatpush1.bf16.xpose.msra.mxu1 %v17076_v15  ;;  %4234 = vmatprep.subr.bf16.mxu0 %v17084_v10  ;;  %v17160_v15 = vld [vmem:[#allocation7 + $0x2e0] ss:$24 sps:$4 sm:$0xff]   ;;  %v17165_v10 = vld [vmem:[#allocation7 + $0x314] ss:$24 sps:$4 sm:$0xff]  }
 0x905   :  { %3927 = vmatprep.subr.bf16.mxu1 %v17081_v17  ;;  %v17163_v17 = vld [vmem:[#allocation7 + $0x310] ss:$24 sps:$4 sm:$0xff]  }
 0x906   :  { %14999 = vmatmul.mubr.msk.bf16.vlgmr.msra.gmra.mrb[20].mxu0 %vm1273_vm1, %v19196_v39  ;;  %v17091_v39 = vld [vmem:[#allocation5 + $0x2a8] ss:$24 sps:$4 sm:$0xff]  }
 0x907   :  { %4266 = vmatprep.mubr.bf16.mxu0 %v19108_v16 }
 0x90b   :  { %3919 = vmatmul.mubr.bf16.vlgmr.msra.gmra.mrb[28].mxu1 %v19112_v33 }
 0x90c   :  { %3928 = vmatpush1.bf16.xpose.msra.mxu1 %v17079_v18  ;;  %4235 = vmatpush1.bf16.xpose.msra.mxu0 %v17082_v19  ;;  %v17168_v18 = vld [vmem:[#allocation7 + $0x344] ss:$24 sps:$4 sm:$0xff]   ;;  %v17166_v19 = vld [vmem:[#allocation7 + $0x340] ss:$24 sps:$4 sm:$0xff]  }
 0x90d   :  { %3929 = vmatprep.subr.bf16.mxu1 %v17087_v20  ;;  %4236 = vmatprep.subr.bf16.mxu0 %v17090_v21  ;;  %v17169_v20 = vld [vmem:[#allocation8 + $0x240] ss:$24 sps:$4 sm:$0xff]   ;;  %v17171_v21 = vld [vmem:[#allocation8 + $0x244] ss:$24 sps:$4 sm:$0xff]  }
 0x90e   :  { %3959 = vmatprep.mubr.bf16.mxu1 %v19114_v38 }
 0x914   :  { %3930 = vmatpush1.bf16.xpose.msra.mxu1 %v17085_v22  ;;  %4237 = vmatpush1.bf16.xpose.msra.mxu0 %v17088_v23  ;;  %v17174_v22 = vld [vmem:[#allocation8 + $0x274] ss:$24 sps:$4 sm:$0xff]   ;;  %v17172_v23 = vld [vmem:[#allocation8 + $0x270] ss:$24 sps:$4 sm:$0xff]  }
 0x915   :  { %3931 = vmatprep.subr.bf16.mxu1 %v17093_v24  ;;  %4238 = vmatprep.subr.bf16.mxu0 %v17096_v25  ;;  %v17177_v24 = vld [vmem:[#allocation8 + $0x2a4] ss:$24 sps:$4 sm:$0xff]   ;;  %v17175_v25 = vld [vmem:[#allocation8 + $0x2a0] ss:$24 sps:$4 sm:$0xff]  }
 0x91c   :  { %3932 = vmatpush1.bf16.xpose.msra.mxu1 %v17091_v39  ;;  %4239 = vmatpush1.bf16.xpose.msra.mxu0 %v17094_v28  ;;  %v17180_v39 = vld [vmem:[#allocation8 + $0x2d4] ss:$24 sps:$4 sm:$0xff]   ;;  %v17178_v28 = vld [vmem:[#allocation8 + $0x2d0] ss:$24 sps:$4 sm:$0xff]  }
 0x91d   :  { %3933 = vmatprep.subr.bf16.mxu1 %v17099_v29  ;;  %4240 = vmatprep.subr.bf16.mxu0 %v17102_v30  ;;  %v17183_v29 = vld [vmem:[#allocation8 + $0x304] ss:$24 sps:$4 sm:$0xff]   ;;  %v17181_v30 = vld [vmem:[#allocation8 + $0x300] ss:$24 sps:$4 sm:$0xff]  }
 0x924   :  { %3934 = vmatpush1.bf16.xpose.msra.mxu1 %v17097_v31  ;;  %4241 = vmatpush1.bf16.xpose.msra.mxu0 %v17100_v32  ;;  %v17186_v31 = vld [vmem:[#allocation8 + $0x334] ss:$24 sps:$4 sm:$0xff]   ;;  %v17184_v32 = vld [vmem:[#allocation8 + $0x330] ss:$24 sps:$4 sm:$0xff]  }
 0x925   :  { %3935 = vmatprep.subr.bf16.mxu1 %v17105_v34  ;;  %4242 = vmatprep.subr.bf16.mxu0 %v17108_v35  ;;  %v17189_v34 = vld [vmem:[#allocation8 + $0x24c] ss:$24 sps:$4 sm:$0xff]   ;;  %v17187_v35 = vld [vmem:[#allocation8 + $0x248] ss:$24 sps:$4 sm:$0xff]  }
 0x92c   :  { %3936 = vmatpush1.bf16.xpose.msra.mxu1 %v17103_v36  ;;  %4243 = vmatpush1.bf16.xpose.msra.mxu0 %v17106_v37  ;;  %v17192_v36 = vld [vmem:[#allocation8 + $0x27c] ss:$24 sps:$4 sm:$0xff]   ;;  %v17190_v37 = vld [vmem:[#allocation8 + $0x278] ss:$24 sps:$4 sm:$0xff]  }
 0x92d   :  { %3937 = vmatprep.subr.bf16.mxu1 %v17111_v40  ;;  %4244 = vmatprep.subr.bf16.mxu0 %v17114_v41  ;;  %v17195_v40 = vld [vmem:[#allocation8 + $0x2ac] ss:$24 sps:$4 sm:$0xff]   ;;  %v17193_v41 = vld [vmem:[#allocation8 + $0x2a8] ss:$24 sps:$4 sm:$0xff]  }
 0x934   :  { %3938 = vmatpush1.bf16.xpose.msra.mxu1 %v17109_v42  ;;  %4245 = vmatpush1.bf16.xpose.msra.mxu0 %v17112_v43  ;;  %v17198_v42 = vld [vmem:[#allocation8 + $0x2dc] ss:$24 sps:$4 sm:$0xff]  }
 0x935   :  { %3968 = vmatprep.subr.bf16.mxu1 %v17117_v44  ;;  %4275 = vmatprep.subr.bf16.mxu0 %v17120_v45  ;;  %v17196_v45 = vld [vmem:[#allocation8 + $0x2d8] ss:$24 sps:$4 sm:$0xff]  }
 0x93b   :  { %3960 = vmatmul.mubr.bf16.vlgmr.msra.gmra.mrb[28].mxu1 %v19120_v1  ;;  %4267 = vmatmul.mubr.bf16.vlgmr.msra.gmra.mrb[24].mxu0 %v19112_v33 }
 0x93c   :  { %3969 = vmatpush1.bf16.xpose.msra.mxu1 %v17115_v46  ;;  %4276 = vmatpush1.bf16.xpose.msra.mxu0 %v17118_v47  ;;  %v17201_v47 = vld [vmem:[#allocation8 + $0x30c] ss:$24 sps:$4 sm:$0xff]  }
 0x93d   :  { %3970 = vmatprep.subr.bf16.mxu1 %v17123_v48  ;;  %4277 = vmatprep.subr.bf16.mxu0 %v17126_v49  ;;  %v17199_v49 = vld [vmem:[#allocation8 + $0x308] ss:$24 sps:$4 sm:$0xff]  }
 0x93e   :  { %4000 = vmatprep.mubr.bf16.mxu1 %v19122_v4  ;;  %4307 = vmatprep.mubr.bf16.mxu0 %v19114_v38 }
 0x944   :  { %3971 = vmatpush1.bf16.xpose.msra.mxu1 %v17121_v50  ;;  %4278 = vmatpush1.bf16.xpose.msra.mxu0 %v17124_v51  ;;  %v17204_v50 = vld [vmem:[#allocation8 + $0x33c] ss:$24 sps:$4 sm:$0xff]   ;;  %v17202_v51 = vld [vmem:[#allocation8 + $0x338] ss:$24 sps:$4 sm:$0xff]  }
 0x945   :  { %3972 = vmatprep.subr.bf16.mxu1 %v17129_v52  ;;  %4279 = vmatprep.subr.bf16.mxu0 %v17132_v53  ;;  %v17207_v52 = vld [vmem:[#allocation8 + $0x254] ss:$24 sps:$4 sm:$0xff]   ;;  %v17205_v53 = vld [vmem:[#allocation8 + $0x250] ss:$24 sps:$4 sm:$0xff]  }
 0x94c   :  { %3973 = vmatpush1.bf16.xpose.msra.mxu1 %v17127_v54  ;;  %4280 = vmatpush1.bf16.xpose.msra.mxu0 %v17130_v55  ;;  %v17210_v54 = vld [vmem:[#allocation8 + $0x284] ss:$24 sps:$4 sm:$0xff]   ;;  %v17208_v55 = vld [vmem:[#allocation8 + $0x280] ss:$24 sps:$4 sm:$0xff]  }
 0x94d   :  { %3974 = vmatprep.subr.bf16.mxu1 %v17135_v56  ;;  %4281 = vmatprep.subr.bf16.mxu0 %v17138_v57  ;;  %v17213_v56 = vld [vmem:[#allocation8 + $0x2b4] ss:$24 sps:$4 sm:$0xff]   ;;  %v17211_v57 = vld [vmem:[#allocation8 + $0x2b0] ss:$24 sps:$4 sm:$0xff]  }
 0x954   :  { %3975 = vmatpush1.bf16.xpose.msra.mxu1 %v17133_v58  ;;  %4282 = vmatpush1.bf16.xpose.msra.mxu0 %v17136_v59  ;;  %v17216_v58 = vld [vmem:[#allocation8 + $0x2e4] ss:$24 sps:$4 sm:$0xff]   ;;  %v15037_v59 = vld [vmem:[#allocation11 + $0x2] ss:$0 sm:$0xff] }
 0x955   :  { %3976 = vmatprep.subr.bf16.mxu1 %v17141_v60  ;;  %4283 = vmatprep.subr.bf16.mxu0 %v17144_v61  ;;  %v15000_v61 = vld [vmem:[#allocation10 + $0x2] ss:$0 sm:$0xff] }
 0x95c   :  { %3977 = vmatpush1.bf16.xpose.msra.mxu1 %v17139_v62  ;;  %4284 = vmatpush1.bf16.xpose.msra.mxu0 %v17142_v63 }
 0x95d   :  { %3978 = vmatprep.subr.bf16.mxu1 %v17147_v0  ;;  %4285 = vmatprep.subr.bf16.mxu0 %v17150_v2  ;;  %v17214_v0 = vld [vmem:[#allocation8 + $0x2e0] ss:$24 sps:$4 sm:$0xff]  }
 0x964   :  { %3979 = vmatpush1.bf16.xpose.msra.mxu1 %v17145_v3  ;;  %4286 = vmatpush1.bf16.xpose.msra.mxu0 %v17148_v6  ;;  %v17219_v3 = vld [vmem:[#allocation8 + $0x314] ss:$24 sps:$4 sm:$0xff]  }
 0x965   :  { %4316 = vmatprep.subr.bf16.mxu0 %v17153_v7  ;;  %4582 = vmatprep.subr.bf16.mxu1 %v17171_v21 }
 0x96b   :  { %4001 = vmatmul.mubr.bf16.vlgmr.msra.gmra.mrb[28].mxu1 %v19128_v26  ;;  %4308 = vmatmul.mubr.bf16.vlgmr.msra.gmra.mrb[24].mxu0 %v19120_v1 }
 0x96c   :  { %4317 = vmatpush1.bf16.xpose.msra.mxu0 %v17151_v8  ;;  %4348 = vmatprep.mubr.bf16.mxu0 %v19122_v4 }
 0x96d   :  { %4318 = vmatprep.subr.bf16.mxu0 %v17156_v9  ;;  %4614 = vmatprep.mubr.bf16.mxu1 %v19108_v16 }
 0x96e   :  { %4583 = vmatpush1.bf16.xpose.msra.mxu1 %v17169_v20 }
 0x96f   :  { %4584 = vmatprep.subr.bf16.mxu1 %v17174_v22  ;;  %v15074_v22 = vld [vmem:[#allocation13 + $0x2] ss:$0 sm:$0xff] }
 0x974   :  { %4319 = vmatpush1.bf16.xpose.msra.mxu0 %v17154_v11  ;;  %v17217_v11 = vld [vmem:[#allocation8 + $0x310] ss:$24 sps:$4 sm:$0xff]  }
 0x975   :  { %4320 = vmatprep.subr.bf16.mxu0 %v17159_v12  ;;  %v17222_v12 = vld [vmem:[#allocation8 + $0x344] ss:$24 sps:$4 sm:$0xff]  }
 0x976   :  { %4585 = vmatpush1.bf16.xpose.msra.mxu1 %v17172_v23 }
 0x977   :  { %4586 = vmatprep.subr.bf16.mxu1 %v17177_v24 }
 0x97c   :  { %4321 = vmatpush1.bf16.xpose.msra.mxu0 %v17157_v13  ;;  %v17220_v13 = vld [vmem:[#allocation8 + $0x340] ss:$24 sps:$4 sm:$0xff]  }
 0x97d   :  { %4322 = vmatprep.subr.bf16.mxu0 %v17162_v14 }
 0x97e   :  { %4587 = vmatpush1.bf16.xpose.msra.mxu1 %v17175_v25 }
 0x97f   :  { %4588 = vmatprep.subr.bf16.mxu1 %v17180_v39 }
 0x984   :  { %4323 = vmatpush1.bf16.xpose.msra.mxu0 %v17160_v15 }
 0x985   :  { %4324 = vmatprep.subr.bf16.mxu0 %v17165_v10 }
 0x986   :  { %4589 = vmatpush1.bf16.xpose.msra.mxu1 %v17178_v28 }
 0x987   :  { %4590 = vmatprep.subr.bf16.mxu1 %v17183_v29 }
 0x98c   :  { %4325 = vmatpush1.bf16.xpose.msra.mxu0 %v17163_v17 }
 0x98d   :  { %4326 = vmatprep.subr.bf16.mxu0 %v17168_v18 }
 0x98e   :  { %4591 = vmatpush1.bf16.xpose.msra.mxu1 %v17181_v30 }
 0x98f   :  { %4592 = vmatprep.subr.bf16.mxu1 %v17186_v31 }
 0x994   :  { %4327 = vmatpush1.bf16.xpose.msra.mxu0 %v17166_v19 }
 0x995   :  { %16157 = vmatprep.subr.mxu0 %v18842_v27 }
 0x996   :  { %4593 = vmatpush1.bf16.xpose.msra.mxu1 %v17184_v32 }
 0x997   :  { %4623 = vmatprep.subr.bf16.mxu1 %v17189_v34 }
 0x99b   :  { %4349 = vmatmul.mubr.bf16.vlgmr.msra.gmra.mrb[24].mxu0 %v19128_v26 }
 0x99c   :  { %16159 = vmatprep.mubr.msk.f32.mxu0 %vm18843_vm0, %v18842_v27 }
 0x99d   :  { %4615 = vmatmul.mubr.bf16.vlgmr.msra.gmra.mrb[32].mxu1 %v19112_v33 }
 0x99e   :  { %4624 = vmatpush1.bf16.xpose.msra.mxu1 %v17187_v35  ;;  %4655 = vmatprep.mubr.bf16.mxu1 %v19114_v38 }
 0x99f   :  { %4625 = vmatprep.subr.bf16.mxu1 %v17192_v36 }
 0x9a6   :  { %4626 = vmatpush1.bf16.xpose.msra.mxu1 %v17190_v37 }
 0x9a7   :  { %4627 = vmatprep.subr.bf16.mxu1 %v17195_v40 }
 0x9ae   :  { %4628 = vmatpush1.bf16.xpose.msra.mxu1 %v17193_v41 }
 0x9af   :  { %4629 = vmatprep.subr.bf16.mxu1 %v17198_v42 }
 0x9b6   :  { %4630 = vmatpush1.bf16.xpose.msra.mxu1 %v17196_v45  ;;  %v17228_v45 = vld [vmem:[#allocation14 + $0x27c] ss:$24 sps:$4 sm:$0xff]  }
 0x9b7   :  { %4631 = vmatprep.subr.bf16.mxu1 %v17201_v47  ;;  %v17234_v47 = vld [vmem:[#allocation14 + $0x2ac] ss:$24 sps:$4 sm:$0xff]  }
 0x9be   :  { %4632 = vmatpush1.bf16.xpose.msra.mxu1 %v17199_v49  ;;  %v17240_v49 = vld [vmem:[#allocation14 + $0x2dc] ss:$24 sps:$4 sm:$0xff]  }
 0x9bf   :  { %4633 = vmatprep.subr.bf16.mxu1 %v17204_v50  ;;  %v17238_v50 = vld [vmem:[#allocation14 + $0x2d8] ss:$24 sps:$4 sm:$0xff]  }
 0x9c6   :  { %4634 = vmatpush1.bf16.xpose.msra.mxu1 %v17202_v51  ;;  %v17246_v51 = vld [vmem:[#allocation14 + $0x30c] ss:$24 sps:$4 sm:$0xff]  }
 0x9c7   :  { %4664 = vmatprep.subr.bf16.mxu1 %v17207_v52  ;;  %v17244_v52 = vld [vmem:[#allocation14 + $0x308] ss:$24 sps:$4 sm:$0xff]  }
 0x9cd   :  { %4656 = vmatmul.mubr.bf16.vlgmr.msra.gmra.mrb[32].mxu1 %v19120_v1 }
 0x9ce   :  { %4665 = vmatpush1.bf16.xpose.msra.mxu1 %v17205_v53  ;;  %4696 = vmatprep.mubr.bf16.mxu1 %v19122_v4  ;;  %v17252_v53 = vld [vmem:[#allocation14 + $0x33c] ss:$24 sps:$4 sm:$0xff]  }
 0x9cf   :  { %4666 = vmatprep.subr.bf16.mxu1 %v17210_v54  ;;  %v17250_v54 = vld [vmem:[#allocation14 + $0x338] ss:$24 sps:$4 sm:$0xff]  }
 0x9d6   :  { %4667 = vmatpush1.bf16.xpose.msra.mxu1 %v17208_v55 }
 0x9d7   :  { %4668 = vmatprep.subr.bf16.mxu1 %v17213_v56 }
 0x9de   :  { %4669 = vmatpush1.bf16.xpose.msra.mxu1 %v17211_v57 }
 0x9df   :  { %4670 = vmatprep.subr.bf16.mxu1 %v17216_v58 }
 0x9e6   :  { %4671 = vmatpush1.bf16.xpose.msra.mxu1 %v17214_v0  ;;  %v17235_v0 = vld [vmem:[#allocation14 + $0x270] ss:$24 sps:$4 sm:$0xff]  }
 0x9e7   :  { %4672 = vmatprep.subr.bf16.mxu1 %v17219_v3  ;;  %v17241_v3 = vld [vmem:[#allocation14 + $0x2a0] ss:$24 sps:$4 sm:$0xff]  }
 0x9ee   :  { %4673 = vmatpush1.bf16.xpose.msra.mxu1 %v17217_v11  ;;  %v17256_v11 = vld [vmem:[#allocation14 + $0x330] ss:$24 sps:$4 sm:$0xff]  }
 0x9ef   :  { %4674 = vmatprep.subr.bf16.mxu1 %v17222_v12  ;;  %v17258_v12 = vld [vmem:[#allocation14 + $0x334] ss:$24 sps:$4 sm:$0xff]  }
 0x9f6   :  { %4675 = vmatpush1.bf16.xpose.msra.mxu1 %v17220_v13  ;;  %v17261_v13 = vld [vmem:[#allocation14 + $0x254] ss:$24 sps:$4 sm:$0xff]  }
 0x9fd   :  { %4697 = vmatmul.mubr.bf16.vlgmr.msra.gmra.mrb[32].mxu1 %v19128_v26 }
 0x9fe   :  { %5322 = vmatprep.mubr.bf16.mxu1 %v18844_v5 }
 0xa3e   :  { %v4002_v43 = vpop.f32.mrb[28].mxu1 }
 0xa3f   :  { %v4004_v44 = vpop.f32.mrb[29].mxu1  ;;  %v16289_v7 = vadd.f32 %v15000_v61, %v4002_v43  ;;  %v17223_v43 = vld [vmem:[#allocation14 + $0x248] ss:$24 sps:$4 sm:$0xff]  }
 0xa40   :  { %v4005_v46 = vpop.f32.mrb[30].mxu1  ;;  %v17225_v44 = vld [vmem:[#allocation14 + $0x24c] ss:$24 sps:$4 sm:$0xff]  }
 0xa41   :  { %v4007_v48 = vpop.f32.mrb[31].mxu1  ;;  %v16290_v9 = vadd.f32 %v15000_v61, %v4005_v46  ;;  %5290 = vmatprep.subr.bf16.mxu1 %v17225_v44  ;;  %v17226_v46 = vld [vmem:[#allocation14 + $0x278] ss:$24 sps:$4 sm:$0xff]   ;;  %v17289_v44 = vld [vmem:[#allocation5 + $0x360] ss:$24 sps:$4 sm:$0xff]  }
 0xa42   :  { %5291 = vmatpush1.bf16.msra.mxu1 %v17223_v43  ;;  %v17232_v48 = vld [vmem:[#allocation14 + $0x2a8] ss:$24 sps:$4 sm:$0xff]   ;;  %v17294_v43 = vld [vmem:[#allocation7 + $0x424] ss:$24 sps:$4 sm:$0xff]  }
 0xa43   :  { %5292 = vmatprep.subr.bf16.mxu1 %v17228_v45  ;;  %v17229_v61 = vld [vmem:[#allocation14 + $0x240] ss:$24 sps:$4 sm:$0xff]   ;;  %v17297_v45 = vld [vmem:[#allocation5 + $0x394] ss:$24 sps:$4 sm:$0xff]  }
 0xa46   :  { %5293 = vmatpush1.bf16.msra.mxu1 %v17226_v46  ;;  %v17292_v46 = vld [vmem:[#allocation7 + $0x420] ss:$24 sps:$4 sm:$0xff]  }
 0xa47   :  { %5294 = vmatprep.subr.bf16.mxu1 %v17234_v47  ;;  %v17300_v47 = vld [vmem:[#allocation7 + $0x454] ss:$24 sps:$4 sm:$0xff]  }
 0xa4a   :  { %5295 = vmatpush1.bf16.msra.mxu1 %v17232_v48  ;;  %v17295_v48 = vld [vmem:[#allocation5 + $0x390] ss:$24 sps:$4 sm:$0xff]  }
 0xa4b   :  { %5296 = vmatprep.subr.bf16.mxu1 %v17240_v49  ;;  %v17303_v49 = vld [vmem:[#allocation5 + $0x3c4] ss:$24 sps:$4 sm:$0xff]  }
 0xa4e   :  { %5297 = vmatpush1.bf16.msra.mxu1 %v17238_v50  ;;  %v17298_v50 = vld [vmem:[#allocation7 + $0x450] ss:$24 sps:$4 sm:$0xff]  }
 0xa4f   :  { %5298 = vmatprep.subr.bf16.mxu1 %v17246_v51  ;;  %v17306_v51 = vld [vmem:[#allocation7 + $0x36c] ss:$24 sps:$4 sm:$0xff]  }
 0xa52   :  { %5299 = vmatpush1.bf16.msra.mxu1 %v17244_v52  ;;  %v17301_v52 = vld [vmem:[#allocation5 + $0x3c0] ss:$24 sps:$4 sm:$0xff]  }
 0xa53   :  { %5300 = vmatprep.subr.bf16.mxu1 %v17252_v53  ;;  %v17309_v53 = vld [vmem:[#allocation5 + $0x3f4] ss:$24 sps:$4 sm:$0xff]  }
 0xa56   :  { %5301 = vmatpush1.bf16.msra.mxu1 %v17250_v54  ;;  %v17304_v54 = vld [vmem:[#allocation7 + $0x368] ss:$24 sps:$4 sm:$0xff]  }
 0xa6e   :  { %v4350_v60 = vpop.f32.mrb[24].mxu0 }
 0xa6f   :  { %v16291_v62 = vadd.f32 %v15037_v59, %v4350_v60  ;;  %v4352_v63 = vpop.f32.mrb[25].mxu0 }
 0xa70   :  { %v4353_v2 = vpop.f32.mrb[26].mxu0  ;;  %v17237_v63 = vld [vmem:[#allocation14 + $0x274] ss:$24 sps:$4 sm:$0xff]  }
 0xa71   :  { %v4355_v6 = vpop.f32.mrb[27].mxu0  ;;  %16158 = vmatpush3.xpose.msk.msra.mxu0 %vm1273_vm1, %v16291_v62  ;;  %v16292_v8 = vadd.f32 %v15037_v59, %v4353_v2  ;;  %v17231_v59 = vld [vmem:[#allocation14 + $0x244] ss:$24 sps:$4 sm:$0xff]  }
 0xa72   :  { %16162 = vmatprep.subr.mxu0 %v18842_v27  ;;  %v17243_v2 = vld [vmem:[#allocation14 + $0x2a4] ss:$24 sps:$4 sm:$0xff]   ;;  %v17249_v6 = vld [vmem:[#allocation14 + $0x2d4] ss:$24 sps:$4 sm:$0xff]  }
 0xa74   :  { %16160 = vmatmul.mubr.msk.f32.vlgmr.msra.gmra.mrb[28].mxu0 %vm1273_vm1, %v16289_v7  ;;  %v17247_v7 = vld [vmem:[#allocation14 + $0x2d0] ss:$24 sps:$4 sm:$0xff]  }
 0xa75   :  { %16163 = vmatpush3.xpose.msk.msra.mxu0 %vm1273_vm1, %v16292_v8  ;;  %16164 = vmatprep.mubr.msk.f32.mxu0 %vm18843_vm0, %v18842_v27  ;;  %v17255_v8 = vld [vmem:[#allocation14 + $0x304] ss:$24 sps:$4 sm:$0xff]  }
 0xa76   :  { %16167 = vmatprep.subr.mxu0 %v18842_v27 }
 0xa78   :  { %16165 = vmatmul.mubr.msk.f32.vlgmr.msra.gmra.mrb[30].mxu0 %vm1273_vm1, %v16290_v9  ;;  %v17253_v9 = vld [vmem:[#allocation14 + $0x300] ss:$24 sps:$4 sm:$0xff]  }
 0xa79   :  { %16169 = vmatprep.mubr.msk.f32.mxu0 %vm18843_vm0, %v18842_v27 }
 0xad0   :  { %v4698_v23 = vpop.f32.mrb[32].mxu1 }
 0xad1   :  { %v16293_v24 = vadd.f32 %v15074_v22, %v4698_v23  ;;  %v4700_v25 = vpop.f32.mrb[33].mxu1  ;;  %v17273_v23 = vld [vmem:[#allocation7 + $0x394] ss:$24 sps:$4 sm:$0xff]  }
 0xad2   :  { %v4701_v39 = vpop.f32.mrb[34].mxu1  ;;  %v17270_v25 = vld [vmem:[#allocation14 + $0x2b4] ss:$24 sps:$4 sm:$0xff]  }
 0xad3   :  { %v16294_v28 = vadd.f32 %v15074_v22, %v4701_v39  ;;  %v4703_v29 = vpop.f32.mrb[35].mxu1  ;;  %16168 = vmatpush3.msra.mxu0 %v16293_v24  ;;  %v17267_v22 = vld [vmem:[#allocation14 + $0x284] ss:$24 sps:$4 sm:$0xff]   ;;  %v17265_v24 = vld [vmem:[#allocation14 + $0x280] ss:$24 sps:$4 sm:$0xff]  }
 0xad4   :  { %16172 = vmatprep.subr.mxu0 %v18842_v27  ;;  %v17268_v39 = vld [vmem:[#allocation14 + $0x2b0] ss:$24 sps:$4 sm:$0xff]   ;;  %v17276_v29 = vld [vmem:[#allocation14 + $0x2e4] ss:$24 sps:$4 sm:$0xff]  }
 0xb47   :  { %v4777_v14 = vpop.f32.mrb[28].mxu0 }
 0xb48   :  { %v4857_v15 = vmul.f32 0.10206208, %v4777_v14  ;;  %v16161_v10 = vpop.f32.mrb[29].mxu0  ;;  %v17264_v14 = vld [vmem:[#allocation7 + $0x364] ss:$24 sps:$4 sm:$0xff]  }
 0xb49   :  { %5961 = vmatprep.subr.bf16.mxu1 %v17264_v14  ;;  %v17334_v14 = vld [vmem:[#allocation7 + $0x458] ss:$24 sps:$4 sm:$0xff]  }
 0xb4a   :  { %v4859_v17 = vsel %vm1428_vm2, %v4857_v15, -inf }
 0xb4b   :  { %4860 = vmax.xlane.f32.xlu0 %v4859_v17  ;;  %v4853_v18 = vpop.f32.mrb[30].mxu0 }
 0xb4c   :  { %v4858_v19 = vmul.f32 0.10206208, %v4853_v18  ;;  %v16166_v20 = vpop.f32.mrb[31].mxu0  ;;  %v17259_v18 = vld [vmem:[#allocation14 + $0x250] ss:$24 sps:$4 sm:$0xff]  }
 0xb4e   :  { %v4862_v21 = vsel %vm1428_vm2, %v4858_v19, -inf }
 0xb4f   :  { %4863 = vmax.xlane.f32.xlu1 %v4862_v21 }
 0xbd8   :  { %v4861_v30 = vpop.xlane.xlu0 %4860 }
 0xbd9   :  { %v4865_v31 = vsub.f32 %v4857_v15, %v4861_v30  ;;  %v17282_v30 = vld [vmem:[#allocation7 + $0x3c4] ss:$24 sps:$4 sm:$0xff]  }
 0xbdb   :  { %v4867_v32 = vmul.f32 1.442695, %v4865_v31  ;;  %v17274_v31 = vld [vmem:[#allocation14 + $0x2e0] ss:$24 sps:$4 sm:$0xff]  }
 0xbdc   :  { %v4864_v34 = vpop.xlane.xlu1 %4863 }
 0xbdd   :  { %18421 = vpow2.f32 %v4867_v32  ;;  %v4866_v35 = vsub.f32 %v4858_v19, %v4864_v34  ;;  %v17262_v19 = vld [vmem:[#allocation7 + $0x360] ss:$24 sps:$4 sm:$0xff]   ;;  %v17279_v32 = vld [vmem:[#allocation14 + $0x314] ss:$24 sps:$4 sm:$0xff]  }
 0xbde   :  { %v17277_v34 = vld [vmem:[#allocation14 + $0x310] ss:$24 sps:$4 sm:$0xff]  }
 0xbdf   :  { %v4869_v36 = vmul.f32 1.442695, %v4866_v35  ;;  %v17280_v35 = vld [vmem:[#allocation7 + $0x3c0] ss:$24 sps:$4 sm:$0xff]  }
 0xbe1   :  { %18423 = vpow2.f32 %v4869_v36  ;;  %v17285_v36 = vld [vmem:[#allocation14 + $0x344] ss:$24 sps:$4 sm:$0xff]  }
 0xbe7   :  { %v18422_v37 = vpop.eup %18421 }
 0xbe8   :  { %v4871_v40 = vsel %vm1428_vm2, %v18422_v37, 0.0 }
 0xbe9   :  { %4872 = vadd.xlane.f32.xlu0 %v4871_v40  ;;  %v17283_v40 = vld [vmem:[#allocation14 + $0x340] ss:$24 sps:$4 sm:$0xff]  }
 0xbeb   :  { %v18424_v41 = vpop.eup %18423 }
 0xbec   :  { %v4874_v42 = vsel %vm1428_vm2, %v18424_v41, 0.0 }
 0xbed   :  { %4875 = vadd.xlane.f32.xlu1 %v4874_v42  ;;  %v17286_v42 = vld [vmem:[#allocation7 + $0x3f0] ss:$24 sps:$4 sm:$0xff]  }
 0xc76   :  { %v4873_v55 = vpop.xlane.xlu0 %4872 }
 0xc77   :  { %18425 = vrcp.f32 %v4873_v55  ;;  %v17312_v55 = vld [vmem:[#allocation7 + $0x39c] ss:$24 sps:$4 sm:$0xff]  }
 0xc7a   :  { %v4876_v56 = vpop.xlane.xlu1 %4875 }
 0xc7b   :  { %18427 = vrcp.f32 %v4876_v56  ;;  %v17307_v56 = vld [vmem:[#allocation5 + $0x3f0] ss:$24 sps:$4 sm:$0xff]  }
 0xc81   :  { %v18426_v57 = vpop.eup %18425 }
 0xc82   :  { %v4879_v58 = vmul.f32 %v18426_v57, %v18422_v37  ;;  %v17288_v37 = vld [vmem:[#allocation7 + $0x3f4] ss:$24 sps:$4 sm:$0xff]   ;;  %v17315_v57 = vld [vmem:[#allocation5 + $0x424] ss:$24 sps:$4 sm:$0xff]  }
 0xc84   :  { %16170 = vmatmul.mubr.msk.f32.vlgmr.msra.gmra.mrb[32].mxu0 %vm1428_vm2, %v4879_v58  ;;  %v17310_v58 = vld [vmem:[#allocation7 + $0x398] ss:$24 sps:$4 sm:$0xff]  }
 0xc85   :  { %v18428_v60 = vpop.eup %18427  ;;  %16173 = vmatpush3.msra.mxu0 %v16294_v28  ;;  %16174 = vmatprep.mubr.msk.f32.mxu0 %vm18843_vm0, %v18842_v27  ;;  %v17271_v28 = vld [vmem:[#allocation7 + $0x390] ss:$24 sps:$4 sm:$0xff]  }
 0xc86   :  { %v4880_v62 = vmul.f32 %v18428_v60, %v18424_v41  ;;  %5247 = vmatprep.subr.bf16.mxu0 %v17231_v59  ;;  %v17291_v41 = vld [vmem:[#allocation5 + $0x364] ss:$24 sps:$4 sm:$0xff]   ;;  %v17313_v60 = vld [vmem:[#allocation5 + $0x420] ss:$24 sps:$4 sm:$0xff]  }
 0xc87   :  { %v17318_v59 = vld [vmem:[#allocation7 + $0x3cc] ss:$24 sps:$4 sm:$0xff]  }
 0xc88   :  { %16175 = vmatmul.mubr.msk.f32.vlgmr.msra.gmra.mrb[34].mxu0 %vm1428_vm2, %v4880_v62  ;;  %v17316_v62 = vld [vmem:[#allocation7 + $0x3c8] ss:$24 sps:$4 sm:$0xff]  }
 0xc89   :  { %5248 = vmatpush1.bf16.msra.mxu0 %v17229_v61  ;;  %5279 = vmatprep.mubr.bf16.mxu0 %v18844_v5  ;;  %v17321_v61 = vld [vmem:[#allocation5 + $0x454] ss:$24 sps:$4 sm:$0xff]  }
 0xc8a   :  { %5249 = vmatprep.subr.bf16.mxu0 %v17237_v63  ;;  %v17324_v63 = vld [vmem:[#allocation7 + $0x3fc] ss:$24 sps:$4 sm:$0xff]  }
 0xc8d   :  { %5250 = vmatpush1.bf16.msra.mxu0 %v17235_v0  ;;  %v17319_v0 = vld [vmem:[#allocation5 + $0x450] ss:$24 sps:$4 sm:$0xff]  }
 0xc8e   :  { %5251 = vmatprep.subr.bf16.mxu0 %v17243_v2  ;;  %v17327_v2 = vld [vmem:[#allocation5 + $0x36c] ss:$24 sps:$4 sm:$0xff]  }
 0xc91   :  { %5252 = vmatpush1.bf16.msra.mxu0 %v17241_v3  ;;  %v17322_v3 = vld [vmem:[#allocation7 + $0x3f8] ss:$24 sps:$4 sm:$0xff]  }
 0xc92   :  { %5253 = vmatprep.subr.bf16.mxu0 %v17249_v6  ;;  %v17330_v6 = vld [vmem:[#allocation7 + $0x42c] ss:$24 sps:$4 sm:$0xff]  }
 0xc95   :  { %5254 = vmatpush1.bf16.msra.mxu0 %v17247_v7  ;;  %v17325_v7 = vld [vmem:[#allocation5 + $0x368] ss:$24 sps:$4 sm:$0xff]  }
 0xc96   :  { %5255 = vmatprep.subr.bf16.mxu0 %v17255_v8  ;;  %v17333_v8 = vld [vmem:[#allocation5 + $0x39c] ss:$24 sps:$4 sm:$0xff]  }
 0xc99   :  { %5256 = vmatpush1.bf16.msra.mxu0 %v17253_v9  ;;  %v17328_v9 = vld [vmem:[#allocation7 + $0x428] ss:$24 sps:$4 sm:$0xff]  }
 0xc9a   :  { %5257 = vmatprep.subr.bf16.mxu0 %v17258_v12  ;;  %v17331_v12 = vld [vmem:[#allocation5 + $0x398] ss:$24 sps:$4 sm:$0xff]  }
 0xc9d   :  { %5258 = vmatpush1.bf16.msra.mxu0 %v17256_v11  ;;  %v17336_v11 = vld [vmem:[#allocation7 + $0x45c] ss:$24 sps:$4 sm:$0xff]  }
 0xc9e   :  { %5333 = vmatprep.subr.bf16.mxu0 %v17261_v13  ;;  %v17339_v13 = vld [vmem:[#allocation5 + $0x3cc] ss:$24 sps:$4 sm:$0xff]  }
 0xd57   :  { %v4950_v15 = vpop.f32.mrb[32].mxu0 }
 0xd58   :  { %v16171_v10 = vpop.f32.mrb[33].mxu0 }
 0xd59   :  { %v17337_v10 = vld [vmem:[#allocation5 + $0x3c8] ss:$24 sps:$4 sm:$0xff]  }
 0xd5b   :  { %v5023_v17 = vpop.f32.mrb[34].mxu0 }
 0xd5c   :  { %v5027_v20 = vpack.c.bf16 %v5023_v17, %v4950_v15  ;;  %v16176_v21 = vpop.f32.mrb[35].mxu0  ;;  %v17342_v15 = vld [vmem:[#allocation7 + $0x374] ss:$24 sps:$4 sm:$0xff]  }
 0xd5d   :  { %v17345_v17 = vld [vmem:[#allocation5 + $0x3fc] ss:$24 sps:$4 sm:$0xff]   ;;  %v17351_v21 = vld [vmem:[#allocation5 + $0x42c] ss:$24 sps:$4 sm:$0xff]  }
 0xd5e   :  { %15153 = vmatmul.mubr.msk.bf16.vlgmr.msra.gmra.mrb[16].mxu0 %vm1273_vm1, %v5027_v20  ;;  %15154 = vmatmul.mubr.msk.bf16.vlgmr.msra.gmra.mrb[24].mxu1 %vm1273_vm1, %v5027_v20 }
 0xd5f   :  { %5334 = vmatpush1.bf16.msra.mxu0 %v17259_v18  ;;  %5962 = vmatpush1.bf16.xpose.msra.mxu1 %v17262_v19  ;;  %v17340_v18 = vld [vmem:[#allocation7 + $0x370] ss:$24 sps:$4 sm:$0xff]   ;;  %v17348_v19 = vld [vmem:[#allocation7 + $0x3a4] ss:$24 sps:$4 sm:$0xff]  }
 0xd60   :  { %5335 = vmatprep.subr.bf16.mxu0 %v17267_v22  ;;  %5963 = vmatprep.subr.bf16.mxu1 %v17273_v23  ;;  %v17346_v22 = vld [vmem:[#allocation7 + $0x3a0] ss:$24 sps:$4 sm:$0xff]   ;;  %v17354_v23 = vld [vmem:[#allocation7 + $0x3d4] ss:$24 sps:$4 sm:$0xff]  }
 0xd61   :  { %5365 = vmatprep.mubr.bf16.mxu0 %v18844_v5  ;;  %5993 = vmatprep.mubr.bf16.mxu1 %v19108_v16 }
 0xd63   :  { %5336 = vmatpush1.bf16.msra.mxu0 %v17265_v24  ;;  %v17349_v24 = vld [vmem:[#allocation5 + $0x428] ss:$24 sps:$4 sm:$0xff]  }
 0xd64   :  { %5337 = vmatprep.subr.bf16.mxu0 %v17270_v25  ;;  %v17357_v25 = vld [vmem:[#allocation5 + $0x45c] ss:$24 sps:$4 sm:$0xff]  }
 0xd67   :  { %5338 = vmatpush1.bf16.msra.mxu0 %v17268_v39  ;;  %5964 = vmatpush1.bf16.xpose.msra.mxu1 %v17271_v28  ;;  %v17352_v39 = vld [vmem:[#allocation7 + $0x3d0] ss:$24 sps:$4 sm:$0xff]   ;;  %v17360_v28 = vld [vmem:[#allocation7 + $0x404] ss:$24 sps:$4 sm:$0xff]  }
 0xd68   :  { %5339 = vmatprep.subr.bf16.mxu0 %v17276_v29  ;;  %5965 = vmatprep.subr.bf16.mxu1 %v17282_v30  ;;  %v17355_v29 = vld [vmem:[#allocation5 + $0x458] ss:$24 sps:$4 sm:$0xff]   ;;  %v17363_v30 = vld [vmem:[#allocation5 + $0x374] ss:$24 sps:$4 sm:$0xff]  }
 0xd6b   :  { %5340 = vmatpush1.bf16.msra.mxu0 %v17274_v31  ;;  %v17358_v31 = vld [vmem:[#allocation7 + $0x400] ss:$24 sps:$4 sm:$0xff]  }
 0xd6c   :  { %5341 = vmatprep.subr.bf16.mxu0 %v17279_v32  ;;  %v17366_v32 = vld [vmem:[#allocation7 + $0x434] ss:$24 sps:$4 sm:$0xff]  }
 0xd6f   :  { %5342 = vmatpush1.bf16.msra.mxu0 %v17277_v34  ;;  %5966 = vmatpush1.bf16.xpose.msra.mxu1 %v17280_v35  ;;  %v17361_v34 = vld [vmem:[#allocation5 + $0x370] ss:$24 sps:$4 sm:$0xff]   ;;  %v17369_v35 = vld [vmem:[#allocation5 + $0x3a4] ss:$24 sps:$4 sm:$0xff]  }
 0xd70   :  { %5343 = vmatprep.subr.bf16.mxu0 %v17285_v36  ;;  %5967 = vmatprep.subr.bf16.mxu1 %v17288_v37  ;;  %v17364_v36 = vld [vmem:[#allocation7 + $0x430] ss:$24 sps:$4 sm:$0xff]   ;;  %v17372_v37 = vld [vmem:[#allocation7 + $0x464] ss:$24 sps:$4 sm:$0xff]  }
 0xd73   :  { %5344 = vmatpush1.bf16.msra.mxu0 %v17283_v40  ;;  %v17367_v40 = vld [vmem:[#allocation5 + $0x3a0] ss:$24 sps:$4 sm:$0xff]  }
 0xd74   :  { %5613 = vmatprep.subr.bf16.mxu0 %v17291_v41  ;;  %v17375_v41 = vld [vmem:[#allocation5 + $0x3d4] ss:$24 sps:$4 sm:$0xff]  }
 0xd76   :  { %15155 = vmatmul.mubr.msk.bf16.vlgmr.msra.gmra.mrb[20].mxu0 %vm1273_vm1, %v5027_v20  ;;  %v17343_v20 = vld [vmem:[#allocation5 + $0x3f8] ss:$24 sps:$4 sm:$0xff]  }
 0xd77   :  { %5968 = vmatpush1.bf16.xpose.msra.mxu1 %v17286_v42  ;;  %5645 = vmatprep.mubr.bf16.mxu0 %v19108_v16  ;;  %v17370_v42 = vld [vmem:[#allocation7 + $0x460] ss:$24 sps:$4 sm:$0xff]  }
 0xd78   :  { %5969 = vmatprep.subr.bf16.mxu1 %v17294_v43  ;;  %v17373_v43 = vld [vmem:[#allocation5 + $0x3d0] ss:$24 sps:$4 sm:$0xff]  }
 0xd7c   :  { %5614 = vmatpush1.bf16.xpose.msra.mxu0 %v17289_v44  ;;  %v17378_v44 = vld [vmem:[#allocation5 + $0x404] ss:$24 sps:$4 sm:$0xff]  }
 0xd7d   :  { %5615 = vmatprep.subr.bf16.mxu0 %v17297_v45  ;;  %v17376_v45 = vld [vmem:[#allocation5 + $0x400] ss:$24 sps:$4 sm:$0xff]  }
 0xd7f   :  { %5970 = vmatpush1.bf16.xpose.msra.mxu1 %v17292_v46  ;;  %v17381_v46 = vld [vmem:[#allocation5 + $0x434] ss:$24 sps:$4 sm:$0xff]  }
 0xd80   :  { %5971 = vmatprep.subr.bf16.mxu1 %v17300_v47  ;;  %v17379_v47 = vld [vmem:[#allocation5 + $0x430] ss:$24 sps:$4 sm:$0xff]  }
 0xd84   :  { %5616 = vmatpush1.bf16.xpose.msra.mxu0 %v17295_v48  ;;  %v17384_v48 = vld [vmem:[#allocation5 + $0x464] ss:$24 sps:$4 sm:$0xff]  }
 0xd85   :  { %5617 = vmatprep.subr.bf16.mxu0 %v17303_v49  ;;  %v17382_v49 = vld [vmem:[#allocation5 + $0x460] ss:$24 sps:$4 sm:$0xff]  }
 0xd87   :  { %5972 = vmatpush1.bf16.xpose.msra.mxu1 %v17298_v50  ;;  %v17385_v50 = vld [vmem:[#allocation8 + $0x360] ss:$24 sps:$4 sm:$0xff]  }
 0xd88   :  { %6002 = vmatprep.subr.bf16.mxu1 %v17306_v51  ;;  %v17387_v51 = vld [vmem:[#allocation8 + $0x364] ss:$24 sps:$4 sm:$0xff]  }
 0xd8c   :  { %5618 = vmatpush1.bf16.xpose.msra.mxu0 %v17301_v52  ;;  %v17390_v52 = vld [vmem:[#allocation8 + $0x394] ss:$24 sps:$4 sm:$0xff]  }
 0xd8d   :  { %5619 = vmatprep.subr.bf16.mxu0 %v17309_v53  ;;  %v17388_v53 = vld [vmem:[#allocation8 + $0x390] ss:$24 sps:$4 sm:$0xff]  }
 0xd8e   :  { %5994 = vmatmul.mubr.bf16.vlgmr.msra.gmra.mrb[36].mxu1 %v19112_v33 }
 0xd8f   :  { %6003 = vmatpush1.bf16.xpose.msra.mxu1 %v17304_v54  ;;  %6034 = vmatprep.mubr.bf16.mxu1 %v19114_v38  ;;  %v17393_v54 = vld [vmem:[#allocation8 + $0x3c4] ss:$24 sps:$4 sm:$0xff]  }
 0xd90   :  { %6004 = vmatprep.subr.bf16.mxu1 %v17312_v55  ;;  %v17391_v55 = vld [vmem:[#allocation8 + $0x3c0] ss:$24 sps:$4 sm:$0xff]  }
 0xd94   :  { %5620 = vmatpush1.bf16.xpose.msra.mxu0 %v17307_v56  ;;  %v17396_v56 = vld [vmem:[#allocation8 + $0x3f4] ss:$24 sps:$4 sm:$0xff]  }
 0xd95   :  { %5621 = vmatprep.subr.bf16.mxu0 %v17315_v57  ;;  %v17394_v57 = vld [vmem:[#allocation8 + $0x3f0] ss:$24 sps:$4 sm:$0xff]  }
 0xd97   :  { %6005 = vmatpush1.bf16.xpose.msra.mxu1 %v17310_v58  ;;  %v17399_v58 = vld [vmem:[#allocation8 + $0x424] ss:$24 sps:$4 sm:$0xff]  }
 0xd98   :  { %6006 = vmatprep.subr.bf16.mxu1 %v17318_v59  ;;  %v17397_v59 = vld [vmem:[#allocation8 + $0x420] ss:$24 sps:$4 sm:$0xff]  }
 0xd9c   :  { %5622 = vmatpush1.bf16.xpose.msra.mxu0 %v17313_v60  ;;  %v17402_v60 = vld [vmem:[#allocation8 + $0x454] ss:$24 sps:$4 sm:$0xff]  }
 0xd9d   :  { %5623 = vmatprep.subr.bf16.mxu0 %v17321_v61  ;;  %v17400_v61 = vld [vmem:[#allocation8 + $0x450] ss:$24 sps:$4 sm:$0xff]  }
 0xd9f   :  { %6007 = vmatpush1.bf16.xpose.msra.mxu1 %v17316_v62  ;;  %v17405_v62 = vld [vmem:[#allocation8 + $0x36c] ss:$24 sps:$4 sm:$0xff]  }
 0xda0   :  { %6008 = vmatprep.subr.bf16.mxu1 %v17324_v63  ;;  %v17403_v63 = vld [vmem:[#allocation8 + $0x368] ss:$24 sps:$4 sm:$0xff]  }
 0xda4   :  { %5624 = vmatpush1.bf16.xpose.msra.mxu0 %v17319_v0  ;;  %v17408_v0 = vld [vmem:[#allocation8 + $0x39c] ss:$24 sps:$4 sm:$0xff]  }
 0xda5   :  { %5654 = vmatprep.subr.bf16.mxu0 %v17327_v2  ;;  %v17406_v2 = vld [vmem:[#allocation8 + $0x398] ss:$24 sps:$4 sm:$0xff]  }
 0xda7   :  { %6009 = vmatpush1.bf16.xpose.msra.mxu1 %v17322_v3  ;;  %v17411_v3 = vld [vmem:[#allocation8 + $0x3cc] ss:$24 sps:$4 sm:$0xff]  }
 0xda8   :  { %6010 = vmatprep.subr.bf16.mxu1 %v17330_v6  ;;  %v17409_v6 = vld [vmem:[#allocation8 + $0x3c8] ss:$24 sps:$4 sm:$0xff]  }
 0xdab   :  { %5646 = vmatmul.mubr.bf16.vlgmr.msra.gmra.mrb[36].mxu0 %v19112_v33 }
 0xdac   :  { %5655 = vmatpush1.bf16.xpose.msra.mxu0 %v17325_v7  ;;  %5686 = vmatprep.mubr.bf16.mxu0 %v19114_v38  ;;  %v17414_v7 = vld [vmem:[#allocation8 + $0x3fc] ss:$24 sps:$4 sm:$0xff]  }
 0xdad   :  { %5656 = vmatprep.subr.bf16.mxu0 %v17333_v8  ;;  %v17412_v8 = vld [vmem:[#allocation8 + $0x3f8] ss:$24 sps:$4 sm:$0xff]  }
 0xdaf   :  { %6011 = vmatpush1.bf16.xpose.msra.mxu1 %v17328_v9  ;;  %v17417_v9 = vld [vmem:[#allocation8 + $0x42c] ss:$24 sps:$4 sm:$0xff]  }
 0xdb0   :  { %6012 = vmatprep.subr.bf16.mxu1 %v17336_v11  ;;  %v17415_v11 = vld [vmem:[#allocation8 + $0x428] ss:$24 sps:$4 sm:$0xff]  }
 0xdb4   :  { %5657 = vmatpush1.bf16.xpose.msra.mxu0 %v17331_v12  ;;  %v17420_v12 = vld [vmem:[#allocation8 + $0x45c] ss:$24 sps:$4 sm:$0xff]  }
 0xdb5   :  { %5658 = vmatprep.subr.bf16.mxu0 %v17339_v13  ;;  %v17418_v13 = vld [vmem:[#allocation8 + $0x458] ss:$24 sps:$4 sm:$0xff]  }
 0xdb7   :  { %6013 = vmatpush1.bf16.xpose.msra.mxu1 %v17334_v14  ;;  %v17423_v14 = vld [vmem:[#allocation8 + $0x374] ss:$24 sps:$4 sm:$0xff]  }
 0xdb8   :  { %6043 = vmatprep.subr.bf16.mxu1 %v17342_v15  ;;  %v15193_v15 = vld [vmem:[#allocation11 + $0x3] ss:$0 sm:$0xff] }
 0xdbc   :  { %5659 = vmatpush1.bf16.xpose.msra.mxu0 %v17337_v10 }
 0xdbd   :  { %5660 = vmatprep.subr.bf16.mxu0 %v17345_v17 }
 0xdbe   :  { %6035 = vmatmul.mubr.bf16.vlgmr.msra.gmra.mrb[36].mxu1 %v19120_v1 }
 0xdbf   :  { %6044 = vmatpush1.bf16.xpose.msra.mxu1 %v17340_v18  ;;  %6075 = vmatprep.mubr.bf16.mxu1 %v19122_v4 }
 0xdc0   :  { %6045 = vmatprep.subr.bf16.mxu1 %v17348_v19 }
 0xdc4   :  { %5661 = vmatpush1.bf16.xpose.msra.mxu0 %v17343_v20 }
 0xdc5   :  { %5662 = vmatprep.subr.bf16.mxu0 %v17351_v21  ;;  %v17421_v21 = vld [vmem:[#allocation8 + $0x370] ss:$24 sps:$4 sm:$0xff]  }
 0xdc7   :  { %6046 = vmatpush1.bf16.xpose.msra.mxu1 %v17346_v22  ;;  %v17426_v22 = vld [vmem:[#allocation8 + $0x3a4] ss:$24 sps:$4 sm:$0xff]  }
 0xdc8   :  { %6047 = vmatprep.subr.bf16.mxu1 %v17354_v23  ;;  %v17424_v23 = vld [vmem:[#allocation8 + $0x3a0] ss:$24 sps:$4 sm:$0xff]  }
 0xdcc   :  { %5663 = vmatpush1.bf16.xpose.msra.mxu0 %v17349_v24  ;;  %v17429_v24 = vld [vmem:[#allocation8 + $0x3d4] ss:$24 sps:$4 sm:$0xff]  }
 0xdcd   :  { %5664 = vmatprep.subr.bf16.mxu0 %v17357_v25  ;;  %v17427_v25 = vld [vmem:[#allocation8 + $0x3d0] ss:$24 sps:$4 sm:$0xff]  }
 0xdcf   :  { %6048 = vmatpush1.bf16.xpose.msra.mxu1 %v17352_v39  ;;  %v17432_v39 = vld [vmem:[#allocation8 + $0x404] ss:$24 sps:$4 sm:$0xff]  }
 0xdd0   :  { %6049 = vmatprep.subr.bf16.mxu1 %v17360_v28  ;;  %v15156_v28 = vld [vmem:[#allocation10 + $0x3] ss:$0 sm:$0xff] }
 0xdd4   :  { %5665 = vmatpush1.bf16.xpose.msra.mxu0 %v17355_v29  ;;  %v17430_v29 = vld [vmem:[#allocation8 + $0x400] ss:$24 sps:$4 sm:$0xff]  }
 0xdd5   :  { %5695 = vmatprep.subr.bf16.mxu0 %v17363_v30  ;;  %v17435_v30 = vld [vmem:[#allocation8 + $0x434] ss:$24 sps:$4 sm:$0xff]  }
 0xdd7   :  { %6050 = vmatpush1.bf16.xpose.msra.mxu1 %v17358_v31 }
 0xdd8   :  { %6051 = vmatprep.subr.bf16.mxu1 %v17366_v32 }
 0xddb   :  { %5687 = vmatmul.mubr.bf16.vlgmr.msra.gmra.mrb[36].mxu0 %v19120_v1 }
 0xddc   :  { %5696 = vmatpush1.bf16.xpose.msra.mxu0 %v17361_v34  ;;  %5727 = vmatprep.mubr.bf16.mxu0 %v19122_v4 }
 0xddd   :  { %5697 = vmatprep.subr.bf16.mxu0 %v17369_v35 }
 0xddf   :  { %6052 = vmatpush1.bf16.xpose.msra.mxu1 %v17364_v36 }
 0xde0   :  { %6053 = vmatprep.subr.bf16.mxu1 %v17372_v37 }
 0xde4   :  { %5698 = vmatpush1.bf16.xpose.msra.mxu0 %v17367_v40 }
 0xde5   :  { %5699 = vmatprep.subr.bf16.mxu0 %v17375_v41  ;;  %v17433_v41 = vld [vmem:[#allocation8 + $0x430] ss:$24 sps:$4 sm:$0xff]  }
 0xde7   :  { %6054 = vmatpush1.bf16.xpose.msra.mxu1 %v17370_v42  ;;  %v17438_v42 = vld [vmem:[#allocation8 + $0x464] ss:$24 sps:$4 sm:$0xff]  }
 0xde8   :  { %16177 = vmatprep.subr.mxu1 %v18842_v27 }
 0xdec   :  { %5700 = vmatpush1.bf16.xpose.msra.mxu0 %v17373_v43  ;;  %v17436_v43 = vld [vmem:[#allocation8 + $0x460] ss:$24 sps:$4 sm:$0xff]  }
 0xded   :  { %5701 = vmatprep.subr.bf16.mxu0 %v17378_v44 }
 0xdee   :  { %6076 = vmatmul.mubr.bf16.vlgmr.msra.gmra.mrb[36].mxu1 %v19128_v26 }
 0xdef   :  { %16179 = vmatprep.mubr.msk.f32.mxu1 %vm18843_vm0, %v18842_v27 }
 0xdf4   :  { %5702 = vmatpush1.bf16.xpose.msra.mxu0 %v17376_v45 }
 0xdf5   :  { %5703 = vmatprep.subr.bf16.mxu0 %v17381_v46 }
 0xdfc   :  { %5704 = vmatpush1.bf16.xpose.msra.mxu0 %v17379_v47 }
 0xdfd   :  { %5705 = vmatprep.subr.bf16.mxu0 %v17384_v48 }
 0xe04   :  { %5706 = vmatpush1.bf16.xpose.msra.mxu0 %v17382_v49 }
 0xe05   :  { %6309 = vmatprep.subr.bf16.mxu0 %v17387_v51 }
 0xe0b   :  { %5728 = vmatmul.mubr.bf16.vlgmr.msra.gmra.mrb[36].mxu0 %v19128_v26 }
 0xe0c   :  { %6341 = vmatprep.mubr.bf16.mxu0 %v19108_v16  ;;  %6310 = vmatpush1.bf16.xpose.msra.mxu0 %v17385_v50 }
 0xe0d   :  { %6311 = vmatprep.subr.bf16.mxu0 %v17390_v52  ;;  %v15230_v52 = vld [vmem:[#allocation13 + $0x3] ss:$0 sm:$0xff] }
 0xe14   :  { %6312 = vmatpush1.bf16.xpose.msra.mxu0 %v17388_v53 }
 0xe15   :  { %6313 = vmatprep.subr.bf16.mxu0 %v17393_v54 }
 0xe1c   :  { %6314 = vmatpush1.bf16.xpose.msra.mxu0 %v17391_v55 }
 0xe1d   :  { %6315 = vmatprep.subr.bf16.mxu0 %v17396_v56 }
 0xe24   :  { %6316 = vmatpush1.bf16.xpose.msra.mxu0 %v17394_v57 }
 0xe25   :  { %6317 = vmatprep.subr.bf16.mxu0 %v17399_v58 }
 0xe2c   :  { %6318 = vmatpush1.bf16.xpose.msra.mxu0 %v17397_v59 }
 0xe2d   :  { %6319 = vmatprep.subr.bf16.mxu0 %v17402_v60 }
 0xe34   :  { %6320 = vmatpush1.bf16.xpose.msra.mxu0 %v17400_v61 }
 0xe35   :  { %6350 = vmatprep.subr.bf16.mxu0 %v17405_v62 }
 0xe3b   :  { %6342 = vmatmul.mubr.bf16.vlgmr.msra.gmra.mrb[40].mxu0 %v19112_v33 }
 0xe3c   :  { %6351 = vmatpush1.bf16.xpose.msra.mxu0 %v17403_v63  ;;  %6382 = vmatprep.mubr.bf16.mxu0 %v19114_v38 }
 0xe3d   :  { %6352 = vmatprep.subr.bf16.mxu0 %v17408_v0 }
 0xe44   :  { %6353 = vmatpush1.bf16.xpose.msra.mxu0 %v17406_v2 }
 0xe45   :  { %6354 = vmatprep.subr.bf16.mxu0 %v17411_v3 }
 0xe4c   :  { %6355 = vmatpush1.bf16.xpose.msra.mxu0 %v17409_v6 }
 0xe4d   :  { %6356 = vmatprep.subr.bf16.mxu0 %v17414_v7 }
 0xe54   :  { %6357 = vmatpush1.bf16.xpose.msra.mxu0 %v17412_v8  ;;  %v17445_v8 = vld [vmem:[#allocation14 + $0x360] ss:$24 sps:$4 sm:$0xff]  }
 0xe55   :  { %6358 = vmatprep.subr.bf16.mxu0 %v17417_v9  ;;  %v17447_v9 = vld [vmem:[#allocation14 + $0x364] ss:$24 sps:$4 sm:$0xff]  }
 0xe5c   :  { %6359 = vmatpush1.bf16.xpose.msra.mxu0 %v17415_v11  ;;  %v17451_v11 = vld [vmem:[#allocation14 + $0x390] ss:$24 sps:$4 sm:$0xff]  }
 0xe5d   :  { %6360 = vmatprep.subr.bf16.mxu0 %v17420_v12  ;;  %v17453_v12 = vld [vmem:[#allocation14 + $0x394] ss:$24 sps:$4 sm:$0xff]  }
 0xe64   :  { %6361 = vmatpush1.bf16.xpose.msra.mxu0 %v17418_v13  ;;  %v17457_v13 = vld [vmem:[#allocation14 + $0x3c0] ss:$24 sps:$4 sm:$0xff]  }
 0xe65   :  { %6391 = vmatprep.subr.bf16.mxu0 %v17423_v14  ;;  %v17459_v14 = vld [vmem:[#allocation14 + $0x3c4] ss:$24 sps:$4 sm:$0xff]  }
 0xe6b   :  { %6383 = vmatmul.mubr.bf16.vlgmr.msra.gmra.mrb[40].mxu0 %v19120_v1 }
 0xe6c   :  { %6392 = vmatpush1.bf16.xpose.msra.mxu0 %v17421_v21  ;;  %6423 = vmatprep.mubr.bf16.mxu0 %v19122_v4 }
 0xe6d   :  { %6393 = vmatprep.subr.bf16.mxu0 %v17426_v22 }
 0xe74   :  { %6394 = vmatpush1.bf16.xpose.msra.mxu0 %v17424_v23  ;;  %v17441_v23 = vld [vmem:[#allocation14 + $0x36c] ss:$24 sps:$4 sm:$0xff]  }
 0xe75   :  { %6395 = vmatprep.subr.bf16.mxu0 %v17429_v24 }
 0xe7c   :  { %6396 = vmatpush1.bf16.xpose.msra.mxu0 %v17427_v25  ;;  %v17439_v25 = vld [vmem:[#allocation14 + $0x368] ss:$24 sps:$4 sm:$0xff]  }
 0xe7d   :  { %6397 = vmatprep.subr.bf16.mxu0 %v17432_v39 }
 0xe84   :  { %6398 = vmatpush1.bf16.xpose.msra.mxu0 %v17430_v29  ;;  %v17442_v29 = vld [vmem:[#allocation14 + $0x398] ss:$24 sps:$4 sm:$0xff]  }
 0xe85   :  { %6399 = vmatprep.subr.bf16.mxu0 %v17435_v30  ;;  %v17450_v30 = vld [vmem:[#allocation14 + $0x3cc] ss:$24 sps:$4 sm:$0xff]  }
 0xe8c   :  { %6400 = vmatpush1.bf16.xpose.msra.mxu0 %v17433_v41  ;;  %v17472_v41 = vld [vmem:[#allocation14 + $0x450] ss:$24 sps:$4 sm:$0xff]  }
 0xe8d   :  { %6401 = vmatprep.subr.bf16.mxu0 %v17438_v42  ;;  %v17474_v42 = vld [vmem:[#allocation14 + $0x454] ss:$24 sps:$4 sm:$0xff]  }
 0xe94   :  { %6402 = vmatpush1.bf16.xpose.msra.mxu0 %v17436_v43  ;;  %v17477_v43 = vld [vmem:[#allocation14 + $0x374] ss:$24 sps:$4 sm:$0xff]  }
 0xe95   :  { %6974 = vmatprep.subr.bf16.mxu0 %v17447_v9  ;;  %v17505_v9 = vld [vmem:[#allocation7 + $0x480] ss:$24 sps:$4 sm:$0xff]  }
 0xe9b   :  { %6424 = vmatmul.mubr.bf16.vlgmr.msra.gmra.mrb[40].mxu0 %v19128_v26 }
 0xe9c   :  { %7006 = vmatprep.mubr.bf16.mxu0 %v18844_v5  ;;  %6975 = vmatpush1.bf16.msra.mxu0 %v17445_v8  ;;  %v17510_v8 = vld [vmem:[#allocation5 + $0x544] ss:$24 sps:$4 sm:$0xff]  }
 0xe9d   :  { %6976 = vmatprep.subr.bf16.mxu0 %v17453_v12  ;;  %v17508_v12 = vld [vmem:[#allocation5 + $0x540] ss:$24 sps:$4 sm:$0xff]  }
 0xea0   :  { %6977 = vmatpush1.bf16.msra.mxu0 %v17451_v11  ;;  %v17513_v11 = vld [vmem:[#allocation7 + $0x4b4] ss:$24 sps:$4 sm:$0xff]  }
 0xea1   :  { %6978 = vmatprep.subr.bf16.mxu0 %v17459_v14  ;;  %v17511_v14 = vld [vmem:[#allocation7 + $0x4b0] ss:$24 sps:$4 sm:$0xff]  }
 0xea4   :  { %6979 = vmatpush1.bf16.msra.mxu0 %v17457_v13  ;;  %v17516_v13 = vld [vmem:[#allocation5 + $0x574] ss:$24 sps:$4 sm:$0xff]  }
 0xec1   :  { %v6077_v10 = vpop.f32.mrb[36].mxu1 }
 0xec2   :  { %v16297_v17 = vadd.f32 %v15193_v15, %v6077_v10  ;;  %v6079_v18 = vpop.f32.mrb[37].mxu1  ;;  %v17465_v10 = vld [vmem:[#allocation14 + $0x3f4] ss:$24 sps:$4 sm:$0xff]  }
 0xec3   :  { %v6080_v19 = vpop.f32.mrb[38].mxu1  ;;  %6980 = vmatprep.subr.bf16.mxu0 %v17465_v10  ;;  %v17471_v18 = vld [vmem:[#allocation14 + $0x424] ss:$24 sps:$4 sm:$0xff]   ;;  %v17514_v10 = vld [vmem:[#allocation5 + $0x570] ss:$24 sps:$4 sm:$0xff]  }
 0xec4   :  { %v6082_v20 = vpop.f32.mrb[39].mxu1  ;;  %16178 = vmatpush3.xpose.msk.msra.mxu1 %vm1273_vm1, %v16297_v17  ;;  %v16298_v35 = vadd.f32 %v15193_v15, %v6080_v19  ;;  %v17463_v15 = vld [vmem:[#allocation14 + $0x3f0] ss:$24 sps:$4 sm:$0xff]   ;;  %v17469_v17 = vld [vmem:[#allocation14 + $0x420] ss:$24 sps:$4 sm:$0xff]  }
 0xec5   :  { %16182 = vmatprep.subr.mxu1 %v18842_v27  ;;  %6981 = vmatpush1.bf16.msra.mxu0 %v17463_v15  ;;  %v17519_v15 = vld [vmem:[#allocation7 + $0x4e4] ss:$24 sps:$4 sm:$0xff]  }
 0xec6   :  { %6982 = vmatprep.subr.bf16.mxu0 %v17471_v18  ;;  %v17517_v18 = vld [vmem:[#allocation7 + $0x4e0] ss:$24 sps:$4 sm:$0xff]  }
 0xec9   :  { %6983 = vmatpush1.bf16.msra.mxu0 %v17469_v17  ;;  %v17522_v17 = vld [vmem:[#allocation5 + $0x48c] ss:$24 sps:$4 sm:$0xff]  }
 0xeca   :  { %6984 = vmatprep.subr.bf16.mxu0 %v17474_v42  ;;  %v17547_v42 = vld [vmem:[#allocation7 + $0x4b8] ss:$24 sps:$4 sm:$0xff]  }
 0xecd   :  { %6985 = vmatpush1.bf16.msra.mxu0 %v17472_v41  ;;  %v17552_v41 = vld [vmem:[#allocation5 + $0x57c] ss:$24 sps:$4 sm:$0xff]  }
 0xece   :  { %7060 = vmatprep.subr.bf16.mxu0 %v17477_v43  ;;  %v17555_v43 = vld [vmem:[#allocation7 + $0x4ec] ss:$24 sps:$4 sm:$0xff]  }
 0xede   :  { %v5729_v31 = vpop.f32.mrb[36].mxu0 }
 0xedf   :  { %v16295_v32 = vadd.f32 %v15156_v28, %v5729_v31  ;;  %v5731_v34 = vpop.f32.mrb[37].mxu0  ;;  %v17448_v31 = vld [vmem:[#allocation14 + $0x3c8] ss:$24 sps:$4 sm:$0xff]  }
 0xee0   :  { %v5732_v36 = vpop.f32.mrb[38].mxu0  ;;  %v17454_v34 = vld [vmem:[#allocation14 + $0x3f8] ss:$24 sps:$4 sm:$0xff]  }
 0xee1   :  { %v5734_v37 = vpop.f32.mrb[39].mxu0  ;;  %16180 = vmatmul.mubr.msk.f32.vlgmr.msra.gmra.mrb[40].mxu1 %vm1273_vm1, %v16295_v32  ;;  %v16296_v40 = vadd.f32 %v15156_v28, %v5732_v36  ;;  %v17444_v28 = vld [vmem:[#allocation14 + $0x39c] ss:$24 sps:$4 sm:$0xff]   ;;  %v17460_v36 = vld [vmem:[#allocation14 + $0x428] ss:$24 sps:$4 sm:$0xff]  }
 0xee2   :  { %16183 = vmatpush3.xpose.msk.msra.mxu1 %vm1273_vm1, %v16298_v35  ;;  %16184 = vmatprep.mubr.msk.f32.mxu1 %vm18843_vm0, %v18842_v27  ;;  %v17456_v32 = vld [vmem:[#allocation14 + $0x3fc] ss:$24 sps:$4 sm:$0xff]   ;;  %v17462_v35 = vld [vmem:[#allocation14 + $0x42c] ss:$24 sps:$4 sm:$0xff]  }
 0xee3   :  { %16187 = vmatprep.subr.mxu1 %v18842_v27  ;;  %v17468_v37 = vld [vmem:[#allocation14 + $0x45c] ss:$24 sps:$4 sm:$0xff]  }
 0xee5   :  { %16185 = vmatmul.mubr.msk.f32.vlgmr.msra.gmra.mrb[42].mxu1 %vm1273_vm1, %v16296_v40  ;;  %v17466_v40 = vld [vmem:[#allocation14 + $0x458] ss:$24 sps:$4 sm:$0xff]  }
 0xee6   :  { %16189 = vmatprep.mubr.msk.f32.mxu1 %vm18843_vm0, %v18842_v27 }
 0xf6e   :  { %v6425_v53 = vpop.f32.mrb[40].mxu0 }
 0xf6f   :  { %v16299_v54 = vadd.f32 %v15230_v52, %v6425_v53  ;;  %v6427_v55 = vpop.f32.mrb[41].mxu0  ;;  %v17489_v53 = vld [vmem:[#allocation5 + $0x4b4] ss:$24 sps:$4 sm:$0xff]  }
 0xf70   :  { %v6428_v56 = vpop.f32.mrb[42].mxu0  ;;  %v17486_v55 = vld [vmem:[#allocation14 + $0x3d4] ss:$24 sps:$4 sm:$0xff]  }
 0xf71   :  { %v16300_v57 = vadd.f32 %v15230_v52, %v6428_v56  ;;  %v6430_v58 = vpop.f32.mrb[43].mxu0  ;;  %16188 = vmatpush3.msra.mxu1 %v16299_v54  ;;  %v17483_v52 = vld [vmem:[#allocation14 + $0x3a4] ss:$24 sps:$4 sm:$0xff]   ;;  %v17481_v54 = vld [vmem:[#allocation14 + $0x3a0] ss:$24 sps:$4 sm:$0xff]  }
 0xf72   :  { %16192 = vmatprep.subr.mxu1 %v18842_v27  ;;  %v17484_v56 = vld [vmem:[#allocation14 + $0x3d0] ss:$24 sps:$4 sm:$0xff]   ;;  %v17492_v58 = vld [vmem:[#allocation14 + $0x404] ss:$24 sps:$4 sm:$0xff]  }
 0xfb4   :  { %v6504_v44 = vpop.f32.mrb[40].mxu1 }
 0xfb5   :  { %v6584_v45 = vmul.f32 0.10206208, %v6504_v44  ;;  %v16181_v46 = vpop.f32.mrb[41].mxu1  ;;  %v17480_v44 = vld [vmem:[#allocation5 + $0x484] ss:$24 sps:$4 sm:$0xff]  }
 0xfb7   :  { %v6586_v47 = vsel %vm1428_vm2, %v6584_v45, -inf }
 0xfb8   :  { %6587 = vmax.xlane.f32.xlu0 %v6586_v47  ;;  %v6580_v48 = vpop.f32.mrb[42].mxu1 }
 0xfb9   :  { %v6585_v49 = vmul.f32 0.10206208, %v6580_v48  ;;  %v16186_v50 = vpop.f32.mrb[43].mxu1  ;;  %v17475_v48 = vld [vmem:[#allocation14 + $0x370] ss:$24 sps:$4 sm:$0xff]  }
 0xfbb   :  { %v6589_v51 = vsel %vm1428_vm2, %v6585_v49, -inf }
 0xfbc   :  { %6590 = vmax.xlane.f32.xlu1 %v6589_v51 }
0x1045   :  { %v6588_v59 = vpop.xlane.xlu0 %6587 }
0x1046   :  { %v6592_v60 = vsub.f32 %v6584_v45, %v6588_v59  ;;  %v17498_v59 = vld [vmem:[#allocation5 + $0x4e4] ss:$24 sps:$4 sm:$0xff]  }
0x1048   :  { %v6594_v61 = vmul.f32 1.442695, %v6592_v60  ;;  %v17490_v60 = vld [vmem:[#allocation14 + $0x400] ss:$24 sps:$4 sm:$0xff]  }
0x1049   :  { %v6591_v62 = vpop.xlane.xlu1 %6590 }
0x104a   :  { %18429 = vpow2.f32 %v6594_v61  ;;  %v6593_v63 = vsub.f32 %v6585_v49, %v6591_v62  ;;  %v17478_v49 = vld [vmem:[#allocation5 + $0x480] ss:$24 sps:$4 sm:$0xff]   ;;  %v17495_v61 = vld [vmem:[#allocation14 + $0x434] ss:$24 sps:$4 sm:$0xff]  }
0x104b   :  { %v17493_v62 = vld [vmem:[#allocation14 + $0x430] ss:$24 sps:$4 sm:$0xff]  }
0x104c   :  { %v6596_v0 = vmul.f32 1.442695, %v6593_v63  ;;  %v17496_v63 = vld [vmem:[#allocation5 + $0x4e0] ss:$24 sps:$4 sm:$0xff]  }
0x104e   :  { %18431 = vpow2.f32 %v6596_v0  ;;  %v17501_v0 = vld [vmem:[#allocation14 + $0x464] ss:$24 sps:$4 sm:$0xff]  }
0x1054   :  { %v18430_v2 = vpop.eup %18429 }
0x1055   :  { %v6598_v3 = vsel %vm1428_vm2, %v18430_v2, 0.0 }
0x1056   :  { %6599 = vadd.xlane.f32.xlu0 %v6598_v3  ;;  %v17499_v3 = vld [vmem:[#allocation14 + $0x460] ss:$24 sps:$4 sm:$0xff]  }
0x1058   :  { %v18432_v6 = vpop.eup %18431 }
0x1059   :  { %v6601_v7 = vsel %vm1428_vm2, %v18432_v6, 0.0 }
0x105a   :  { %6602 = vadd.xlane.f32.xlu1 %v6601_v7  ;;  %v17502_v7 = vld [vmem:[#allocation5 + $0x510] ss:$24 sps:$4 sm:$0xff]  }
0x10e3   :  { %v6600_v19 = vpop.xlane.xlu0 %6599 }
0x10e4   :  { %18433 = vrcp.f32 %v6600_v19  ;;  %v17525_v19 = vld [vmem:[#allocation7 + $0x514] ss:$24 sps:$4 sm:$0xff]  }
0x10e7   :  { %v6603_v20 = vpop.xlane.xlu1 %6602 }
0x10e8   :  { %18435 = vrcp.f32 %v6603_v20  ;;  %v17520_v20 = vld [vmem:[#allocation5 + $0x488] ss:$24 sps:$4 sm:$0xff]  }
0x10ee   :  { %v18434_v21 = vpop.eup %18433 }
0x10ef   :  { %v6606_v22 = vmul.f32 %v18434_v21, %v18430_v2  ;;  %v17504_v2 = vld [vmem:[#allocation5 + $0x514] ss:$24 sps:$4 sm:$0xff]  }
0x10f0   :  { %v17528_v21 = vld [vmem:[#allocation5 + $0x4bc] ss:$24 sps:$4 sm:$0xff]  }
0x10f1   :  { %16190 = vmatmul.mubr.msk.f32.vlgmr.msra.gmra.mrb[44].mxu1 %vm1428_vm2, %v6606_v22  ;;  %v17523_v22 = vld [vmem:[#allocation7 + $0x510] ss:$24 sps:$4 sm:$0xff]  }
0x10f2   :  { %v18436_v24 = vpop.eup %18435  ;;  %16193 = vmatpush3.msra.mxu1 %v16300_v57  ;;  %16194 = vmatprep.mubr.msk.f32.mxu1 %vm18843_vm0, %v18842_v27  ;;  %v17487_v57 = vld [vmem:[#allocation5 + $0x4b0] ss:$24 sps:$4 sm:$0xff]  }
0x10f3   :  { %v6607_v39 = vmul.f32 %v18436_v24, %v18432_v6  ;;  %7017 = vmatprep.subr.bf16.mxu1 %v17441_v23  ;;  %v17507_v6 = vld [vmem:[#allocation7 + $0x484] ss:$24 sps:$4 sm:$0xff]   ;;  %v17526_v24 = vld [vmem:[#allocation5 + $0x4b8] ss:$24 sps:$4 sm:$0xff]  }
0x10f4   :  { %v17531_v23 = vld [vmem:[#allocation7 + $0x544] ss:$24 sps:$4 sm:$0xff]  }
0x10f5   :  { %16195 = vmatmul.mubr.msk.f32.vlgmr.msra.gmra.mrb[46].mxu1 %vm1428_vm2, %v6607_v39  ;;  %v17529_v39 = vld [vmem:[#allocation7 + $0x540] ss:$24 sps:$4 sm:$0xff]  }
0x10f6   :  { %7018 = vmatpush1.bf16.msra.mxu1 %v17439_v25  ;;  %7049 = vmatprep.mubr.bf16.mxu1 %v18844_v5  ;;  %v17534_v25 = vld [vmem:[#allocation5 + $0x4ec] ss:$24 sps:$4 sm:$0xff]  }
0x10f7   :  { %7019 = vmatprep.subr.bf16.mxu1 %v17444_v28  ;;  %v17537_v28 = vld [vmem:[#allocation7 + $0x574] ss:$24 sps:$4 sm:$0xff]  }
0x10fa   :  { %7020 = vmatpush1.bf16.msra.mxu1 %v17442_v29  ;;  %v17532_v29 = vld [vmem:[#allocation5 + $0x4e8] ss:$24 sps:$4 sm:$0xff]  }
0x10fb   :  { %7021 = vmatprep.subr.bf16.mxu1 %v17450_v30  ;;  %v17540_v30 = vld [vmem:[#allocation5 + $0x51c] ss:$24 sps:$4 sm:$0xff]  }
0x10fe   :  { %7022 = vmatpush1.bf16.msra.mxu1 %v17448_v31  ;;  %v17535_v31 = vld [vmem:[#allocation7 + $0x570] ss:$24 sps:$4 sm:$0xff]  }
0x10ff   :  { %7023 = vmatprep.subr.bf16.mxu1 %v17456_v32  ;;  %v17543_v32 = vld [vmem:[#allocation7 + $0x48c] ss:$24 sps:$4 sm:$0xff]  }
0x1102   :  { %7024 = vmatpush1.bf16.msra.mxu1 %v17454_v34  ;;  %v17538_v34 = vld [vmem:[#allocation5 + $0x518] ss:$24 sps:$4 sm:$0xff]  }
0x1103   :  { %7025 = vmatprep.subr.bf16.mxu1 %v17462_v35  ;;  %v17546_v35 = vld [vmem:[#allocation5 + $0x54c] ss:$24 sps:$4 sm:$0xff]  }
0x1106   :  { %7026 = vmatpush1.bf16.msra.mxu1 %v17460_v36  ;;  %v17541_v36 = vld [vmem:[#allocation7 + $0x488] ss:$24 sps:$4 sm:$0xff]  }
0x1107   :  { %7027 = vmatprep.subr.bf16.mxu1 %v17468_v37  ;;  %v17549_v37 = vld [vmem:[#allocation7 + $0x4bc] ss:$24 sps:$4 sm:$0xff]  }
0x110a   :  { %7028 = vmatpush1.bf16.msra.mxu1 %v17466_v40  ;;  %v17544_v40 = vld [vmem:[#allocation5 + $0x548] ss:$24 sps:$4 sm:$0xff]  }
0x110b   :  { %7340 = vmatprep.subr.bf16.mxu1 %v17480_v44  ;;  %v17550_v44 = vld [vmem:[#allocation5 + $0x578] ss:$24 sps:$4 sm:$0xff]  }
0x11c4   :  { %v6677_v45 = vpop.f32.mrb[44].mxu1 }
0x11c5   :  { %v16191_v46 = vpop.f32.mrb[45].mxu1 }
0x11c6   :  { %v17553_v46 = vld [vmem:[#allocation7 + $0x4e8] ss:$24 sps:$4 sm:$0xff]  }
0x11c8   :  { %v6750_v47 = vpop.f32.mrb[46].mxu1 }
0x11c9   :  { %v6754_v50 = vpack.c.bf16 %v6750_v47, %v6677_v45  ;;  %v16196_v51 = vpop.f32.mrb[47].mxu1  ;;  %v17558_v45 = vld [vmem:[#allocation5 + $0x494] ss:$24 sps:$4 sm:$0xff]  }
0x11ca   :  { %v17561_v47 = vld [vmem:[#allocation7 + $0x51c] ss:$24 sps:$4 sm:$0xff]   ;;  %v17567_v51 = vld [vmem:[#allocation7 + $0x54c] ss:$24 sps:$4 sm:$0xff]  }
0x11cb   :  { %15309 = vmatmul.mubr.msk.bf16.vlgmr.msra.gmra.mrb[16].mxu0 %vm1273_vm1, %v6754_v50  ;;  %15310 = vmatmul.mubr.msk.bf16.vlgmr.msra.gmra.mrb[24].mxu1 %vm1273_vm1, %v6754_v50 }
0x11cc   :  { %7061 = vmatpush1.bf16.msra.mxu0 %v17475_v48  ;;  %7341 = vmatpush1.bf16.xpose.msra.mxu1 %v17478_v49  ;;  %v17556_v48 = vld [vmem:[#allocation5 + $0x490] ss:$24 sps:$4 sm:$0xff]   ;;  %v17564_v49 = vld [vmem:[#allocation5 + $0x4c4] ss:$24 sps:$4 sm:$0xff]  }
0x11cd   :  { %7062 = vmatprep.subr.bf16.mxu0 %v17483_v52  ;;  %7342 = vmatprep.subr.bf16.mxu1 %v17489_v53  ;;  %v17562_v52 = vld [vmem:[#allocation5 + $0x4c0] ss:$24 sps:$4 sm:$0xff]   ;;  %v17570_v53 = vld [vmem:[#allocation5 + $0x4f4] ss:$24 sps:$4 sm:$0xff]  }
0x11ce   :  { %7092 = vmatprep.mubr.bf16.mxu0 %v18844_v5  ;;  %7372 = vmatprep.mubr.bf16.mxu1 %v19108_v16 }
0x11d0   :  { %7063 = vmatpush1.bf16.msra.mxu0 %v17481_v54  ;;  %v17565_v54 = vld [vmem:[#allocation7 + $0x548] ss:$24 sps:$4 sm:$0xff]  }
0x11d1   :  { %7064 = vmatprep.subr.bf16.mxu0 %v17486_v55  ;;  %v17573_v55 = vld [vmem:[#allocation7 + $0x57c] ss:$24 sps:$4 sm:$0xff]  }
0x11d4   :  { %7065 = vmatpush1.bf16.msra.mxu0 %v17484_v56  ;;  %7343 = vmatpush1.bf16.xpose.msra.mxu1 %v17487_v57  ;;  %v17568_v56 = vld [vmem:[#allocation5 + $0x4f0] ss:$24 sps:$4 sm:$0xff]   ;;  %v17576_v57 = vld [vmem:[#allocation5 + $0x524] ss:$24 sps:$4 sm:$0xff]  }
0x11d5   :  { %7066 = vmatprep.subr.bf16.mxu0 %v17492_v58  ;;  %7344 = vmatprep.subr.bf16.mxu1 %v17498_v59  ;;  %v17571_v58 = vld [vmem:[#allocation7 + $0x578] ss:$24 sps:$4 sm:$0xff]   ;;  %v17579_v59 = vld [vmem:[#allocation7 + $0x494] ss:$24 sps:$4 sm:$0xff]  }
0x11d8   :  { %7067 = vmatpush1.bf16.msra.mxu0 %v17490_v60  ;;  %v17574_v60 = vld [vmem:[#allocation5 + $0x520] ss:$24 sps:$4 sm:$0xff]  }
0x11d9   :  { %7068 = vmatprep.subr.bf16.mxu0 %v17495_v61  ;;  %v17582_v61 = vld [vmem:[#allocation5 + $0x554] ss:$24 sps:$4 sm:$0xff]  }
0x11dc   :  { %7069 = vmatpush1.bf16.msra.mxu0 %v17493_v62  ;;  %7345 = vmatpush1.bf16.xpose.msra.mxu1 %v17496_v63  ;;  %v17577_v62 = vld [vmem:[#allocation7 + $0x490] ss:$24 sps:$4 sm:$0xff]   ;;  %v17585_v63 = vld [vmem:[#allocation7 + $0x4c4] ss:$24 sps:$4 sm:$0xff]  }
0x11dd   :  { %7070 = vmatprep.subr.bf16.mxu0 %v17501_v0  ;;  %7346 = vmatprep.subr.bf16.mxu1 %v17504_v2  ;;  %v17580_v0 = vld [vmem:[#allocation5 + $0x550] ss:$24 sps:$4 sm:$0xff]   ;;  %v17588_v2 = vld [vmem:[#allocation5 + $0x584] ss:$24 sps:$4 sm:$0xff]  }
0x11e0   :  { %7071 = vmatpush1.bf16.msra.mxu0 %v17499_v3  ;;  %v17583_v3 = vld [vmem:[#allocation7 + $0x4c0] ss:$24 sps:$4 sm:$0xff]  }
0x11e1   :  { %7688 = vmatprep.subr.bf16.mxu0 %v17507_v6  ;;  %v17591_v6 = vld [vmem:[#allocation7 + $0x4f4] ss:$24 sps:$4 sm:$0xff]  }
0x11e3   :  { %15311 = vmatmul.mubr.msk.bf16.vlgmr.msra.gmra.mrb[20].mxu0 %vm1273_vm1, %v6754_v50  ;;  %v17559_v50 = vld [vmem:[#allocation7 + $0x518] ss:$24 sps:$4 sm:$0xff]  }
0x11e4   :  { %7347 = vmatpush1.bf16.xpose.msra.mxu1 %v17502_v7  ;;  %7720 = vmatprep.mubr.bf16.mxu0 %v19108_v16  ;;  %v17586_v7 = vld [vmem:[#allocation5 + $0x580] ss:$24 sps:$4 sm:$0xff]  }
0x11e5   :  { %7348 = vmatprep.subr.bf16.mxu1 %v17510_v8  ;;  %v17589_v8 = vld [vmem:[#allocation7 + $0x4f0] ss:$24 sps:$4 sm:$0xff]  }
0x11e9   :  { %7689 = vmatpush1.bf16.xpose.msra.mxu0 %v17505_v9  ;;  %v17594_v9 = vld [vmem:[#allocation7 + $0x524] ss:$24 sps:$4 sm:$0xff]  }
0x11ea   :  { %7690 = vmatprep.subr.bf16.mxu0 %v17513_v11  ;;  %v17592_v11 = vld [vmem:[#allocation7 + $0x520] ss:$24 sps:$4 sm:$0xff]  }
0x11ec   :  { %7349 = vmatpush1.bf16.xpose.msra.mxu1 %v17508_v12  ;;  %v17597_v12 = vld [vmem:[#allocation7 + $0x554] ss:$24 sps:$4 sm:$0xff]  }
0x11ed   :  { %7350 = vmatprep.subr.bf16.mxu1 %v17516_v13  ;;  %v17595_v13 = vld [vmem:[#allocation7 + $0x550] ss:$24 sps:$4 sm:$0xff]  }
0x11f1   :  { %7691 = vmatpush1.bf16.xpose.msra.mxu0 %v17511_v14  ;;  %v17600_v14 = vld [vmem:[#allocation7 + $0x584] ss:$24 sps:$4 sm:$0xff]  }
0x11f2   :  { %7692 = vmatprep.subr.bf16.mxu0 %v17519_v15  ;;  %v17598_v15 = vld [vmem:[#allocation7 + $0x580] ss:$24 sps:$4 sm:$0xff]  }
0x11f4   :  { %7351 = vmatpush1.bf16.xpose.msra.mxu1 %v17514_v10  ;;  %v17601_v10 = vld [vmem:[#allocation8 + $0x480] ss:$24 sps:$4 sm:$0xff]  }
0x11f5   :  { %7381 = vmatprep.subr.bf16.mxu1 %v17522_v17  ;;  %v17603_v17 = vld [vmem:[#allocation8 + $0x484] ss:$24 sps:$4 sm:$0xff]  }
0x11f9   :  { %7693 = vmatpush1.bf16.xpose.msra.mxu0 %v17517_v18  ;;  %v17606_v18 = vld [vmem:[#allocation8 + $0x4b4] ss:$24 sps:$4 sm:$0xff]  }
0x11fa   :  { %7694 = vmatprep.subr.bf16.mxu0 %v17525_v19  ;;  %v17604_v19 = vld [vmem:[#allocation8 + $0x4b0] ss:$24 sps:$4 sm:$0xff]  }
0x11fb   :  { %7373 = vmatmul.mubr.bf16.vlgmr.msra.gmra.mrb[48].mxu1 %v19112_v33 }
0x11fc   :  { %7382 = vmatpush1.bf16.xpose.msra.mxu1 %v17520_v20  ;;  %7413 = vmatprep.mubr.bf16.mxu1 %v19114_v38  ;;  %v17609_v20 = vld [vmem:[#allocation8 + $0x4e4] ss:$24 sps:$4 sm:$0xff]  }
0x11fd   :  { %7383 = vmatprep.subr.bf16.mxu1 %v17528_v21  ;;  %v17607_v21 = vld [vmem:[#allocation8 + $0x4e0] ss:$24 sps:$4 sm:$0xff]  }
0x1201   :  { %7695 = vmatpush1.bf16.xpose.msra.mxu0 %v17523_v22  ;;  %v17612_v22 = vld [vmem:[#allocation8 + $0x514] ss:$24 sps:$4 sm:$0xff]  }
0x1202   :  { %7696 = vmatprep.subr.bf16.mxu0 %v17531_v23  ;;  %v17610_v23 = vld [vmem:[#allocation8 + $0x510] ss:$24 sps:$4 sm:$0xff]  }
0x1204   :  { %7384 = vmatpush1.bf16.xpose.msra.mxu1 %v17526_v24  ;;  %v17615_v24 = vld [vmem:[#allocation8 + $0x544] ss:$24 sps:$4 sm:$0xff]  }
0x1205   :  { %7385 = vmatprep.subr.bf16.mxu1 %v17534_v25  ;;  %v17613_v25 = vld [vmem:[#allocation8 + $0x540] ss:$24 sps:$4 sm:$0xff]  }
0x1209   :  { %7697 = vmatpush1.bf16.xpose.msra.mxu0 %v17529_v39  ;;  %v17618_v39 = vld [vmem:[#allocation8 + $0x574] ss:$24 sps:$4 sm:$0xff]  }
0x120a   :  { %7698 = vmatprep.subr.bf16.mxu0 %v17537_v28  ;;  %v17616_v28 = vld [vmem:[#allocation8 + $0x570] ss:$24 sps:$4 sm:$0xff]  }
0x120c   :  { %7386 = vmatpush1.bf16.xpose.msra.mxu1 %v17532_v29  ;;  %v17621_v29 = vld [vmem:[#allocation8 + $0x48c] ss:$24 sps:$4 sm:$0xff]  }
0x120d   :  { %7387 = vmatprep.subr.bf16.mxu1 %v17540_v30  ;;  %v17619_v30 = vld [vmem:[#allocation8 + $0x488] ss:$24 sps:$4 sm:$0xff]  }
0x1211   :  { %7699 = vmatpush1.bf16.xpose.msra.mxu0 %v17535_v31  ;;  %v17624_v31 = vld [vmem:[#allocation8 + $0x4bc] ss:$24 sps:$4 sm:$0xff]  }
0x1212   :  { %7729 = vmatprep.subr.bf16.mxu0 %v17543_v32  ;;  %v17622_v32 = vld [vmem:[#allocation8 + $0x4b8] ss:$24 sps:$4 sm:$0xff]  }
0x1214   :  { %7388 = vmatpush1.bf16.xpose.msra.mxu1 %v17538_v34  ;;  %v17627_v34 = vld [vmem:[#allocation8 + $0x4ec] ss:$24 sps:$4 sm:$0xff]  }
0x1215   :  { %7389 = vmatprep.subr.bf16.mxu1 %v17546_v35  ;;  %v17625_v35 = vld [vmem:[#allocation8 + $0x4e8] ss:$24 sps:$4 sm:$0xff]  }
0x1218   :  { %7721 = vmatmul.mubr.bf16.vlgmr.msra.gmra.mrb[44].mxu0 %v19112_v33 }
0x1219   :  { %7730 = vmatpush1.bf16.xpose.msra.mxu0 %v17541_v36  ;;  %7761 = vmatprep.mubr.bf16.mxu0 %v19114_v38  ;;  %v17630_v36 = vld [vmem:[#allocation8 + $0x51c] ss:$24 sps:$4 sm:$0xff]  }
0x121a   :  { %7731 = vmatprep.subr.bf16.mxu0 %v17549_v37  ;;  %v17628_v37 = vld [vmem:[#allocation8 + $0x518] ss:$24 sps:$4 sm:$0xff]  }
0x121c   :  { %7390 = vmatpush1.bf16.xpose.msra.mxu1 %v17544_v40  ;;  %v17633_v40 = vld [vmem:[#allocation8 + $0x54c] ss:$24 sps:$4 sm:$0xff]  }
0x121d   :  { %7391 = vmatprep.subr.bf16.mxu1 %v17552_v41  ;;  %v17631_v41 = vld [vmem:[#allocation8 + $0x548] ss:$24 sps:$4 sm:$0xff]  }
0x1221   :  { %7732 = vmatpush1.bf16.xpose.msra.mxu0 %v17547_v42  ;;  %v17636_v42 = vld [vmem:[#allocation8 + $0x57c] ss:$24 sps:$4 sm:$0xff]  }
0x1222   :  { %7733 = vmatprep.subr.bf16.mxu0 %v17555_v43  ;;  %v17634_v43 = vld [vmem:[#allocation8 + $0x578] ss:$24 sps:$4 sm:$0xff]  }
0x1224   :  { %7392 = vmatpush1.bf16.xpose.msra.mxu1 %v17550_v44  ;;  %v17639_v44 = vld [vmem:[#allocation8 + $0x494] ss:$24 sps:$4 sm:$0xff]  }
0x1225   :  { %7422 = vmatprep.subr.bf16.mxu1 %v17558_v45 }
0x1229   :  { %7734 = vmatpush1.bf16.xpose.msra.mxu0 %v17553_v46 }
0x122a   :  { %7735 = vmatprep.subr.bf16.mxu0 %v17561_v47 }
0x122b   :  { %7414 = vmatmul.mubr.bf16.vlgmr.msra.gmra.mrb[48].mxu1 %v19120_v1 }
0x122c   :  { %7423 = vmatpush1.bf16.xpose.msra.mxu1 %v17556_v48  ;;  %7454 = vmatprep.mubr.bf16.mxu1 %v19122_v4 }
0x122d   :  { %7424 = vmatprep.subr.bf16.mxu1 %v17564_v49  ;;  %v17637_v49 = vld [vmem:[#allocation8 + $0x490] ss:$24 sps:$4 sm:$0xff]  }
0x1231   :  { %7736 = vmatpush1.bf16.xpose.msra.mxu0 %v17559_v50  ;;  %v17642_v50 = vld [vmem:[#allocation8 + $0x4c4] ss:$24 sps:$4 sm:$0xff]  }
0x1232   :  { %7737 = vmatprep.subr.bf16.mxu0 %v17567_v51  ;;  %v17640_v51 = vld [vmem:[#allocation8 + $0x4c0] ss:$24 sps:$4 sm:$0xff]  }
0x1234   :  { %7425 = vmatpush1.bf16.xpose.msra.mxu1 %v17562_v52  ;;  %v17645_v52 = vld [vmem:[#allocation8 + $0x4f4] ss:$24 sps:$4 sm:$0xff]  }
0x1235   :  { %7426 = vmatprep.subr.bf16.mxu1 %v17570_v53  ;;  %v17643_v53 = vld [vmem:[#allocation8 + $0x4f0] ss:$24 sps:$4 sm:$0xff]  }
0x1239   :  { %7738 = vmatpush1.bf16.xpose.msra.mxu0 %v17565_v54  ;;  %v17648_v54 = vld [vmem:[#allocation8 + $0x524] ss:$24 sps:$4 sm:$0xff]  }
0x123a   :  { %7739 = vmatprep.subr.bf16.mxu0 %v17573_v55  ;;  %v15349_v55 = vld [vmem:[#allocation11 + $0x4] ss:$0 sm:$0xff] }
0x123c   :  { %7427 = vmatpush1.bf16.xpose.msra.mxu1 %v17568_v56 }
0x123d   :  { %7428 = vmatprep.subr.bf16.mxu1 %v17576_v57  ;;  %v15312_v57 = vld [vmem:[#allocation10 + $0x4] ss:$0 sm:$0xff] }
0x1241   :  { %7740 = vmatpush1.bf16.xpose.msra.mxu0 %v17571_v58 }
0x1242   :  { %7770 = vmatprep.subr.bf16.mxu0 %v17579_v59 }
0x1244   :  { %7429 = vmatpush1.bf16.xpose.msra.mxu1 %v17574_v60  ;;  %v17646_v60 = vld [vmem:[#allocation8 + $0x520] ss:$24 sps:$4 sm:$0xff]  }
0x1245   :  { %7430 = vmatprep.subr.bf16.mxu1 %v17582_v61 }
0x1248   :  { %7762 = vmatmul.mubr.bf16.vlgmr.msra.gmra.mrb[44].mxu0 %v19120_v1 }
0x1249   :  { %7771 = vmatpush1.bf16.xpose.msra.mxu0 %v17577_v62  ;;  %7802 = vmatprep.mubr.bf16.mxu0 %v19122_v4  ;;  %v17651_v62 = vld [vmem:[#allocation8 + $0x554] ss:$24 sps:$4 sm:$0xff]  }
0x124a   :  { %7772 = vmatprep.subr.bf16.mxu0 %v17585_v63 }
0x124c   :  { %7431 = vmatpush1.bf16.xpose.msra.mxu1 %v17580_v0 }
0x124d   :  { %7432 = vmatprep.subr.bf16.mxu1 %v17588_v2 }
0x1251   :  { %7773 = vmatpush1.bf16.xpose.msra.mxu0 %v17583_v3 }
0x1252   :  { %7774 = vmatprep.subr.bf16.mxu0 %v17591_v6  ;;  %v17649_v6 = vld [vmem:[#allocation8 + $0x550] ss:$24 sps:$4 sm:$0xff]  }
0x1254   :  { %7433 = vmatpush1.bf16.xpose.msra.mxu1 %v17586_v7  ;;  %v17654_v7 = vld [vmem:[#allocation8 + $0x584] ss:$24 sps:$4 sm:$0xff]  }
0x1255   :  { %8036 = vmatprep.subr.bf16.mxu1 %v17603_v17 }
0x1259   :  { %7775 = vmatpush1.bf16.xpose.msra.mxu0 %v17589_v8  ;;  %v17652_v8 = vld [vmem:[#allocation8 + $0x580] ss:$24 sps:$4 sm:$0xff]  }
0x125a   :  { %7776 = vmatprep.subr.bf16.mxu0 %v17594_v9 }
0x125b   :  { %7455 = vmatmul.mubr.bf16.vlgmr.msra.gmra.mrb[48].mxu1 %v19128_v26 }
0x125c   :  { %8068 = vmatprep.mubr.bf16.mxu1 %v19108_v16  ;;  %8037 = vmatpush1.bf16.xpose.msra.mxu1 %v17601_v10 }
0x125d   :  { %8038 = vmatprep.subr.bf16.mxu1 %v17606_v18  ;;  %v15386_v18 = vld [vmem:[#allocation13 + $0x4] ss:$0 sm:$0xff] }
0x1261   :  { %7777 = vmatpush1.bf16.xpose.msra.mxu0 %v17592_v11 }
0x1262   :  { %7778 = vmatprep.subr.bf16.mxu0 %v17597_v12 }
0x1264   :  { %8039 = vmatpush1.bf16.xpose.msra.mxu1 %v17604_v19 }
0x1265   :  { %8040 = vmatprep.subr.bf16.mxu1 %v17609_v20 }
0x1269   :  { %7779 = vmatpush1.bf16.xpose.msra.mxu0 %v17595_v13 }
0x126a   :  { %7780 = vmatprep.subr.bf16.mxu0 %v17600_v14 }
0x126c   :  { %8041 = vmatpush1.bf16.xpose.msra.mxu1 %v17607_v21 }
0x126d   :  { %8042 = vmatprep.subr.bf16.mxu1 %v17612_v22 }
0x1271   :  { %7781 = vmatpush1.bf16.xpose.msra.mxu0 %v17598_v15 }
0x1272   :  { %16197 = vmatprep.subr.mxu0 %v18842_v27 }
0x1274   :  { %8043 = vmatpush1.bf16.xpose.msra.mxu1 %v17610_v23 }
0x1275   :  { %8044 = vmatprep.subr.bf16.mxu1 %v17615_v24 }
0x1278   :  { %7803 = vmatmul.mubr.bf16.vlgmr.msra.gmra.mrb[44].mxu0 %v19128_v26 }
0x1279   :  { %16199 = vmatprep.mubr.msk.f32.mxu0 %vm18843_vm0, %v18842_v27 }
0x127c   :  { %8045 = vmatpush1.bf16.xpose.msra.mxu1 %v17613_v25 }
0x127d   :  { %8046 = vmatprep.subr.bf16.mxu1 %v17618_v39 }
0x1284   :  { %8047 = vmatpush1.bf16.xpose.msra.mxu1 %v17616_v28 }
0x1285   :  { %8077 = vmatprep.subr.bf16.mxu1 %v17621_v29 }
0x128b   :  { %8069 = vmatmul.mubr.bf16.vlgmr.msra.gmra.mrb[52].mxu1 %v19112_v33 }
0x128c   :  { %8078 = vmatpush1.bf16.xpose.msra.mxu1 %v17619_v30  ;;  %8109 = vmatprep.mubr.bf16.mxu1 %v19114_v38 }
0x128d   :  { %8079 = vmatprep.subr.bf16.mxu1 %v17624_v31 }
0x1294   :  { %8080 = vmatpush1.bf16.xpose.msra.mxu1 %v17622_v32 }
0x1295   :  { %8081 = vmatprep.subr.bf16.mxu1 %v17627_v34 }
0x129c   :  { %8082 = vmatpush1.bf16.xpose.msra.mxu1 %v17625_v35 }
0x129d   :  { %8083 = vmatprep.subr.bf16.mxu1 %v17630_v36 }
0x12a4   :  { %8084 = vmatpush1.bf16.xpose.msra.mxu1 %v17628_v37  ;;  %v17655_v37 = vld [vmem:[#allocation14 + $0x488] ss:$24 sps:$4 sm:$0xff]  }
0x12a5   :  { %8085 = vmatprep.subr.bf16.mxu1 %v17633_v40  ;;  %v17657_v40 = vld [vmem:[#allocation14 + $0x48c] ss:$24 sps:$4 sm:$0xff]  }
0x12ac   :  { %8086 = vmatpush1.bf16.xpose.msra.mxu1 %v17631_v41  ;;  %v17660_v41 = vld [vmem:[#allocation14 + $0x4bc] ss:$24 sps:$4 sm:$0xff]  }
0x12ad   :  { %8087 = vmatprep.subr.bf16.mxu1 %v17636_v42  ;;  %v17658_v42 = vld [vmem:[#allocation14 + $0x4b8] ss:$24 sps:$4 sm:$0xff]  }
0x12b4   :  { %8088 = vmatpush1.bf16.xpose.msra.mxu1 %v17634_v43  ;;  %v17666_v43 = vld [vmem:[#allocation14 + $0x4ec] ss:$24 sps:$4 sm:$0xff]  }
0x12b5   :  { %8118 = vmatprep.subr.bf16.mxu1 %v17639_v44  ;;  %v17664_v44 = vld [vmem:[#allocation14 + $0x4e8] ss:$24 sps:$4 sm:$0xff]  }
0x12bb   :  { %8110 = vmatmul.mubr.bf16.vlgmr.msra.gmra.mrb[52].mxu1 %v19120_v1 }
0x12bc   :  { %8119 = vmatpush1.bf16.xpose.msra.mxu1 %v17637_v49  ;;  %8150 = vmatprep.mubr.bf16.mxu1 %v19122_v4  ;;  %v17684_v49 = vld [vmem:[#allocation14 + $0x57c] ss:$24 sps:$4 sm:$0xff]  }
0x12bd   :  { %8120 = vmatprep.subr.bf16.mxu1 %v17642_v50  ;;  %v17682_v50 = vld [vmem:[#allocation14 + $0x578] ss:$24 sps:$4 sm:$0xff]  }
0x12c4   :  { %8121 = vmatpush1.bf16.xpose.msra.mxu1 %v17640_v51 }
0x12c5   :  { %8122 = vmatprep.subr.bf16.mxu1 %v17645_v52 }
0x12cc   :  { %8123 = vmatpush1.bf16.xpose.msra.mxu1 %v17643_v53 }
0x12cd   :  { %8124 = vmatprep.subr.bf16.mxu1 %v17648_v54 }
0x12d4   :  { %8125 = vmatpush1.bf16.xpose.msra.mxu1 %v17646_v60  ;;  %v17667_v60 = vld [vmem:[#allocation14 + $0x4b0] ss:$24 sps:$4 sm:$0xff]  }
0x12d5   :  { %8126 = vmatprep.subr.bf16.mxu1 %v17651_v62  ;;  %v17673_v62 = vld [vmem:[#allocation14 + $0x4e0] ss:$24 sps:$4 sm:$0xff]  }
0x12dc   :  { %8127 = vmatpush1.bf16.xpose.msra.mxu1 %v17649_v6  ;;  %v17688_v6 = vld [vmem:[#allocation14 + $0x570] ss:$24 sps:$4 sm:$0xff]  }
0x12dd   :  { %8128 = vmatprep.subr.bf16.mxu1 %v17654_v7  ;;  %v17690_v7 = vld [vmem:[#allocation14 + $0x574] ss:$24 sps:$4 sm:$0xff]  }
0x12e4   :  { %8129 = vmatpush1.bf16.xpose.msra.mxu1 %v17652_v8  ;;  %v17693_v8 = vld [vmem:[#allocation14 + $0x494] ss:$24 sps:$4 sm:$0xff]  }
0x12e5   :  { %8744 = vmatprep.subr.bf16.mxu1 %v17657_v40  ;;  %v17721_v40 = vld [vmem:[#allocation5 + $0x5a0] ss:$24 sps:$4 sm:$0xff]  }
0x12eb   :  { %8151 = vmatmul.mubr.bf16.vlgmr.msra.gmra.mrb[52].mxu1 %v19128_v26 }
0x12ec   :  { %8776 = vmatprep.mubr.bf16.mxu1 %v18844_v5  ;;  %8745 = vmatpush1.bf16.msra.mxu1 %v17655_v37  ;;  %v17726_v37 = vld [vmem:[#allocation7 + $0x664] ss:$24 sps:$4 sm:$0xff]  }
0x12ed   :  { %8746 = vmatprep.subr.bf16.mxu1 %v17660_v41  ;;  %v17729_v41 = vld [vmem:[#allocation5 + $0x5d4] ss:$24 sps:$4 sm:$0xff]  }
0x12f0   :  { %8747 = vmatpush1.bf16.msra.mxu1 %v17658_v42  ;;  %v17724_v42 = vld [vmem:[#allocation7 + $0x660] ss:$24 sps:$4 sm:$0xff]  }
0x12f1   :  { %8748 = vmatprep.subr.bf16.mxu1 %v17666_v43  ;;  %v17732_v43 = vld [vmem:[#allocation7 + $0x694] ss:$24 sps:$4 sm:$0xff]  }
0x12f4   :  { %8749 = vmatpush1.bf16.msra.mxu1 %v17664_v44  ;;  %v17727_v44 = vld [vmem:[#allocation5 + $0x5d0] ss:$24 sps:$4 sm:$0xff]  }
0x132e   :  { %v7456_v45 = vpop.f32.mrb[48].mxu1 }
0x132f   :  { %v7458_v46 = vpop.f32.mrb[49].mxu1  ;;  %v16301_v0 = vadd.f32 %v15312_v57, %v7456_v45  ;;  %v17672_v45 = vld [vmem:[#allocation14 + $0x51c] ss:$24 sps:$4 sm:$0xff]  }
0x1330   :  { %v7459_v47 = vpop.f32.mrb[50].mxu1  ;;  %v17670_v46 = vld [vmem:[#allocation14 + $0x518] ss:$24 sps:$4 sm:$0xff]   ;;  %8750 = vmatprep.subr.bf16.mxu1 %v17672_v45  ;;  %v17735_v45 = vld [vmem:[#allocation5 + $0x604] ss:$24 sps:$4 sm:$0xff]  }
0x1331   :  { %v7461_v48 = vpop.f32.mrb[51].mxu1  ;;  %v16302_v3 = vadd.f32 %v15312_v57, %v7459_v47  ;;  %v17678_v47 = vld [vmem:[#allocation14 + $0x54c] ss:$24 sps:$4 sm:$0xff]   ;;  %8751 = vmatpush1.bf16.msra.mxu1 %v17670_v46  ;;  %v17661_v57 = vld [vmem:[#allocation14 + $0x480] ss:$24 sps:$4 sm:$0xff]  }
0x1332   :  { %v17676_v48 = vld [vmem:[#allocation14 + $0x548] ss:$24 sps:$4 sm:$0xff]   ;;  %8752 = vmatprep.subr.bf16.mxu1 %v17678_v47  ;;  %v17730_v46 = vld [vmem:[#allocation7 + $0x690] ss:$24 sps:$4 sm:$0xff]   ;;  %v17738_v47 = vld [vmem:[#allocation7 + $0x5ac] ss:$24 sps:$4 sm:$0xff]  }
0x1335   :  { %8753 = vmatpush1.bf16.msra.mxu1 %v17676_v48  ;;  %v17733_v48 = vld [vmem:[#allocation5 + $0x600] ss:$24 sps:$4 sm:$0xff]  }
0x1336   :  { %8754 = vmatprep.subr.bf16.mxu1 %v17684_v49  ;;  %v17741_v49 = vld [vmem:[#allocation5 + $0x634] ss:$24 sps:$4 sm:$0xff]  }
0x1339   :  { %8755 = vmatpush1.bf16.msra.mxu1 %v17682_v50  ;;  %v17736_v50 = vld [vmem:[#allocation7 + $0x5a8] ss:$24 sps:$4 sm:$0xff]  }
0x134b   :  { %v7804_v56 = vpop.f32.mrb[44].mxu0 }
0x134c   :  { %v16303_v58 = vadd.f32 %v15349_v55, %v7804_v56  ;;  %v7806_v59 = vpop.f32.mrb[45].mxu0 }
0x134d   :  { %v7807_v61 = vpop.f32.mrb[46].mxu0  ;;  %v17669_v59 = vld [vmem:[#allocation14 + $0x4b4] ss:$24 sps:$4 sm:$0xff]  }
0x134e   :  { %v7809_v63 = vpop.f32.mrb[47].mxu0  ;;  %16198 = vmatpush3.xpose.msk.msra.mxu0 %vm1273_vm1, %v16303_v58  ;;  %v16304_v2 = vadd.f32 %v15349_v55, %v7807_v61  ;;  %v17663_v55 = vld [vmem:[#allocation14 + $0x484] ss:$24 sps:$4 sm:$0xff]  }
0x134f   :  { %16202 = vmatprep.subr.mxu0 %v18842_v27  ;;  %v17675_v61 = vld [vmem:[#allocation14 + $0x4e4] ss:$24 sps:$4 sm:$0xff]   ;;  %v17681_v63 = vld [vmem:[#allocation14 + $0x514] ss:$24 sps:$4 sm:$0xff]  }
0x1351   :  { %16200 = vmatmul.mubr.msk.f32.vlgmr.msra.gmra.mrb[48].mxu0 %vm1273_vm1, %v16301_v0  ;;  %v17679_v0 = vld [vmem:[#allocation14 + $0x510] ss:$24 sps:$4 sm:$0xff]  }
0x1352   :  { %16203 = vmatpush3.xpose.msk.msra.mxu0 %vm1273_vm1, %v16304_v2  ;;  %16204 = vmatprep.mubr.msk.f32.mxu0 %vm18843_vm0, %v18842_v27  ;;  %v17687_v2 = vld [vmem:[#allocation14 + $0x544] ss:$24 sps:$4 sm:$0xff]  }
0x1353   :  { %16207 = vmatprep.subr.mxu0 %v18842_v27 }
0x1355   :  { %16205 = vmatmul.mubr.msk.f32.vlgmr.msra.gmra.mrb[50].mxu0 %vm1273_vm1, %v16302_v3  ;;  %v17685_v3 = vld [vmem:[#allocation14 + $0x540] ss:$24 sps:$4 sm:$0xff]  }
0x1356   :  { %16209 = vmatprep.mubr.msk.f32.mxu0 %vm18843_vm0, %v18842_v27 }
0x13be   :  { %v8152_v19 = vpop.f32.mrb[52].mxu1 }
0x13bf   :  { %v16305_v20 = vadd.f32 %v15386_v18, %v8152_v19  ;;  %v8154_v21 = vpop.f32.mrb[53].mxu1  ;;  %v17705_v19 = vld [vmem:[#allocation7 + $0x5d4] ss:$24 sps:$4 sm:$0xff]  }
0x13c0   :  { %v8155_v22 = vpop.f32.mrb[54].mxu1  ;;  %v17702_v21 = vld [vmem:[#allocation14 + $0x4f4] ss:$24 sps:$4 sm:$0xff]  }
0x13c1   :  { %v16306_v23 = vadd.f32 %v15386_v18, %v8155_v22  ;;  %v8157_v24 = vpop.f32.mrb[55].mxu1  ;;  %16208 = vmatpush3.msra.mxu0 %v16305_v20  ;;  %v17699_v18 = vld [vmem:[#allocation14 + $0x4c4] ss:$24 sps:$4 sm:$0xff]   ;;  %v17697_v20 = vld [vmem:[#allocation14 + $0x4c0] ss:$24 sps:$4 sm:$0xff]  }
0x13c2   :  { %16212 = vmatprep.subr.mxu0 %v18842_v27  ;;  %v17700_v22 = vld [vmem:[#allocation14 + $0x4f0] ss:$24 sps:$4 sm:$0xff]   ;;  %v17708_v24 = vld [vmem:[#allocation14 + $0x524] ss:$24 sps:$4 sm:$0xff]  }
0x1424   :  { %v8231_v9 = vpop.f32.mrb[48].mxu0 }
0x1425   :  { %v8311_v11 = vmul.f32 0.10206208, %v8231_v9  ;;  %v16201_v12 = vpop.f32.mrb[49].mxu0  ;;  %v17696_v9 = vld [vmem:[#allocation7 + $0x5a4] ss:$24 sps:$4 sm:$0xff]  }
0x1426   :  { %9415 = vmatprep.subr.bf16.mxu1 %v17696_v9  ;;  %v17766_v9 = vld [vmem:[#allocation7 + $0x698] ss:$24 sps:$4 sm:$0xff]  }
0x1427   :  { %v8313_v13 = vsel %vm1428_vm2, %v8311_v11, -inf }
0x1428   :  { %8314 = vmax.xlane.f32.xlu0 %v8313_v13  ;;  %v8307_v14 = vpop.f32.mrb[50].mxu0 }
0x1429   :  { %v8312_v15 = vmul.f32 0.10206208, %v8307_v14  ;;  %v16206_v10 = vpop.f32.mrb[51].mxu0  ;;  %v17691_v14 = vld [vmem:[#allocation14 + $0x490] ss:$24 sps:$4 sm:$0xff]  }
0x142b   :  { %v8316_v17 = vsel %vm1428_vm2, %v8312_v15, -inf }
0x142c   :  { %8317 = vmax.xlane.f32.xlu1 %v8316_v17 }
0x14b5   :  { %v8315_v25 = vpop.xlane.xlu0 %8314 }
0x14b6   :  { %v8319_v39 = vsub.f32 %v8311_v11, %v8315_v25  ;;  %v17714_v25 = vld [vmem:[#allocation7 + $0x604] ss:$24 sps:$4 sm:$0xff]  }
0x14b8   :  { %v8321_v28 = vmul.f32 1.442695, %v8319_v39  ;;  %v17706_v39 = vld [vmem:[#allocation14 + $0x520] ss:$24 sps:$4 sm:$0xff]  }
0x14b9   :  { %v8318_v29 = vpop.xlane.xlu1 %8317 }
0x14ba   :  { %18437 = vpow2.f32 %v8321_v28  ;;  %v8320_v30 = vsub.f32 %v8312_v15, %v8318_v29  ;;  %v17694_v15 = vld [vmem:[#allocation7 + $0x5a0] ss:$24 sps:$4 sm:$0xff]   ;;  %v17711_v28 = vld [vmem:[#allocation14 + $0x554] ss:$24 sps:$4 sm:$0xff]  }
0x14bb   :  { %v17709_v29 = vld [vmem:[#allocation14 + $0x550] ss:$24 sps:$4 sm:$0xff]  }
0x14bc   :  { %v8323_v31 = vmul.f32 1.442695, %v8320_v30  ;;  %v17712_v30 = vld [vmem:[#allocation7 + $0x600] ss:$24 sps:$4 sm:$0xff]  }
0x14be   :  { %18439 = vpow2.f32 %v8323_v31  ;;  %v17717_v31 = vld [vmem:[#allocation14 + $0x584] ss:$24 sps:$4 sm:$0xff]  }
0x14c4   :  { %v18438_v32 = vpop.eup %18437 }
0x14c5   :  { %v8325_v34 = vsel %vm1428_vm2, %v18438_v32, 0.0 }
0x14c6   :  { %8326 = vadd.xlane.f32.xlu0 %v8325_v34  ;;  %v17715_v34 = vld [vmem:[#allocation14 + $0x580] ss:$24 sps:$4 sm:$0xff]  }
0x14c8   :  { %v18440_v35 = vpop.eup %18439 }
0x14c9   :  { %v8328_v36 = vsel %vm1428_vm2, %v18440_v35, 0.0 }
0x14ca   :  { %8329 = vadd.xlane.f32.xlu1 %v8328_v36  ;;  %v17718_v36 = vld [vmem:[#allocation7 + $0x630] ss:$24 sps:$4 sm:$0xff]  }
0x1553   :  { %v8327_v51 = vpop.xlane.xlu0 %8326 }
0x1554   :  { %18441 = vrcp.f32 %v8327_v51  ;;  %v17744_v51 = vld [vmem:[#allocation7 + $0x5dc] ss:$24 sps:$4 sm:$0xff]  }
0x1557   :  { %v8330_v52 = vpop.xlane.xlu1 %8329 }
0x1558   :  { %18443 = vrcp.f32 %v8330_v52  ;;  %v17739_v52 = vld [vmem:[#allocation5 + $0x630] ss:$24 sps:$4 sm:$0xff]  }
0x155e   :  { %v18442_v53 = vpop.eup %18441 }
0x155f   :  { %v8333_v54 = vmul.f32 %v18442_v53, %v18438_v32  ;;  %v17720_v32 = vld [vmem:[#allocation7 + $0x634] ss:$24 sps:$4 sm:$0xff]   ;;  %v17747_v53 = vld [vmem:[#allocation5 + $0x664] ss:$24 sps:$4 sm:$0xff]  }
0x1561   :  { %16210 = vmatmul.mubr.msk.f32.vlgmr.msra.gmra.mrb[52].mxu0 %vm1428_vm2, %v8333_v54  ;;  %v17742_v54 = vld [vmem:[#allocation7 + $0x5d8] ss:$24 sps:$4 sm:$0xff]  }
0x1562   :  { %v18444_v56 = vpop.eup %18443  ;;  %16213 = vmatpush3.msra.mxu0 %v16306_v23  ;;  %16214 = vmatprep.mubr.msk.f32.mxu0 %vm18843_vm0, %v18842_v27  ;;  %v17703_v23 = vld [vmem:[#allocation7 + $0x5d0] ss:$24 sps:$4 sm:$0xff]  }
0x1563   :  { %v8334_v58 = vmul.f32 %v18444_v56, %v18440_v35  ;;  %8701 = vmatprep.subr.bf16.mxu0 %v17663_v55  ;;  %v17723_v35 = vld [vmem:[#allocation5 + $0x5a4] ss:$24 sps:$4 sm:$0xff]   ;;  %v17745_v56 = vld [vmem:[#allocation5 + $0x660] ss:$24 sps:$4 sm:$0xff]  }
0x1564   :  { %v17750_v55 = vld [vmem:[#allocation7 + $0x60c] ss:$24 sps:$4 sm:$0xff]  }
0x1565   :  { %16215 = vmatmul.mubr.msk.f32.vlgmr.msra.gmra.mrb[54].mxu0 %vm1428_vm2, %v8334_v58  ;;  %v17748_v58 = vld [vmem:[#allocation7 + $0x608] ss:$24 sps:$4 sm:$0xff]  }
0x1566   :  { %8702 = vmatpush1.bf16.msra.mxu0 %v17661_v57  ;;  %8733 = vmatprep.mubr.bf16.mxu0 %v18844_v5  ;;  %v17753_v57 = vld [vmem:[#allocation5 + $0x694] ss:$24 sps:$4 sm:$0xff]  }
0x1567   :  { %8703 = vmatprep.subr.bf16.mxu0 %v17669_v59  ;;  %v17756_v59 = vld [vmem:[#allocation7 + $0x63c] ss:$24 sps:$4 sm:$0xff]  }
0x156a   :  { %8704 = vmatpush1.bf16.msra.mxu0 %v17667_v60  ;;  %v17751_v60 = vld [vmem:[#allocation5 + $0x690] ss:$24 sps:$4 sm:$0xff]  }
0x156b   :  { %8705 = vmatprep.subr.bf16.mxu0 %v17675_v61  ;;  %v17759_v61 = vld [vmem:[#allocation5 + $0x5ac] ss:$24 sps:$4 sm:$0xff]  }
0x156e   :  { %8706 = vmatpush1.bf16.msra.mxu0 %v17673_v62  ;;  %v17754_v62 = vld [vmem:[#allocation7 + $0x638] ss:$24 sps:$4 sm:$0xff]  }
0x156f   :  { %8707 = vmatprep.subr.bf16.mxu0 %v17681_v63  ;;  %v17762_v63 = vld [vmem:[#allocation7 + $0x66c] ss:$24 sps:$4 sm:$0xff]  }
0x1572   :  { %8708 = vmatpush1.bf16.msra.mxu0 %v17679_v0  ;;  %v17757_v0 = vld [vmem:[#allocation5 + $0x5a8] ss:$24 sps:$4 sm:$0xff]  }
0x1573   :  { %8709 = vmatprep.subr.bf16.mxu0 %v17687_v2  ;;  %v17765_v2 = vld [vmem:[#allocation5 + $0x5dc] ss:$24 sps:$4 sm:$0xff]  }
0x1576   :  { %8710 = vmatpush1.bf16.msra.mxu0 %v17685_v3  ;;  %v17760_v3 = vld [vmem:[#allocation7 + $0x668] ss:$24 sps:$4 sm:$0xff]  }
0x1577   :  { %8711 = vmatprep.subr.bf16.mxu0 %v17690_v7  ;;  %v17763_v7 = vld [vmem:[#allocation5 + $0x5d8] ss:$24 sps:$4 sm:$0xff]  }
0x157a   :  { %8712 = vmatpush1.bf16.msra.mxu0 %v17688_v6  ;;  %v17768_v6 = vld [vmem:[#allocation7 + $0x69c] ss:$24 sps:$4 sm:$0xff]  }
0x157b   :  { %8787 = vmatprep.subr.bf16.mxu0 %v17693_v8  ;;  %v17771_v8 = vld [vmem:[#allocation5 + $0x60c] ss:$24 sps:$4 sm:$0xff]  }
0x1634   :  { %v8404_v11 = vpop.f32.mrb[52].mxu0 }
0x1635   :  { %v16211_v12 = vpop.f32.mrb[53].mxu0 }
0x1636   :  { %v17769_v12 = vld [vmem:[#allocation5 + $0x608] ss:$24 sps:$4 sm:$0xff]  }
0x1638   :  { %v8477_v13 = vpop.f32.mrb[54].mxu0 }
0x1639   :  { %v8481_v10 = vpack.c.bf16 %v8477_v13, %v8404_v11  ;;  %v16216_v17 = vpop.f32.mrb[55].mxu0  ;;  %v17774_v11 = vld [vmem:[#allocation7 + $0x5b4] ss:$24 sps:$4 sm:$0xff]  }
0x163a   :  { %v17777_v13 = vld [vmem:[#allocation5 + $0x63c] ss:$24 sps:$4 sm:$0xff]   ;;  %v17783_v17 = vld [vmem:[#allocation5 + $0x66c] ss:$24 sps:$4 sm:$0xff]  }
0x163b   :  { %15465 = vmatmul.mubr.msk.bf16.vlgmr.msra.gmra.mrb[16].mxu0 %vm1273_vm1, %v8481_v10  ;;  %15466 = vmatmul.mubr.msk.bf16.vlgmr.msra.gmra.mrb[24].mxu1 %vm1273_vm1, %v8481_v10 }
0x163c   :  { %8788 = vmatpush1.bf16.msra.mxu0 %v17691_v14  ;;  %9416 = vmatpush1.bf16.xpose.msra.mxu1 %v17694_v15  ;;  %v17772_v14 = vld [vmem:[#allocation7 + $0x5b0] ss:$24 sps:$4 sm:$0xff]   ;;  %v17780_v15 = vld [vmem:[#allocation7 + $0x5e4] ss:$24 sps:$4 sm:$0xff]  }
0x163d   :  { %8789 = vmatprep.subr.bf16.mxu0 %v17699_v18  ;;  %9417 = vmatprep.subr.bf16.mxu1 %v17705_v19  ;;  %v17778_v18 = vld [vmem:[#allocation7 + $0x5e0] ss:$24 sps:$4 sm:$0xff]   ;;  %v17786_v19 = vld [vmem:[#allocation7 + $0x614] ss:$24 sps:$4 sm:$0xff]  }
0x163e   :  { %8819 = vmatprep.mubr.bf16.mxu0 %v18844_v5  ;;  %9447 = vmatprep.mubr.bf16.mxu1 %v19108_v16 }
0x1640   :  { %8790 = vmatpush1.bf16.msra.mxu0 %v17697_v20  ;;  %v17781_v20 = vld [vmem:[#allocation5 + $0x668] ss:$24 sps:$4 sm:$0xff]  }
0x1641   :  { %8791 = vmatprep.subr.bf16.mxu0 %v17702_v21  ;;  %v17789_v21 = vld [vmem:[#allocation5 + $0x69c] ss:$24 sps:$4 sm:$0xff]  }
0x1644   :  { %8792 = vmatpush1.bf16.msra.mxu0 %v17700_v22  ;;  %9418 = vmatpush1.bf16.xpose.msra.mxu1 %v17703_v23  ;;  %v17784_v22 = vld [vmem:[#allocation7 + $0x610] ss:$24 sps:$4 sm:$0xff]   ;;  %v17792_v23 = vld [vmem:[#allocation7 + $0x644] ss:$24 sps:$4 sm:$0xff]  }
0x1645   :  { %8793 = vmatprep.subr.bf16.mxu0 %v17708_v24  ;;  %9419 = vmatprep.subr.bf16.mxu1 %v17714_v25  ;;  %v17787_v24 = vld [vmem:[#allocation5 + $0x698] ss:$24 sps:$4 sm:$0xff]   ;;  %v17795_v25 = vld [vmem:[#allocation5 + $0x5b4] ss:$24 sps:$4 sm:$0xff]  }
0x1648   :  { %8794 = vmatpush1.bf16.msra.mxu0 %v17706_v39  ;;  %v17790_v39 = vld [vmem:[#allocation7 + $0x640] ss:$24 sps:$4 sm:$0xff]  }
0x1649   :  { %8795 = vmatprep.subr.bf16.mxu0 %v17711_v28  ;;  %v17798_v28 = vld [vmem:[#allocation7 + $0x674] ss:$24 sps:$4 sm:$0xff]  }
0x164c   :  { %8796 = vmatpush1.bf16.msra.mxu0 %v17709_v29  ;;  %9420 = vmatpush1.bf16.xpose.msra.mxu1 %v17712_v30  ;;  %v17793_v29 = vld [vmem:[#allocation5 + $0x5b0] ss:$24 sps:$4 sm:$0xff]   ;;  %v17801_v30 = vld [vmem:[#allocation5 + $0x5e4] ss:$24 sps:$4 sm:$0xff]  }
0x164d   :  { %8797 = vmatprep.subr.bf16.mxu0 %v17717_v31  ;;  %9421 = vmatprep.subr.bf16.mxu1 %v17720_v32  ;;  %v17796_v31 = vld [vmem:[#allocation7 + $0x670] ss:$24 sps:$4 sm:$0xff]   ;;  %v17804_v32 = vld [vmem:[#allocation7 + $0x6a4] ss:$24 sps:$4 sm:$0xff]  }
0x1650   :  { %8798 = vmatpush1.bf16.msra.mxu0 %v17715_v34  ;;  %v17799_v34 = vld [vmem:[#allocation5 + $0x5e0] ss:$24 sps:$4 sm:$0xff]  }
0x1651   :  { %9067 = vmatprep.subr.bf16.mxu0 %v17723_v35  ;;  %v17807_v35 = vld [vmem:[#allocation5 + $0x614] ss:$24 sps:$4 sm:$0xff]  }
0x1653   :  { %15467 = vmatmul.mubr.msk.bf16.vlgmr.msra.gmra.mrb[20].mxu0 %vm1273_vm1, %v8481_v10  ;;  %v17775_v10 = vld [vmem:[#allocation5 + $0x638] ss:$24 sps:$4 sm:$0xff]  }
0x1654   :  { %9422 = vmatpush1.bf16.xpose.msra.mxu1 %v17718_v36  ;;  %9099 = vmatprep.mubr.bf16.mxu0 %v19108_v16  ;;  %v17802_v36 = vld [vmem:[#allocation7 + $0x6a0] ss:$24 sps:$4 sm:$0xff]  }
0x1655   :  { %9423 = vmatprep.subr.bf16.mxu1 %v17726_v37  ;;  %v17805_v37 = vld [vmem:[#allocation5 + $0x610] ss:$24 sps:$4 sm:$0xff]  }
0x1659   :  { %9068 = vmatpush1.bf16.xpose.msra.mxu0 %v17721_v40  ;;  %v17810_v40 = vld [vmem:[#allocation5 + $0x644] ss:$24 sps:$4 sm:$0xff]  }
0x165a   :  { %9069 = vmatprep.subr.bf16.mxu0 %v17729_v41  ;;  %v17808_v41 = vld [vmem:[#allocation5 + $0x640] ss:$24 sps:$4 sm:$0xff]  }
0x165c   :  { %9424 = vmatpush1.bf16.xpose.msra.mxu1 %v17724_v42  ;;  %v17813_v42 = vld [vmem:[#allocation5 + $0x674] ss:$24 sps:$4 sm:$0xff]  }
0x165d   :  { %9425 = vmatprep.subr.bf16.mxu1 %v17732_v43  ;;  %v17811_v43 = vld [vmem:[#allocation5 + $0x670] ss:$24 sps:$4 sm:$0xff]  }
0x1661   :  { %9070 = vmatpush1.bf16.xpose.msra.mxu0 %v17727_v44  ;;  %v17816_v44 = vld [vmem:[#allocation5 + $0x6a4] ss:$24 sps:$4 sm:$0xff]  }
0x1662   :  { %9071 = vmatprep.subr.bf16.mxu0 %v17735_v45  ;;  %v17814_v45 = vld [vmem:[#allocation5 + $0x6a0] ss:$24 sps:$4 sm:$0xff]  }
0x1664   :  { %9426 = vmatpush1.bf16.xpose.msra.mxu1 %v17730_v46  ;;  %v17817_v46 = vld [vmem:[#allocation8 + $0x5a0] ss:$24 sps:$4 sm:$0xff]  }
0x1665   :  { %9456 = vmatprep.subr.bf16.mxu1 %v17738_v47  ;;  %v17819_v47 = vld [vmem:[#allocation8 + $0x5a4] ss:$24 sps:$4 sm:$0xff]  }
0x1669   :  { %9072 = vmatpush1.bf16.xpose.msra.mxu0 %v17733_v48  ;;  %v17822_v48 = vld [vmem:[#allocation8 + $0x5d4] ss:$24 sps:$4 sm:$0xff]  }
0x166a   :  { %9073 = vmatprep.subr.bf16.mxu0 %v17741_v49  ;;  %v17820_v49 = vld [vmem:[#allocation8 + $0x5d0] ss:$24 sps:$4 sm:$0xff]  }
0x166b   :  { %9448 = vmatmul.mubr.bf16.vlgmr.msra.gmra.mrb[56].mxu1 %v19112_v33 }
0x166c   :  { %9457 = vmatpush1.bf16.xpose.msra.mxu1 %v17736_v50  ;;  %9488 = vmatprep.mubr.bf16.mxu1 %v19114_v38  ;;  %v17825_v50 = vld [vmem:[#allocation8 + $0x604] ss:$24 sps:$4 sm:$0xff]  }
0x166d   :  { %9458 = vmatprep.subr.bf16.mxu1 %v17744_v51  ;;  %v17823_v51 = vld [vmem:[#allocation8 + $0x600] ss:$24 sps:$4 sm:$0xff]  }
0x1671   :  { %9074 = vmatpush1.bf16.xpose.msra.mxu0 %v17739_v52  ;;  %v17828_v52 = vld [vmem:[#allocation8 + $0x634] ss:$24 sps:$4 sm:$0xff]  }
0x1672   :  { %9075 = vmatprep.subr.bf16.mxu0 %v17747_v53  ;;  %v17826_v53 = vld [vmem:[#allocation8 + $0x630] ss:$24 sps:$4 sm:$0xff]  }
0x1674   :  { %9459 = vmatpush1.bf16.xpose.msra.mxu1 %v17742_v54  ;;  %v17831_v54 = vld [vmem:[#allocation8 + $0x664] ss:$24 sps:$4 sm:$0xff]  }
0x1675   :  { %9460 = vmatprep.subr.bf16.mxu1 %v17750_v55  ;;  %v17829_v55 = vld [vmem:[#allocation8 + $0x660] ss:$24 sps:$4 sm:$0xff]  }
0x1679   :  { %9076 = vmatpush1.bf16.xpose.msra.mxu0 %v17745_v56  ;;  %v17834_v56 = vld [vmem:[#allocation8 + $0x694] ss:$24 sps:$4 sm:$0xff]  }
0x167a   :  { %9077 = vmatprep.subr.bf16.mxu0 %v17753_v57  ;;  %v17832_v57 = vld [vmem:[#allocation8 + $0x690] ss:$24 sps:$4 sm:$0xff]  }
0x167c   :  { %9461 = vmatpush1.bf16.xpose.msra.mxu1 %v17748_v58  ;;  %v17837_v58 = vld [vmem:[#allocation8 + $0x5ac] ss:$24 sps:$4 sm:$0xff]  }
0x167d   :  { %9462 = vmatprep.subr.bf16.mxu1 %v17756_v59  ;;  %v17835_v59 = vld [vmem:[#allocation8 + $0x5a8] ss:$24 sps:$4 sm:$0xff]  }
0x1681   :  { %9078 = vmatpush1.bf16.xpose.msra.mxu0 %v17751_v60  ;;  %v17840_v60 = vld [vmem:[#allocation8 + $0x5dc] ss:$24 sps:$4 sm:$0xff]  }
0x1682   :  { %9108 = vmatprep.subr.bf16.mxu0 %v17759_v61  ;;  %v17838_v61 = vld [vmem:[#allocation8 + $0x5d8] ss:$24 sps:$4 sm:$0xff]  }
0x1684   :  { %9463 = vmatpush1.bf16.xpose.msra.mxu1 %v17754_v62  ;;  %v17843_v62 = vld [vmem:[#allocation8 + $0x60c] ss:$24 sps:$4 sm:$0xff]  }
0x1685   :  { %9464 = vmatprep.subr.bf16.mxu1 %v17762_v63  ;;  %v17841_v63 = vld [vmem:[#allocation8 + $0x608] ss:$24 sps:$4 sm:$0xff]  }
0x1688   :  { %9100 = vmatmul.mubr.bf16.vlgmr.msra.gmra.mrb[56].mxu0 %v19112_v33 }
0x1689   :  { %9109 = vmatpush1.bf16.xpose.msra.mxu0 %v17757_v0  ;;  %9140 = vmatprep.mubr.bf16.mxu0 %v19114_v38  ;;  %v17846_v0 = vld [vmem:[#allocation8 + $0x63c] ss:$24 sps:$4 sm:$0xff]  }
0x168a   :  { %9110 = vmatprep.subr.bf16.mxu0 %v17765_v2  ;;  %v17844_v2 = vld [vmem:[#allocation8 + $0x638] ss:$24 sps:$4 sm:$0xff]  }
0x168c   :  { %9465 = vmatpush1.bf16.xpose.msra.mxu1 %v17760_v3  ;;  %v17849_v3 = vld [vmem:[#allocation8 + $0x66c] ss:$24 sps:$4 sm:$0xff]  }
0x168d   :  { %9466 = vmatprep.subr.bf16.mxu1 %v17768_v6  ;;  %v17847_v6 = vld [vmem:[#allocation8 + $0x668] ss:$24 sps:$4 sm:$0xff]  }
0x1691   :  { %9111 = vmatpush1.bf16.xpose.msra.mxu0 %v17763_v7  ;;  %v17852_v7 = vld [vmem:[#allocation8 + $0x69c] ss:$24 sps:$4 sm:$0xff]  }
0x1692   :  { %9112 = vmatprep.subr.bf16.mxu0 %v17771_v8  ;;  %v17850_v8 = vld [vmem:[#allocation8 + $0x698] ss:$24 sps:$4 sm:$0xff]  }
0x1694   :  { %9467 = vmatpush1.bf16.xpose.msra.mxu1 %v17766_v9  ;;  %v17855_v9 = vld [vmem:[#allocation8 + $0x5b4] ss:$24 sps:$4 sm:$0xff]  }
0x1695   :  { %9497 = vmatprep.subr.bf16.mxu1 %v17774_v11  ;;  %v15505_v11 = vld [vmem:[#allocation11 + $0x5] ss:$0 sm:$0xff] }
0x1699   :  { %9113 = vmatpush1.bf16.xpose.msra.mxu0 %v17769_v12 }
0x169a   :  { %9114 = vmatprep.subr.bf16.mxu0 %v17777_v13 }
0x169b   :  { %9489 = vmatmul.mubr.bf16.vlgmr.msra.gmra.mrb[56].mxu1 %v19120_v1 }
0x169c   :  { %9498 = vmatpush1.bf16.xpose.msra.mxu1 %v17772_v14  ;;  %9529 = vmatprep.mubr.bf16.mxu1 %v19122_v4 }
0x169d   :  { %9499 = vmatprep.subr.bf16.mxu1 %v17780_v15 }
0x16a1   :  { %9115 = vmatpush1.bf16.xpose.msra.mxu0 %v17775_v10 }
0x16a2   :  { %9116 = vmatprep.subr.bf16.mxu0 %v17783_v17  ;;  %v17853_v17 = vld [vmem:[#allocation8 + $0x5b0] ss:$24 sps:$4 sm:$0xff]  }
0x16a4   :  { %9500 = vmatpush1.bf16.xpose.msra.mxu1 %v17778_v18  ;;  %v17858_v18 = vld [vmem:[#allocation8 + $0x5e4] ss:$24 sps:$4 sm:$0xff]  }
0x16a5   :  { %9501 = vmatprep.subr.bf16.mxu1 %v17786_v19  ;;  %v17856_v19 = vld [vmem:[#allocation8 + $0x5e0] ss:$24 sps:$4 sm:$0xff]  }
0x16a9   :  { %9117 = vmatpush1.bf16.xpose.msra.mxu0 %v17781_v20  ;;  %v17861_v20 = vld [vmem:[#allocation8 + $0x614] ss:$24 sps:$4 sm:$0xff]  }
0x16aa   :  { %9118 = vmatprep.subr.bf16.mxu0 %v17789_v21  ;;  %v17859_v21 = vld [vmem:[#allocation8 + $0x610] ss:$24 sps:$4 sm:$0xff]  }
0x16ac   :  { %9502 = vmatpush1.bf16.xpose.msra.mxu1 %v17784_v22  ;;  %v17864_v22 = vld [vmem:[#allocation8 + $0x644] ss:$24 sps:$4 sm:$0xff]  }
0x16ad   :  { %9503 = vmatprep.subr.bf16.mxu1 %v17792_v23  ;;  %v15468_v23 = vld [vmem:[#allocation10 + $0x5] ss:$0 sm:$0xff] }
0x16b1   :  { %9119 = vmatpush1.bf16.xpose.msra.mxu0 %v17787_v24  ;;  %v17862_v24 = vld [vmem:[#allocation8 + $0x640] ss:$24 sps:$4 sm:$0xff]  }
0x16b2   :  { %9149 = vmatprep.subr.bf16.mxu0 %v17795_v25  ;;  %v17867_v25 = vld [vmem:[#allocation8 + $0x674] ss:$24 sps:$4 sm:$0xff]  }
0x16b4   :  { %9504 = vmatpush1.bf16.xpose.msra.mxu1 %v17790_v39 }
0x16b5   :  { %9505 = vmatprep.subr.bf16.mxu1 %v17798_v28 }
0x16b8   :  { %9141 = vmatmul.mubr.bf16.vlgmr.msra.gmra.mrb[56].mxu0 %v19120_v1 }
0x16b9   :  { %9150 = vmatpush1.bf16.xpose.msra.mxu0 %v17793_v29  ;;  %9181 = vmatprep.mubr.bf16.mxu0 %v19122_v4 }
0x16ba   :  { %9151 = vmatprep.subr.bf16.mxu0 %v17801_v30 }
0x16bc   :  { %9506 = vmatpush1.bf16.xpose.msra.mxu1 %v17796_v31 }
0x16bd   :  { %9507 = vmatprep.subr.bf16.mxu1 %v17804_v32 }
0x16c1   :  { %9152 = vmatpush1.bf16.xpose.msra.mxu0 %v17799_v34 }
0x16c2   :  { %9153 = vmatprep.subr.bf16.mxu0 %v17807_v35  ;;  %v17865_v35 = vld [vmem:[#allocation8 + $0x670] ss:$24 sps:$4 sm:$0xff]  }
0x16c4   :  { %9508 = vmatpush1.bf16.xpose.msra.mxu1 %v17802_v36  ;;  %v17870_v36 = vld [vmem:[#allocation8 + $0x6a4] ss:$24 sps:$4 sm:$0xff]  }
0x16c5   :  { %16217 = vmatprep.subr.mxu1 %v18842_v27 }
0x16c9   :  { %9154 = vmatpush1.bf16.xpose.msra.mxu0 %v17805_v37  ;;  %v17868_v37 = vld [vmem:[#allocation8 + $0x6a0] ss:$24 sps:$4 sm:$0xff]  }
0x16ca   :  { %9155 = vmatprep.subr.bf16.mxu0 %v17810_v40 }
0x16cb   :  { %9530 = vmatmul.mubr.bf16.vlgmr.msra.gmra.mrb[56].mxu1 %v19128_v26 }
0x16cc   :  { %16219 = vmatprep.mubr.msk.f32.mxu1 %vm18843_vm0, %v18842_v27 }
0x16d1   :  { %9156 = vmatpush1.bf16.xpose.msra.mxu0 %v17808_v41 }
0x16d2   :  { %9157 = vmatprep.subr.bf16.mxu0 %v17813_v42 }
0x16d9   :  { %9158 = vmatpush1.bf16.xpose.msra.mxu0 %v17811_v43 }
0x16da   :  { %9159 = vmatprep.subr.bf16.mxu0 %v17816_v44 }
0x16e1   :  { %9160 = vmatpush1.bf16.xpose.msra.mxu0 %v17814_v45 }
0x16e2   :  { %9763 = vmatprep.subr.bf16.mxu0 %v17819_v47 }
0x16e8   :  { %9182 = vmatmul.mubr.bf16.vlgmr.msra.gmra.mrb[56].mxu0 %v19128_v26 }
0x16e9   :  { %9795 = vmatprep.mubr.bf16.mxu0 %v19108_v16  ;;  %9764 = vmatpush1.bf16.xpose.msra.mxu0 %v17817_v46 }
0x16ea   :  { %9765 = vmatprep.subr.bf16.mxu0 %v17822_v48  ;;  %v15542_v48 = vld [vmem:[#allocation13 + $0x5] ss:$0 sm:$0xff] }
0x16f1   :  { %9766 = vmatpush1.bf16.xpose.msra.mxu0 %v17820_v49 }
0x16f2   :  { %9767 = vmatprep.subr.bf16.mxu0 %v17825_v50 }
0x16f9   :  { %9768 = vmatpush1.bf16.xpose.msra.mxu0 %v17823_v51 }
0x16fa   :  { %9769 = vmatprep.subr.bf16.mxu0 %v17828_v52 }
0x1701   :  { %9770 = vmatpush1.bf16.xpose.msra.mxu0 %v17826_v53 }
0x1702   :  { %9771 = vmatprep.subr.bf16.mxu0 %v17831_v54 }
0x1709   :  { %9772 = vmatpush1.bf16.xpose.msra.mxu0 %v17829_v55 }
0x170a   :  { %9773 = vmatprep.subr.bf16.mxu0 %v17834_v56 }
0x1711   :  { %9774 = vmatpush1.bf16.xpose.msra.mxu0 %v17832_v57 }
0x1712   :  { %9804 = vmatprep.subr.bf16.mxu0 %v17837_v58 }
0x1718   :  { %9796 = vmatmul.mubr.bf16.vlgmr.msra.gmra.mrb[60].mxu0 %v19112_v33 }
0x1719   :  { %9805 = vmatpush1.bf16.xpose.msra.mxu0 %v17835_v59  ;;  %9836 = vmatprep.mubr.bf16.mxu0 %v19114_v38 }
0x171a   :  { %9806 = vmatprep.subr.bf16.mxu0 %v17840_v60 }
0x1721   :  { %9807 = vmatpush1.bf16.xpose.msra.mxu0 %v17838_v61 }
0x1722   :  { %9808 = vmatprep.subr.bf16.mxu0 %v17843_v62 }
0x1729   :  { %9809 = vmatpush1.bf16.xpose.msra.mxu0 %v17841_v63 }
0x172a   :  { %9810 = vmatprep.subr.bf16.mxu0 %v17846_v0 }
0x1731   :  { %9811 = vmatpush1.bf16.xpose.msra.mxu0 %v17844_v2  ;;  %v17877_v2 = vld [vmem:[#allocation14 + $0x5a0] ss:$24 sps:$4 sm:$0xff]  }
0x1732   :  { %9812 = vmatprep.subr.bf16.mxu0 %v17849_v3  ;;  %v17879_v3 = vld [vmem:[#allocation14 + $0x5a4] ss:$24 sps:$4 sm:$0xff]  }
0x1739   :  { %9813 = vmatpush1.bf16.xpose.msra.mxu0 %v17847_v6  ;;  %v17883_v6 = vld [vmem:[#allocation14 + $0x5d0] ss:$24 sps:$4 sm:$0xff]  }
0x173a   :  { %9814 = vmatprep.subr.bf16.mxu0 %v17852_v7  ;;  %v17885_v7 = vld [vmem:[#allocation14 + $0x5d4] ss:$24 sps:$4 sm:$0xff]  }
0x1741   :  { %9815 = vmatpush1.bf16.xpose.msra.mxu0 %v17850_v8  ;;  %v17889_v8 = vld [vmem:[#allocation14 + $0x600] ss:$24 sps:$4 sm:$0xff]  }
0x1742   :  { %9845 = vmatprep.subr.bf16.mxu0 %v17855_v9  ;;  %v17891_v9 = vld [vmem:[#allocation14 + $0x604] ss:$24 sps:$4 sm:$0xff]  }
0x1748   :  { %9837 = vmatmul.mubr.bf16.vlgmr.msra.gmra.mrb[60].mxu0 %v19120_v1 }
0x1749   :  { %9846 = vmatpush1.bf16.xpose.msra.mxu0 %v17853_v17  ;;  %9877 = vmatprep.mubr.bf16.mxu0 %v19122_v4 }
0x174a   :  { %9847 = vmatprep.subr.bf16.mxu0 %v17858_v18 }
0x1751   :  { %9848 = vmatpush1.bf16.xpose.msra.mxu0 %v17856_v19  ;;  %v17873_v19 = vld [vmem:[#allocation14 + $0x5ac] ss:$24 sps:$4 sm:$0xff]  }
0x1752   :  { %9849 = vmatprep.subr.bf16.mxu0 %v17861_v20 }
0x1759   :  { %9850 = vmatpush1.bf16.xpose.msra.mxu0 %v17859_v21  ;;  %v17871_v21 = vld [vmem:[#allocation14 + $0x5a8] ss:$24 sps:$4 sm:$0xff]  }
0x175a   :  { %9851 = vmatprep.subr.bf16.mxu0 %v17864_v22 }
0x1761   :  { %9852 = vmatpush1.bf16.xpose.msra.mxu0 %v17862_v24  ;;  %v17874_v24 = vld [vmem:[#allocation14 + $0x5d8] ss:$24 sps:$4 sm:$0xff]  }
0x1762   :  { %9853 = vmatprep.subr.bf16.mxu0 %v17867_v25  ;;  %v17882_v25 = vld [vmem:[#allocation14 + $0x60c] ss:$24 sps:$4 sm:$0xff]  }
0x1769   :  { %9854 = vmatpush1.bf16.xpose.msra.mxu0 %v17865_v35  ;;  %v17904_v35 = vld [vmem:[#allocation14 + $0x690] ss:$24 sps:$4 sm:$0xff]  }
0x176a   :  { %9855 = vmatprep.subr.bf16.mxu0 %v17870_v36  ;;  %v17906_v36 = vld [vmem:[#allocation14 + $0x694] ss:$24 sps:$4 sm:$0xff]  }
0x1771   :  { %9856 = vmatpush1.bf16.xpose.msra.mxu0 %v17868_v37  ;;  %v17909_v37 = vld [vmem:[#allocation14 + $0x5b4] ss:$24 sps:$4 sm:$0xff]  }
0x1772   :  { %10428 = vmatprep.subr.bf16.mxu0 %v17879_v3  ;;  %v17937_v3 = vld [vmem:[#allocation7 + $0x6c0] ss:$24 sps:$4 sm:$0xff]  }
0x1778   :  { %9878 = vmatmul.mubr.bf16.vlgmr.msra.gmra.mrb[60].mxu0 %v19128_v26 }
0x1779   :  { %10460 = vmatprep.mubr.bf16.mxu0 %v18844_v5  ;;  %10429 = vmatpush1.bf16.msra.mxu0 %v17877_v2  ;;  %v17942_v2 = vld [vmem:[#allocation5 + $0x784] ss:$24 sps:$4 sm:$0xff]  }
0x177a   :  { %10430 = vmatprep.subr.bf16.mxu0 %v17885_v7  ;;  %v17940_v7 = vld [vmem:[#allocation5 + $0x780] ss:$24 sps:$4 sm:$0xff]  }
0x177d   :  { %10431 = vmatpush1.bf16.msra.mxu0 %v17883_v6  ;;  %v17945_v6 = vld [vmem:[#allocation7 + $0x6f4] ss:$24 sps:$4 sm:$0xff]  }
0x177e   :  { %10432 = vmatprep.subr.bf16.mxu0 %v17891_v9  ;;  %v17943_v9 = vld [vmem:[#allocation7 + $0x6f0] ss:$24 sps:$4 sm:$0xff]  }
0x1781   :  { %10433 = vmatpush1.bf16.msra.mxu0 %v17889_v8  ;;  %v17948_v8 = vld [vmem:[#allocation5 + $0x7b4] ss:$24 sps:$4 sm:$0xff]  }
0x179e   :  { %v9531_v12 = vpop.f32.mrb[56].mxu1 }
0x179f   :  { %v16309_v13 = vadd.f32 %v15505_v11, %v9531_v12  ;;  %v9533_v14 = vpop.f32.mrb[57].mxu1  ;;  %v17897_v12 = vld [vmem:[#allocation14 + $0x634] ss:$24 sps:$4 sm:$0xff]  }
0x17a0   :  { %v9534_v15 = vpop.f32.mrb[58].mxu1  ;;  %10434 = vmatprep.subr.bf16.mxu0 %v17897_v12  ;;  %v17903_v14 = vld [vmem:[#allocation14 + $0x664] ss:$24 sps:$4 sm:$0xff]   ;;  %v17946_v12 = vld [vmem:[#allocation5 + $0x7b0] ss:$24 sps:$4 sm:$0xff]  }
0x17a1   :  { %v9536_v10 = vpop.f32.mrb[59].mxu1  ;;  %16218 = vmatpush3.xpose.msk.msra.mxu1 %vm1273_vm1, %v16309_v13  ;;  %v16310_v30 = vadd.f32 %v15505_v11, %v9534_v15  ;;  %v17895_v11 = vld [vmem:[#allocation14 + $0x630] ss:$24 sps:$4 sm:$0xff]   ;;  %v17901_v13 = vld [vmem:[#allocation14 + $0x660] ss:$24 sps:$4 sm:$0xff]  }
0x17a2   :  { %16222 = vmatprep.subr.mxu1 %v18842_v27  ;;  %10435 = vmatpush1.bf16.msra.mxu0 %v17895_v11  ;;  %v17951_v11 = vld [vmem:[#allocation7 + $0x724] ss:$24 sps:$4 sm:$0xff]  }
0x17a3   :  { %10436 = vmatprep.subr.bf16.mxu0 %v17903_v14  ;;  %v17949_v14 = vld [vmem:[#allocation7 + $0x720] ss:$24 sps:$4 sm:$0xff]  }
0x17a6   :  { %10437 = vmatpush1.bf16.msra.mxu0 %v17901_v13  ;;  %v17954_v13 = vld [vmem:[#allocation5 + $0x6cc] ss:$24 sps:$4 sm:$0xff]  }
0x17a7   :  { %10438 = vmatprep.subr.bf16.mxu0 %v17906_v36  ;;  %v17979_v36 = vld [vmem:[#allocation7 + $0x6f8] ss:$24 sps:$4 sm:$0xff]  }
0x17aa   :  { %10439 = vmatpush1.bf16.msra.mxu0 %v17904_v35  ;;  %v17984_v35 = vld [vmem:[#allocation5 + $0x7bc] ss:$24 sps:$4 sm:$0xff]  }
0x17ab   :  { %10514 = vmatprep.subr.bf16.mxu0 %v17909_v37  ;;  %v17987_v37 = vld [vmem:[#allocation7 + $0x72c] ss:$24 sps:$4 sm:$0xff]  }
0x17bb   :  { %v9183_v39 = vpop.f32.mrb[56].mxu0 }
0x17bc   :  { %v16307_v28 = vadd.f32 %v15468_v23, %v9183_v39  ;;  %v9185_v29 = vpop.f32.mrb[57].mxu0  ;;  %v17880_v39 = vld [vmem:[#allocation14 + $0x608] ss:$24 sps:$4 sm:$0xff]  }
0x17bd   :  { %v9186_v31 = vpop.f32.mrb[58].mxu0  ;;  %v17886_v29 = vld [vmem:[#allocation14 + $0x638] ss:$24 sps:$4 sm:$0xff]  }
0x17be   :  { %v9188_v32 = vpop.f32.mrb[59].mxu0  ;;  %16220 = vmatmul.mubr.msk.f32.vlgmr.msra.gmra.mrb[60].mxu1 %vm1273_vm1, %v16307_v28  ;;  %v16308_v34 = vadd.f32 %v15468_v23, %v9186_v31  ;;  %v17876_v23 = vld [vmem:[#allocation14 + $0x5dc] ss:$24 sps:$4 sm:$0xff]   ;;  %v17892_v31 = vld [vmem:[#allocation14 + $0x668] ss:$24 sps:$4 sm:$0xff]  }
0x17bf   :  { %16223 = vmatpush3.xpose.msk.msra.mxu1 %vm1273_vm1, %v16310_v30  ;;  %16224 = vmatprep.mubr.msk.f32.mxu1 %vm18843_vm0, %v18842_v27  ;;  %v17888_v28 = vld [vmem:[#allocation14 + $0x63c] ss:$24 sps:$4 sm:$0xff]   ;;  %v17894_v30 = vld [vmem:[#allocation14 + $0x66c] ss:$24 sps:$4 sm:$0xff]  }
0x17c0   :  { %16227 = vmatprep.subr.mxu1 %v18842_v27  ;;  %v17900_v32 = vld [vmem:[#allocation14 + $0x69c] ss:$24 sps:$4 sm:$0xff]  }
0x17c2   :  { %16225 = vmatmul.mubr.msk.f32.vlgmr.msra.gmra.mrb[62].mxu1 %vm1273_vm1, %v16308_v34  ;;  %v17898_v34 = vld [vmem:[#allocation14 + $0x698] ss:$24 sps:$4 sm:$0xff]  }
0x17c3   :  { %16229 = vmatprep.mubr.msk.f32.mxu1 %vm18843_vm0, %v18842_v27 }
0x184b   :  { %v9879_v49 = vpop.f32.mrb[60].mxu0 }
0x184c   :  { %v16311_v50 = vadd.f32 %v15542_v48, %v9879_v49  ;;  %v9881_v51 = vpop.f32.mrb[61].mxu0  ;;  %v17921_v49 = vld [vmem:[#allocation5 + $0x6f4] ss:$24 sps:$4 sm:$0xff]  }
0x184d   :  { %v9882_v52 = vpop.f32.mrb[62].mxu0  ;;  %v17918_v51 = vld [vmem:[#allocation14 + $0x614] ss:$24 sps:$4 sm:$0xff]  }
0x184e   :  { %v16312_v53 = vadd.f32 %v15542_v48, %v9882_v52  ;;  %v9884_v54 = vpop.f32.mrb[63].mxu0  ;;  %16228 = vmatpush3.msra.mxu1 %v16311_v50  ;;  %v17915_v48 = vld [vmem:[#allocation14 + $0x5e4] ss:$24 sps:$4 sm:$0xff]   ;;  %v17913_v50 = vld [vmem:[#allocation14 + $0x5e0] ss:$24 sps:$4 sm:$0xff]  }
0x184f   :  { %16232 = vmatprep.subr.mxu1 %v18842_v27  ;;  %v17916_v52 = vld [vmem:[#allocation14 + $0x610] ss:$24 sps:$4 sm:$0xff]   ;;  %v17924_v54 = vld [vmem:[#allocation14 + $0x644] ss:$24 sps:$4 sm:$0xff]  }
0x1891   :  { %v9958_v40 = vpop.f32.mrb[60].mxu1 }
0x1892   :  { %v10038_v41 = vmul.f32 0.10206208, %v9958_v40  ;;  %v16221_v42 = vpop.f32.mrb[61].mxu1  ;;  %v17912_v40 = vld [vmem:[#allocation5 + $0x6c4] ss:$24 sps:$4 sm:$0xff]  }
0x1894   :  { %v10040_v43 = vsel %vm1428_vm2, %v10038_v41, -inf }
0x1895   :  { %10041 = vmax.xlane.f32.xlu0 %v10040_v43  ;;  %v10034_v44 = vpop.f32.mrb[62].mxu1 }
0x1896   :  { %v10039_v45 = vmul.f32 0.10206208, %v10034_v44  ;;  %v16226_v46 = vpop.f32.mrb[63].mxu1  ;;  %v17907_v44 = vld [vmem:[#allocation14 + $0x5b0] ss:$24 sps:$4 sm:$0xff]  }
0x1898   :  { %v10043_v47 = vsel %vm1428_vm2, %v10039_v45, -inf }
0x1899   :  { %10044 = vmax.xlane.f32.xlu1 %v10043_v47 }
0x1922   :  { %v10042_v55 = vpop.xlane.xlu0 %10041 }
0x1923   :  { %v10046_v56 = vsub.f32 %v10038_v41, %v10042_v55  ;;  %v17930_v55 = vld [vmem:[#allocation5 + $0x724] ss:$24 sps:$4 sm:$0xff]  }
0x1925   :  { %v10048_v57 = vmul.f32 1.442695, %v10046_v56  ;;  %v17922_v56 = vld [vmem:[#allocation14 + $0x640] ss:$24 sps:$4 sm:$0xff]  }
0x1926   :  { %v10045_v58 = vpop.xlane.xlu1 %10044 }
0x1927   :  { %18445 = vpow2.f32 %v10048_v57  ;;  %v10047_v59 = vsub.f32 %v10039_v45, %v10045_v58  ;;  %v17910_v45 = vld [vmem:[#allocation5 + $0x6c0] ss:$24 sps:$4 sm:$0xff]   ;;  %v17927_v57 = vld [vmem:[#allocation14 + $0x674] ss:$24 sps:$4 sm:$0xff]  }
0x1928   :  { %v17925_v58 = vld [vmem:[#allocation14 + $0x670] ss:$24 sps:$4 sm:$0xff]  }
0x1929   :  { %v10050_v60 = vmul.f32 1.442695, %v10047_v59  ;;  %v17928_v59 = vld [vmem:[#allocation5 + $0x720] ss:$24 sps:$4 sm:$0xff]  }
0x192b   :  { %18447 = vpow2.f32 %v10050_v60  ;;  %v17933_v60 = vld [vmem:[#allocation14 + $0x6a4] ss:$24 sps:$4 sm:$0xff]  }
0x1931   :  { %v18446_v61 = vpop.eup %18445 }
0x1932   :  { %v10052_v62 = vsel %vm1428_vm2, %v18446_v61, 0.0 }
0x1933   :  { %10053 = vadd.xlane.f32.xlu0 %v10052_v62  ;;  %v17931_v62 = vld [vmem:[#allocation14 + $0x6a0] ss:$24 sps:$4 sm:$0xff]  }
0x1935   :  { %v18448_v63 = vpop.eup %18447 }
0x1936   :  { %v10055_v0 = vsel %vm1428_vm2, %v18448_v63, 0.0 }
0x1937   :  { %10056 = vadd.xlane.f32.xlu1 %v10055_v0  ;;  %v17934_v0 = vld [vmem:[#allocation5 + $0x750] ss:$24 sps:$4 sm:$0xff]  }
0x19c0   :  { %v10054_v15 = vpop.xlane.xlu0 %10053 }
0x19c1   :  { %18449 = vrcp.f32 %v10054_v15  ;;  %v17957_v15 = vld [vmem:[#allocation7 + $0x754] ss:$24 sps:$4 sm:$0xff]  }
0x19c4   :  { %v10057_v10 = vpop.xlane.xlu1 %10056 }
0x19c5   :  { %18451 = vrcp.f32 %v10057_v10  ;;  %v17952_v10 = vld [vmem:[#allocation5 + $0x6c8] ss:$24 sps:$4 sm:$0xff]  }
0x19cb   :  { %v18450_v17 = vpop.eup %18449 }
0x19cc   :  { %v10060_v18 = vmul.f32 %v18450_v17, %v18446_v61  ;;  %v17936_v61 = vld [vmem:[#allocation5 + $0x754] ss:$24 sps:$4 sm:$0xff]  }
0x19cd   :  { %v17960_v17 = vld [vmem:[#allocation5 + $0x6fc] ss:$24 sps:$4 sm:$0xff]  }
0x19ce   :  { %16230 = vmatmul.mubr.msk.f32.vlgmr.msra.gmra.mrb[64].mxu1 %vm1428_vm2, %v10060_v18  ;;  %v17955_v18 = vld [vmem:[#allocation7 + $0x750] ss:$24 sps:$4 sm:$0xff]  }
0x19cf   :  { %v18452_v20 = vpop.eup %18451  ;;  %16233 = vmatpush3.msra.mxu1 %v16312_v53  ;;  %16234 = vmatprep.mubr.msk.f32.mxu1 %vm18843_vm0, %v18842_v27  ;;  %v17919_v53 = vld [vmem:[#allocation5 + $0x6f0] ss:$24 sps:$4 sm:$0xff]  }
0x19d0   :  { %v10061_v22 = vmul.f32 %v18452_v20, %v18448_v63  ;;  %10471 = vmatprep.subr.bf16.mxu1 %v17873_v19  ;;  %v17939_v63 = vld [vmem:[#allocation7 + $0x6c4] ss:$24 sps:$4 sm:$0xff]   ;;  %v17958_v20 = vld [vmem:[#allocation5 + $0x6f8] ss:$24 sps:$4 sm:$0xff]  }
0x19d1   :  { %v17963_v19 = vld [vmem:[#allocation7 + $0x784] ss:$24 sps:$4 sm:$0xff]  }
0x19d2   :  { %16235 = vmatmul.mubr.msk.f32.vlgmr.msra.gmra.mrb[66].mxu1 %vm1428_vm2, %v10061_v22  ;;  %v17961_v22 = vld [vmem:[#allocation7 + $0x780] ss:$24 sps:$4 sm:$0xff]  }
0x19d3   :  { %10472 = vmatpush1.bf16.msra.mxu1 %v17871_v21  ;;  %10503 = vmatprep.mubr.bf16.mxu1 %v18844_v5  ;;  %v17966_v21 = vld [vmem:[#allocation5 + $0x72c] ss:$24 sps:$4 sm:$0xff]  }
0x19d4   :  { %10473 = vmatprep.subr.bf16.mxu1 %v17876_v23  ;;  %v17969_v23 = vld [vmem:[#allocation7 + $0x7b4] ss:$24 sps:$4 sm:$0xff]  }
0x19d7   :  { %10474 = vmatpush1.bf16.msra.mxu1 %v17874_v24  ;;  %v17964_v24 = vld [vmem:[#allocation5 + $0x728] ss:$24 sps:$4 sm:$0xff]  }
0x19d8   :  { %10475 = vmatprep.subr.bf16.mxu1 %v17882_v25  ;;  %v17972_v25 = vld [vmem:[#allocation5 + $0x75c] ss:$24 sps:$4 sm:$0xff]  }
0x19db   :  { %10476 = vmatpush1.bf16.msra.mxu1 %v17880_v39  ;;  %v17967_v39 = vld [vmem:[#allocation7 + $0x7b0] ss:$24 sps:$4 sm:$0xff]  }
0x19dc   :  { %10477 = vmatprep.subr.bf16.mxu1 %v17888_v28  ;;  %v17975_v28 = vld [vmem:[#allocation7 + $0x6cc] ss:$24 sps:$4 sm:$0xff]  }
0x19df   :  { %10478 = vmatpush1.bf16.msra.mxu1 %v17886_v29  ;;  %v17970_v29 = vld [vmem:[#allocation5 + $0x758] ss:$24 sps:$4 sm:$0xff]  }
0x19e0   :  { %10479 = vmatprep.subr.bf16.mxu1 %v17894_v30  ;;  %v17978_v30 = vld [vmem:[#allocation5 + $0x78c] ss:$24 sps:$4 sm:$0xff]  }
0x19e3   :  { %10480 = vmatpush1.bf16.msra.mxu1 %v17892_v31  ;;  %v17973_v31 = vld [vmem:[#allocation7 + $0x6c8] ss:$24 sps:$4 sm:$0xff]  }
0x19e4   :  { %10481 = vmatprep.subr.bf16.mxu1 %v17900_v32  ;;  %v17981_v32 = vld [vmem:[#allocation7 + $0x6fc] ss:$24 sps:$4 sm:$0xff]  }
0x19e7   :  { %10482 = vmatpush1.bf16.msra.mxu1 %v17898_v34  ;;  %v17976_v34 = vld [vmem:[#allocation5 + $0x788] ss:$24 sps:$4 sm:$0xff]  }
0x19e8   :  { %10794 = vmatprep.subr.bf16.mxu1 %v17912_v40  ;;  %v17982_v40 = vld [vmem:[#allocation5 + $0x7b8] ss:$24 sps:$4 sm:$0xff]  }
0x1aa1   :  { %v10131_v41 = vpop.f32.mrb[64].mxu1 }
0x1aa2   :  { %v16231_v42 = vpop.f32.mrb[65].mxu1 }
0x1aa3   :  { %v17985_v42 = vld [vmem:[#allocation7 + $0x728] ss:$24 sps:$4 sm:$0xff]  }
0x1aa5   :  { %v10204_v43 = vpop.f32.mrb[66].mxu1 }
0x1aa6   :  { %v10208_v46 = vpack.c.bf16 %v10204_v43, %v10131_v41  ;;  %v16236_v47 = vpop.f32.mrb[67].mxu1  ;;  %v17990_v41 = vld [vmem:[#allocation5 + $0x6d4] ss:$24 sps:$4 sm:$0xff]  }
0x1aa7   :  { %v17993_v43 = vld [vmem:[#allocation7 + $0x75c] ss:$24 sps:$4 sm:$0xff]   ;;  %v17999_v47 = vld [vmem:[#allocation7 + $0x78c] ss:$24 sps:$4 sm:$0xff]  }
0x1aa8   :  { %15621 = vmatmul.mubr.msk.bf16.vlgmr.msra.gmra.mrb[16].mxu0 %vm1273_vm1, %v10208_v46  ;;  %15622 = vmatmul.mubr.msk.bf16.vlgmr.msra.gmra.mrb[24].mxu1 %vm1273_vm1, %v10208_v46 }
0x1aa9   :  { %10515 = vmatpush1.bf16.msra.mxu0 %v17907_v44  ;;  %10795 = vmatpush1.bf16.xpose.msra.mxu1 %v17910_v45  ;;  %v17988_v44 = vld [vmem:[#allocation5 + $0x6d0] ss:$24 sps:$4 sm:$0xff]   ;;  %v17996_v45 = vld [vmem:[#allocation5 + $0x704] ss:$24 sps:$4 sm:$0xff]  }
0x1aaa   :  { %10516 = vmatprep.subr.bf16.mxu0 %v17915_v48  ;;  %10796 = vmatprep.subr.bf16.mxu1 %v17921_v49  ;;  %v17994_v48 = vld [vmem:[#allocation5 + $0x700] ss:$24 sps:$4 sm:$0xff]   ;;  %v18002_v49 = vld [vmem:[#allocation5 + $0x734] ss:$24 sps:$4 sm:$0xff]  }
0x1aab   :  { %10546 = vmatprep.mubr.bf16.mxu0 %v18844_v5  ;;  %10826 = vmatprep.mubr.bf16.mxu1 %v19108_v16 }
0x1aad   :  { %10517 = vmatpush1.bf16.msra.mxu0 %v17913_v50  ;;  %v17997_v50 = vld [vmem:[#allocation7 + $0x788] ss:$24 sps:$4 sm:$0xff]  }
0x1aae   :  { %10518 = vmatprep.subr.bf16.mxu0 %v17918_v51  ;;  %v18005_v51 = vld [vmem:[#allocation7 + $0x7bc] ss:$24 sps:$4 sm:$0xff]  }
0x1ab1   :  { %10519 = vmatpush1.bf16.msra.mxu0 %v17916_v52  ;;  %10797 = vmatpush1.bf16.xpose.msra.mxu1 %v17919_v53  ;;  %v18000_v52 = vld [vmem:[#allocation5 + $0x730] ss:$24 sps:$4 sm:$0xff]   ;;  %v18008_v53 = vld [vmem:[#allocation5 + $0x764] ss:$24 sps:$4 sm:$0xff]  }
0x1ab2   :  { %10520 = vmatprep.subr.bf16.mxu0 %v17924_v54  ;;  %10798 = vmatprep.subr.bf16.mxu1 %v17930_v55  ;;  %v18003_v54 = vld [vmem:[#allocation7 + $0x7b8] ss:$24 sps:$4 sm:$0xff]   ;;  %v18011_v55 = vld [vmem:[#allocation7 + $0x6d4] ss:$24 sps:$4 sm:$0xff]  }
0x1ab5   :  { %10521 = vmatpush1.bf16.msra.mxu0 %v17922_v56  ;;  %v18006_v56 = vld [vmem:[#allocation5 + $0x760] ss:$24 sps:$4 sm:$0xff]  }
0x1ab6   :  { %10522 = vmatprep.subr.bf16.mxu0 %v17927_v57  ;;  %v18014_v57 = vld [vmem:[#allocation5 + $0x794] ss:$24 sps:$4 sm:$0xff]  }
0x1ab9   :  { %10523 = vmatpush1.bf16.msra.mxu0 %v17925_v58  ;;  %10799 = vmatpush1.bf16.xpose.msra.mxu1 %v17928_v59  ;;  %v18009_v58 = vld [vmem:[#allocation7 + $0x6d0] ss:$24 sps:$4 sm:$0xff]   ;;  %v18017_v59 = vld [vmem:[#allocation7 + $0x704] ss:$24 sps:$4 sm:$0xff]  }
0x1aba   :  { %10524 = vmatprep.subr.bf16.mxu0 %v17933_v60  ;;  %10800 = vmatprep.subr.bf16.mxu1 %v17936_v61  ;;  %v18012_v60 = vld [vmem:[#allocation5 + $0x790] ss:$24 sps:$4 sm:$0xff]   ;;  %v18020_v61 = vld [vmem:[#allocation5 + $0x7c4] ss:$24 sps:$4 sm:$0xff]  }
0x1abd   :  { %10525 = vmatpush1.bf16.msra.mxu0 %v17931_v62  ;;  %v18015_v62 = vld [vmem:[#allocation7 + $0x700] ss:$24 sps:$4 sm:$0xff]  }
0x1abe   :  { %11142 = vmatprep.subr.bf16.mxu0 %v17939_v63  ;;  %v18023_v63 = vld [vmem:[#allocation7 + $0x734] ss:$24 sps:$4 sm:$0xff]  }
0x1ac0   :  { %15623 = vmatmul.mubr.msk.bf16.vlgmr.msra.gmra.mrb[20].mxu0 %vm1273_vm1, %v10208_v46  ;;  %v17991_v46 = vld [vmem:[#allocation7 + $0x758] ss:$24 sps:$4 sm:$0xff]  }
0x1ac1   :  { %10801 = vmatpush1.bf16.xpose.msra.mxu1 %v17934_v0  ;;  %11174 = vmatprep.mubr.bf16.mxu0 %v19108_v16  ;;  %v18018_v0 = vld [vmem:[#allocation5 + $0x7c0] ss:$24 sps:$4 sm:$0xff]  }
0x1ac2   :  { %10802 = vmatprep.subr.bf16.mxu1 %v17942_v2  ;;  %v18026_v2 = vld [vmem:[#allocation8 + $0x6c4] ss:$24 sps:$4 sm:$0xff]  }
0x1ac6   :  { %11143 = vmatpush1.bf16.xpose.msra.mxu0 %v17937_v3  ;;  %v18021_v3 = vld [vmem:[#allocation7 + $0x730] ss:$24 sps:$4 sm:$0xff]  }
0x1ac7   :  { %11144 = vmatprep.subr.bf16.mxu0 %v17945_v6  ;;  %v18029_v6 = vld [vmem:[#allocation7 + $0x764] ss:$24 sps:$4 sm:$0xff]  }
0x1ac9   :  { %10803 = vmatpush1.bf16.xpose.msra.mxu1 %v17940_v7  ;;  %v18024_v7 = vld [vmem:[#allocation8 + $0x6c0] ss:$24 sps:$4 sm:$0xff]  }
0x1aca   :  { %10804 = vmatprep.subr.bf16.mxu1 %v17948_v8  ;;  %v18032_v8 = vld [vmem:[#allocation8 + $0x6f4] ss:$24 sps:$4 sm:$0xff]  }
0x1ace   :  { %11145 = vmatpush1.bf16.xpose.msra.mxu0 %v17943_v9  ;;  %v18027_v9 = vld [vmem:[#allocation7 + $0x760] ss:$24 sps:$4 sm:$0xff]  }
0x1acf   :  { %11146 = vmatprep.subr.bf16.mxu0 %v17951_v11  ;;  %v18035_v11 = vld [vmem:[#allocation7 + $0x794] ss:$24 sps:$4 sm:$0xff]  }
0x1ad1   :  { %10805 = vmatpush1.bf16.xpose.msra.mxu1 %v17946_v12  ;;  %v18030_v12 = vld [vmem:[#allocation8 + $0x6f0] ss:$24 sps:$4 sm:$0xff]  }
0x1ad2   :  { %10835 = vmatprep.subr.bf16.mxu1 %v17954_v13  ;;  %v18038_v13 = vld [vmem:[#allocation8 + $0x724] ss:$24 sps:$4 sm:$0xff]  }
0x1ad6   :  { %11147 = vmatpush1.bf16.xpose.msra.mxu0 %v17949_v14  ;;  %v18033_v14 = vld [vmem:[#allocation7 + $0x790] ss:$24 sps:$4 sm:$0xff]  }
0x1ad7   :  { %11148 = vmatprep.subr.bf16.mxu0 %v17957_v15  ;;  %v18041_v15 = vld [vmem:[#allocation7 + $0x7c4] ss:$24 sps:$4 sm:$0xff]  }
0x1ad8   :  { %10827 = vmatmul.mubr.bf16.vlgmr.msra.gmra.mrb[68].mxu1 %v19112_v33 }
0x1ad9   :  { %10836 = vmatpush1.bf16.xpose.msra.mxu1 %v17952_v10  ;;  %10867 = vmatprep.mubr.bf16.mxu1 %v19114_v38  ;;  %v18036_v10 = vld [vmem:[#allocation8 + $0x720] ss:$24 sps:$4 sm:$0xff]  }
0x1ada   :  { %10837 = vmatprep.subr.bf16.mxu1 %v17960_v17  ;;  %v18044_v17 = vld [vmem:[#allocation8 + $0x754] ss:$24 sps:$4 sm:$0xff]  }
0x1ade   :  { %11149 = vmatpush1.bf16.xpose.msra.mxu0 %v17955_v18  ;;  %v18039_v18 = vld [vmem:[#allocation7 + $0x7c0] ss:$24 sps:$4 sm:$0xff]  }
0x1adf   :  { %11150 = vmatprep.subr.bf16.mxu0 %v17963_v19  ;;  %v18042_v19 = vld [vmem:[#allocation8 + $0x750] ss:$24 sps:$4 sm:$0xff]  }
0x1ae1   :  { %10838 = vmatpush1.bf16.xpose.msra.mxu1 %v17958_v20  ;;  %v18047_v20 = vld [vmem:[#allocation8 + $0x784] ss:$24 sps:$4 sm:$0xff]  }
0x1ae2   :  { %10839 = vmatprep.subr.bf16.mxu1 %v17966_v21  ;;  %v18045_v21 = vld [vmem:[#allocation8 + $0x780] ss:$24 sps:$4 sm:$0xff]  }
0x1ae6   :  { %11151 = vmatpush1.bf16.xpose.msra.mxu0 %v17961_v22  ;;  %v18050_v22 = vld [vmem:[#allocation8 + $0x7b4] ss:$24 sps:$4 sm:$0xff]  }
0x1ae7   :  { %11152 = vmatprep.subr.bf16.mxu0 %v17969_v23  ;;  %v18048_v23 = vld [vmem:[#allocation8 + $0x7b0] ss:$24 sps:$4 sm:$0xff]  }
0x1ae9   :  { %10840 = vmatpush1.bf16.xpose.msra.mxu1 %v17964_v24  ;;  %v18053_v24 = vld [vmem:[#allocation8 + $0x6cc] ss:$24 sps:$4 sm:$0xff]  }
0x1aea   :  { %10841 = vmatprep.subr.bf16.mxu1 %v17972_v25  ;;  %v18051_v25 = vld [vmem:[#allocation8 + $0x6c8] ss:$24 sps:$4 sm:$0xff]  }
0x1aee   :  { %11153 = vmatpush1.bf16.xpose.msra.mxu0 %v17967_v39  ;;  %v18056_v39 = vld [vmem:[#allocation8 + $0x6fc] ss:$24 sps:$4 sm:$0xff]  }
0x1aef   :  { %11183 = vmatprep.subr.bf16.mxu0 %v17975_v28  ;;  %v18054_v28 = vld [vmem:[#allocation8 + $0x6f8] ss:$24 sps:$4 sm:$0xff]  }
0x1af1   :  { %10842 = vmatpush1.bf16.xpose.msra.mxu1 %v17970_v29  ;;  %v18059_v29 = vld [vmem:[#allocation8 + $0x72c] ss:$24 sps:$4 sm:$0xff]  }
0x1af2   :  { %10843 = vmatprep.subr.bf16.mxu1 %v17978_v30  ;;  %v18057_v30 = vld [vmem:[#allocation8 + $0x728] ss:$24 sps:$4 sm:$0xff]  }
0x1af5   :  { %11175 = vmatmul.mubr.bf16.vlgmr.msra.gmra.mrb[64].mxu0 %v19112_v33 }
0x1af6   :  { %11184 = vmatpush1.bf16.xpose.msra.mxu0 %v17973_v31  ;;  %11215 = vmatprep.mubr.bf16.mxu0 %v19114_v38  ;;  %v18062_v31 = vld [vmem:[#allocation8 + $0x75c] ss:$24 sps:$4 sm:$0xff]  }
0x1af7   :  { %11185 = vmatprep.subr.bf16.mxu0 %v17981_v32  ;;  %v18060_v32 = vld [vmem:[#allocation8 + $0x758] ss:$24 sps:$4 sm:$0xff]  }
0x1af9   :  { %10844 = vmatpush1.bf16.xpose.msra.mxu1 %v17976_v34  ;;  %v18065_v34 = vld [vmem:[#allocation8 + $0x78c] ss:$24 sps:$4 sm:$0xff]  }
0x1afa   :  { %10845 = vmatprep.subr.bf16.mxu1 %v17984_v35  ;;  %v18063_v35 = vld [vmem:[#allocation8 + $0x788] ss:$24 sps:$4 sm:$0xff]  }
0x1afe   :  { %11186 = vmatpush1.bf16.xpose.msra.mxu0 %v17979_v36  ;;  %v18068_v36 = vld [vmem:[#allocation8 + $0x7bc] ss:$24 sps:$4 sm:$0xff]  }
0x1aff   :  { %11187 = vmatprep.subr.bf16.mxu0 %v17987_v37  ;;  %v18066_v37 = vld [vmem:[#allocation8 + $0x7b8] ss:$24 sps:$4 sm:$0xff]  }
0x1b01   :  { %10846 = vmatpush1.bf16.xpose.msra.mxu1 %v17982_v40  ;;  %v18071_v40 = vld [vmem:[#allocation8 + $0x6d4] ss:$24 sps:$4 sm:$0xff]  }
0x1b02   :  { %10876 = vmatprep.subr.bf16.mxu1 %v17990_v41  ;;  %v18069_v41 = vld [vmem:[#allocation8 + $0x6d0] ss:$24 sps:$4 sm:$0xff]  }
0x1b06   :  { %11188 = vmatpush1.bf16.xpose.msra.mxu0 %v17985_v42  ;;  %v18074_v42 = vld [vmem:[#allocation8 + $0x704] ss:$24 sps:$4 sm:$0xff]  }
0x1b07   :  { %11189 = vmatprep.subr.bf16.mxu0 %v17993_v43  ;;  %v18072_v43 = vld [vmem:[#allocation8 + $0x700] ss:$24 sps:$4 sm:$0xff]  }
0x1b08   :  { %10868 = vmatmul.mubr.bf16.vlgmr.msra.gmra.mrb[68].mxu1 %v19120_v1 }
0x1b09   :  { %10877 = vmatpush1.bf16.xpose.msra.mxu1 %v17988_v44  ;;  %10908 = vmatprep.mubr.bf16.mxu1 %v19122_v4  ;;  %v18077_v44 = vld [vmem:[#allocation8 + $0x734] ss:$24 sps:$4 sm:$0xff]  }
0x1b0a   :  { %10878 = vmatprep.subr.bf16.mxu1 %v17996_v45  ;;  %v18075_v45 = vld [vmem:[#allocation8 + $0x730] ss:$24 sps:$4 sm:$0xff]  }
0x1b0e   :  { %11190 = vmatpush1.bf16.xpose.msra.mxu0 %v17991_v46  ;;  %v18080_v46 = vld [vmem:[#allocation8 + $0x764] ss:$24 sps:$4 sm:$0xff]  }
0x1b0f   :  { %11191 = vmatprep.subr.bf16.mxu0 %v17999_v47  ;;  %v18078_v47 = vld [vmem:[#allocation8 + $0x760] ss:$24 sps:$4 sm:$0xff]  }
0x1b11   :  { %10879 = vmatpush1.bf16.xpose.msra.mxu1 %v17994_v48  ;;  %v18083_v48 = vld [vmem:[#allocation8 + $0x794] ss:$24 sps:$4 sm:$0xff]  }
0x1b12   :  { %10880 = vmatprep.subr.bf16.mxu1 %v18002_v49  ;;  %v18081_v49 = vld [vmem:[#allocation8 + $0x790] ss:$24 sps:$4 sm:$0xff]  }
0x1b16   :  { %11192 = vmatpush1.bf16.xpose.msra.mxu0 %v17997_v50  ;;  %v18086_v50 = vld [vmem:[#allocation8 + $0x7c4] ss:$24 sps:$4 sm:$0xff]  }
0x1b17   :  { %11193 = vmatprep.subr.bf16.mxu0 %v18005_v51  ;;  %v18084_v51 = vld [vmem:[#allocation8 + $0x7c0] ss:$24 sps:$4 sm:$0xff]  }
0x1b19   :  { %10881 = vmatpush1.bf16.xpose.msra.mxu1 %v18000_v52 }
0x1b1a   :  { %10882 = vmatprep.subr.bf16.mxu1 %v18008_v53 }
0x1b1e   :  { %11194 = vmatpush1.bf16.xpose.msra.mxu0 %v18003_v54 }
0x1b1f   :  { %11224 = vmatprep.subr.bf16.mxu0 %v18011_v55 }
0x1b21   :  { %10883 = vmatpush1.bf16.xpose.msra.mxu1 %v18006_v56  ;;  %v15661_v56 = vld [vmem:[#allocation11 + $0x6] ss:$0 sm:$0xff] }
0x1b22   :  { %10884 = vmatprep.subr.bf16.mxu1 %v18014_v57 }
0x1b25   :  { %11216 = vmatmul.mubr.bf16.vlgmr.msra.gmra.mrb[64].mxu0 %v19120_v1 }
0x1b26   :  { %11225 = vmatpush1.bf16.xpose.msra.mxu0 %v18009_v58  ;;  %11256 = vmatprep.mubr.bf16.mxu0 %v19122_v4  ;;  %v15624_v58 = vld [vmem:[#allocation10 + $0x6] ss:$0 sm:$0xff] }
0x1b27   :  { %11226 = vmatprep.subr.bf16.mxu0 %v18017_v59 }
0x1b29   :  { %10885 = vmatpush1.bf16.xpose.msra.mxu1 %v18012_v60 }
0x1b2a   :  { %10886 = vmatprep.subr.bf16.mxu1 %v18020_v61 }
0x1b2e   :  { %11227 = vmatpush1.bf16.xpose.msra.mxu0 %v18015_v62 }
0x1b2f   :  { %11228 = vmatprep.subr.bf16.mxu0 %v18023_v63 }
0x1b31   :  { %10887 = vmatpush1.bf16.xpose.msra.mxu1 %v18018_v0 }
0x1b32   :  { %11490 = vmatprep.subr.bf16.mxu1 %v18026_v2 }
0x1b36   :  { %11229 = vmatpush1.bf16.xpose.msra.mxu0 %v18021_v3  ;;  %v15698_v3 = vld [vmem:[#allocation13 + $0x6] ss:$0 sm:$0xff] }
0x1b37   :  { %11230 = vmatprep.subr.bf16.mxu0 %v18029_v6 }
0x1b38   :  { %10909 = vmatmul.mubr.bf16.vlgmr.msra.gmra.mrb[68].mxu1 %v19128_v26 }
0x1b39   :  { %11491 = vmatpush1.bf16.xpose.msra.mxu1 %v18024_v7  ;;  %11522 = vmatprep.mubr.bf16.mxu1 %v19108_v16 }
0x1b3a   :  { %11492 = vmatprep.subr.bf16.mxu1 %v18032_v8 }
0x1b3e   :  { %11231 = vmatpush1.bf16.xpose.msra.mxu0 %v18027_v9 }
0x1b3f   :  { %11232 = vmatprep.subr.bf16.mxu0 %v18035_v11 }
0x1b41   :  { %11493 = vmatpush1.bf16.xpose.msra.mxu1 %v18030_v12 }
0x1b42   :  { %11494 = vmatprep.subr.bf16.mxu1 %v18038_v13 }
0x1b46   :  { %11233 = vmatpush1.bf16.xpose.msra.mxu0 %v18033_v14 }
0x1b47   :  { %11234 = vmatprep.subr.bf16.mxu0 %v18041_v15 }
0x1b49   :  { %11495 = vmatpush1.bf16.xpose.msra.mxu1 %v18036_v10 }
0x1b4a   :  { %11496 = vmatprep.subr.bf16.mxu1 %v18044_v17 }
0x1b4e   :  { %11235 = vmatpush1.bf16.xpose.msra.mxu0 %v18039_v18 }
0x1b4f   :  { %16237 = vmatprep.subr.mxu0 %v18842_v27 }
0x1b51   :  { %11497 = vmatpush1.bf16.xpose.msra.mxu1 %v18042_v19 }
0x1b52   :  { %11498 = vmatprep.subr.bf16.mxu1 %v18047_v20 }
0x1b55   :  { %11257 = vmatmul.mubr.bf16.vlgmr.msra.gmra.mrb[64].mxu0 %v19128_v26 }
0x1b56   :  { %16239 = vmatprep.mubr.msk.f32.mxu0 %vm18843_vm0, %v18842_v27 }
0x1b59   :  { %11499 = vmatpush1.bf16.xpose.msra.mxu1 %v18045_v21 }
0x1b5a   :  { %11500 = vmatprep.subr.bf16.mxu1 %v18050_v22 }
0x1b61   :  { %11501 = vmatpush1.bf16.xpose.msra.mxu1 %v18048_v23 }
0x1b62   :  { %11531 = vmatprep.subr.bf16.mxu1 %v18053_v24 }
0x1b68   :  { %11523 = vmatmul.mubr.bf16.vlgmr.msra.gmra.mrb[72].mxu1 %v19112_v33 }
0x1b69   :  { %11532 = vmatpush1.bf16.xpose.msra.mxu1 %v18051_v25  ;;  %11563 = vmatprep.mubr.bf16.mxu1 %v19114_v38 }
0x1b6a   :  { %11533 = vmatprep.subr.bf16.mxu1 %v18056_v39 }
0x1b71   :  { %11534 = vmatpush1.bf16.xpose.msra.mxu1 %v18054_v28 }
0x1b72   :  { %11535 = vmatprep.subr.bf16.mxu1 %v18059_v29 }
0x1b79   :  { %11536 = vmatpush1.bf16.xpose.msra.mxu1 %v18057_v30 }
0x1b7a   :  { %11537 = vmatprep.subr.bf16.mxu1 %v18062_v31 }
0x1b81   :  { %11538 = vmatpush1.bf16.xpose.msra.mxu1 %v18060_v32  ;;  %v18089_v32 = vld [vmem:[#allocation14 + $0x6cc] ss:$24 sps:$4 sm:$0xff]  }
0x1b82   :  { %11539 = vmatprep.subr.bf16.mxu1 %v18065_v34  ;;  %v18095_v34 = vld [vmem:[#allocation14 + $0x6c4] ss:$24 sps:$4 sm:$0xff]  }
0x1b89   :  { %11540 = vmatpush1.bf16.xpose.msra.mxu1 %v18063_v35 }
0x1b8a   :  { %11541 = vmatprep.subr.bf16.mxu1 %v18068_v36 }
0x1b91   :  { %11542 = vmatpush1.bf16.xpose.msra.mxu1 %v18066_v37 }
0x1b92   :  { %11572 = vmatprep.subr.bf16.mxu1 %v18071_v40  ;;  %v18093_v40 = vld [vmem:[#allocation14 + $0x6c0] ss:$24 sps:$4 sm:$0xff]  }
0x1b98   :  { %11564 = vmatmul.mubr.bf16.vlgmr.msra.gmra.mrb[72].mxu1 %v19120_v1 }
0x1b99   :  { %11573 = vmatpush1.bf16.xpose.msra.mxu1 %v18069_v41  ;;  %11604 = vmatprep.mubr.bf16.mxu1 %v19122_v4 }
0x1b9a   :  { %11574 = vmatprep.subr.bf16.mxu1 %v18074_v42  ;;  %v18101_v42 = vld [vmem:[#allocation14 + $0x6f4] ss:$24 sps:$4 sm:$0xff]  }
0x1ba1   :  { %11575 = vmatpush1.bf16.xpose.msra.mxu1 %v18072_v43 }
0x1ba2   :  { %11576 = vmatprep.subr.bf16.mxu1 %v18077_v44  ;;  %v18087_v44 = vld [vmem:[#allocation14 + $0x6c8] ss:$24 sps:$4 sm:$0xff]  }
0x1ba9   :  { %11577 = vmatpush1.bf16.xpose.msra.mxu1 %v18075_v45 }
0x1baa   :  { %11578 = vmatprep.subr.bf16.mxu1 %v18080_v46  ;;  %v18092_v46 = vld [vmem:[#allocation14 + $0x6fc] ss:$24 sps:$4 sm:$0xff]  }
0x1bb1   :  { %11579 = vmatpush1.bf16.xpose.msra.mxu1 %v18078_v47  ;;  %v18099_v47 = vld [vmem:[#allocation14 + $0x6f0] ss:$24 sps:$4 sm:$0xff]  }
0x1bb2   :  { %11580 = vmatprep.subr.bf16.mxu1 %v18083_v48  ;;  %v18107_v48 = vld [vmem:[#allocation14 + $0x724] ss:$24 sps:$4 sm:$0xff]  }
0x1bb9   :  { %11581 = vmatpush1.bf16.xpose.msra.mxu1 %v18081_v49  ;;  %v18090_v49 = vld [vmem:[#allocation14 + $0x6f8] ss:$24 sps:$4 sm:$0xff]  }
0x1bba   :  { %11582 = vmatprep.subr.bf16.mxu1 %v18086_v50  ;;  %v18098_v50 = vld [vmem:[#allocation14 + $0x72c] ss:$24 sps:$4 sm:$0xff]  }
0x1bc1   :  { %11583 = vmatpush1.bf16.xpose.msra.mxu1 %v18084_v51  ;;  %v18105_v51 = vld [vmem:[#allocation14 + $0x720] ss:$24 sps:$4 sm:$0xff]  }
0x1bc2   :  { %16242 = vmatprep.subr.mxu1 %v18842_v27 }
0x1bc8   :  { %11605 = vmatmul.mubr.bf16.vlgmr.msra.gmra.mrb[72].mxu1 %v19128_v26 }
0x1bc9   :  { %16244 = vmatprep.mubr.msk.f32.mxu1 %vm18843_vm0, %v18842_v27 }
0x1c0b   :  { %v10910_v52 = vpop.f32.mrb[68].mxu1 }
0x1c0c   :  { %v10912_v53 = vpop.f32.mrb[69].mxu1  ;;  %v16313_v0 = vadd.f32 %v15624_v58, %v10910_v52  ;;  %v18113_v52 = vld [vmem:[#allocation14 + $0x754] ss:$24 sps:$4 sm:$0xff]  }
0x1c0d   :  { %v10913_v54 = vpop.f32.mrb[70].mxu1  ;;  %v18096_v53 = vld [vmem:[#allocation14 + $0x728] ss:$24 sps:$4 sm:$0xff]  }
0x1c0e   :  { %v10915_v55 = vpop.f32.mrb[71].mxu1  ;;  %v16314_v2 = vadd.f32 %v15624_v58, %v10913_v54  ;;  %v18104_v54 = vld [vmem:[#allocation14 + $0x75c] ss:$24 sps:$4 sm:$0xff]   ;;  %v18110_v58 = vld [vmem:[#allocation14 + $0x78c] ss:$24 sps:$4 sm:$0xff]  }
0x1c0f   :  { %v18111_v55 = vld [vmem:[#allocation14 + $0x750] ss:$24 sps:$4 sm:$0xff]  }
0x1c28   :  { %v11258_v57 = vpop.f32.mrb[64].mxu0 }
0x1c29   :  { %v16315_v59 = vadd.f32 %v15661_v56, %v11258_v57  ;;  %v11260_v60 = vpop.f32.mrb[65].mxu0  ;;  %v18102_v57 = vld [vmem:[#allocation14 + $0x758] ss:$24 sps:$4 sm:$0xff]  }
0x1c2a   :  { %v11261_v61 = vpop.f32.mrb[66].mxu0  ;;  %v18108_v60 = vld [vmem:[#allocation14 + $0x788] ss:$24 sps:$4 sm:$0xff]  }
0x1c2b   :  { %v16316_v62 = vadd.f32 %v15661_v56, %v11261_v61  ;;  %v11263_v63 = vpop.f32.mrb[67].mxu0  ;;  %16238 = vmatpush3.xpose.msk.msra.mxu0 %vm1273_vm1, %v16315_v59  ;;  %v18119_v56 = vld [vmem:[#allocation14 + $0x784] ss:$24 sps:$4 sm:$0xff]   ;;  %v18117_v59 = vld [vmem:[#allocation14 + $0x780] ss:$24 sps:$4 sm:$0xff]  }
0x1c2c   :  { %16247 = vmatprep.subr.mxu0 %v18842_v27  ;;  %v18116_v61 = vld [vmem:[#allocation14 + $0x7bc] ss:$24 sps:$4 sm:$0xff]  }
0x1c2d   :  { %16243 = vmatpush3.xpose.msk.msra.mxu1 %vm1273_vm1, %v16316_v62  ;;  %v18114_v62 = vld [vmem:[#allocation14 + $0x7b8] ss:$24 sps:$4 sm:$0xff]   ;;  %v18122_v63 = vld [vmem:[#allocation14 + $0x7b4] ss:$24 sps:$4 sm:$0xff]  }
0x1c2e   :  { %16240 = vmatmul.mubr.msk.f32.vlgmr.msra.gmra.mrb[68].mxu0 %vm1273_vm1, %v16313_v0  ;;  %16252 = vmatprep.subr.mxu1 %v18842_v27  ;;  %v18120_v0 = vld [vmem:[#allocation14 + $0x7b0] ss:$24 sps:$4 sm:$0xff]  }
0x1c2f   :  { %16249 = vmatprep.mubr.msk.f32.mxu0 %vm18843_vm0, %v18842_v27 }
0x1c30   :  { %16245 = vmatmul.mubr.msk.f32.vlgmr.msra.gmra.mrb[76].mxu1 %vm1273_vm1, %v16314_v2  ;;  %v18125_v2 = vld [vmem:[#allocation14 + $0x6d4] ss:$24 sps:$4 sm:$0xff]  }
0x1c31   :  { %16254 = vmatprep.mubr.msk.f32.mxu1 %vm18843_vm0, %v18842_v27 }
0x1c9b   :  { %v11606_v6 = vpop.f32.mrb[72].mxu1 }
0x1c9c   :  { %v16317_v7 = vadd.f32 %v15698_v3, %v11606_v6  ;;  %v11608_v8 = vpop.f32.mrb[73].mxu1 }
0x1c9d   :  { %v11609_v9 = vpop.f32.mrb[74].mxu1 }
0x1c9e   :  { %v16318_v11 = vadd.f32 %v15698_v3, %v11609_v9  ;;  %v11611_v12 = vpop.f32.mrb[75].mxu1  ;;  %16248 = vmatpush3.msra.mxu0 %v16317_v7  ;;  %v18128_v3 = vld [vmem:[#allocation5 + $0x7e4] ss:$24 sps:$4 sm:$0xff]   ;;  %v18123_v9 = vld [vmem:[#allocation14 + $0x6d0] ss:$24 sps:$4 sm:$0xff]  }
0x1c9f   :  { %12155 = vmatprep.subr.bf16.mxu0 %v18095_v34  ;;  %v18153_v34 = vld [vmem:[#allocation7 + $0x7e0] ss:$24 sps:$4 sm:$0xff]  }
0x1ca0   :  { %16253 = vmatpush3.msra.mxu1 %v16318_v11  ;;  %v18126_v11 = vld [vmem:[#allocation5 + $0x7e0] ss:$24 sps:$4 sm:$0xff]  }
0x1ca1   :  { %12198 = vmatprep.subr.bf16.mxu1 %v18089_v32  ;;  %v18158_v32 = vld [vmem:[#allocation5 + $0x8a4] ss:$24 sps:$4 sm:$0xff]  }
0x1d01   :  { %v11685_v13 = vpop.f32.mrb[68].mxu0 }
0x1d02   :  { %v11765_v14 = vmul.f32 0.10206208, %v11685_v13  ;;  %v16241_v15 = vpop.f32.mrb[69].mxu0 }
0x1d03   :  { %v11761_v10 = vpop.f32.mrb[76].mxu1  ;;  %v18137_v15 = vld [vmem:[#allocation5 + $0x814] ss:$24 sps:$4 sm:$0xff]  }
0x1d04   :  { %v11766_v17 = vmul.f32 0.10206208, %v11761_v10  ;;  %v16246_v18 = vpop.f32.mrb[77].mxu1  ;;  %v11767_v19 = vsel %vm1428_vm2, %v11765_v14, -inf  ;;  %v18129_v10 = vld [vmem:[#allocation14 + $0x700] ss:$24 sps:$4 sm:$0xff]  }
0x1d05   :  { %11768 = vmax.xlane.f32.xlu0 %v11767_v19  ;;  %v18132_v18 = vld [vmem:[#allocation14 + $0x730] ss:$24 sps:$4 sm:$0xff]  }
0x1d06   :  { %v11770_v20 = vsel %vm1428_vm2, %v11766_v17, -inf  ;;  %v18135_v19 = vld [vmem:[#allocation5 + $0x810] ss:$24 sps:$4 sm:$0xff]  }
0x1d07   :  { %11771 = vmax.xlane.f32.xlu1 %v11770_v20  ;;  %v18140_v20 = vld [vmem:[#allocation14 + $0x764] ss:$24 sps:$4 sm:$0xff]  }
0x1d92   :  { %v11769_v21 = vpop.xlane.xlu0 %11768 }
0x1d93   :  { %v11773_v22 = vsub.f32 %v11765_v14, %v11769_v21  ;;  %v18131_v14 = vld [vmem:[#allocation14 + $0x704] ss:$24 sps:$4 sm:$0xff]  }
0x1d94   :  { %v11772_v23 = vpop.xlane.xlu1 %11771  ;;  %v18146_v21 = vld [vmem:[#allocation5 + $0x844] ss:$24 sps:$4 sm:$0xff]  }
0x1d95   :  { %v11775_v24 = vmul.f32 1.442695, %v11773_v22  ;;  %v11774_v25 = vsub.f32 %v11766_v17, %v11772_v23  ;;  %v18134_v17 = vld [vmem:[#allocation14 + $0x734] ss:$24 sps:$4 sm:$0xff]   ;;  %v18138_v22 = vld [vmem:[#allocation14 + $0x760] ss:$24 sps:$4 sm:$0xff]  }
0x1d96   :  { %v18143_v23 = vld [vmem:[#allocation14 + $0x794] ss:$24 sps:$4 sm:$0xff]  }
0x1d97   :  { %18453 = vpow2.f32 %v11775_v24  ;;  %v11777_v39 = vmul.f32 1.442695, %v11774_v25  ;;  %v18141_v24 = vld [vmem:[#allocation14 + $0x790] ss:$24 sps:$4 sm:$0xff]  }
0x1d98   :  { %v18144_v25 = vld [vmem:[#allocation5 + $0x840] ss:$24 sps:$4 sm:$0xff]  }
0x1d99   :  { %18455 = vpow2.f32 %v11777_v39  ;;  %v18149_v39 = vld [vmem:[#allocation14 + $0x7c4] ss:$24 sps:$4 sm:$0xff]  }
0x1da1   :  { %v18454_v28 = vpop.eup %18453 }
0x1da2   :  { %v11779_v29 = vsel %vm1428_vm2, %v18454_v28, 0.0 }
0x1da3   :  { %v18456_v30 = vpop.eup %18455  ;;  %11780 = vadd.xlane.f32.xlu0 %v11779_v29  ;;  %v18147_v29 = vld [vmem:[#allocation14 + $0x7c0] ss:$24 sps:$4 sm:$0xff]  }
0x1da4   :  { %v11782_v31 = vsel %vm1428_vm2, %v18456_v30, 0.0 }
0x1da5   :  { %11783 = vadd.xlane.f32.xlu1 %v11782_v31  ;;  %v18150_v31 = vld [vmem:[#allocation5 + $0x870] ss:$24 sps:$4 sm:$0xff]  }
0x1e30   :  { %v11781_v35 = vpop.xlane.xlu0 %11780 }
0x1e31   :  { %18457 = vrcp.f32 %v11781_v35  ;;  %v18161_v35 = vld [vmem:[#allocation7 + $0x814] ss:$24 sps:$4 sm:$0xff]  }
0x1e32   :  { %v11784_v36 = vpop.xlane.xlu1 %11783 }
0x1e33   :  { %18459 = vrcp.f32 %v11784_v36  ;;  %v18156_v36 = vld [vmem:[#allocation5 + $0x8a0] ss:$24 sps:$4 sm:$0xff]  }
0x1e3b   :  { %v18458_v37 = vpop.eup %18457 }
0x1e3c   :  { %v11787_v41 = vmul.f32 %v18458_v37, %v18454_v28  ;;  %v18152_v28 = vld [vmem:[#allocation5 + $0x874] ss:$24 sps:$4 sm:$0xff]  }
0x1e3d   :  { %v18460_v43 = vpop.eup %18459  ;;  %v18164_v37 = vld [vmem:[#allocation5 + $0x8d4] ss:$24 sps:$4 sm:$0xff]  }
0x1e3e   :  { %v11788_v45 = vmul.f32 %v18460_v43, %v18456_v30  ;;  %16250 = vmatmul.mubr.msk.f32.vlgmr.msra.gmra.mrb[70].mxu0 %vm1428_vm2, %v11787_v41  ;;  %v18155_v30 = vld [vmem:[#allocation7 + $0x7e4] ss:$24 sps:$4 sm:$0xff]  }
0x1e3f   :  { %12156 = vmatpush1.bf16.msra.mxu0 %v18093_v40  ;;  %12187 = vmatprep.mubr.bf16.mxu0 %v18844_v5  ;;  %v18159_v40 = vld [vmem:[#allocation7 + $0x810] ss:$24 sps:$4 sm:$0xff]   ;;  %v18167_v41 = vld [vmem:[#allocation7 + $0x844] ss:$24 sps:$4 sm:$0xff]  }
0x1e40   :  { %16255 = vmatmul.mubr.msk.f32.vlgmr.msra.gmra.mrb[78].mxu1 %vm1428_vm2, %v11788_v45  ;;  %12157 = vmatprep.subr.bf16.mxu0 %v18101_v42  ;;  %v18162_v42 = vld [vmem:[#allocation5 + $0x8d0] ss:$24 sps:$4 sm:$0xff]   ;;  %v18170_v43 = vld [vmem:[#allocation5 + $0x7ec] ss:$24 sps:$4 sm:$0xff]  }
0x1e41   :  { %12199 = vmatpush1.bf16.msra.mxu1 %v18087_v44  ;;  %12230 = vmatprep.mubr.bf16.mxu1 %v18844_v5  ;;  %v18165_v44 = vld [vmem:[#allocation7 + $0x840] ss:$24 sps:$4 sm:$0xff]   ;;  %v18173_v45 = vld [vmem:[#allocation7 + $0x874] ss:$24 sps:$4 sm:$0xff]  }
0x1e42   :  { %12200 = vmatprep.subr.bf16.mxu1 %v18092_v46  ;;  %v18168_v46 = vld [vmem:[#allocation5 + $0x7e8] ss:$24 sps:$4 sm:$0xff]  }
0x1e43   :  { %12158 = vmatpush1.bf16.msra.mxu0 %v18099_v47  ;;  %v18176_v47 = vld [vmem:[#allocation5 + $0x81c] ss:$24 sps:$4 sm:$0xff]  }
0x1e44   :  { %12159 = vmatprep.subr.bf16.mxu0 %v18107_v48  ;;  %v18171_v48 = vld [vmem:[#allocation7 + $0x870] ss:$24 sps:$4 sm:$0xff]  }
0x1e45   :  { %12201 = vmatpush1.bf16.msra.mxu1 %v18090_v49  ;;  %v18179_v49 = vld [vmem:[#allocation7 + $0x8a4] ss:$24 sps:$4 sm:$0xff]  }
0x1e46   :  { %12202 = vmatprep.subr.bf16.mxu1 %v18098_v50  ;;  %v18174_v50 = vld [vmem:[#allocation5 + $0x818] ss:$24 sps:$4 sm:$0xff]  }
0x1e47   :  { %12160 = vmatpush1.bf16.msra.mxu0 %v18105_v51  ;;  %v18182_v51 = vld [vmem:[#allocation5 + $0x84c] ss:$24 sps:$4 sm:$0xff]  }
0x1e48   :  { %12161 = vmatprep.subr.bf16.mxu0 %v18113_v52  ;;  %v18177_v52 = vld [vmem:[#allocation7 + $0x8a0] ss:$24 sps:$4 sm:$0xff]  }
0x1e49   :  { %12203 = vmatpush1.bf16.msra.mxu1 %v18096_v53  ;;  %v18185_v53 = vld [vmem:[#allocation7 + $0x8d4] ss:$24 sps:$4 sm:$0xff]  }
0x1e4a   :  { %12204 = vmatprep.subr.bf16.mxu1 %v18104_v54  ;;  %v18180_v54 = vld [vmem:[#allocation5 + $0x848] ss:$24 sps:$4 sm:$0xff]  }
0x1e4b   :  { %12162 = vmatpush1.bf16.msra.mxu0 %v18111_v55  ;;  %v18188_v55 = vld [vmem:[#allocation5 + $0x87c] ss:$24 sps:$4 sm:$0xff]  }
0x1e4c   :  { %12163 = vmatprep.subr.bf16.mxu0 %v18119_v56  ;;  %v18183_v56 = vld [vmem:[#allocation7 + $0x8d0] ss:$24 sps:$4 sm:$0xff]  }
0x1e4d   :  { %12205 = vmatpush1.bf16.msra.mxu1 %v18102_v57  ;;  %v18191_v57 = vld [vmem:[#allocation7 + $0x7ec] ss:$24 sps:$4 sm:$0xff]  }
0x1e4e   :  { %12206 = vmatprep.subr.bf16.mxu1 %v18110_v58  ;;  %v18186_v58 = vld [vmem:[#allocation5 + $0x878] ss:$24 sps:$4 sm:$0xff]  }
0x1e4f   :  { %12164 = vmatpush1.bf16.msra.mxu0 %v18117_v59  ;;  %v18194_v59 = vld [vmem:[#allocation5 + $0x8ac] ss:$24 sps:$4 sm:$0xff]  }
0x1e50   :  { %12165 = vmatprep.subr.bf16.mxu0 %v18122_v63  ;;  %v18200_v63 = vld [vmem:[#allocation5 + $0x8dc] ss:$24 sps:$4 sm:$0xff]  }
0x1e51   :  { %12207 = vmatpush1.bf16.msra.mxu1 %v18108_v60  ;;  %v18189_v60 = vld [vmem:[#allocation7 + $0x7e8] ss:$24 sps:$4 sm:$0xff]  }
0x1e52   :  { %12208 = vmatprep.subr.bf16.mxu1 %v18116_v61  ;;  %v18197_v61 = vld [vmem:[#allocation7 + $0x81c] ss:$24 sps:$4 sm:$0xff]  }
0x1e53   :  { %12166 = vmatpush1.bf16.msra.mxu0 %v18120_v0  ;;  %v18195_v0 = vld [vmem:[#allocation7 + $0x818] ss:$24 sps:$4 sm:$0xff]  }
0x1e54   :  { %12241 = vmatprep.subr.bf16.mxu0 %v18125_v2  ;;  %v18203_v2 = vld [vmem:[#allocation7 + $0x84c] ss:$24 sps:$4 sm:$0xff]  }
0x1e55   :  { %12209 = vmatpush1.bf16.msra.mxu1 %v18114_v62  ;;  %v18192_v62 = vld [vmem:[#allocation5 + $0x8a8] ss:$24 sps:$4 sm:$0xff]  }
0x1e56   :  { %12521 = vmatprep.subr.bf16.mxu1 %v18128_v3  ;;  %v18198_v3 = vld [vmem:[#allocation5 + $0x8d8] ss:$24 sps:$4 sm:$0xff]  }
0x1f11   :  { %v11858_v6 = vpop.f32.mrb[70].mxu0 }
0x1f12   :  { %v16251_v7 = vpop.f32.mrb[71].mxu0 }
0x1f13   :  { %v11931_v8 = vpop.f32.mrb[78].mxu1  ;;  %v18201_v7 = vld [vmem:[#allocation7 + $0x848] ss:$24 sps:$4 sm:$0xff]  }
0x1f14   :  { %v11935_v12 = vpack.c.bf16 %v11931_v8, %v11858_v6  ;;  %v16256_v13 = vpop.f32.mrb[79].mxu1  ;;  %v18206_v6 = vld [vmem:[#allocation5 + $0x7f4] ss:$24 sps:$4 sm:$0xff]  }
0x1f15   :  { %v18209_v8 = vld [vmem:[#allocation7 + $0x87c] ss:$24 sps:$4 sm:$0xff]   ;;  %v18215_v13 = vld [vmem:[#allocation7 + $0x8ac] ss:$24 sps:$4 sm:$0xff]  }
0x1f16   :  { %15777 = vmatmul.mubr.msk.bf16.vlgmr.msra.gmra.mrb[16].mxu0 %vm1273_vm1, %v11935_v12  ;;  %15778 = vmatmul.mubr.msk.bf16.vlgmr.msra.gmra.mrb[24].mxu1 %vm1273_vm1, %v11935_v12 }
0x1f17   :  { %12242 = vmatpush1.bf16.msra.mxu0 %v18123_v9  ;;  %12522 = vmatpush1.bf16.xpose.msra.mxu1 %v18126_v11  ;;  %v18204_v9 = vld [vmem:[#allocation5 + $0x7f0] ss:$24 sps:$4 sm:$0xff]   ;;  %v18212_v11 = vld [vmem:[#allocation5 + $0x824] ss:$24 sps:$4 sm:$0xff]  }
0x1f18   :  { %12243 = vmatprep.subr.bf16.mxu0 %v18131_v14  ;;  %12523 = vmatprep.subr.bf16.mxu1 %v18137_v15  ;;  %v18210_v14 = vld [vmem:[#allocation5 + $0x820] ss:$24 sps:$4 sm:$0xff]   ;;  %v18218_v15 = vld [vmem:[#allocation5 + $0x854] ss:$24 sps:$4 sm:$0xff]  }
0x1f19   :  { %12273 = vmatprep.mubr.bf16.mxu0 %v18844_v5  ;;  %12553 = vmatprep.mubr.bf16.mxu1 %v19108_v16 }
0x1f1b   :  { %12244 = vmatpush1.bf16.msra.mxu0 %v18129_v10  ;;  %v18213_v10 = vld [vmem:[#allocation7 + $0x8a8] ss:$24 sps:$4 sm:$0xff]  }
0x1f1c   :  { %12245 = vmatprep.subr.bf16.mxu0 %v18134_v17  ;;  %v18221_v17 = vld [vmem:[#allocation7 + $0x8dc] ss:$24 sps:$4 sm:$0xff]  }
0x1f1f   :  { %12246 = vmatpush1.bf16.msra.mxu0 %v18132_v18  ;;  %12524 = vmatpush1.bf16.xpose.msra.mxu1 %v18135_v19  ;;  %v18216_v18 = vld [vmem:[#allocation5 + $0x850] ss:$24 sps:$4 sm:$0xff]   ;;  %v18224_v19 = vld [vmem:[#allocation5 + $0x884] ss:$24 sps:$4 sm:$0xff]  }
0x1f20   :  { %12247 = vmatprep.subr.bf16.mxu0 %v18140_v20  ;;  %12525 = vmatprep.subr.bf16.mxu1 %v18146_v21  ;;  %v18219_v20 = vld [vmem:[#allocation7 + $0x8d8] ss:$24 sps:$4 sm:$0xff]   ;;  %v18227_v21 = vld [vmem:[#allocation7 + $0x7f4] ss:$24 sps:$4 sm:$0xff]  }
0x1f23   :  { %12248 = vmatpush1.bf16.msra.mxu0 %v18138_v22  ;;  %v18222_v22 = vld [vmem:[#allocation5 + $0x880] ss:$24 sps:$4 sm:$0xff]  }
0x1f24   :  { %12249 = vmatprep.subr.bf16.mxu0 %v18143_v23  ;;  %v18230_v23 = vld [vmem:[#allocation5 + $0x8b4] ss:$24 sps:$4 sm:$0xff]  }
0x1f27   :  { %12250 = vmatpush1.bf16.msra.mxu0 %v18141_v24  ;;  %12526 = vmatpush1.bf16.xpose.msra.mxu1 %v18144_v25  ;;  %v18225_v24 = vld [vmem:[#allocation7 + $0x7f0] ss:$24 sps:$4 sm:$0xff]   ;;  %v18233_v25 = vld [vmem:[#allocation7 + $0x824] ss:$24 sps:$4 sm:$0xff]  }
0x1f28   :  { %12251 = vmatprep.subr.bf16.mxu0 %v18149_v39  ;;  %12527 = vmatprep.subr.bf16.mxu1 %v18152_v28  ;;  %v18228_v39 = vld [vmem:[#allocation5 + $0x8b0] ss:$24 sps:$4 sm:$0xff]   ;;  %v18236_v28 = vld [vmem:[#allocation5 + $0x8e4] ss:$24 sps:$4 sm:$0xff]  }
0x1f2b   :  { %12252 = vmatpush1.bf16.msra.mxu0 %v18147_v29  ;;  %v18231_v29 = vld [vmem:[#allocation7 + $0x820] ss:$24 sps:$4 sm:$0xff]  }
0x1f2c   :  { %12869 = vmatprep.subr.bf16.mxu0 %v18155_v30  ;;  %v18239_v30 = vld [vmem:[#allocation7 + $0x854] ss:$24 sps:$4 sm:$0xff]  }
0x1f2e   :  { %15779 = vmatmul.mubr.msk.bf16.vlgmr.msra.gmra.mrb[20].mxu0 %vm1273_vm1, %v11935_v12  ;;  %v18207_v12 = vld [vmem:[#allocation7 + $0x878] ss:$24 sps:$4 sm:$0xff]  }
0x1f2f   :  { %12528 = vmatpush1.bf16.xpose.msra.mxu1 %v18150_v31  ;;  %12901 = vmatprep.mubr.bf16.mxu0 %v19108_v16  ;;  %v18234_v31 = vld [vmem:[#allocation5 + $0x8e0] ss:$24 sps:$4 sm:$0xff]  }
0x1f30   :  { %12529 = vmatprep.subr.bf16.mxu1 %v18158_v32  ;;  %v18237_v32 = vld [vmem:[#allocation7 + $0x850] ss:$24 sps:$4 sm:$0xff]  }
0x1f34   :  { %12870 = vmatpush1.bf16.xpose.msra.mxu0 %v18153_v34  ;;  %v18242_v34 = vld [vmem:[#allocation7 + $0x884] ss:$24 sps:$4 sm:$0xff]  }
0x1f35   :  { %12871 = vmatprep.subr.bf16.mxu0 %v18161_v35  ;;  %v18240_v35 = vld [vmem:[#allocation7 + $0x880] ss:$24 sps:$4 sm:$0xff]  }
0x1f37   :  { %12530 = vmatpush1.bf16.xpose.msra.mxu1 %v18156_v36  ;;  %v18245_v36 = vld [vmem:[#allocation7 + $0x8b4] ss:$24 sps:$4 sm:$0xff]  }
0x1f38   :  { %12531 = vmatprep.subr.bf16.mxu1 %v18164_v37  ;;  %v18243_v37 = vld [vmem:[#allocation7 + $0x8b0] ss:$24 sps:$4 sm:$0xff]  }
0x1f3c   :  { %12872 = vmatpush1.bf16.xpose.msra.mxu0 %v18159_v40  ;;  %v18248_v40 = vld [vmem:[#allocation7 + $0x8e4] ss:$24 sps:$4 sm:$0xff]  }
0x1f3d   :  { %12873 = vmatprep.subr.bf16.mxu0 %v18167_v41  ;;  %v18246_v41 = vld [vmem:[#allocation7 + $0x8e0] ss:$24 sps:$4 sm:$0xff]  }
0x1f3f   :  { %12532 = vmatpush1.bf16.xpose.msra.mxu1 %v18162_v42  ;;  %v18249_v42 = vld [vmem:[#allocation8 + $0x7e0] ss:$24 sps:$4 sm:$0xff]  }
0x1f40   :  { %12562 = vmatprep.subr.bf16.mxu1 %v18170_v43  ;;  %v18251_v43 = vld [vmem:[#allocation8 + $0x7e4] ss:$24 sps:$4 sm:$0xff]  }
0x1f44   :  { %12874 = vmatpush1.bf16.xpose.msra.mxu0 %v18165_v44  ;;  %v18252_v44 = vld [vmem:[#allocation8 + $0x810] ss:$24 sps:$4 sm:$0xff]  }
0x1f45   :  { %12875 = vmatprep.subr.bf16.mxu0 %v18173_v45  ;;  %v18257_v45 = vld [vmem:[#allocation8 + $0x844] ss:$24 sps:$4 sm:$0xff]  }
0x1f46   :  { %12554 = vmatmul.mubr.bf16.vlgmr.msra.gmra.mrb[80].mxu1 %v19112_v33 }
0x1f47   :  { %12563 = vmatpush1.bf16.xpose.msra.mxu1 %v18168_v46  ;;  %12594 = vmatprep.mubr.bf16.mxu1 %v19114_v38  ;;  %v18255_v46 = vld [vmem:[#allocation8 + $0x840] ss:$24 sps:$4 sm:$0xff]  }
0x1f48   :  { %12564 = vmatprep.subr.bf16.mxu1 %v18176_v47  ;;  %v18260_v47 = vld [vmem:[#allocation8 + $0x874] ss:$24 sps:$4 sm:$0xff]  }
0x1f4c   :  { %12876 = vmatpush1.bf16.xpose.msra.mxu0 %v18171_v48  ;;  %v18258_v48 = vld [vmem:[#allocation8 + $0x870] ss:$24 sps:$4 sm:$0xff]  }
0x1f4d   :  { %12877 = vmatprep.subr.bf16.mxu0 %v18179_v49  ;;  %v18263_v49 = vld [vmem:[#allocation8 + $0x8a4] ss:$24 sps:$4 sm:$0xff]  }
0x1f4f   :  { %12565 = vmatpush1.bf16.xpose.msra.mxu1 %v18174_v50  ;;  %v18261_v50 = vld [vmem:[#allocation8 + $0x8a0] ss:$24 sps:$4 sm:$0xff]  }
0x1f50   :  { %12566 = vmatprep.subr.bf16.mxu1 %v18182_v51  ;;  %v18266_v51 = vld [vmem:[#allocation8 + $0x8d4] ss:$24 sps:$4 sm:$0xff]  }
0x1f54   :  { %12878 = vmatpush1.bf16.xpose.msra.mxu0 %v18177_v52  ;;  %v18264_v52 = vld [vmem:[#allocation8 + $0x8d0] ss:$24 sps:$4 sm:$0xff]  }
0x1f55   :  { %12879 = vmatprep.subr.bf16.mxu0 %v18185_v53  ;;  %v18269_v53 = vld [vmem:[#allocation8 + $0x7ec] ss:$24 sps:$4 sm:$0xff]  }
0x1f57   :  { %12567 = vmatpush1.bf16.xpose.msra.mxu1 %v18180_v54  ;;  %v18267_v54 = vld [vmem:[#allocation8 + $0x7e8] ss:$24 sps:$4 sm:$0xff]  }
0x1f58   :  { %12568 = vmatprep.subr.bf16.mxu1 %v18188_v55  ;;  %v18272_v55 = vld [vmem:[#allocation8 + $0x81c] ss:$24 sps:$4 sm:$0xff]  }
0x1f5c   :  { %12880 = vmatpush1.bf16.xpose.msra.mxu0 %v18183_v56  ;;  %v18270_v56 = vld [vmem:[#allocation8 + $0x818] ss:$24 sps:$4 sm:$0xff]  }
0x1f5d   :  { %12910 = vmatprep.subr.bf16.mxu0 %v18191_v57  ;;  %v18275_v57 = vld [vmem:[#allocation8 + $0x84c] ss:$24 sps:$4 sm:$0xff]  }
0x1f5f   :  { %12569 = vmatpush1.bf16.xpose.msra.mxu1 %v18186_v58  ;;  %v18273_v58 = vld [vmem:[#allocation8 + $0x848] ss:$24 sps:$4 sm:$0xff]  }
0x1f60   :  { %12570 = vmatprep.subr.bf16.mxu1 %v18194_v59  ;;  %v18278_v59 = vld [vmem:[#allocation8 + $0x87c] ss:$24 sps:$4 sm:$0xff]  }
0x1f63   :  { %12902 = vmatmul.mubr.bf16.vlgmr.msra.gmra.mrb[72].mxu0 %v19112_v33 }
0x1f64   :  { %12911 = vmatpush1.bf16.xpose.msra.mxu0 %v18189_v60  ;;  %12942 = vmatprep.mubr.bf16.mxu0 %v19114_v38  ;;  %v18276_v60 = vld [vmem:[#allocation8 + $0x878] ss:$24 sps:$4 sm:$0xff]  }
0x1f65   :  { %12912 = vmatprep.subr.bf16.mxu0 %v18197_v61  ;;  %v18281_v61 = vld [vmem:[#allocation8 + $0x8ac] ss:$24 sps:$4 sm:$0xff]  }
0x1f67   :  { %12571 = vmatpush1.bf16.xpose.msra.mxu1 %v18192_v62  ;;  %v18279_v62 = vld [vmem:[#allocation8 + $0x8a8] ss:$24 sps:$4 sm:$0xff]  }
0x1f68   :  { %12572 = vmatprep.subr.bf16.mxu1 %v18200_v63  ;;  %v18284_v63 = vld [vmem:[#allocation8 + $0x8dc] ss:$24 sps:$4 sm:$0xff]  }
0x1f6c   :  { %12913 = vmatpush1.bf16.xpose.msra.mxu0 %v18195_v0  ;;  %v18287_v0 = vld [vmem:[#allocation8 + $0x7f4] ss:$24 sps:$4 sm:$0xff]  }
0x1f6d   :  { %12914 = vmatprep.subr.bf16.mxu0 %v18203_v2 }
0x1f6f   :  { %12573 = vmatpush1.bf16.xpose.msra.mxu1 %v18198_v3 }
0x1f70   :  { %12603 = vmatprep.subr.bf16.mxu1 %v18206_v6 }
0x1f74   :  { %12915 = vmatpush1.bf16.xpose.msra.mxu0 %v18201_v7  ;;  %v18285_v7 = vld [vmem:[#allocation8 + $0x7f0] ss:$24 sps:$4 sm:$0xff]  }
0x1f75   :  { %12916 = vmatprep.subr.bf16.mxu0 %v18209_v8  ;;  %v18290_v8 = vld [vmem:[#allocation8 + $0x824] ss:$24 sps:$4 sm:$0xff]  }
0x1f76   :  { %12595 = vmatmul.mubr.bf16.vlgmr.msra.gmra.mrb[80].mxu1 %v19120_v1 }
0x1f77   :  { %12604 = vmatpush1.bf16.xpose.msra.mxu1 %v18204_v9  ;;  %12635 = vmatprep.mubr.bf16.mxu1 %v19122_v4  ;;  %v18288_v9 = vld [vmem:[#allocation8 + $0x820] ss:$24 sps:$4 sm:$0xff]  }
0x1f78   :  { %12605 = vmatprep.subr.bf16.mxu1 %v18212_v11  ;;  %v18293_v11 = vld [vmem:[#allocation8 + $0x854] ss:$24 sps:$4 sm:$0xff]  }
0x1f7c   :  { %12917 = vmatpush1.bf16.xpose.msra.mxu0 %v18207_v12  ;;  %v18291_v12 = vld [vmem:[#allocation8 + $0x850] ss:$24 sps:$4 sm:$0xff]  }
0x1f7d   :  { %12918 = vmatprep.subr.bf16.mxu0 %v18215_v13  ;;  %v18296_v13 = vld [vmem:[#allocation8 + $0x884] ss:$24 sps:$4 sm:$0xff]  }
0x1f7f   :  { %12606 = vmatpush1.bf16.xpose.msra.mxu1 %v18210_v14  ;;  %v15817_v14 = vld [vmem:[#allocation11 + $0x7] ss:$0 sm:$0xff] }
0x1f80   :  { %12607 = vmatprep.subr.bf16.mxu1 %v18218_v15 }
0x1f84   :  { %12919 = vmatpush1.bf16.xpose.msra.mxu0 %v18213_v10  ;;  %v15780_v10 = vld [vmem:[#allocation10 + $0x7] ss:$0 sm:$0xff] }
0x1f85   :  { %12920 = vmatprep.subr.bf16.mxu0 %v18221_v17 }
0x1f87   :  { %12608 = vmatpush1.bf16.xpose.msra.mxu1 %v18216_v18 }
0x1f88   :  { %12609 = vmatprep.subr.bf16.mxu1 %v18224_v19  ;;  %v18294_v19 = vld [vmem:[#allocation8 + $0x880] ss:$24 sps:$4 sm:$0xff]  }
0x1f8c   :  { %12921 = vmatpush1.bf16.xpose.msra.mxu0 %v18219_v20 }
0x1f8d   :  { %12951 = vmatprep.subr.bf16.mxu0 %v18227_v21 }
0x1f8f   :  { %12610 = vmatpush1.bf16.xpose.msra.mxu1 %v18222_v22 }
0x1f90   :  { %12611 = vmatprep.subr.bf16.mxu1 %v18230_v23 }
0x1f93   :  { %12943 = vmatmul.mubr.bf16.vlgmr.msra.gmra.mrb[72].mxu0 %v19120_v1 }
0x1f94   :  { %12952 = vmatpush1.bf16.xpose.msra.mxu0 %v18225_v24  ;;  %12983 = vmatprep.mubr.bf16.mxu0 %v19122_v4  ;;  %v18297_v24 = vld [vmem:[#allocation8 + $0x8b0] ss:$24 sps:$4 sm:$0xff]  }
0x1f95   :  { %12953 = vmatprep.subr.bf16.mxu0 %v18233_v25  ;;  %v18302_v25 = vld [vmem:[#allocation8 + $0x8e4] ss:$24 sps:$4 sm:$0xff]  }
0x1f97   :  { %12612 = vmatpush1.bf16.xpose.msra.mxu1 %v18228_v39  ;;  %v18300_v39 = vld [vmem:[#allocation8 + $0x8e0] ss:$24 sps:$4 sm:$0xff]  }
0x1f98   :  { %12613 = vmatprep.subr.bf16.mxu1 %v18236_v28 }
0x1f9c   :  { %12954 = vmatpush1.bf16.xpose.msra.mxu0 %v18231_v29 }
0x1f9d   :  { %12955 = vmatprep.subr.bf16.mxu0 %v18239_v30 }
0x1f9f   :  { %12614 = vmatpush1.bf16.xpose.msra.mxu1 %v18234_v31 }
0x1fa0   :  { %13217 = vmatprep.subr.bf16.mxu1 %v18251_v43 }
0x1fa4   :  { %12956 = vmatpush1.bf16.xpose.msra.mxu0 %v18237_v32 }
0x1fa5   :  { %12957 = vmatprep.subr.bf16.mxu0 %v18242_v34 }
0x1fa6   :  { %12636 = vmatmul.mubr.bf16.vlgmr.msra.gmra.mrb[80].mxu1 %v19128_v26 }
0x1fa7   :  { %13249 = vmatprep.mubr.bf16.mxu1 %v19108_v16  ;;  %v18254_v16 = vld [vmem:[#allocation8 + $0x814] ss:$24 sps:$4 sm:$0xff]   ;;  %13218 = vmatpush1.bf16.xpose.msra.mxu1 %v18249_v42 }
0x1fa8   :  { %13219 = vmatprep.subr.bf16.mxu1 %v18254_v16 }
0x1fac   :  { %12958 = vmatpush1.bf16.xpose.msra.mxu0 %v18240_v35 }
0x1fad   :  { %12959 = vmatprep.subr.bf16.mxu0 %v18245_v36 }
0x1faf   :  { %13220 = vmatpush1.bf16.xpose.msra.mxu1 %v18252_v44 }
0x1fb0   :  { %13221 = vmatprep.subr.bf16.mxu1 %v18257_v45 }
0x1fb4   :  { %12960 = vmatpush1.bf16.xpose.msra.mxu0 %v18243_v37  ;;  %v15854_v37 = vld [vmem:[#allocation13 + $0x7] ss:$0 sm:$0xff] }
0x1fb5   :  { %12961 = vmatprep.subr.bf16.mxu0 %v18248_v40 }
0x1fb7   :  { %13222 = vmatpush1.bf16.xpose.msra.mxu1 %v18255_v46 }
0x1fb8   :  { %13223 = vmatprep.subr.bf16.mxu1 %v18260_v47 }
0x1fbc   :  { %12962 = vmatpush1.bf16.xpose.msra.mxu0 %v18246_v41 }
0x1fbd   :  { %16257 = vmatprep.subr.mxu0 %v18842_v27 }
0x1fbf   :  { %13224 = vmatpush1.bf16.xpose.msra.mxu1 %v18258_v48 }
0x1fc0   :  { %13225 = vmatprep.subr.bf16.mxu1 %v18263_v49 }
0x1fc3   :  { %12984 = vmatmul.mubr.bf16.vlgmr.msra.gmra.mrb[72].mxu0 %v19128_v26 }
0x1fc4   :  { %16259 = vmatprep.mubr.msk.f32.mxu0 %vm18843_vm0, %v18842_v27 }
0x1fc7   :  { %13226 = vmatpush1.bf16.xpose.msra.mxu1 %v18261_v50 }
0x1fc8   :  { %13227 = vmatprep.subr.bf16.mxu1 %v18266_v51 }
0x1fcf   :  { %13228 = vmatpush1.bf16.xpose.msra.mxu1 %v18264_v52 }
0x1fd0   :  { %13258 = vmatprep.subr.bf16.mxu1 %v18269_v53 }
0x1fd6   :  { %13250 = vmatmul.mubr.bf16.vlgmr.msra.gmra.mrb[84].mxu1 %v19112_v33  ;;  %v18282_v33 = vld [vmem:[#allocation8 + $0x8d8] ss:$24 sps:$4 sm:$0xff]  }
0x1fd7   :  { %13259 = vmatpush1.bf16.xpose.msra.mxu1 %v18267_v54  ;;  %13290 = vmatprep.mubr.bf16.mxu1 %v19114_v38  ;;  %v18306_v54 = vld [vmem:[#allocation14 + $0x7e8] ss:$24 sps:$4 sm:$0xff]  }
0x1fd8   :  { %13260 = vmatprep.subr.bf16.mxu1 %v18272_v55  ;;  %v18308_v55 = vld [vmem:[#allocation14 + $0x7ec] ss:$24 sps:$4 sm:$0xff]  }
0x1fdf   :  { %13261 = vmatpush1.bf16.xpose.msra.mxu1 %v18270_v56  ;;  %v18312_v56 = vld [vmem:[#allocation14 + $0x818] ss:$24 sps:$4 sm:$0xff]  }
0x1fe0   :  { %13262 = vmatprep.subr.bf16.mxu1 %v18275_v57  ;;  %v18314_v57 = vld [vmem:[#allocation14 + $0x81c] ss:$24 sps:$4 sm:$0xff]  }
0x1fe7   :  { %13263 = vmatpush1.bf16.xpose.msra.mxu1 %v18273_v58  ;;  %v18318_v58 = vld [vmem:[#allocation14 + $0x848] ss:$24 sps:$4 sm:$0xff]  }
0x1fe8   :  { %13264 = vmatprep.subr.bf16.mxu1 %v18278_v59  ;;  %v18320_v59 = vld [vmem:[#allocation14 + $0x84c] ss:$24 sps:$4 sm:$0xff]  }
0x1fef   :  { %13265 = vmatpush1.bf16.xpose.msra.mxu1 %v18276_v60  ;;  %v18324_v60 = vld [vmem:[#allocation14 + $0x878] ss:$24 sps:$4 sm:$0xff]  }
0x1ff0   :  { %13266 = vmatprep.subr.bf16.mxu1 %v18281_v61  ;;  %v18326_v61 = vld [vmem:[#allocation14 + $0x87c] ss:$24 sps:$4 sm:$0xff]  }
0x1ff7   :  { %13267 = vmatpush1.bf16.xpose.msra.mxu1 %v18279_v62  ;;  %v18330_v62 = vld [vmem:[#allocation14 + $0x8a8] ss:$24 sps:$4 sm:$0xff]  }
0x1ff8   :  { %13268 = vmatprep.subr.bf16.mxu1 %v18284_v63  ;;  %v18332_v63 = vld [vmem:[#allocation14 + $0x8ac] ss:$24 sps:$4 sm:$0xff]  }
0x1fff   :  { %13269 = vmatpush1.bf16.xpose.msra.mxu1 %v18282_v33 }
0x2000   :  { %13299 = vmatprep.subr.bf16.mxu1 %v18287_v0 }
0x2006   :  { %13291 = vmatmul.mubr.bf16.vlgmr.msra.gmra.mrb[84].mxu1 %v19120_v1  ;;  %v18299_v1 = vld [vmem:[#allocation8 + $0x8b4] ss:$24 sps:$4 sm:$0xff]  }
0x2007   :  { %13300 = vmatpush1.bf16.xpose.msra.mxu1 %v18285_v7  ;;  %13331 = vmatprep.mubr.bf16.mxu1 %v19122_v4  ;;  %v18303_v7 = vld [vmem:[#allocation14 + $0x7e0] ss:$24 sps:$4 sm:$0xff]  }
0x2008   :  { %13301 = vmatprep.subr.bf16.mxu1 %v18290_v8 }
0x200f   :  { %13302 = vmatpush1.bf16.xpose.msra.mxu1 %v18288_v9  ;;  %v18311_v9 = vld [vmem:[#allocation14 + $0x814] ss:$24 sps:$4 sm:$0xff]  }
0x2010   :  { %13303 = vmatprep.subr.bf16.mxu1 %v18293_v11  ;;  %v18309_v11 = vld [vmem:[#allocation14 + $0x810] ss:$24 sps:$4 sm:$0xff]  }
0x2017   :  { %13304 = vmatpush1.bf16.xpose.msra.mxu1 %v18291_v12  ;;  %v18317_v12 = vld [vmem:[#allocation14 + $0x844] ss:$24 sps:$4 sm:$0xff]  }
0x2018   :  { %13305 = vmatprep.subr.bf16.mxu1 %v18296_v13  ;;  %v18315_v13 = vld [vmem:[#allocation14 + $0x840] ss:$24 sps:$4 sm:$0xff]  }
0x201f   :  { %13306 = vmatpush1.bf16.xpose.msra.mxu1 %v18294_v19  ;;  %v18336_v19 = vld [vmem:[#allocation14 + $0x8d8] ss:$24 sps:$4 sm:$0xff]  }
0x2020   :  { %13307 = vmatprep.subr.bf16.mxu1 %v18299_v1  ;;  %v18341_v1 = vld [vmem:[#allocation14 + $0x7f4] ss:$24 sps:$4 sm:$0xff]  }
0x2027   :  { %13308 = vmatpush1.bf16.xpose.msra.mxu1 %v18297_v24 }
0x2028   :  { %13309 = vmatprep.subr.bf16.mxu1 %v18302_v25 }
0x202f   :  { %13310 = vmatpush1.bf16.xpose.msra.mxu1 %v18300_v39  ;;  %v18344_v39 = vld [vmem:[#allocation14 + $0x824] ss:$24 sps:$4 sm:$0xff]  }
0x2030   :  { %13925 = vmatprep.subr.bf16.mxu1 %v18308_v55 }
0x2036   :  { %13332 = vmatmul.mubr.bf16.vlgmr.msra.gmra.mrb[84].mxu1 %v19128_v26 }
0x2037   :  { %13957 = vmatprep.mubr.bf16.mxu1 %v18844_v5  ;;  %13926 = vmatpush1.bf16.msra.mxu1 %v18306_v54  ;;  %v14025_v54 = vlaneseq }
0x2038   :  { %13927 = vmatprep.subr.bf16.mxu1 %v18314_v57  ;;  %v14023_v57 = vld [vmem:[#allocation16] sm:$0x3f] }
0x2039   :  { %v14026_v55 = vshrl.u32 %v14025_v54, 7  ;;  %v18393_v54 = vld [vmem:[#allocation17 + $0x150] sm:$0xff]  }
0x203b   :  { %13928 = vmatpush1.bf16.msra.mxu1 %v18312_v56  ;;  %v14043_v56 = vsub.s32 4, %v14026_v55 }
0x203c   :  { %13929 = vmatprep.subr.bf16.mxu1 %v18320_v59  ;;  %v14027_v59 = vsub.s32 0, %v14026_v55 }
0x203f   :  { %13930 = vmatpush1.bf16.msra.mxu1 %v18318_v58  ;;  %v14044_v58 = vrot.slane %v14023_v57, %v14043_v56  ;;  %v18395_v56 = vld [vmem:[#allocation17 + $0x158] sm:$0xff]  }
0x2040   :  { %13931 = vmatprep.subr.bf16.mxu1 %v18326_v61  ;;  %v14031_v61 = vsub.s32 1, %v14026_v55 }
0x2043   :  { %13932 = vmatpush1.bf16.msra.mxu1 %v18324_v60  ;;  %v14035_v60 = vsub.s32 2, %v14026_v55 }
0x2044   :  { %13933 = vmatprep.subr.bf16.mxu1 %v18332_v63  ;;  %v14028_v63 = vrot.slane %v14023_v57, %v14027_v59  ;;  %v18398_v59 = vld [vmem:[#allocation17 + $0x120] sm:$0xff]  }
0x2047   :  { %13934 = vmatpush1.bf16.msra.mxu1 %v18330_v62  ;;  %v14039_v62 = vsub.s32 3, %v14026_v55 }
0x2079   :  { %v12637_v38 = vpop.f32.mrb[80].mxu1 }
0x207a   :  { %v12639_v2 = vpop.f32.mrb[81].mxu1  ;;  %v16319_v4 = vadd.f32 %v15780_v10, %v12637_v38 }
0x207b   :  { %v12640_v3 = vpop.f32.mrb[82].mxu1 }
0x207c   :  { %v12642_v6 = vpop.f32.mrb[83].mxu1  ;;  %v16320_v23 = vadd.f32 %v15780_v10, %v12640_v3  ;;  %v18305_v3 = vld [vmem:[#allocation14 + $0x7e4] ss:$24 sps:$4 sm:$0xff]   ;;  %v18327_v10 = vld [vmem:[#allocation14 + $0x8a0] ss:$24 sps:$4 sm:$0xff]  }
0x2096   :  { %v12985_v15 = vpop.f32.mrb[72].mxu0 }
0x2097   :  { %v16321_v17 = vadd.f32 %v15817_v14, %v12985_v15  ;;  %v12987_v18 = vpop.f32.mrb[73].mxu0  ;;  %v18321_v15 = vld [vmem:[#allocation14 + $0x870] ss:$24 sps:$4 sm:$0xff]  }
0x2098   :  { %v12988_v20 = vpop.f32.mrb[74].mxu0  ;;  %v18335_v18 = vld [vmem:[#allocation14 + $0x8d4] ss:$24 sps:$4 sm:$0xff]  }
0x2099   :  { %v12990_v21 = vpop.f32.mrb[75].mxu0  ;;  %16258 = vmatpush3.xpose.msk.msra.mxu0 %vm1273_vm1, %v16321_v17  ;;  %v16322_v22 = vadd.f32 %v15817_v14, %v12988_v20  ;;  %v18323_v14 = vld [vmem:[#allocation14 + $0x874] ss:$24 sps:$4 sm:$0xff]   ;;  %v18333_v17 = vld [vmem:[#allocation14 + $0x8d0] ss:$24 sps:$4 sm:$0xff]  }
0x209a   :  { %16262 = vmatprep.subr.mxu0 %v18842_v27  ;;  %v18338_v20 = vld [vmem:[#allocation14 + $0x8dc] ss:$24 sps:$4 sm:$0xff]  }
0x209b   :  { %13935 = vmatprep.subr.bf16.mxu1 %v18338_v20 }
0x209c   :  { %16260 = vmatmul.mubr.msk.f32.vlgmr.msra.gmra.mrb[76].mxu0 %vm1273_vm1, %v16319_v4  ;;  %13936 = vmatpush1.bf16.msra.mxu1 %v18336_v19 }
0x209d   :  { %16263 = vmatpush3.xpose.msk.msra.mxu0 %vm1273_vm1, %v16322_v22  ;;  %16264 = vmatprep.mubr.msk.f32.mxu0 %vm18843_vm0, %v18842_v27 }
0x209e   :  { %16267 = vmatprep.subr.mxu0 %v18842_v27 }
0x20a0   :  { %16265 = vmatmul.mubr.msk.f32.vlgmr.msra.gmra.mrb[78].mxu0 %vm1273_vm1, %v16320_v23  ;;  %v18339_v23 = vld [vmem:[#allocation14 + $0x7f0] ss:$24 sps:$4 sm:$0xff]  }
0x20a1   :  { %16269 = vmatprep.mubr.msk.f32.mxu0 %vm18843_vm0, %v18842_v27 }
0x2109   :  { %v13333_v40 = vpop.f32.mrb[84].mxu1 }
0x210a   :  { %v16323_v41 = vadd.f32 %v15854_v37, %v13333_v40  ;;  %v13335_v42 = vpop.f32.mrb[85].mxu1  ;;  %v18357_v40 = vld [vmem:[#allocation17 + $0x40] sm:$0xff]  }
0x210b   :  { %v13336_v43 = vpop.f32.mrb[86].mxu1  ;;  %v18360_v42 = vld [vmem:[#allocation17 + $0x8] sm:$0xff]  }
0x210c   :  { %v16324_v26 = vadd.f32 %v15854_v37, %v13336_v43  ;;  %v13338_v16 = vpop.f32.mrb[87].mxu1  ;;  %16268 = vmatpush3.msra.mxu0 %v16323_v41  ;;  %v18354_v37 = vld [vmem:[#allocation14 + $0x8e0] ss:$24 sps:$4 sm:$0xff]   ;;  %v18359_v41 = vld [vmem:[#allocation17 + $0x48] sm:$0xff]  }
0x210d   :  { %16272 = vmatprep.subr.mxu0 %v18842_v27  ;;  %v18361_v43 = vld [vmem:[#allocation17 + $0x50] sm:$0xff]   ;;  %v18363_v16 = vld [vmem:[#allocation17 + $0x58] sm:$0xff]  }
0x216f   :  { %v13412_v28 = vpop.f32.mrb[76].mxu0 }
0x2170   :  { %v13492_v29 = vmul.f32 0.10206208, %v13412_v28  ;;  %v16261_v30 = vpop.f32.mrb[77].mxu0  ;;  %v18342_v28 = vld [vmem:[#allocation14 + $0x820] ss:$24 sps:$4 sm:$0xff]  }
0x2171   :  { %v18345_v30 = vld [vmem:[#allocation14 + $0x850] ss:$24 sps:$4 sm:$0xff]  }
0x2172   :  { %v13494_v31 = vsel %vm1428_vm2, %v13492_v29, -inf }
0x2173   :  { %13495 = vmax.xlane.f32.xlu0 %v13494_v31  ;;  %v13488_v32 = vpop.f32.mrb[78].mxu0  ;;  %v18350_v31 = vld [vmem:[#allocation14 + $0x884] ss:$24 sps:$4 sm:$0xff]  }
0x2174   :  { %v13493_v34 = vmul.f32 0.10206208, %v13488_v32  ;;  %v16266_v35 = vpop.f32.mrb[79].mxu0  ;;  %v18348_v32 = vld [vmem:[#allocation14 + $0x880] ss:$24 sps:$4 sm:$0xff]  }
0x2175   :  { %v18351_v35 = vld [vmem:[#allocation14 + $0x8b0] ss:$24 sps:$4 sm:$0xff]  }
0x2176   :  { %v13497_v36 = vsel %vm1428_vm2, %v13493_v34, -inf }
0x2177   :  { %13498 = vmax.xlane.f32.xlu1 %v13497_v36  ;;  %v18356_v36 = vld [vmem:[#allocation14 + $0x8e4] ss:$24 sps:$4 sm:$0xff]  }
0x2200   :  { %v13496_v44 = vpop.xlane.xlu0 %13495 }
0x2201   :  { %v13500_v45 = vsub.f32 %v13492_v29, %v13496_v44  ;;  %v18347_v29 = vld [vmem:[#allocation14 + $0x854] ss:$24 sps:$4 sm:$0xff]   ;;  %v18364_v44 = vld [vmem:[#allocation17 + $0x18] sm:$0xff]  }
0x2203   :  { %v13502_v46 = vmul.f32 1.442695, %v13500_v45  ;;  %v18365_v45 = vld [vmem:[#allocation17 + $0x60] sm:$0xff]  }
0x2204   :  { %v13499_v47 = vpop.xlane.xlu1 %13498 }
0x2205   :  { %18461 = vpow2.f32 %v13502_v46  ;;  %v13501_v48 = vsub.f32 %v13493_v34, %v13499_v47  ;;  %v18353_v34 = vld [vmem:[#allocation14 + $0x8b4] ss:$24 sps:$4 sm:$0xff]  }
0x2206   :  { %v18366_v46 = vld [vmem:[#allocation17 + $0x20] sm:$0xff]   ;;  %v18367_v47 = vld [vmem:[#allocation17 + $0x68] sm:$0xff]  }
0x2207   :  { %v13504_v49 = vmul.f32 1.442695, %v13501_v48  ;;  %v18368_v48 = vld [vmem:[#allocation17 + $0x28] sm:$0xff]  }
0x2209   :  { %18463 = vpow2.f32 %v13504_v49  ;;  %v18369_v49 = vld [vmem:[#allocation17 + $0x70] sm:$0xff]  }
0x220f   :  { %v18462_v50 = vpop.eup %18461 }
0x2210   :  { %v13506_v51 = vsel %vm1428_vm2, %v18462_v50, 0.0 }
0x2211   :  { %13507 = vadd.xlane.f32.xlu0 %v13506_v51  ;;  %v18371_v51 = vld [vmem:[#allocation17 + $0x78] sm:$0xff]  }
0x2213   :  { %v18464_v52 = vpop.eup %18463 }
0x2214   :  { %v13509_v53 = vsel %vm1428_vm2, %v18464_v52, 0.0 }
0x2215   :  { %13510 = vadd.xlane.f32.xlu1 %v13509_v53  ;;  %v18373_v53 = vld [vmem:[#allocation17 + $0xc0] sm:$0xff]  }
0x229e   :  { %v13508_v33 = vpop.xlane.xlu0 %13507 }
0x229f   :  { %18465 = vrcp.f32 %v13508_v33  ;;  %v14036_v33 = vrot.slane %v14023_v57, %v14035_v60  ;;  %v18399_v60 = vld [vmem:[#allocation17 + $0x168] sm:$0xff]  }
0x22a2   :  { %v13511_v0 = vpop.xlane.xlu1 %13510 }
0x22a3   :  { %18467 = vrcp.f32 %v13511_v0 }
0x22a9   :  { %v18466_v38 = vpop.eup %18465 }
0x22aa   :  { %v13514_v2 = vmul.f32 %v18466_v38, %v18462_v50  ;;  %v18370_v50 = vld [vmem:[#allocation17 + $0x30] sm:$0xff]  }
0x22ac   :  { %16270 = vmatmul.mubr.msk.f32.vlgmr.msra.gmra.mrb[80].mxu0 %vm1428_vm2, %v13514_v2  ;;  %v14032_v2 = vrot.slane %v14023_v57, %v14031_v61  ;;  %v18400_v61 = vld [vmem:[#allocation17 + $0x128] sm:$0xff]  }
0x22ad   :  { %v18468_v6 = vpop.eup %18467  ;;  %16273 = vmatpush3.msra.mxu0 %v16324_v26  ;;  %16274 = vmatprep.mubr.msk.f32.mxu0 %vm18843_vm0, %v18842_v27  ;;  %v18329_v27 = vld [vmem:[#allocation14 + $0x8a4] ss:$24 sps:$4 sm:$0xff]  }
0x22ae   :  { %v13515_v8 = vmul.f32 %v18468_v6, %v18464_v52  ;;  %13882 = vmatprep.subr.bf16.mxu0 %v18305_v3  ;;  %v18362_v26 = vld [vmem:[#allocation17 + $0x10] sm:$0xff]   ;;  %v18372_v52 = vld [vmem:[#allocation17 + $0x38] sm:$0xff]   ;;  %v14040_v3 = vrot.slane %v14023_v57, %v14039_v62 }
0x22af   :  { %v18401_v62 = vld [vmem:[#allocation17 + $0x170] sm:$0xff]  }
0x22b0   :  { %16275 = vmatmul.mubr.msk.f32.vlgmr.msra.gmra.mrb[82].mxu0 %vm1428_vm2, %v13515_v8 }
0x22b1   :  { %13883 = vmatpush1.bf16.msra.mxu0 %v18303_v7  ;;  %13914 = vmatprep.mubr.bf16.mxu0 %v18844_v5 }
0x22b2   :  { %13884 = vmatprep.subr.bf16.mxu0 %v18311_v9 }
0x22b5   :  { %13885 = vmatpush1.bf16.msra.mxu0 %v18309_v11 }
0x22b6   :  { %13886 = vmatprep.subr.bf16.mxu0 %v18317_v12 }
0x22b9   :  { %13887 = vmatpush1.bf16.msra.mxu0 %v18315_v13 }
0x22ba   :  { %13888 = vmatprep.subr.bf16.mxu0 %v18323_v14 }
0x22bd   :  { %13889 = vmatpush1.bf16.msra.mxu0 %v18321_v15 }
0x22be   :  { %13890 = vmatprep.subr.bf16.mxu0 %v18329_v27 }
0x22c1   :  { %13891 = vmatpush1.bf16.msra.mxu0 %v18327_v10 }
0x22c2   :  { %13892 = vmatprep.subr.bf16.mxu0 %v18335_v18 }
0x22c5   :  { %13893 = vmatpush1.bf16.msra.mxu0 %v18333_v17 }
0x22c6   :  { %13968 = vmatprep.subr.bf16.mxu0 %v18341_v1 }
0x237f   :  { %v13585_v21 = vpop.f32.mrb[80].mxu0 }
0x2380   :  { %v16271_v4 = vpop.f32.mrb[81].mxu0 }
0x2383   :  { %v13658_v22 = vpop.f32.mrb[82].mxu0 }
0x2384   :  { %v13662_v24 = vpack.c.bf16 %v13658_v22, %v13585_v21  ;;  %v16276_v25 = vpop.f32.mrb[83].mxu0  ;;  %v18374_v22 = vld [vmem:[#allocation17 + $0x80] sm:$0xff]  }
0x2385   :  { %v18377_v25 = vld [vmem:[#allocation17 + $0xd0] sm:$0xff]  }
0x2386   :  { %15933 = vmatmul.mubr.msk.bf16.vlgmr.msra.gmra.mrb[16].mxu0 %vm1273_vm1, %v13662_v24  ;;  %15934 = vmatmul.mubr.msk.bf16.vlgmr.msra.gmra.mrb[24].mxu1 %vm1273_vm1, %v13662_v24 }
0x2387   :  { %13969 = vmatpush1.bf16.msra.mxu0 %v18339_v23  ;;  %14000 = vmatprep.mubr.bf16.mxu0 %v18844_v5  ;;  %v18358_v5 = vld [vmem:[#allocation17] sm:$0xff]   ;;  %v18375_v23 = vld [vmem:[#allocation17 + $0xc8] sm:$0xff]  }
0x2388   :  { %13970 = vmatprep.subr.bf16.mxu0 %v18344_v39  ;;  %v18378_v39 = vld [vmem:[#allocation17 + $0x90] sm:$0xff]  }
0x238b   :  { %13971 = vmatpush1.bf16.msra.mxu0 %v18342_v28  ;;  %v18379_v28 = vld [vmem:[#allocation17 + $0xd8] sm:$0xff]  }
0x238c   :  { %13972 = vmatprep.subr.bf16.mxu0 %v18347_v29  ;;  %v18380_v29 = vld [vmem:[#allocation17 + $0x98] sm:$0xff]  }
0x238f   :  { %13973 = vmatpush1.bf16.msra.mxu0 %v18345_v30  ;;  %v18381_v30 = vld [vmem:[#allocation17 + $0xe0] sm:$0xff]  }
0x2390   :  { %13974 = vmatprep.subr.bf16.mxu0 %v18350_v31  ;;  %v14047_v31 = vsub.s32 5, %v14026_v55  ;;  %v18394_v55 = vld [vmem:[#allocation17 + $0x110] sm:$0xff]  }
0x2393   :  { %13975 = vmatpush1.bf16.msra.mxu0 %v18348_v32  ;;  %v18382_v32 = vld [vmem:[#allocation17 + $0xa0] sm:$0xff]  }
0x2394   :  { %13976 = vmatprep.subr.bf16.mxu0 %v18353_v34  ;;  %v18383_v34 = vld [vmem:[#allocation17 + $0xe8] sm:$0xff]  }
0x2397   :  { %13977 = vmatpush1.bf16.msra.mxu0 %v18351_v35 }
0x2398   :  { %13978 = vmatprep.subr.bf16.mxu0 %v18356_v36  ;;  %v14048_v36 = vrot.slane %v14023_v57, %v14047_v31  ;;  %v18396_v57 = vld [vmem:[#allocation17 + $0x118] sm:$0xff]  }
0x239b   :  { %13979 = vmatpush1.bf16.msra.mxu0 %v18354_v37 }
0x239c   :  { %16051 = vmatprep.subr.bf16.mxu0 %v18357_v40 }
0x239e   :  { %15935 = vmatmul.mubr.msk.bf16.vlgmr.msra.gmra.mrb[20].mxu0 %vm1273_vm1, %v13662_v24  ;;  %v18376_v24 = vld [vmem:[#allocation17 + $0x88] sm:$0xff]  }
0x239f   :  { %16052 = vmatpush3.bf16.msra.mxu0 %v18358_v5 }
0x23a0   :  { %16053 = vmatprep.subr.bf16.mxu0 %v18359_v41  ;;  %v18384_v41 = vld [vmem:[#allocation17 + $0xa8] sm:$0xff]  }
0x23a3   :  { %16054 = vmatpush3.bf16.msra.mxu0 %v18360_v42 }
0x23a4   :  { %16055 = vmatprep.subr.bf16.mxu0 %v18361_v43 }
0x23a7   :  { %16056 = vmatpush3.bf16.msra.mxu0 %v18362_v26  ;;  %v18385_v26 = vld [vmem:[#allocation17 + $0xf0] sm:$0xff]  }
0x23a8   :  { %16057 = vmatprep.subr.bf16.mxu0 %v18363_v16 }
0x23ab   :  { %16058 = vmatpush3.bf16.msra.mxu0 %v18364_v44 }
0x23ac   :  { %16059 = vmatprep.subr.bf16.mxu0 %v18365_v45 }
0x23af   :  { %16060 = vmatpush3.bf16.msra.mxu0 %v18366_v46 }
0x23b0   :  { %16061 = vmatprep.subr.bf16.mxu0 %v18367_v47  ;;  %v18386_v47 = vld [vmem:[#allocation17 + $0xb0] sm:$0xff]  }
0x23b3   :  { %16062 = vmatpush3.bf16.msra.mxu0 %v18368_v48  ;;  %v18387_v48 = vld [vmem:[#allocation17 + $0xf8] sm:$0xff]  }
0x23b4   :  { %16063 = vmatprep.subr.bf16.mxu0 %v18369_v49  ;;  %v18388_v49 = vld [vmem:[#allocation17 + $0xb8] sm:$0xff]  }
0x23b7   :  { %16064 = vmatpush3.bf16.msra.mxu0 %v18370_v50  ;;  %v18389_v50 = vld [vmem:[#allocation17 + $0x140] sm:$0xff]  }
0x23b8   :  { %16065 = vmatprep.subr.bf16.mxu0 %v18371_v51  ;;  %v18390_v51 = vld [vmem:[#allocation17 + $0x100] sm:$0xff]  }
0x23bb   :  { %16066 = vmatpush3.bf16.msra.mxu0 %v18372_v52  ;;  %v18391_v52 = vld [vmem:[#allocation17 + $0x148] sm:$0xff]  }
0x23bc   :  { %16073 = vmatprep.subr.bf16.mxu0 %v18373_v53  ;;  %v18392_v53 = vld [vmem:[#allocation17 + $0x108] sm:$0xff]  }
0x2459   :  { %v13916_v0 = vpop.f32.mrb[16].mxu0  ;;  %v13959_v38 = vpop.f32.mrb[24].mxu1 }
0x245a   :  { %v13918_v6 = vpop.f32.mrb[17].mxu0  ;;  %v13961_v7 = vpop.f32.mrb[25].mxu1  ;;  %v14055_v11 = vadd.f32 %v14028_v63, %v13916_v0  ;;  %v14057_v12 = vadd.f32 %v14036_v33, %v13959_v38  ;;  %v18404_v0 = vld [vmem:[#allocation17 + $0x138] sm:$0xff]  }
0x245b   :  { %v13920_v8 = vpop.f32.mrb[18].mxu0  ;;  %v13963_v9 = vpop.f32.mrb[26].mxu1  ;;  %v14056_v10 = vadd.f32 %v14032_v2, %v13918_v6  ;;  %v14058_v17 = vadd.f32 %v14040_v3, %v13961_v7 }
0x245c   :  { %v14061_v13 = vadd.f32 %v14028_v63, %v13920_v8  ;;  %v14063_v14 = vadd.f32 %v14036_v33, %v13963_v9  ;;  %v13922_v15 = vpop.f32.mrb[19].mxu0  ;;  %v13965_v27 = vpop.f32.mrb[27].mxu1  ;;  %v18402_v63 = vld [vmem:[#allocation17 + $0x130] sm:$0xff]   ;;  %v18403_v33 = vld [vmem:[#allocation17 + $0x178] sm:$0xff]   ;;  %v15936_v9 = vld [vmem:[#allocation19] ss:$0 sm:$0xff] }
0x245d   :  { %v14062_v18 = vadd.f32 %v14032_v2, %v13922_v15  ;;  %v14064_v19 = vadd.f32 %v14040_v3, %v13965_v27 }
0x245e   :  { %v14067_v20 = vpack.c.bf16 %v14061_v13, %v14055_v11  ;;  %v14069_v1 = vpack.c.bf16 %v14063_v14, %v14057_v12 }
0x245f   :  { %v14068_v21 = vpack.c.bf16 %v14062_v18, %v14056_v10  ;;  %v14070_v4 = vpack.c.bf16 %v14064_v19, %v14058_v17 }
0x2461   :  { %14496 = vmatprep.mubr.bf16.mxu0 %v14068_v21 }
0x2462   :  { %14497 = vmatmul.mubr.bf16.vlgmr.msra.gmra.mrb[84].mxu0 %v14067_v20 }
0x2463   :  { %16074 = vmatpush3.bf16.msra.mxu0 %v18374_v22  ;;  %14537 = vmatprep.mubr.bf16.mxu0 %v14070_v4 }
0x2464   :  { %16075 = vmatprep.subr.bf16.mxu0 %v18375_v23 }
0x2467   :  { %16076 = vmatpush3.bf16.msra.mxu0 %v18376_v24 }
0x2468   :  { %16077 = vmatprep.subr.bf16.mxu0 %v18377_v25 }
0x246b   :  { %16078 = vmatpush3.bf16.msra.mxu0 %v18378_v39 }
0x246c   :  { %16079 = vmatprep.subr.bf16.mxu0 %v18379_v28 }
0x246f   :  { %16080 = vmatpush3.bf16.msra.mxu0 %v18380_v29 }
0x2470   :  { %16081 = vmatprep.subr.bf16.mxu0 %v18381_v30 }
0x2471   :  { %v14002_v35 = vpop.f32.mrb[20].mxu0 }
0x2472   :  { %v14059_v37 = vadd.f32 %v14044_v58, %v14002_v35  ;;  %v14004_v40 = vpop.f32.mrb[21].mxu0 }
0x2473   :  { %v14006_v5 = vpop.f32.mrb[22].mxu0  ;;  %16082 = vmatpush3.bf16.msra.mxu0 %v18382_v32  ;;  %v14060_v16 = vadd.f32 %v14048_v36, %v14004_v40 }
0x2474   :  { %v14065_v42 = vadd.f32 %v14044_v58, %v14006_v5  ;;  %v14008_v43 = vpop.f32.mrb[23].mxu0  ;;  %16083 = vmatprep.subr.bf16.mxu0 %v18383_v34  ;;  %v18397_v58 = vld [vmem:[#allocation17 + $0x160] sm:$0xff]  }
0x2475   :  { %v14066_v44 = vadd.f32 %v14048_v36, %v14008_v43 }
0x2476   :  { %v14071_v45 = vpack.c.bf16 %v14065_v42, %v14059_v37 }
0x2477   :  { %v14072_v46 = vpack.c.bf16 %v14066_v44, %v14060_v16  ;;  %16084 = vmatpush3.bf16.msra.mxu0 %v18384_v41 }
0x2478   :  { %16085 = vmatprep.subr.bf16.mxu0 %v18385_v26  ;;  %v15985_v26 = vld [vmem:[#allocation20] ss:$0 sm:$0xff] }
0x247b   :  { %16086 = vmatpush3.bf16.msra.mxu0 %v18386_v47 }
0x247c   :  { %16087 = vmatprep.subr.bf16.mxu0 %v18387_v48 }
0x247f   :  { %16088 = vmatpush3.bf16.msra.mxu0 %v18388_v49 }
0x2480   :  { %16095 = vmatprep.subr.bf16.mxu0 %v18389_v50 }
0x2482   :  { %14538 = vmatmul.mubr.bf16.vlgmr.msra.gmra.mrb[88].mxu0 %v14069_v1 }
0x2483   :  { %16096 = vmatpush3.bf16.msra.mxu0 %v18390_v51  ;;  %14578 = vmatprep.mubr.bf16.mxu0 %v14072_v46 }
0x2484   :  { %16097 = vmatprep.subr.bf16.mxu0 %v18391_v52 }
0x2487   :  { %16098 = vmatpush3.bf16.msra.mxu0 %v18392_v53 }
0x2488   :  { %16099 = vmatprep.subr.bf16.mxu0 %v18393_v54 }
0x248b   :  { %16100 = vmatpush3.bf16.msra.mxu0 %v18394_v55 }
0x248c   :  { %16101 = vmatprep.subr.bf16.mxu0 %v18395_v56 }
0x248f   :  { %16102 = vmatpush3.bf16.msra.mxu0 %v18396_v57 }
0x2490   :  { %16103 = vmatprep.subr.bf16.mxu0 %v18397_v58 }
0x2493   :  { %16104 = vmatpush3.bf16.msra.mxu0 %v18398_v59 }
0x2494   :  { %16105 = vmatprep.subr.bf16.mxu0 %v18399_v60 }
0x2497   :  { %16106 = vmatpush3.bf16.msra.mxu0 %v18400_v61 }
0x2498   :  { %16107 = vmatprep.subr.bf16.mxu0 %v18401_v62 }
0x249b   :  { %16108 = vmatpush3.bf16.msra.mxu0 %v18402_v63 }
0x249c   :  { %16109 = vmatprep.subr.bf16.mxu0 %v18403_v33 }
0x249f   :  { %16110 = vmatpush3.bf16.msra.mxu0 %v18404_v0 }
0x24a2   :  { %14579 = vmatmul.mubr.bf16.vlgmr.msra.gmra.mrb[92].mxu0 %v14071_v45  ;;  %v15986_v45 = vld [vmem:[#allocation22] ss:$0 sm:$0xff] }
0x2535   :  { %v16067_v38 = vpop.f32.mrb[84].mxu0 }
0x2536   :  { %v16068_v2 = vpop.f32.mrb[85].mxu0 }
0x2537   :  { %v16069_v3 = vadd.f32 %v16068_v2, %v16067_v38  ;;  %v16070_v6 = vpop.f32.mrb[86].mxu0 }
0x2538   :  { %v16071_v7 = vpop.f32.mrb[87].mxu0 }
0x2539   :  { %v16072_v8 = vadd.f32 %v16071_v7, %v16070_v6  ;;  %v14499_v13 = vadd.f32 %v16069_v3, %v15936_v9 }
0x253b   :  { %v14502_v10 = vadd.f32 %v16072_v8, %v15936_v9 }
0x2555   :  { %v16089_v11 = vpop.f32.mrb[88].mxu0 }
0x2556   :  { %v16090_v12 = vpop.f32.mrb[89].mxu0 }
0x2557   :  { %v16091_v14 = vadd.f32 %v16090_v12, %v16089_v11  ;;  %v16092_v15 = vpop.f32.mrb[90].mxu0 }
0x2558   :  { %v16093_v27 = vpop.f32.mrb[91].mxu0 }
0x2559   :  { %v14540_v17 = vadd.f32 %v16091_v14, %v14499_v13  ;;  %v16094_v18 = vadd.f32 %v16093_v27, %v16092_v15 }
0x255b   :  { %v14543_v19 = vadd.f32 %v16094_v18, %v14502_v10 }
0x2575   :  { %v16111_v20 = vpop.f32.mrb[92].mxu0 }
0x2576   :  { %v16112_v1 = vpop.f32.mrb[93].mxu0 }
0x2577   :  { %v16113_v21 = vadd.f32 %v16112_v1, %v16111_v20  ;;  %v16114_v4 = vpop.f32.mrb[94].mxu0 }
0x2578   :  { %v16115_v22 = vpop.f32.mrb[95].mxu0 }
0x2579   :  { %v16116_v23 = vadd.f32 %v16115_v22, %v16114_v4  ;;  %v14581_v24 = vadd.f32 %v16113_v21, %v14540_v17 }
0x257b   :  { %14589 = vadd.xlane.f32.xlu0 %v14581_v24  ;;  %v14584_v25 = vadd.f32 %v16116_v23, %v14543_v19 }
0x257d   :  { %14591 = vadd.xlane.f32.xlu1 %v14584_v25 }
0x2608   :  { %v14590_v39 = vpop.xlane.xlu0 %14589 }
0x2609   :  { %v14594_v28 = vmul.f32 0.0078125, %v14590_v39 }
0x260a   :  { %v14592_v29 = vpop.xlane.xlu1 %14591 }
0x260b   :  { %v14596_v30 = vsub.f32 %v14581_v24, %v14594_v28  ;;  %v14595_v31 = vmul.f32 0.0078125, %v14592_v29 }
0x260d   :  { %v14597_v32 = vsub.f32 %v14584_v25, %v14595_v31  ;;  %v14598_v34 = vmul.f32 %v14596_v30, %v14596_v30 }
0x260f   :  { %14600 = vadd.xlane.f32.xlu0 %v14598_v34  ;;  %v14599_v35 = vmul.f32 %v14597_v32, %v14597_v32 }
0x2611   :  { %14602 = vadd.xlane.f32.xlu1 %v14599_v35 }
0x269c   :  { %v14601_v36 = vpop.xlane.xlu0 %14600 }
0x269d   :  { %v14604_v37 = vmul.f32 0.0078125, %v14601_v36 }
0x269e   :  { %v14603_v40 = vpop.xlane.xlu1 %14602 }
0x269f   :  { %v14606_v5 = vadd.f32 1e-05, %v14604_v37  ;;  %v14605_v41 = vmul.f32 0.0078125, %v14603_v40 }
0x26a1   :  { %18469 = vrsqrt.f32 %v14606_v5  ;;  %v14607_v42 = vadd.f32 1e-05, %v14605_v41 }
0x26a3   :  { %18471 = vrsqrt.f32 %v14607_v42 }
0x26ab   :  { %v18470_v43 = vpop.eup %18469 }
0x26ac   :  { %v14610_v16 = vmul.f32 %v18470_v43, %v14596_v30 }
0x26ad   :  { %v18472_v44 = vpop.eup %18471 }
0x26ae   :  { %v14618_v46 = vmul.f32 %v15985_v26, %v14610_v16  ;;  %v14611_v47 = vmul.f32 %v18472_v44, %v14597_v32 }
0x26b0   :  { %v14619_v48 = vmul.f32 %v15985_v26, %v14611_v47  ;;  %v14626_v49 = vadd.f32 %v15986_v45, %v14618_v46 }
0x26b2   :  { %v14627_v50 = vadd.f32 %v15986_v45, %v14619_v48  ;;  %14628 = vst [vmem:[#allocation23] sm:$0xff] %v14626_v49  ;;  %v14630_v51 = vrot.slane %v14626_v49, 4 }
0x26b4   :  { %14629 = vst [vmem:[#allocation23 + $0x8] sm:$0xff] %v14627_v50  ;;  %v14631_v52 = vadd.f32 %v14630_v51, %v14626_v49  ;;  %v14636_v53 = vrot.slane %v14627_v50, 4 }
0x26b5   :  { %18770 = shalt.err (!%p18767_p10)
}
0x26b6   :  { %s18771_s24 = scalar_lea.hbm %s19551_s13, 256 }
0x26b7   :  { %p18772_p11 = scmp.ne.s32.totalorder %s19551_s13, %s18771_s24  ;;  %p18775_p12 = scmp.lt.u32.totalorder %s18771_s24, %s19551_s13 }
0x26b9   :  { %p18777_p13 = pnand %p18775_p12, %p18772_p11 }
0x26bb   :  { %18780 = shalt.err (!%p18777_p13)
}
0x26bc   :  { %s18846_s30 = smov 128   ;;  %s18847_s22 = smov 8   ;;  %v14632_v54 = vrot.slane %v14631_v52, 2  ;;  %v14637_v55 = vadd.f32 %v14636_v53, %v14627_v50  ;;  %vm14647_vm3 = vcmask 1041409  }
0x26bd   :  { %14662 = dma.vmem_to_hbm [thread:$0]  %s14657_s6, 256, %s19551_s13, [#allocation4], %s18846_s30, %s18846_s30, %s18847_s22  }
0x26be   :  { %v14633_v56 = vadd.f32 %v14632_v54, %v14631_v52  ;;  %v14638_v57 = vrot.slane %v14637_v55, 2  ;;  %s18848_s8 = smov [#allocation24]  }
0x26bf   :  { %s14669_s19 = sshll.u32 %s18848_s8, 4  ;;  %s14670_s19 = int_to_ptr.vmem [resolvable:$true] %s14669_s19 }
0x26c0   :  { %v14634_v58 = vrot.slane %v14633_v56, 1  ;;  %v14639_v59 = vadd.f32 %v14638_v57, %v14637_v55  ;;  %s18781_s26 = scalar_lea.vmem %s14670_s19, 32  ;;  %p18786_p1 = scmp.lt.s32.totalorder %s14670_s19, %s14670_s19 }
0x26c1   :  { %p18782_p0 = scmp.ne.s32.totalorder %s14670_s19, %s18781_s26  ;;  %p18787_p2 = scmp.lt.s32.totalorder %s18781_s26, %s18781_s26 }
0x26c2   :  { %v14635_v60 = vadd.f32 %v14634_v58, %v14633_v56  ;;  %v14640_v61 = vrot.slane %v14639_v59, 1 }
0x26c3   :  { %p18788_p3 = por %p18787_p2, %p18786_p1 }
0x26c4   :  { %v14641_v62 = vadd.f32 %v14640_v61, %v14639_v59  ;;  %v14643_v63 = vmul.f32 0.125, %v14635_v60 }
0x26c5   :  { %p18789_p4 = pnand %p18788_p3, %p18782_p0 }
0x26c6   :  { %v14644_v33 = vmul.f32 0.125, %v14641_v62 }
0x26c8   :  { %v14648_v0 = vsel %vm14647_vm3, %v14644_v33, %v14643_v63 }
0x26c9   :  { %14650 = vst [vmem:[#allocation24] sm:$0x3] %v14648_v0 }
0x26ca   :  { %18792 = shalt.err (!%p18789_p4)
}
0x26cb   :  { %s18793_s7 = scalar_lea.hbm %s19552_s14, 32 }
0x26cc   :  { %p18794_p5 = scmp.ne.s32.totalorder %s19552_s14, %s18793_s7  ;;  %p18797_p6 = scmp.lt.u32.totalorder %s18793_s7, %s19552_s14 }
0x26ce   :  { %p18799_p7 = pnand %p18797_p6, %p18794_p5 }
0x26d0   :  { %18802 = shalt.err (!%p18799_p7)
}
0x26d1   :  { %14672 = dma.vmem_to_hbm [thread:$0]  %s14670_s19, 32, %s19552_s14, [#allocation25]  }
0x26d2   :  { %18817 = dma.done.wait [#allocation4], 256  }
0x26d3   :  { %18818 = vsyncadd [#allocation4], 4294967040 }
0x26d4   :  { %18819 = dma.done.wait [#allocation25], 32  }
0x26d5   :  { %18820 = vsyncadd [#allocation25], 4294967264 }
0x26d6   :  { %14679 = vsyncpa [#allocation3], 1 }
0x26d7   :  { %14680 = vsyncpa [#allocation6], 1 }
0x26d8   :  { %14681 = vsyncpa [#allocation9], 1 }
0x26d9   :  { %14682 = vsyncpa [#allocation12], 1 }
0x26da   :  { %14683 = vsyncpa [#allocation15], 1 }
0x26db   :  { %14684 = vsyncpa [#allocation18], 1 }
0x26dc   :  { %14685 = vsyncpa [#allocation21], 1 }
0x26dd   :  { %14686 = vsyncpa [#allocation4], 1 }
0x26de   :  { %14687 = vsyncpa [#allocation25], 1 }

</bundles_post_ra>
